<compile_context>
chip_gen: v7x
topology: tpu7x:2x2x1
jax: 0.10.0
libtpu: 0.0.40
codegen_flags: <defaults>
</compile_context>

<pallas_src>
import jax
import jax.numpy as jnp
from jax.experimental import pallas as pl
from jax.experimental.pallas import tpu as pltpu

Z_DIM = 200
Z_PAD = 256          # z_dim padded to a multiple of 128 lanes
H_DIM = 4096         # encoder feature width (per nn.Linear(4096, z_dim))
M_ALIGN = 16         # batch padding (bf16 sublane packing)


def _round_up(n, m):
    return ((n + m - 1) // m) * m


# ---------------------------------------------------------------------------
# Fully fused VAE forward kernel (single grid step, all weights in VMEM).
# ---------------------------------------------------------------------------
def _vae_fused_kernel(x_ref, eps_ref, we_ref, be_ref, wml_ref, bml_ref,
                      wd_ref, bd_ref, recon_ref, mu_ref, logvar_ref):
    # Encoder + ReLU  (bf16 MXU inputs, f32 accumulation, f32 epilogue).
    h1 = jnp.dot(x_ref[...], we_ref[...], preferred_element_type=jnp.float32)
    h1 = jnp.maximum(h1 + be_ref[...], 0.0)

    # Fused mean/logvar projection: one [16,4096] @ [4096,512] matmul.
    ml = jnp.dot(h1.astype(wml_ref.dtype), wml_ref[...],
                 preferred_element_type=jnp.float32) + bml_ref[...]
    mu = ml[:, :Z_PAD]          # lane-aligned split (256-lane halves)
    logvar = ml[:, Z_PAD:]

    # Reparameterize (training path): z = eps * exp(0.5*logvar) + mu.
    # Padded lanes: weights/bias/eps are zero-padded, so z stays 0 there.
    z = eps_ref[...] * jnp.exp(0.5 * logvar) + mu

    # Decoder + sigmoid.
    rec = jnp.dot(z.astype(wd_ref.dtype), wd_ref[...],
                  preferred_element_type=jnp.float32) + bd_ref[...]

    recon_ref[...] = jax.nn.sigmoid(rec)
    mu_ref[...] = mu
    logvar_ref[...] = logvar


def _fused_vae_call(xp, epsp, we, be, wml, bml, wd, bd):
    m_p, k_in_p = xp.shape
    h_dim = we.shape[1]

    def full(shape):
        return pl.BlockSpec(shape, lambda i: (0, 0))

    return pl.pallas_call(
        _vae_fused_kernel,
        out_shape=(
            jax.ShapeDtypeStruct((m_p, k_in_p), jnp.float32),   # recon (padded)
            jax.ShapeDtypeStruct((m_p, Z_PAD), jnp.float32),    # mu (padded)
            jax.ShapeDtypeStruct((m_p, Z_PAD), jnp.float32),    # logvar (padded)
        ),
        grid_spec=pltpu.PrefetchScalarGridSpec(
            num_scalar_prefetch=0,
            grid=(1,),
            in_specs=[
                full((m_p, k_in_p)),       # x
                full((m_p, Z_PAD)),        # eps
                full((k_in_p, h_dim)),     # W_enc
                full((1, h_dim)),          # b_enc
                full((h_dim, 2 * Z_PAD)),  # W_mean|logvar (fused)
                full((1, 2 * Z_PAD)),      # b_mean|logvar (fused)
                full((Z_PAD, k_in_p)),     # W_dec
                full((1, k_in_p)),         # b_dec
            ],
            out_specs=(
                full((m_p, k_in_p)),
                full((m_p, Z_PAD)),
                full((m_p, Z_PAD)),
            ),
        ),
        compiler_params=pltpu.CompilerParams(
            dimension_semantics=("arbitrary",),
            vmem_limit_bytes=32 * 1024 * 1024,
        ),
    )(xp, epsp, we, be, wml, bml, wd, bd)


# ---------------------------------------------------------------------------
# Parameter init: PyTorch nn.Linear default U(-1/sqrt(fan_in), +), then
# pre-padded / fused / cast to bf16 ONCE (weights stored [in, out]).
# ---------------------------------------------------------------------------
def init_params(key, in_features):
    k_in_p = _round_up(in_features, 128)

    def uniform(k, shape, fan_in):
        bound = 1.0 / float(fan_in) ** 0.5
        return jax.random.uniform(k, shape, jnp.float32, -bound, bound)

    keys = jax.random.split(key, 8)
    w_enc = uniform(keys[0], (in_features, H_DIM), in_features)
    b_enc = uniform(keys[1], (H_DIM,), in_features)
    w_mean = uniform(keys[2], (H_DIM, Z_DIM), H_DIM)
    b_mean = uniform(keys[3], (Z_DIM,), H_DIM)
    w_logv = uniform(keys[4], (H_DIM, Z_DIM), H_DIM)
    b_logv = uniform(keys[5], (Z_DIM,), H_DIM)
    w_dec = uniform(keys[6], (Z_DIM, in_features), Z_DIM)
    b_dec = uniform(keys[7], (in_features,), Z_DIM)

    # Encoder (zero-pad K to 128-multiple), bf16 weights, f32 bias.
    we = jnp.zeros((k_in_p, H_DIM), jnp.bfloat16)
    we = we.at[:in_features].set(w_enc.astype(jnp.bfloat16))
    be = b_enc.reshape(1, H_DIM)

    # Fused mean/logvar weights: [4096, 2*Z_PAD]; each half zero-padded to 256.
    wml = jnp.zeros((H_DIM, 2 * Z_PAD), jnp.bfloat16)
    wml = wml.at[:, :Z_DIM].set(w_mean.astype(jnp.bfloat16))
    wml = wml.at[:, Z_PAD:Z_PAD + Z_DIM].set(w_logv.astype(jnp.bfloat16))
    bml = jnp.zeros((1, 2 * Z_PAD), jnp.float32)
    bml = bml.at[0, :Z_DIM].set(b_mean)
    bml = bml.at[0, Z_PAD:Z_PAD + Z_DIM].set(b_logv)

    # Decoder (zero-pad z rows and output cols).
    wd = jnp.zeros((Z_PAD, k_in_p), jnp.bfloat16)
    wd = wd.at[:Z_DIM, :in_features].set(w_dec.astype(jnp.bfloat16))
    bd = jnp.zeros((1, k_in_p), jnp.float32)
    bd = bd.at[0, :in_features].set(b_dec)

    return {"we": we, "be": be, "wml": wml, "bml": bml, "wd": wd, "bd": bd}


# ---------------------------------------------------------------------------
# Forward: mirrors VAE.forward -> (decode(z), mu, logvar), training reparam.
# ---------------------------------------------------------------------------
def vae_forward(params, x, eps):
    B = x.shape[0]
    x_flat = x.reshape(B, -1)
    in_features = x_flat.shape[1]
    k_in_p = params["we"].shape[0]
    m_p = _round_up(B, M_ALIGN)

    # Per-forward padding only touches the tiny activations (x, eps).
    xp = jnp.zeros((m_p, k_in_p), jnp.bfloat16)
    xp = xp.at[:B, :in_features].set(x_flat.astype(jnp.bfloat16))
    epsp = jnp.zeros((m_p, Z_PAD), jnp.float32)
    epsp = epsp.at[:B, :Z_DIM].set(eps.astype(jnp.float32))

    recon_p, mu_p, logvar_p = _fused_vae_call(
        xp, epsp, params["we"], params["be"], params["wml"], params["bml"],
        params["wd"], params["bd"])

    recon = recon_p[:B, :in_features].reshape(x.shape)
    return recon, mu_p[:B, :Z_DIM], logvar_p[:B, :Z_DIM]


if __name__ == "__main__":
    key = jax.random.PRNGKey(0)
    k_param, k_x, k_eps = jax.random.split(key, 3)

    B, C, H, W = 2, 1, 16, 16                      # small NCHW input
    x = jax.random.normal(k_x, (B, C, H, W), jnp.float32)
    eps = jax.random.normal(k_eps, (B, Z_DIM), jnp.float32)   # reparam noise

    params = init_params(k_param, C * H * W)

    fwd = jax.jit(vae_forward)
    recon, mu, logvar = fwd(params, x, eps)
    jax.block_until_ready((recon, mu, logvar))

    assert recon.shape == (B, C, H, W)
    assert mu.shape == (B, Z_DIM)
    assert logvar.shape == (B, Z_DIM)
    assert bool(jnp.all(jnp.isfinite(recon)))
    assert bool(jnp.all(jnp.isfinite(mu)))
    assert bool(jnp.all(jnp.isfinite(logvar)))
    print("KERNEL_OK")
</pallas_src>

<mosaic_0001>
module attributes {stable_mosaic.version = 11 : i64} {
  func.func @_vae_fused_kernel(%arg0: i32, %arg1: memref<16x256xbf16, #tpu.memory_space<vmem>>, %arg2: memref<16x256xf32, #tpu.memory_space<vmem>>, %arg3: memref<256x4096xbf16, #tpu.memory_space<vmem>>, %arg4: memref<1x4096xf32, #tpu.memory_space<vmem>>, %arg5: memref<4096x512xbf16, #tpu.memory_space<vmem>>, %arg6: memref<1x512xf32, #tpu.memory_space<vmem>>, %arg7: memref<256x256xbf16, #tpu.memory_space<vmem>>, %arg8: memref<1x256xf32, #tpu.memory_space<vmem>>, %arg9: memref<16x256xf32, #tpu.memory_space<vmem>>, %arg10: memref<16x256xf32, #tpu.memory_space<vmem>>, %arg11: memref<16x256xf32, #tpu.memory_space<vmem>>) attributes {dimension_semantics = [#tpu.dimension_semantics<arbitrary>], iteration_bounds = array<i64: 1>, scalar_prefetch = 0 : i64, scratch_operands = 0 : i64, tpu.core_type = #tpu.core_type<tc>, window_params = [{pipeline_mode = #tpu.pipeline_mode<synchronous>, transform_indices = @transform_0, window_bounds = array<i64: 16, 256>}, {pipeline_mode = #tpu.pipeline_mode<synchronous>, transform_indices = @transform_1, window_bounds = array<i64: 16, 256>}, {pipeline_mode = #tpu.pipeline_mode<synchronous>, transform_indices = @transform_2, window_bounds = array<i64: 256, 4096>}, {pipeline_mode = #tpu.pipeline_mode<synchronous>, transform_indices = @transform_3, window_bounds = array<i64: 1, 4096>}, {pipeline_mode = #tpu.pipeline_mode<synchronous>, transform_indices = @transform_4, window_bounds = array<i64: 4096, 512>}, {pipeline_mode = #tpu.pipeline_mode<synchronous>, transform_indices = @transform_5, window_bounds = array<i64: 1, 512>}, {pipeline_mode = #tpu.pipeline_mode<synchronous>, transform_indices = @transform_6, window_bounds = array<i64: 256, 256>}, {pipeline_mode = #tpu.pipeline_mode<synchronous>, transform_indices = @transform_7, window_bounds = array<i64: 1, 256>}, {pipeline_mode = #tpu.pipeline_mode<synchronous>, transform_indices = @transform_8, window_bounds = array<i64: 16, 256>}, {pipeline_mode = #tpu.pipeline_mode<synchronous>, transform_indices = @transform_9, window_bounds = array<i64: 16, 256>}, {pipeline_mode = #tpu.pipeline_mode<synchronous>, transform_indices = @transform_10, window_bounds = array<i64: 16, 256>}]} {
    %c0 = arith.constant 0 : index
    %c0_0 = arith.constant 0 : index
    %0 = vector.load %arg1[%c0, %c0_0] : memref<16x256xbf16, #tpu.memory_space<vmem>>, vector<16x256xbf16>
    %c0_1 = arith.constant 0 : index
    %c0_2 = arith.constant 0 : index
    %1 = vector.load %arg3[%c0_1, %c0_2] : memref<256x4096xbf16, #tpu.memory_space<vmem>>, vector<256x4096xbf16>
    %cst = arith.constant dense<0.000000e+00> : vector<16x4096xf32>
    %2 = tpu.matmul %0, %1, %cst {dimension_numbers = #tpu.dot_dimension_numbers<[1], [0], [0], [1], [0, 0, 1, 1], [], []>} : vector<16x256xbf16>, vector<256x4096xbf16>, vector<16x4096xf32> -> vector<16x4096xf32>
    %c0_3 = arith.constant 0 : index
    %c0_4 = arith.constant 0 : index
    %3 = vector.load %arg4[%c0_3, %c0_4] : memref<1x4096xf32, #tpu.memory_space<vmem>>, vector<1x4096xf32>
    %4 = vector.broadcast %3 : vector<1x4096xf32> to vector<16x4096xf32>
    %5 = arith.addf %2, %4 : vector<16x4096xf32>
    %cst_5 = arith.constant 0.000000e+00 : f32
    %6 = vector.broadcast %cst_5 : f32 to vector<16x4096xf32>
    %7 = arith.maximumf %5, %6 : vector<16x4096xf32>
    %8 = arith.truncf %7 : vector<16x4096xf32> to vector<16x4096xbf16>
    %c0_6 = arith.constant 0 : index
    %c0_7 = arith.constant 0 : index
    %9 = vector.load %arg5[%c0_6, %c0_7] : memref<4096x512xbf16, #tpu.memory_space<vmem>>, vector<4096x512xbf16>
    %cst_8 = arith.constant dense<0.000000e+00> : vector<16x512xf32>
    %10 = tpu.matmul %8, %9, %cst_8 {dimension_numbers = #tpu.dot_dimension_numbers<[1], [0], [0], [1], [0, 0, 1, 1], [], []>} : vector<16x4096xbf16>, vector<4096x512xbf16>, vector<16x512xf32> -> vector<16x512xf32>
    %c0_9 = arith.constant 0 : index
    %c0_10 = arith.constant 0 : index
    %11 = vector.load %arg6[%c0_9, %c0_10] : memref<1x512xf32, #tpu.memory_space<vmem>>, vector<1x512xf32>
    %12 = vector.broadcast %11 : vector<1x512xf32> to vector<16x512xf32>
    %13 = arith.addf %10, %12 : vector<16x512xf32>
    %14 = vector.extract_strided_slice %13 {offsets = [0, 0], sizes = [16, 256], strides = [1, 1]} : vector<16x512xf32> to vector<16x256xf32>
    %15 = vector.extract_strided_slice %13 {offsets = [0, 256], sizes = [16, 256], strides = [1, 1]} : vector<16x512xf32> to vector<16x256xf32>
    %c0_11 = arith.constant 0 : index
    %c0_12 = arith.constant 0 : index
    %16 = vector.load %arg2[%c0_11, %c0_12] : memref<16x256xf32, #tpu.memory_space<vmem>>, vector<16x256xf32>
    %cst_13 = arith.constant 5.000000e-01 : f32
    %17 = vector.broadcast %cst_13 : f32 to vector<16x256xf32>
    %18 = arith.mulf %17, %15 : vector<16x256xf32>
    %19 = math.exp %18 : vector<16x256xf32>
    %20 = arith.mulf %16, %19 : vector<16x256xf32>
    %21 = arith.addf %20, %14 : vector<16x256xf32>
    %22 = arith.truncf %21 : vector<16x256xf32> to vector<16x256xbf16>
    %c0_14 = arith.constant 0 : index
    %c0_15 = arith.constant 0 : index
    %23 = vector.load %arg7[%c0_14, %c0_15] : memref<256x256xbf16, #tpu.memory_space<vmem>>, vector<256x256xbf16>
    %cst_16 = arith.constant dense<0.000000e+00> : vector<16x256xf32>
    %24 = tpu.matmul %22, %23, %cst_16 {dimension_numbers = #tpu.dot_dimension_numbers<[1], [0], [0], [1], [0, 0, 1, 1], [], []>} : vector<16x256xbf16>, vector<256x256xbf16>, vector<16x256xf32> -> vector<16x256xf32>
    %c0_17 = arith.constant 0 : index
    %c0_18 = arith.constant 0 : index
    %25 = vector.load %arg8[%c0_17, %c0_18] : memref<1x256xf32, #tpu.memory_space<vmem>>, vector<1x256xf32>
    %26 = vector.broadcast %25 : vector<1x256xf32> to vector<16x256xf32>
    %27 = arith.addf %24, %26 : vector<16x256xf32>
    %28 = arith.negf %27 : vector<16x256xf32>
    %29 = math.exp %28 : vector<16x256xf32>
    %cst_19 = arith.constant 1.000000e+00 : f32
    %30 = vector.broadcast %cst_19 : f32 to vector<16x256xf32>
    %31 = arith.addf %30, %29 : vector<16x256xf32>
    %32 = arith.divf %30, %31 : vector<16x256xf32>
    %c0_20 = arith.constant 0 : index
    %c0_21 = arith.constant 0 : index
    %33 = vector.load %arg9[%c0_20, %c0_21] : memref<16x256xf32, #tpu.memory_space<vmem>>, vector<16x256xf32>
    tpu.vector_store %arg9[%c0_20, %c0_21], %32 {strides = array<i32>} : memref<16x256xf32, #tpu.memory_space<vmem>>, vector<16x256xf32>,
    %c0_22 = arith.constant 0 : index
    %c0_23 = arith.constant 0 : index
    %34 = vector.load %arg10[%c0_22, %c0_23] : memref<16x256xf32, #tpu.memory_space<vmem>>, vector<16x256xf32>
    tpu.vector_store %arg10[%c0_22, %c0_23], %14 {strides = array<i32>} : memref<16x256xf32, #tpu.memory_space<vmem>>, vector<16x256xf32>,
    %c0_24 = arith.constant 0 : index
    %c0_25 = arith.constant 0 : index
    %35 = vector.load %arg11[%c0_24, %c0_25] : memref<16x256xf32, #tpu.memory_space<vmem>>, vector<16x256xf32>
    tpu.vector_store %arg11[%c0_24, %c0_25], %15 {strides = array<i32>} : memref<16x256xf32, #tpu.memory_space<vmem>>, vector<16x256xf32>,
    return
  }
  func.func @transform_0(%arg0: i32) -> (i32, i32) {
    %c0_i32 = arith.constant 0 : i32
    %c0_i32_0 = arith.constant 0 : i32
    %c0_i32_1 = arith.constant 0 : i32
    return %c0_i32, %c0_i32_0 : i32, i32
  }
  func.func @transform_1(%arg0: i32) -> (i32, i32) {
    %c0_i32 = arith.constant 0 : i32
    %c0_i32_0 = arith.constant 0 : i32
    %c0_i32_1 = arith.constant 0 : i32
    return %c0_i32, %c0_i32_0 : i32, i32
  }
  func.func @transform_2(%arg0: i32) -> (i32, i32) {
    %c0_i32 = arith.constant 0 : i32
    %c0_i32_0 = arith.constant 0 : i32
    %c0_i32_1 = arith.constant 0 : i32
    return %c0_i32, %c0_i32_0 : i32, i32
  }
  func.func @transform_3(%arg0: i32) -> (i32, i32) {
    %c0_i32 = arith.constant 0 : i32
    %c0_i32_0 = arith.constant 0 : i32
    %c0_i32_1 = arith.constant 0 : i32
    return %c0_i32, %c0_i32_0 : i32, i32
  }
  func.func @transform_4(%arg0: i32) -> (i32, i32) {
    %c0_i32 = arith.constant 0 : i32
    %c0_i32_0 = arith.constant 0 : i32
    %c0_i32_1 = arith.constant 0 : i32
    return %c0_i32, %c0_i32_0 : i32, i32
  }
  func.func @transform_5(%arg0: i32) -> (i32, i32) {
    %c0_i32 = arith.constant 0 : i32
    %c0_i32_0 = arith.constant 0 : i32
    %c0_i32_1 = arith.constant 0 : i32
    return %c0_i32, %c0_i32_0 : i32, i32
  }
  func.func @transform_6(%arg0: i32) -> (i32, i32) {
    %c0_i32 = arith.constant 0 : i32
    %c0_i32_0 = arith.constant 0 : i32
    %c0_i32_1 = arith.constant 0 : i32
    return %c0_i32, %c0_i32_0 : i32, i32
  }
  func.func @transform_7(%arg0: i32) -> (i32, i32) {
    %c0_i32 = arith.constant 0 : i32
    %c0_i32_0 = arith.constant 0 : i32
    %c0_i32_1 = arith.constant 0 : i32
    return %c0_i32, %c0_i32_0 : i32, i32
  }
  func.func @transform_8(%arg0: i32) -> (i32, i32) {
    %c0_i32 = arith.constant 0 : i32
    %c0_i32_0 = arith.constant 0 : i32
    %c0_i32_1 = arith.constant 0 : i32
    return %c0_i32, %c0_i32_0 : i32, i32
  }
  func.func @transform_9(%arg0: i32) -> (i32, i32) {
    %c0_i32 = arith.constant 0 : i32
    %c0_i32_0 = arith.constant 0 : i32
    %c0_i32_1 = arith.constant 0 : i32
    return %c0_i32, %c0_i32_0 : i32, i32
  }
  func.func @transform_10(%arg0: i32) -> (i32, i32) {
    %c0_i32 = arith.constant 0 : i32
    %c0_i32_0 = arith.constant 0 : i32
    %c0_i32_1 = arith.constant 0 : i32
    return %c0_i32, %c0_i32_0 : i32, i32
  }
}

</mosaic_0001>

<bundles_post_ra>
// kernel: vae_forward.1
= control target key start
LH: loop header
LB: loop body
LE: loop exit
PB: predicated region body
PF: predicated region fallthrough
CT: control target
= control target key end

     0   :  { %16 = vsyncpa [#allocation3], 0  ;;  %s15998_s0 = inlined_call_operand.vmem [shape: bf16[16,256], index: 0, kind: input, shape index: {}]   ;;  %s15999_s1 = inlined_call_operand.vmem [shape: f32[16,256], index: 1, kind: input, shape index: {}]   ;;  %s16000_s2 = inlined_call_operand.hbm [shape: bf16[256,4096], index: 2, kind: input, shape index: {}]   ;;  %s16001_s3 = inlined_call_operand.hbm [shape: f32[1,4096], index: 3, kind: input, shape index: {}]   ;;  %s16002_s4 = inlined_call_operand.hbm [shape: bf16[4096,512], index: 4, kind: input, shape index: {}]   ;;  %s16003_s5 = inlined_call_operand.hbm [shape: f32[1,512], index: 5, kind: input, shape index: {}]   ;;  %s16004_s6 = inlined_call_operand.hbm [shape: bf16[256,256], index: 6, kind: input, shape index: {}]   ;;  %s16005_s7 = inlined_call_operand.hbm [shape: f32[1,256], index: 7, kind: input, shape index: {}]   ;;  %s16006_s8 = inlined_call_operand.vmem [shape: f32[16,256], index: 8, kind: output, shape index: {0}]   ;;  %s16007_s9 = inlined_call_operand.vmem [shape: f32[16,256], index: 9, kind: output, shape index: {1}]   ;;  %s16008_s10 = inlined_call_operand.vmem [shape: f32[16,256], index: 10, kind: output, shape index: {2}]  }
   0x1   :  { %17 = vsyncpa [#allocation5], 0 }
   0x2   :  { %18 = vsyncpa [#allocation8], 0 }
   0x3   :  { %19 = vsyncpa [#allocation11], 0  ;;  %s15481_s13 = smov [#allocation4]   ;;  %s15482_s15 = smov [#allocation7]  }
   0x4   :  { %s42_s14 = sshll.u32 %s15481_s13, 4  ;;  %s64_s16 = sshll.u32 %s15482_s15, 4  ;;  %s43_s14 = int_to_ptr.vmem [resolvable:$true] %s42_s14  ;;  %s65_s16 = int_to_ptr.vmem [resolvable:$true] %s64_s16 }
   0x5   :  { %s15341_s19 = scalar_lea.hbm %s16001_s3, 512 }
   0x6   :  { %p15342_p0 = scmp.ne.s32.totalorder %s16001_s3, %s15341_s19  ;;  %p15345_p1 = scmp.lt.u32.totalorder %s15341_s19, %s16001_s3 }
   0x8   :  { %p15347_p2 = pnand %p15345_p1, %p15342_p0 }
   0xa   :  { %15350 = shalt.err (!%p15347_p2)
}
   0xb   :  { %s15351_s24 = scalar_lea.vmem %s43_s14, 512  ;;  %p15356_p4 = scmp.lt.s32.totalorder %s43_s14, %s43_s14 }
   0xc   :  { %p15352_p3 = scmp.ne.s32.totalorder %s43_s14, %s15351_s24  ;;  %p15357_p5 = scmp.lt.s32.totalorder %s15351_s24, %s15351_s24 }
   0xe   :  { %p15358_p6 = por %p15357_p5, %p15356_p4 }
  0x10   :  { %p15359_p7 = pnand %p15358_p6, %p15352_p3 }
  0x12   :  { %15362 = shalt.err (!%p15359_p7)
}
  0x13   :  { %45 = dma.hbm_to_vmem [thread:$0]  %s16001_s3, 512, %s43_s14, [#allocation5]  }
  0x14   :  { %s15363_s29 = scalar_lea.hbm %s16003_s5, 64 }
  0x15   :  { %p15364_p8 = scmp.ne.s32.totalorder %s16003_s5, %s15363_s29  ;;  %p15367_p9 = scmp.lt.u32.totalorder %s15363_s29, %s16003_s5 }
  0x17   :  { %p15369_p10 = pnand %p15367_p9, %p15364_p8 }
  0x19   :  { %15372 = shalt.err (!%p15369_p10)
}
  0x1a   :  { %s15373_s15 = scalar_lea.vmem %s65_s16, 64  ;;  %p15378_p12 = scmp.lt.s32.totalorder %s65_s16, %s65_s16 }
  0x1b   :  { %p15374_p11 = scmp.ne.s32.totalorder %s65_s16, %s15373_s15  ;;  %p15379_p13 = scmp.lt.s32.totalorder %s15373_s15, %s15373_s15 }
  0x1d   :  { %p15380_p0 = por %p15379_p13, %p15378_p12 }
  0x1f   :  { %p15381_p1 = pnand %p15380_p0, %p15374_p11 }
  0x21   :  { %15384 = shalt.err (!%p15381_p1)
}
  0x22   :  { %67 = dma.hbm_to_vmem [thread:$0]  %s16003_s5, 64, %s65_s16, [#allocation8]  }
  0x23   :  { %s15483_s17 = smov [#allocation2]   ;;  %s15385_s21 = scalar_lea.hbm %s16000_s2, 65536 }
  0x24   :  { %s29_s18 = sshll.u32 %s15483_s17, 4  ;;  %p15386_p2 = scmp.ne.s32.totalorder %s16000_s2, %s15385_s21  ;;  %s30_s18 = int_to_ptr.vmem [resolvable:$true] %s29_s18 }
  0x25   :  { %p15389_p3 = scmp.lt.u32.totalorder %s15385_s21, %s16000_s2 }
  0x27   :  { %p15391_p4 = pnand %p15389_p3, %p15386_p2 }
  0x29   :  { %15394 = shalt.err (!%p15391_p4)
}
  0x2a   :  { %s15395_s26 = scalar_lea.vmem %s30_s18, 65536  ;;  %p15400_p6 = scmp.lt.s32.totalorder %s30_s18, %s30_s18 }
  0x2b   :  { %p15396_p5 = scmp.ne.s32.totalorder %s30_s18, %s15395_s26  ;;  %p15401_p7 = scmp.lt.s32.totalorder %s15395_s26, %s15395_s26 }
  0x2d   :  { %p15402_p8 = por %p15401_p7, %p15400_p6 }
  0x2f   :  { %p15403_p9 = pnand %p15402_p8, %p15396_p5 }
  0x31   :  { %15406 = shalt.err (!%p15403_p9)
}
  0x32   :  { %s15484_s5 = smov 2048   ;;  %s15485_s16 = smov 128  }
  0x33   :  { %35 = dma.hbm_to_vmem [thread:$0]  %s16000_s2, 65536, %s30_s18, [#allocation3], %s15484_s5, %s15484_s5, %s15485_s16  }
  0x34   :  { %s15486_s29 = smov [#allocation6]   ;;  %s15407_s13 = scalar_lea.hbm %s16002_s4, 131072 }
  0x35   :  { %s51_s30 = sshll.u32 %s15486_s29, 4  ;;  %p15408_p10 = scmp.ne.s32.totalorder %s16002_s4, %s15407_s13  ;;  %s52_s30 = int_to_ptr.vmem [resolvable:$true] %s51_s30 }
  0x36   :  { %p15411_p11 = scmp.lt.u32.totalorder %s15407_s13, %s16002_s4 }
  0x38   :  { %p15413_p12 = pnand %p15411_p11, %p15408_p10 }
  0x3a   :  { %15416 = shalt.err (!%p15413_p12)
}
  0x3b   :  { %s15417_s19 = scalar_lea.vmem %s52_s30, 131072  ;;  %p15422_p0 = scmp.lt.s32.totalorder %s52_s30, %s52_s30 }
  0x3c   :  { %p15418_p13 = scmp.ne.s32.totalorder %s52_s30, %s15417_s19  ;;  %p15423_p1 = scmp.lt.s32.totalorder %s15417_s19, %s15417_s19 }
  0x3e   :  { %p15424_p2 = por %p15423_p1, %p15422_p0 }
  0x40   :  { %p15425_p3 = pnand %p15424_p2, %p15418_p13 }
  0x42   :  { %15428 = shalt.err (!%p15425_p3)
}
  0x43   :  { %s15487_s2 = smov 256   ;;  %s15488_s18 = smov 16  }
  0x44   :  { %57 = dma.hbm_to_vmem [thread:$0]  %s16002_s4, 131072, %s52_s30, [#allocation5], %s15487_s2, %s15487_s2, %s15488_s18  }
  0x45   :  { %s15489_s22 = smov [#allocation9]   ;;  %s15490_s24 = smov [#allocation10]  }
  0x46   :  { %s73_s23 = sshll.u32 %s15489_s22, 4  ;;  %s86_s25 = sshll.u32 %s15490_s24, 4  ;;  %s74_s23 = int_to_ptr.vmem [resolvable:$true] %s73_s23  ;;  %s87_s25 = int_to_ptr.vmem [resolvable:$true] %s86_s25 }
  0x47   :  { %s15429_s27 = scalar_lea.hbm %s16004_s6, 4096 }
  0x48   :  { %p15430_p4 = scmp.ne.s32.totalorder %s16004_s6, %s15429_s27  ;;  %p15433_p5 = scmp.lt.u32.totalorder %s15429_s27, %s16004_s6 }
  0x4a   :  { %p15435_p6 = pnand %p15433_p5, %p15430_p4 }
  0x4c   :  { %15438 = shalt.err (!%p15435_p6)
}
  0x4d   :  { %s15439_s4 = scalar_lea.vmem %s74_s23, 4096  ;;  %p15444_p8 = scmp.lt.s32.totalorder %s74_s23, %s74_s23 }
  0x4e   :  { %p15440_p7 = scmp.ne.s32.totalorder %s74_s23, %s15439_s4  ;;  %p15445_p9 = scmp.lt.s32.totalorder %s15439_s4, %s15439_s4 }
  0x50   :  { %p15446_p10 = por %p15445_p9, %p15444_p8 }
  0x52   :  { %p15447_p11 = pnand %p15446_p10, %p15440_p7 }
  0x54   :  { %15450 = shalt.err (!%p15447_p11)
}
  0x55   :  { %s15491_s30 = smov 8   ;;  %s15451_s17 = scalar_lea.hbm %s16005_s7, 32 }
  0x56   :  { %79 = dma.hbm_to_vmem [thread:$0]  %s16004_s6, 4096, %s74_s23, [#allocation8], %s15485_s16, %s15485_s16, %s15491_s30  }
  0x57   :  { %p15452_p12 = scmp.ne.s32.totalorder %s16005_s7, %s15451_s17  ;;  %p15455_p13 = scmp.lt.u32.totalorder %s15451_s17, %s16005_s7 }
  0x59   :  { %p15457_p0 = pnand %p15455_p13, %p15452_p12 }
  0x5b   :  { %15460 = shalt.err (!%p15457_p0)
}
  0x5c   :  { %s15461_s21 = scalar_lea.vmem %s87_s25, 32  ;;  %p15466_p2 = scmp.lt.s32.totalorder %s87_s25, %s87_s25 }
  0x5d   :  { %p15462_p1 = scmp.ne.s32.totalorder %s87_s25, %s15461_s21  ;;  %p15467_p3 = scmp.lt.s32.totalorder %s15461_s21, %s15461_s21 }
  0x5f   :  { %p15468_p4 = por %p15467_p3, %p15466_p2 }
  0x61   :  { %p15469_p5 = pnand %p15468_p4, %p15462_p1 }
  0x63   :  { %15472 = shalt.err (!%p15469_p5)
}
  0x64   :  { %89 = dma.hbm_to_vmem [thread:$0]  %s16005_s7, 32, %s87_s25, [#allocation11]  }
  0x65   :  { %15473 = dma.done.wait [#allocation3], 65536  }
  0x66   :  { %15474 = vsyncadd [#allocation3], 4294901760 }
  0x67   :  { %15475 = dma.done.wait [#allocation5], 131584  }
  0x68   :  { %15476 = vsyncadd [#allocation5], 4294835712 }
  0x69   :  { %15477 = dma.done.wait [#allocation8], 4160  }
  0x6a   :  { %15478 = vsyncadd [#allocation8], 4294963136 }
  0x6b   :  { %15479 = dma.done.wait [#allocation11], 32  }
  0x6c   :  { %15480 = vsyncadd [#allocation11], 4294967264  ;;  %v110_v0 = vld [vmem:[#allocation2] sm:$0xff]  ;;  %v111_v2 = vld [vmem:[#allocation2 + $0x8] sm:$0xff] }
  0x6d   :  { %v126_v1 = vld [vmem:[#allocation2 + $0x80] sm:$0xff]  ;;  %v127_v4 = vld [vmem:[#allocation2 + $0x88] sm:$0xff] }
  0x6e   :  { %v12014_v3 = vcombine.high %v110_v0, %v126_v1  ;;  %v12013_v5 = vcombine.low %v110_v0, %v126_v1  ;;  %v142_v6 = vld [vmem:[#allocation2 + $0x100] sm:$0xff]  ;;  %v12016_v8 = vcombine.high %v111_v2, %v127_v4  ;;  %v12015_v9 = vcombine.low %v111_v2, %v127_v4  ;;  %v143_v11 = vld [vmem:[#allocation2 + $0x108] sm:$0xff] }
  0x6f   :  { %v158_v7 = vld [vmem:[#allocation2 + $0x180] sm:$0xff]  ;;  %v159_v12 = vld [vmem:[#allocation2 + $0x188] sm:$0xff] }
  0x70   :  { %v12046_v10 = vcombine.high %v142_v6, %v158_v7  ;;  %v174_v13 = vld [vmem:[#allocation2 + $0x200] sm:$0xff]  ;;  %3360 = vmatprep.subr.bf16.mxu0 %v12014_v3  ;;  %v12048_v14 = vcombine.high %v143_v11, %v159_v12  ;;  %v175_v16 = vld [vmem:[#allocation2 + $0x208] sm:$0xff]  ;;  %3403 = vmatprep.subr.bf16.mxu1 %v12016_v8  ;;  %v12045_v18 = vcombine.low %v142_v6, %v158_v7 }
  0x71   :  { %v190_v15 = vld [vmem:[#allocation2 + $0x280] sm:$0xff]  ;;  %v191_v17 = vld [vmem:[#allocation2 + $0x288] sm:$0xff]  ;;  %3361 = vmatpush1.bf16.msra.mxu0 %v12013_v5  ;;  %3404 = vmatpush1.bf16.msra.mxu1 %v12015_v9  ;;  %v12047_v19 = vcombine.low %v143_v11, %v159_v12 }
  0x72   :  { %3362 = vmatprep.subr.bf16.mxu0 %v12046_v10  ;;  %v12078_v20 = vcombine.high %v174_v13, %v190_v15  ;;  %3405 = vmatprep.subr.bf16.mxu1 %v12048_v14  ;;  %v12080_v21 = vcombine.high %v175_v16, %v191_v17  ;;  %v206_v22 = vld [vmem:[#allocation2 + $0x300] sm:$0xff]  ;;  %v207_v24 = vld [vmem:[#allocation2 + $0x308] sm:$0xff]  ;;  %v12077_v26 = vcombine.low %v174_v13, %v190_v15 }
  0x73   :  { %v222_v23 = vld [vmem:[#allocation2 + $0x380] sm:$0xff]  ;;  %v223_v25 = vld [vmem:[#allocation2 + $0x388] sm:$0xff]  ;;  %v12079_v27 = vcombine.low %v175_v16, %v191_v17 }
  0x74   :  { %v12110_v28 = vcombine.high %v206_v22, %v222_v23  ;;  %v12112_v29 = vcombine.high %v207_v24, %v223_v25  ;;  %v238_v30 = vld [vmem:[#allocation2 + $0x400] sm:$0xff]  ;;  %v239_v32 = vld [vmem:[#allocation2 + $0x408] sm:$0xff]  ;;  %v12109_v34 = vcombine.low %v206_v22, %v222_v23  ;;  %v12111_v35 = vcombine.low %v207_v24, %v223_v25 }
  0x75   :  { %3363 = vmatpush1.bf16.msra.mxu0 %v12045_v18  ;;  %3406 = vmatpush1.bf16.msra.mxu1 %v12047_v19  ;;  %v254_v31 = vld [vmem:[#allocation2 + $0x480] sm:$0xff]  ;;  %v255_v33 = vld [vmem:[#allocation2 + $0x488] sm:$0xff] }
  0x76   :  { %3364 = vmatprep.subr.bf16.mxu0 %v12078_v20  ;;  %3407 = vmatprep.subr.bf16.mxu1 %v12080_v21  ;;  %v12142_v36 = vcombine.high %v238_v30, %v254_v31  ;;  %v12144_v37 = vcombine.high %v239_v32, %v255_v33  ;;  %v270_v38 = vld [vmem:[#allocation2 + $0x500] sm:$0xff]  ;;  %v271_v40 = vld [vmem:[#allocation2 + $0x508] sm:$0xff]  ;;  %v12141_v42 = vcombine.low %v238_v30, %v254_v31 }
  0x77   :  { %v286_v39 = vld [vmem:[#allocation2 + $0x580] sm:$0xff]  ;;  %v287_v41 = vld [vmem:[#allocation2 + $0x588] sm:$0xff]  ;;  %v12143_v43 = vcombine.low %v239_v32, %v255_v33 }
  0x78   :  { %v12174_v44 = vcombine.high %v270_v38, %v286_v39  ;;  %v12176_v45 = vcombine.high %v271_v40, %v287_v41  ;;  %v302_v46 = vld [vmem:[#allocation2 + $0x600] sm:$0xff]  ;;  %v303_v48 = vld [vmem:[#allocation2 + $0x608] sm:$0xff]  ;;  %v12173_v50 = vcombine.low %v270_v38, %v286_v39  ;;  %v12175_v51 = vcombine.low %v271_v40, %v287_v41 }
  0x79   :  { %3365 = vmatpush1.bf16.msra.mxu0 %v12077_v26  ;;  %3408 = vmatpush1.bf16.msra.mxu1 %v12079_v27  ;;  %v318_v47 = vld [vmem:[#allocation2 + $0x680] sm:$0xff]  ;;  %v319_v49 = vld [vmem:[#allocation2 + $0x688] sm:$0xff] }
  0x7a   :  { %3366 = vmatprep.subr.bf16.mxu0 %v12110_v28  ;;  %3409 = vmatprep.subr.bf16.mxu1 %v12112_v29  ;;  %v12206_v52 = vcombine.high %v302_v46, %v318_v47  ;;  %v12208_v53 = vcombine.high %v303_v48, %v319_v49  ;;  %v334_v54 = vld [vmem:[#allocation2 + $0x700] sm:$0xff]  ;;  %v335_v57 = vld [vmem:[#allocation2 + $0x708] sm:$0xff]  ;;  %v12205_v59 = vcombine.low %v302_v46, %v318_v47 }
  0x7b   :  { %v350_v55 = vld [vmem:[#allocation2 + $0x780] sm:$0xff]  ;;  %v351_v58 = vld [vmem:[#allocation2 + $0x788] sm:$0xff]  ;;  %v12207_v60 = vcombine.low %v303_v48, %v319_v49 }
  0x7c   :  { %v15625_v56 = vld [vmem:[%s15998_s0 + $0x4] ss:$8 sps:$4 sm:$0xff]   ;;  %v12238_v61 = vcombine.high %v334_v54, %v350_v55  ;;  %v12240_v62 = vcombine.high %v335_v57, %v351_v58  ;;  %v12237_v3 = vcombine.low %v334_v54, %v350_v55  ;;  %v12239_v4 = vcombine.low %v335_v57, %v351_v58 }
  0x7d   :  { %3367 = vmatpush1.bf16.msra.mxu0 %v12109_v34  ;;  %3410 = vmatpush1.bf16.msra.mxu1 %v12111_v35  ;;  %v366_v63 = vld [vmem:[#allocation2 + $0x800] sm:$0xff]  ;;  %v367_v1 = vld [vmem:[#allocation2 + $0x808] sm:$0xff] }
  0x7e   :  { %3368 = vmatprep.subr.bf16.mxu0 %v12142_v36  ;;  %3411 = vmatprep.subr.bf16.mxu1 %v12144_v37  ;;  %v382_v0 = vld [vmem:[#allocation2 + $0x880] sm:$0xff]  ;;  %v383_v2 = vld [vmem:[#allocation2 + $0x888] sm:$0xff] }
  0x7f   :  { %3435 = vmatprep.mubr.bf16.mxu1 %v15625_v56  ;;  %3392 = vmatprep.mubr.bf16.mxu0 %v15625_v56  ;;  %v12270_v5 = vcombine.high %v366_v63, %v382_v0  ;;  %v12272_v6 = vcombine.high %v367_v1, %v383_v2  ;;  %v398_v7 = vld [vmem:[#allocation2 + $0x900] sm:$0xff]  ;;  %v399_v9 = vld [vmem:[#allocation2 + $0x908] sm:$0xff]  ;;  %v12269_v11 = vcombine.low %v366_v63, %v382_v0  ;;  %v112_v0 = vld [vmem:[#allocation2 + $0x10] sm:$0xff] }
  0x80   :  { %v414_v8 = vld [vmem:[#allocation2 + $0x980] sm:$0xff]  ;;  %v415_v10 = vld [vmem:[#allocation2 + $0x988] sm:$0xff]  ;;  %v12271_v12 = vcombine.low %v367_v1, %v383_v2  ;;  %v128_v1 = vld [vmem:[#allocation2 + $0x90] sm:$0xff] }
  0x81   :  { %3369 = vmatpush1.bf16.msra.mxu0 %v12141_v42  ;;  %3412 = vmatpush1.bf16.msra.mxu1 %v12143_v43  ;;  %v12302_v13 = vcombine.high %v398_v7, %v414_v8  ;;  %v12304_v14 = vcombine.high %v399_v9, %v415_v10  ;;  %v430_v15 = vld [vmem:[#allocation2 + $0xa00] sm:$0xff]  ;;  %v431_v17 = vld [vmem:[#allocation2 + $0xa08] sm:$0xff]  ;;  %v12301_v19 = vcombine.low %v398_v7, %v414_v8  ;;  %v113_v2 = vld [vmem:[#allocation2 + $0x18] sm:$0xff] }
  0x82   :  { %3370 = vmatprep.subr.bf16.mxu0 %v12174_v44  ;;  %3413 = vmatprep.subr.bf16.mxu1 %v12176_v45  ;;  %v446_v16 = vld [vmem:[#allocation2 + $0xa80] sm:$0xff]  ;;  %v447_v18 = vld [vmem:[#allocation2 + $0xa88] sm:$0xff]  ;;  %v12303_v20 = vcombine.low %v399_v9, %v415_v10  ;;  %v144_v8 = vld [vmem:[#allocation2 + $0x110] sm:$0xff] }
  0x83   :  { %v12334_v21 = vcombine.high %v430_v15, %v446_v16  ;;  %v12336_v22 = vcombine.high %v431_v17, %v447_v18  ;;  %v462_v23 = vld [vmem:[#allocation2 + $0xb00] sm:$0xff]  ;;  %v463_v25 = vld [vmem:[#allocation2 + $0xb08] sm:$0xff]  ;;  %v12333_v27 = vcombine.low %v430_v15, %v446_v16  ;;  %v12335_v28 = vcombine.low %v431_v17, %v447_v18  ;;  %v160_v9 = vld [vmem:[#allocation2 + $0x190] sm:$0xff] }
  0x84   :  { %v478_v24 = vld [vmem:[#allocation2 + $0xb80] sm:$0xff]  ;;  %v479_v26 = vld [vmem:[#allocation2 + $0xb88] sm:$0xff]  ;;  %v12050_v15 = vcombine.high %v144_v8, %v160_v9  ;;  %v176_v16 = vld [vmem:[#allocation2 + $0x210] sm:$0xff] }
  0x85   :  { %3371 = vmatpush1.bf16.msra.mxu0 %v12173_v50  ;;  %3414 = vmatpush1.bf16.msra.mxu1 %v12175_v51  ;;  %v12366_v29 = vcombine.high %v462_v23, %v478_v24  ;;  %v12368_v30 = vcombine.high %v463_v25, %v479_v26  ;;  %v494_v31 = vld [vmem:[#allocation2 + $0xc00] sm:$0xff]  ;;  %v495_v33 = vld [vmem:[#allocation2 + $0xc08] sm:$0xff]  ;;  %v12365_v35 = vcombine.low %v462_v23, %v478_v24  ;;  %v192_v17 = vld [vmem:[#allocation2 + $0x290] sm:$0xff] }
  0x86   :  { %3372 = vmatprep.subr.bf16.mxu0 %v12206_v52  ;;  %3415 = vmatprep.subr.bf16.mxu1 %v12208_v53  ;;  %v510_v32 = vld [vmem:[#allocation2 + $0xc80] sm:$0xff]  ;;  %v511_v34 = vld [vmem:[#allocation2 + $0xc88] sm:$0xff]  ;;  %v12367_v36 = vcombine.low %v463_v25, %v479_v26  ;;  %v12082_v23 = vcombine.high %v176_v16, %v192_v17  ;;  %v208_v24 = vld [vmem:[#allocation2 + $0x310] sm:$0xff] }
  0x87   :  { %v12398_v37 = vcombine.high %v494_v31, %v510_v32  ;;  %v12400_v38 = vcombine.high %v495_v33, %v511_v34  ;;  %v526_v39 = vld [vmem:[#allocation2 + $0xd00] sm:$0xff]  ;;  %v527_v41 = vld [vmem:[#allocation2 + $0xd08] sm:$0xff]  ;;  %v12397_v43 = vcombine.low %v494_v31, %v510_v32  ;;  %v12399_v44 = vcombine.low %v495_v33, %v511_v34  ;;  %v224_v25 = vld [vmem:[#allocation2 + $0x390] sm:$0xff] }
  0x88   :  { %v542_v40 = vld [vmem:[#allocation2 + $0xd80] sm:$0xff]  ;;  %v543_v42 = vld [vmem:[#allocation2 + $0xd88] sm:$0xff]  ;;  %v209_v26 = vld [vmem:[#allocation2 + $0x318] sm:$0xff]  ;;  %v12114_v31 = vcombine.high %v208_v24, %v224_v25 }
  0x89   :  { %3373 = vmatpush1.bf16.msra.mxu0 %v12205_v59  ;;  %3416 = vmatpush1.bf16.msra.mxu1 %v12207_v60  ;;  %v12430_v45 = vcombine.high %v526_v39, %v542_v40  ;;  %v12432_v46 = vcombine.high %v527_v41, %v543_v42  ;;  %v558_v47 = vld [vmem:[#allocation2 + $0xe00] sm:$0xff]  ;;  %v559_v49 = vld [vmem:[#allocation2 + $0xe08] sm:$0xff]  ;;  %v12429_v51 = vcombine.low %v526_v39, %v542_v40  ;;  %v240_v32 = vld [vmem:[#allocation2 + $0x410] sm:$0xff] }
  0x8a   :  { %3374 = vmatprep.subr.bf16.mxu0 %v12238_v61  ;;  %3417 = vmatprep.subr.bf16.mxu1 %v12240_v62  ;;  %v574_v48 = vld [vmem:[#allocation2 + $0xe80] sm:$0xff]  ;;  %v575_v50 = vld [vmem:[#allocation2 + $0xe88] sm:$0xff]  ;;  %v12431_v52 = vcombine.low %v527_v41, %v543_v42  ;;  %v256_v33 = vld [vmem:[#allocation2 + $0x490] sm:$0xff] }
  0x8b   :  { %v12462_v53 = vcombine.high %v558_v47, %v574_v48  ;;  %v12464_v54 = vcombine.high %v559_v49, %v575_v50  ;;  %v590_v55 = vld [vmem:[#allocation2 + $0xf00] sm:$0xff]  ;;  %v591_v58 = vld [vmem:[#allocation2 + $0xf08] sm:$0xff]  ;;  %v12461_v60 = vcombine.low %v558_v47, %v574_v48  ;;  %v12463_v61 = vcombine.low %v559_v49, %v575_v50  ;;  %v241_v34 = vld [vmem:[#allocation2 + $0x418] sm:$0xff] }
  0x8c   :  { %v606_v57 = vld [vmem:[#allocation2 + $0xf80] sm:$0xff]  ;;  %v607_v59 = vld [vmem:[#allocation2 + $0xf88] sm:$0xff]  ;;  %v12146_v39 = vcombine.high %v240_v32, %v256_v33  ;;  %v272_v40 = vld [vmem:[#allocation2 + $0x510] sm:$0xff] }
  0x8d   :  { %3375 = vmatpush1.bf16.msra.mxu0 %v12237_v3  ;;  %3418 = vmatpush1.bf16.msra.mxu1 %v12239_v4  ;;  %v12494_v62 = vcombine.high %v590_v55, %v606_v57  ;;  %v12496_v63 = vcombine.high %v591_v58, %v607_v59  ;;  %v129_v3 = vld [vmem:[#allocation2 + $0x98] sm:$0xff]  ;;  %v12493_v4 = vcombine.low %v590_v55, %v606_v57  ;;  %v15632_v10 = vld [vmem:[%s15998_s0] ss:$8 sps:$4 sm:$0xff]   ;;  %v288_v41 = vld [vmem:[#allocation2 + $0x590] sm:$0xff] }
  0x8e   :  { %3376 = vmatprep.subr.bf16.mxu0 %v12270_v5  ;;  %3419 = vmatprep.subr.bf16.mxu1 %v12272_v6  ;;  %v12495_v5 = vcombine.low %v591_v58, %v607_v59  ;;  %v12018_v6 = vcombine.high %v112_v0, %v128_v1  ;;  %v12020_v7 = vcombine.high %v113_v2, %v129_v3  ;;  %v273_v42 = vld [vmem:[#allocation2 + $0x518] sm:$0xff]  ;;  %v304_v48 = vld [vmem:[#allocation2 + $0x610] sm:$0xff] }
  0x8f   :  { %v12178_v47 = vcombine.high %v272_v40, %v288_v41  ;;  %v320_v49 = vld [vmem:[#allocation2 + $0x690] sm:$0xff]  ;;  %v305_v50 = vld [vmem:[#allocation2 + $0x618] sm:$0xff] }
  0x90   :  { %v12210_v55 = vcombine.high %v304_v48, %v320_v49  ;;  %v336_v57 = vld [vmem:[#allocation2 + $0x710] sm:$0xff]  ;;  %v337_v59 = vld [vmem:[#allocation2 + $0x718] sm:$0xff] }
  0x91   :  { %3377 = vmatpush1.bf16.msra.mxu0 %v12269_v11  ;;  %3420 = vmatpush1.bf16.msra.mxu1 %v12271_v12  ;;  %v145_v11 = vld [vmem:[#allocation2 + $0x118] sm:$0xff]  ;;  %v352_v58 = vld [vmem:[#allocation2 + $0x790] sm:$0xff] }
  0x92   :  { %3378 = vmatprep.subr.bf16.mxu0 %v12302_v13  ;;  %3421 = vmatprep.subr.bf16.mxu1 %v12304_v14  ;;  %v161_v12 = vld [vmem:[#allocation2 + $0x198] sm:$0xff]  ;;  %v12017_v13 = vcombine.low %v112_v0, %v128_v1  ;;  %v12019_v14 = vcombine.low %v113_v2, %v129_v3  ;;  %v12242_v0 = vcombine.high %v336_v57, %v352_v58  ;;  %v368_v1 = vld [vmem:[#allocation2 + $0x810] sm:$0xff] }
  0x93   :  { %v12052_v18 = vcombine.high %v145_v11, %v161_v12  ;;  %v384_v2 = vld [vmem:[#allocation2 + $0x890] sm:$0xff]  ;;  %v369_v3 = vld [vmem:[#allocation2 + $0x818] sm:$0xff] }
  0x95   :  { %3379 = vmatpush1.bf16.msra.mxu0 %v12301_v19  ;;  %3422 = vmatpush1.bf16.msra.mxu1 %v12303_v20  ;;  %v177_v19 = vld [vmem:[#allocation2 + $0x218] sm:$0xff] }
  0x96   :  { %3380 = vmatprep.subr.bf16.mxu0 %v12334_v21  ;;  %3423 = vmatprep.subr.bf16.mxu1 %v12336_v22  ;;  %v193_v20 = vld [vmem:[#allocation2 + $0x298] sm:$0xff]  ;;  %v12049_v21 = vcombine.low %v144_v8, %v160_v9  ;;  %v12051_v22 = vcombine.low %v145_v11, %v161_v12  ;;  %v12274_v8 = vcombine.high %v368_v1, %v384_v2  ;;  %v400_v9 = vld [vmem:[#allocation2 + $0x910] sm:$0xff] }
  0x97   :  { %v416_v11 = vld [vmem:[#allocation2 + $0x990] sm:$0xff]  ;;  %v401_v12 = vld [vmem:[#allocation2 + $0x918] sm:$0xff] }
  0x99   :  { %3381 = vmatpush1.bf16.msra.mxu0 %v12333_v27  ;;  %3424 = vmatpush1.bf16.msra.mxu1 %v12335_v28  ;;  %v12084_v27 = vcombine.high %v177_v19, %v193_v20  ;;  %v225_v28 = vld [vmem:[#allocation2 + $0x398] sm:$0xff] }
  0x9a   :  { %3382 = vmatprep.subr.bf16.mxu0 %v12366_v29  ;;  %3425 = vmatprep.subr.bf16.mxu1 %v12368_v30  ;;  %v12081_v29 = vcombine.low %v176_v16, %v192_v17  ;;  %v12083_v30 = vcombine.low %v177_v19, %v193_v20  ;;  %v12306_v17 = vcombine.high %v400_v9, %v416_v11  ;;  %v448_v19 = vld [vmem:[#allocation2 + $0xa90] sm:$0xff]  ;;  %v433_v20 = vld [vmem:[#allocation2 + $0xa18] sm:$0xff] }
  0x9d   :  { %3383 = vmatpush1.bf16.msra.mxu0 %v12365_v35  ;;  %3426 = vmatpush1.bf16.msra.mxu1 %v12367_v36  ;;  %v12116_v35 = vcombine.high %v209_v26, %v225_v28  ;;  %v257_v36 = vld [vmem:[#allocation2 + $0x498] sm:$0xff] }
  0x9e   :  { %3384 = vmatprep.subr.bf16.mxu0 %v12398_v37  ;;  %3427 = vmatprep.subr.bf16.mxu1 %v12400_v38  ;;  %v12113_v37 = vcombine.low %v208_v24, %v224_v25  ;;  %v12115_v38 = vcombine.low %v209_v26, %v225_v28  ;;  %v464_v26 = vld [vmem:[#allocation2 + $0xb10] sm:$0xff]  ;;  %v465_v28 = vld [vmem:[#allocation2 + $0xb18] sm:$0xff] }
  0xa1   :  { %3385 = vmatpush1.bf16.msra.mxu0 %v12397_v43  ;;  %3428 = vmatpush1.bf16.msra.mxu1 %v12399_v44  ;;  %v12148_v43 = vcombine.high %v241_v34, %v257_v36  ;;  %v289_v44 = vld [vmem:[#allocation2 + $0x598] sm:$0xff] }
  0xa2   :  { %3386 = vmatprep.subr.bf16.mxu0 %v12430_v45  ;;  %3429 = vmatprep.subr.bf16.mxu1 %v12432_v46  ;;  %v12145_v45 = vcombine.low %v240_v32, %v256_v33  ;;  %v12147_v46 = vcombine.low %v241_v34, %v257_v36  ;;  %v496_v34 = vld [vmem:[#allocation2 + $0xc10] sm:$0xff]  ;;  %v497_v36 = vld [vmem:[#allocation2 + $0xc18] sm:$0xff] }
  0xa5   :  { %3387 = vmatpush1.bf16.msra.mxu0 %v12429_v51  ;;  %3430 = vmatpush1.bf16.msra.mxu1 %v12431_v52  ;;  %v12180_v51 = vcombine.high %v273_v42, %v289_v44  ;;  %v321_v52 = vld [vmem:[#allocation2 + $0x698] sm:$0xff] }
  0xa6   :  { %3388 = vmatprep.subr.bf16.mxu0 %v12462_v53  ;;  %3431 = vmatprep.subr.bf16.mxu1 %v12464_v54  ;;  %v12177_v53 = vcombine.low %v272_v40, %v288_v41  ;;  %v12179_v54 = vcombine.low %v273_v42, %v289_v44  ;;  %v528_v42 = vld [vmem:[#allocation2 + $0xd10] sm:$0xff]  ;;  %v529_v44 = vld [vmem:[#allocation2 + $0xd18] sm:$0xff] }
  0xa9   :  { %3389 = vmatpush1.bf16.msra.mxu0 %v12461_v60  ;;  %3432 = vmatpush1.bf16.msra.mxu1 %v12463_v61  ;;  %v12212_v60 = vcombine.high %v305_v50, %v321_v52  ;;  %v353_v61 = vld [vmem:[#allocation2 + $0x798] sm:$0xff] }
  0xaa   :  { %3390 = vmatprep.subr.bf16.mxu0 %v12494_v62  ;;  %3433 = vmatprep.subr.bf16.mxu1 %v12496_v63  ;;  %v12209_v62 = vcombine.low %v304_v48, %v320_v49  ;;  %v12211_v63 = vcombine.low %v305_v50, %v321_v52  ;;  %v560_v50 = vld [vmem:[#allocation2 + $0xe10] sm:$0xff]  ;;  %v561_v52 = vld [vmem:[#allocation2 + $0xe18] sm:$0xff] }
  0xad   :  { %3391 = vmatpush1.bf16.msra.mxu0 %v12493_v4  ;;  %3434 = vmatpush1.bf16.msra.mxu1 %v12495_v5  ;;  %v12244_v4 = vcombine.high %v337_v59, %v353_v61  ;;  %v385_v5 = vld [vmem:[#allocation2 + $0x898] sm:$0xff] }
  0xae   :  { %3446 = vmatprep.subr.bf16.mxu0 %v12018_v6  ;;  %3489 = vmatprep.subr.bf16.mxu1 %v12020_v7  ;;  %v12241_v6 = vcombine.low %v336_v57, %v352_v58  ;;  %v12243_v7 = vcombine.low %v337_v59, %v353_v61  ;;  %v12275_v16 = vcombine.low %v369_v3, %v385_v5  ;;  %v592_v59 = vld [vmem:[#allocation2 + $0xf10] sm:$0xff]  ;;  %v593_v61 = vld [vmem:[#allocation2 + $0xf18] sm:$0xff] }
  0xb0   :  { %3393 = vmatmul.mubr.bf16.vlgmr.msra.gmra.mrb[0].mxu0 %v15632_v10  ;;  %3436 = vmatmul.mubr.bf16.vlgmr.msra.gmra.mrb[0].mxu1 %v15632_v10 }
  0xb1   :  { %3447 = vmatpush1.bf16.msra.mxu0 %v12017_v13  ;;  %3490 = vmatpush1.bf16.msra.mxu1 %v12019_v14  ;;  %v12276_v13 = vcombine.high %v369_v3, %v385_v5  ;;  %v417_v14 = vld [vmem:[#allocation2 + $0x998] sm:$0xff]  ;;  %v114_v3 = vld [vmem:[#allocation2 + $0x20] sm:$0xff]  ;;  %v115_v5 = vld [vmem:[#allocation2 + $0x28] sm:$0xff] }
  0xb2   :  { %3448 = vmatprep.subr.bf16.mxu0 %v12050_v15  ;;  %3491 = vmatprep.subr.bf16.mxu1 %v12052_v18  ;;  %v12273_v15 = vcombine.low %v368_v1, %v384_v2  ;;  %v432_v18 = vld [vmem:[#allocation2 + $0xa10] sm:$0xff]  ;;  %v12307_v24 = vcombine.low %v401_v12, %v417_v14 }
  0xb3   :  { %3521 = vmatprep.mubr.bf16.mxu1 %v15625_v56  ;;  %3478 = vmatprep.mubr.bf16.mxu0 %v15625_v56  ;;  %v12338_v25 = vcombine.high %v432_v18, %v448_v19 }
  0xb5   :  { %3449 = vmatpush1.bf16.msra.mxu0 %v12049_v21  ;;  %3492 = vmatpush1.bf16.msra.mxu1 %v12051_v22  ;;  %v12308_v21 = vcombine.high %v401_v12, %v417_v14  ;;  %v449_v22 = vld [vmem:[#allocation2 + $0xa98] sm:$0xff]  ;;  %v146_v12 = vld [vmem:[#allocation2 + $0x120] sm:$0xff]  ;;  %v147_v14 = vld [vmem:[#allocation2 + $0x128] sm:$0xff] }
  0xb6   :  { %3450 = vmatprep.subr.bf16.mxu0 %v12082_v23  ;;  %3493 = vmatprep.subr.bf16.mxu1 %v12084_v27  ;;  %v12305_v23 = vcombine.low %v400_v9, %v416_v11  ;;  %v480_v27 = vld [vmem:[#allocation2 + $0xb90] sm:$0xff]  ;;  %v12339_v32 = vcombine.low %v433_v20, %v449_v22 }
  0xb7   :  { %v12370_v33 = vcombine.high %v464_v26, %v480_v27 }
  0xb9   :  { %3451 = vmatpush1.bf16.msra.mxu0 %v12081_v29  ;;  %3494 = vmatpush1.bf16.msra.mxu1 %v12083_v30  ;;  %v12340_v29 = vcombine.high %v433_v20, %v449_v22  ;;  %v481_v30 = vld [vmem:[#allocation2 + $0xb98] sm:$0xff]  ;;  %v178_v20 = vld [vmem:[#allocation2 + $0x220] sm:$0xff]  ;;  %v179_v22 = vld [vmem:[#allocation2 + $0x228] sm:$0xff] }
  0xba   :  { %3452 = vmatprep.subr.bf16.mxu0 %v12114_v31  ;;  %3495 = vmatprep.subr.bf16.mxu1 %v12116_v35  ;;  %v12337_v31 = vcombine.low %v432_v18, %v448_v19  ;;  %v512_v35 = vld [vmem:[#allocation2 + $0xc90] sm:$0xff]  ;;  %v12371_v40 = vcombine.low %v465_v28, %v481_v30 }
  0xbb   :  { %v12402_v41 = vcombine.high %v496_v34, %v512_v35 }
  0xbd   :  { %3453 = vmatpush1.bf16.msra.mxu0 %v12113_v37  ;;  %3496 = vmatpush1.bf16.msra.mxu1 %v12115_v38  ;;  %v12372_v37 = vcombine.high %v465_v28, %v481_v30  ;;  %v513_v38 = vld [vmem:[#allocation2 + $0xc98] sm:$0xff]  ;;  %v210_v28 = vld [vmem:[#allocation2 + $0x320] sm:$0xff]  ;;  %v211_v30 = vld [vmem:[#allocation2 + $0x328] sm:$0xff] }
  0xbe   :  { %3454 = vmatprep.subr.bf16.mxu0 %v12146_v39  ;;  %3497 = vmatprep.subr.bf16.mxu1 %v12148_v43  ;;  %v12369_v39 = vcombine.low %v464_v26, %v480_v27  ;;  %v544_v43 = vld [vmem:[#allocation2 + $0xd90] sm:$0xff]  ;;  %v12403_v48 = vcombine.low %v497_v36, %v513_v38 }
  0xbf   :  { %v12434_v49 = vcombine.high %v528_v42, %v544_v43 }
  0xc1   :  { %3455 = vmatpush1.bf16.msra.mxu0 %v12145_v45  ;;  %3498 = vmatpush1.bf16.msra.mxu1 %v12147_v46  ;;  %v12404_v45 = vcombine.high %v497_v36, %v513_v38  ;;  %v545_v46 = vld [vmem:[#allocation2 + $0xd98] sm:$0xff]  ;;  %v258_v36 = vld [vmem:[#allocation2 + $0x4a0] sm:$0xff] }
  0xc2   :  { %3456 = vmatprep.subr.bf16.mxu0 %v12178_v47  ;;  %3499 = vmatprep.subr.bf16.mxu1 %v12180_v51  ;;  %v12401_v47 = vcombine.low %v496_v34, %v512_v35  ;;  %v576_v51 = vld [vmem:[#allocation2 + $0xe90] sm:$0xff]  ;;  %v12435_v57 = vcombine.low %v529_v44, %v545_v46  ;;  %v242_v35 = vld [vmem:[#allocation2 + $0x420] sm:$0xff] }
  0xc3   :  { %v12466_v58 = vcombine.high %v560_v50, %v576_v51 }
  0xc5   :  { %3457 = vmatpush1.bf16.msra.mxu0 %v12177_v53  ;;  %3500 = vmatpush1.bf16.msra.mxu1 %v12179_v54  ;;  %v12436_v53 = vcombine.high %v529_v44, %v545_v46  ;;  %v577_v54 = vld [vmem:[#allocation2 + $0xe98] sm:$0xff]  ;;  %v275_v44 = vld [vmem:[#allocation2 + $0x528] sm:$0xff] }
  0xc6   :  { %3458 = vmatprep.subr.bf16.mxu0 %v12210_v55  ;;  %3501 = vmatprep.subr.bf16.mxu1 %v12212_v60  ;;  %v12433_v55 = vcombine.low %v528_v42, %v544_v43  ;;  %v608_v60 = vld [vmem:[#allocation2 + $0xf90] sm:$0xff]  ;;  %v12467_v1 = vcombine.low %v561_v52, %v577_v54  ;;  %v12150_v42 = vcombine.high %v242_v35, %v258_v36  ;;  %v274_v43 = vld [vmem:[#allocation2 + $0x520] sm:$0xff]  ;;  %v291_v46 = vld [vmem:[#allocation2 + $0x5a8] sm:$0xff] }
  0xc7   :  { %v12498_v2 = vcombine.high %v592_v59, %v608_v60 }
  0xc9   :  { %3459 = vmatpush1.bf16.msra.mxu0 %v12209_v62  ;;  %3502 = vmatpush1.bf16.msra.mxu1 %v12211_v63  ;;  %v12468_v62 = vcombine.high %v561_v52, %v577_v54  ;;  %v609_v63 = vld [vmem:[#allocation2 + $0xf98] sm:$0xff]  ;;  %v307_v52 = vld [vmem:[#allocation2 + $0x628] sm:$0xff] }
  0xca   :  { %3460 = vmatprep.subr.bf16.mxu0 %v12242_v0  ;;  %3503 = vmatprep.subr.bf16.mxu1 %v12244_v4  ;;  %v12465_v0 = vcombine.low %v560_v50, %v576_v51  ;;  %v130_v4 = vld [vmem:[#allocation2 + $0xa0] sm:$0xff]  ;;  %v12499_v9 = vcombine.low %v593_v61, %v609_v63  ;;  %v323_v54 = vld [vmem:[#allocation2 + $0x6a8] sm:$0xff] }
  0xcb   :  { %v12022_v11 = vcombine.high %v114_v3, %v130_v4  ;;  %v306_v50 = vld [vmem:[#allocation2 + $0x620] sm:$0xff] }
  0xcc   :  { %v322_v51 = vld [vmem:[#allocation2 + $0x6a0] sm:$0xff] }
  0xcd   :  { %3461 = vmatpush1.bf16.msra.mxu0 %v12241_v6  ;;  %3504 = vmatpush1.bf16.msra.mxu1 %v12243_v7  ;;  %v12500_v6 = vcombine.high %v593_v61, %v609_v63  ;;  %v131_v7 = vld [vmem:[#allocation2 + $0xa8] sm:$0xff]  ;;  %v12216_v61 = vcombine.high %v307_v52, %v323_v54 }
  0xce   :  { %3462 = vmatprep.subr.bf16.mxu0 %v12274_v8  ;;  %3505 = vmatprep.subr.bf16.mxu1 %v12276_v13  ;;  %v12497_v8 = vcombine.low %v592_v59, %v608_v60  ;;  %v162_v13 = vld [vmem:[#allocation2 + $0x1a0] sm:$0xff]  ;;  %v12023_v18 = vcombine.low %v115_v5, %v131_v7  ;;  %v355_v63 = vld [vmem:[#allocation2 + $0x7a8] sm:$0xff] }
  0xcf   :  { %v12054_v19 = vcombine.high %v146_v12, %v162_v13  ;;  %v338_v59 = vld [vmem:[#allocation2 + $0x720] sm:$0xff] }
  0xd0   :  { %v354_v60 = vld [vmem:[#allocation2 + $0x7a0] sm:$0xff] }
  0xd1   :  { %3463 = vmatpush1.bf16.msra.mxu0 %v12273_v15  ;;  %3506 = vmatpush1.bf16.msra.mxu1 %v12275_v16  ;;  %v12024_v15 = vcombine.high %v115_v5, %v131_v7  ;;  %v163_v16 = vld [vmem:[#allocation2 + $0x1a8] sm:$0xff] }
  0xd2   :  { %3464 = vmatprep.subr.bf16.mxu0 %v12306_v17  ;;  %3507 = vmatprep.subr.bf16.mxu1 %v12308_v21  ;;  %v12021_v17 = vcombine.low %v114_v3, %v130_v4  ;;  %v194_v21 = vld [vmem:[#allocation2 + $0x2a0] sm:$0xff]  ;;  %v12055_v26 = vcombine.low %v147_v14, %v163_v16  ;;  %v371_v5 = vld [vmem:[#allocation2 + $0x828] sm:$0xff] }
  0xd3   :  { %v12086_v27 = vcombine.high %v178_v20, %v194_v21  ;;  %v370_v3 = vld [vmem:[#allocation2 + $0x820] sm:$0xff]  ;;  %v387_v7 = vld [vmem:[#allocation2 + $0x8a8] sm:$0xff] }
  0xd4   :  { %v386_v4 = vld [vmem:[#allocation2 + $0x8a0] sm:$0xff] }
  0xd5   :  { %3465 = vmatpush1.bf16.msra.mxu0 %v12305_v23  ;;  %3508 = vmatpush1.bf16.msra.mxu1 %v12307_v24  ;;  %v12056_v23 = vcombine.high %v147_v14, %v163_v16  ;;  %v195_v24 = vld [vmem:[#allocation2 + $0x2a8] sm:$0xff] }
  0xd6   :  { %3466 = vmatprep.subr.bf16.mxu0 %v12338_v25  ;;  %3509 = vmatprep.subr.bf16.mxu1 %v12340_v29  ;;  %v12053_v25 = vcombine.low %v146_v12, %v162_v13  ;;  %v226_v29 = vld [vmem:[#allocation2 + $0x3a0] sm:$0xff]  ;;  %v403_v14 = vld [vmem:[#allocation2 + $0x928] sm:$0xff] }
  0xd7   :  { %v12118_v34 = vcombine.high %v210_v28, %v226_v29  ;;  %v402_v12 = vld [vmem:[#allocation2 + $0x920] sm:$0xff]  ;;  %v419_v16 = vld [vmem:[#allocation2 + $0x9a8] sm:$0xff] }
  0xd8   :  { %v418_v13 = vld [vmem:[#allocation2 + $0x9a0] sm:$0xff] }
  0xd9   :  { %3467 = vmatpush1.bf16.msra.mxu0 %v12337_v31  ;;  %3510 = vmatpush1.bf16.msra.mxu1 %v12339_v32  ;;  %v12088_v31 = vcombine.high %v179_v22, %v195_v24  ;;  %v227_v32 = vld [vmem:[#allocation2 + $0x3a8] sm:$0xff] }
  0xda   :  { %3468 = vmatprep.subr.bf16.mxu0 %v12370_v33  ;;  %3511 = vmatprep.subr.bf16.mxu1 %v12372_v37  ;;  %v12085_v33 = vcombine.low %v178_v20, %v194_v21  ;;  %v243_v37 = vld [vmem:[#allocation2 + $0x428] sm:$0xff]  ;;  %v12120_v38 = vcombine.high %v211_v30, %v227_v32  ;;  %v434_v20 = vld [vmem:[#allocation2 + $0xa20] sm:$0xff] }
  0xdb   :  { %v450_v21 = vld [vmem:[#allocation2 + $0xaa0] sm:$0xff] }
  0xdd   :  { %3469 = vmatpush1.bf16.msra.mxu0 %v12369_v39  ;;  %3512 = vmatpush1.bf16.msra.mxu1 %v12371_v40  ;;  %v259_v39 = vld [vmem:[#allocation2 + $0x4a8] sm:$0xff]  ;;  %v12117_v40 = vcombine.low %v210_v28, %v226_v29  ;;  %v466_v28 = vld [vmem:[#allocation2 + $0xb20] sm:$0xff] }
  0xde   :  { %3470 = vmatprep.subr.bf16.mxu0 %v12402_v41  ;;  %3513 = vmatprep.subr.bf16.mxu1 %v12404_v45  ;;  %v12119_v41 = vcombine.low %v211_v30, %v227_v32  ;;  %v12152_v45 = vcombine.high %v243_v37, %v259_v39  ;;  %v482_v29 = vld [vmem:[#allocation2 + $0xba0] sm:$0xff]  ;;  %v467_v30 = vld [vmem:[#allocation2 + $0xb28] sm:$0xff] }
  0xdf   :  { %v483_v32 = vld [vmem:[#allocation2 + $0xba8] sm:$0xff] }
  0xe1   :  { %3471 = vmatpush1.bf16.msra.mxu0 %v12401_v47  ;;  %3514 = vmatpush1.bf16.msra.mxu1 %v12403_v48  ;;  %v12149_v47 = vcombine.low %v242_v35, %v258_v36  ;;  %v12151_v48 = vcombine.low %v243_v37, %v259_v39  ;;  %v498_v35 = vld [vmem:[#allocation2 + $0xc20] sm:$0xff]  ;;  %v499_v37 = vld [vmem:[#allocation2 + $0xc28] sm:$0xff] }
  0xe2   :  { %3472 = vmatprep.subr.bf16.mxu0 %v12434_v49  ;;  %3515 = vmatprep.subr.bf16.mxu1 %v12436_v53  ;;  %v12184_v53 = vcombine.high %v275_v44, %v291_v46  ;;  %v514_v36 = vld [vmem:[#allocation2 + $0xca0] sm:$0xff]  ;;  %v515_v39 = vld [vmem:[#allocation2 + $0xca8] sm:$0xff] }
  0xe5   :  { %3473 = vmatpush1.bf16.msra.mxu0 %v12433_v55  ;;  %3516 = vmatpush1.bf16.msra.mxu1 %v12435_v57  ;;  %v12183_v57 = vcombine.low %v275_v44, %v291_v46  ;;  %v531_v44 = vld [vmem:[#allocation2 + $0xd28] sm:$0xff] }
  0xe6   :  { %3474 = vmatprep.subr.bf16.mxu0 %v12466_v58  ;;  %3517 = vmatprep.subr.bf16.mxu1 %v12468_v62  ;;  %v12214_v58 = vcombine.high %v306_v50, %v322_v51  ;;  %v339_v62 = vld [vmem:[#allocation2 + $0x728] sm:$0xff] }
  0xe7   :  { %v547_v46 = vld [vmem:[#allocation2 + $0xda8] sm:$0xff] }
  0xe9   :  { %3475 = vmatpush1.bf16.msra.mxu0 %v12465_v0  ;;  %3518 = vmatpush1.bf16.msra.mxu1 %v12467_v1  ;;  %v12213_v0 = vcombine.low %v306_v50, %v322_v51  ;;  %v12215_v1 = vcombine.low %v307_v52, %v323_v54  ;;  %v562_v50 = vld [vmem:[#allocation2 + $0xe20] sm:$0xff]  ;;  %v563_v52 = vld [vmem:[#allocation2 + $0xe28] sm:$0xff] }
  0xea   :  { %3476 = vmatprep.subr.bf16.mxu0 %v12498_v2  ;;  %3519 = vmatprep.subr.bf16.mxu1 %v12500_v6  ;;  %v12246_v2 = vcombine.high %v338_v59, %v354_v60  ;;  %v12248_v6 = vcombine.high %v339_v62, %v355_v63  ;;  %v578_v51 = vld [vmem:[#allocation2 + $0xea0] sm:$0xff]  ;;  %v579_v54 = vld [vmem:[#allocation2 + $0xea8] sm:$0xff] }
  0xed   :  { %3477 = vmatpush1.bf16.msra.mxu0 %v12497_v8  ;;  %3520 = vmatpush1.bf16.msra.mxu1 %v12499_v9  ;;  %v12245_v8 = vcombine.low %v338_v59, %v354_v60  ;;  %v12247_v9 = vcombine.low %v339_v62, %v355_v63  ;;  %v594_v59 = vld [vmem:[#allocation2 + $0xf20] sm:$0xff]  ;;  %v12472_v62 = vcombine.high %v563_v52, %v579_v54  ;;  %v611_v63 = vld [vmem:[#allocation2 + $0xfa8] sm:$0xff] }
  0xee   :  { %3532 = vmatprep.subr.bf16.mxu0 %v12022_v11  ;;  %3575 = vmatprep.subr.bf16.mxu1 %v12024_v15  ;;  %v12278_v11 = vcombine.high %v370_v3, %v386_v4  ;;  %v12280_v15 = vcombine.high %v371_v5, %v387_v7  ;;  %v610_v60 = vld [vmem:[#allocation2 + $0xfa0] sm:$0xff] }
  0xf0   :  { %3479 = vmatmul.mubr.bf16.vlgmr.msra.gmra.mrb[4].mxu0 %v15632_v10  ;;  %3522 = vmatmul.mubr.bf16.vlgmr.msra.gmra.mrb[4].mxu1 %v15632_v10  ;;  %v12087_v10 = vcombine.low %v179_v22, %v195_v24  ;;  %v435_v22 = vld [vmem:[#allocation2 + $0xa28] sm:$0xff] }
  0xf1   :  { %3533 = vmatpush1.bf16.msra.mxu0 %v12021_v17  ;;  %3576 = vmatpush1.bf16.msra.mxu1 %v12023_v18  ;;  %v12277_v17 = vcombine.low %v370_v3, %v386_v4  ;;  %v12279_v18 = vcombine.low %v371_v5, %v387_v7  ;;  %v451_v24 = vld [vmem:[#allocation2 + $0xaa8] sm:$0xff]  ;;  %v116_v3 = vld [vmem:[#allocation2 + $0x30] sm:$0xff]  ;;  %v117_v5 = vld [vmem:[#allocation2 + $0x38] sm:$0xff] }
  0xf2   :  { %3534 = vmatprep.subr.bf16.mxu0 %v12054_v19  ;;  %3577 = vmatprep.subr.bf16.mxu1 %v12056_v23  ;;  %v12310_v19 = vcombine.high %v402_v12, %v418_v13  ;;  %v12312_v23 = vcombine.high %v403_v14, %v419_v16  ;;  %v132_v4 = vld [vmem:[#allocation2 + $0xb0] sm:$0xff]  ;;  %v133_v7 = vld [vmem:[#allocation2 + $0xb8] sm:$0xff] }
  0xf3   :  { %3607 = vmatprep.mubr.bf16.mxu1 %v15625_v56  ;;  %3564 = vmatprep.mubr.bf16.mxu0 %v15625_v56  ;;  %v290_v56 = vld [vmem:[#allocation2 + $0x5a0] sm:$0xff] }
  0xf4   :  { %v12182_v49 = vcombine.high %v274_v43, %v290_v56  ;;  %v12181_v55 = vcombine.low %v274_v43, %v290_v56  ;;  %v530_v43 = vld [vmem:[#allocation2 + $0xd20] sm:$0xff] }
  0xf5   :  { %3535 = vmatpush1.bf16.msra.mxu0 %v12053_v25  ;;  %3578 = vmatpush1.bf16.msra.mxu1 %v12055_v26  ;;  %v12309_v25 = vcombine.low %v402_v12, %v418_v13  ;;  %v12311_v26 = vcombine.low %v403_v14, %v419_v16  ;;  %v546_v56 = vld [vmem:[#allocation2 + $0xda0] sm:$0xff]  ;;  %v148_v12 = vld [vmem:[#allocation2 + $0x130] sm:$0xff]  ;;  %v149_v14 = vld [vmem:[#allocation2 + $0x138] sm:$0xff] }
  0xf6   :  { %3536 = vmatprep.subr.bf16.mxu0 %v12086_v27  ;;  %3579 = vmatprep.subr.bf16.mxu1 %v12088_v31  ;;  %v12342_v27 = vcombine.high %v434_v20, %v450_v21  ;;  %v12344_v31 = vcombine.high %v435_v22, %v451_v24  ;;  %v164_v13 = vld [vmem:[#allocation2 + $0x1b0] sm:$0xff]  ;;  %v165_v16 = vld [vmem:[#allocation2 + $0x1b8] sm:$0xff] }
  0xf9   :  { %3537 = vmatpush1.bf16.msra.mxu0 %v12085_v33  ;;  %3580 = vmatpush1.bf16.msra.mxu1 %v12087_v10  ;;  %v12341_v33 = vcombine.low %v434_v20, %v450_v21  ;;  %v12343_v10 = vcombine.low %v435_v22, %v451_v24  ;;  %v180_v20 = vld [vmem:[#allocation2 + $0x230] sm:$0xff]  ;;  %v181_v22 = vld [vmem:[#allocation2 + $0x238] sm:$0xff] }
  0xfa   :  { %3538 = vmatprep.subr.bf16.mxu0 %v12118_v34  ;;  %3581 = vmatprep.subr.bf16.mxu1 %v12120_v38  ;;  %v12374_v34 = vcombine.high %v466_v28, %v482_v29  ;;  %v12376_v38 = vcombine.high %v467_v30, %v483_v32  ;;  %v196_v21 = vld [vmem:[#allocation2 + $0x2b0] sm:$0xff]  ;;  %v197_v24 = vld [vmem:[#allocation2 + $0x2b8] sm:$0xff] }
  0xfd   :  { %3539 = vmatpush1.bf16.msra.mxu0 %v12117_v40  ;;  %3582 = vmatpush1.bf16.msra.mxu1 %v12119_v41  ;;  %v12373_v40 = vcombine.low %v466_v28, %v482_v29  ;;  %v12375_v41 = vcombine.low %v467_v30, %v483_v32  ;;  %v12090_v28 = vcombine.high %v180_v20, %v196_v21  ;;  %v212_v29 = vld [vmem:[#allocation2 + $0x330] sm:$0xff] }
  0xfe   :  { %3540 = vmatprep.subr.bf16.mxu0 %v12150_v42  ;;  %3583 = vmatprep.subr.bf16.mxu1 %v12152_v45  ;;  %v12406_v42 = vcombine.high %v498_v35, %v514_v36  ;;  %v12408_v45 = vcombine.high %v499_v37, %v515_v39  ;;  %v228_v30 = vld [vmem:[#allocation2 + $0x3b0] sm:$0xff]  ;;  %v12092_v32 = vcombine.high %v181_v22, %v197_v24 }
 0x101   :  { %3541 = vmatpush1.bf16.msra.mxu0 %v12149_v47  ;;  %3584 = vmatpush1.bf16.msra.mxu1 %v12151_v48  ;;  %v12405_v47 = vcombine.low %v498_v35, %v514_v36  ;;  %v12407_v48 = vcombine.low %v499_v37, %v515_v39  ;;  %v12091_v35 = vcombine.low %v181_v22, %v197_v24  ;;  %v244_v37 = vld [vmem:[#allocation2 + $0x430] sm:$0xff]  ;;  %v245_v39 = vld [vmem:[#allocation2 + $0x438] sm:$0xff] }
 0x102   :  { %3542 = vmatprep.subr.bf16.mxu0 %v12182_v49  ;;  %3585 = vmatprep.subr.bf16.mxu1 %v12184_v53  ;;  %v12438_v49 = vcombine.high %v530_v43, %v546_v56  ;;  %v12440_v53 = vcombine.high %v531_v44, %v547_v46  ;;  %v12122_v36 = vcombine.high %v212_v29, %v228_v30  ;;  %v436_v22 = vld [vmem:[#allocation2 + $0xa30] sm:$0xff]  ;;  %v437_v24 = vld [vmem:[#allocation2 + $0xa38] sm:$0xff] }
 0x105   :  { %3543 = vmatpush1.bf16.msra.mxu0 %v12181_v55  ;;  %3586 = vmatpush1.bf16.msra.mxu1 %v12183_v57  ;;  %v12437_v55 = vcombine.low %v530_v43, %v546_v56  ;;  %v12439_v57 = vcombine.low %v531_v44, %v547_v46  ;;  %v276_v44 = vld [vmem:[#allocation2 + $0x530] sm:$0xff]  ;;  %v277_v46 = vld [vmem:[#allocation2 + $0x538] sm:$0xff] }
 0x106   :  { %3544 = vmatprep.subr.bf16.mxu0 %v12214_v58  ;;  %3587 = vmatprep.subr.bf16.mxu1 %v12216_v61  ;;  %v12470_v58 = vcombine.high %v562_v50, %v578_v51  ;;  %v595_v61 = vld [vmem:[#allocation2 + $0xf28] sm:$0xff] }
 0x109   :  { %3545 = vmatpush1.bf16.msra.mxu0 %v12213_v0  ;;  %3588 = vmatpush1.bf16.msra.mxu1 %v12215_v1  ;;  %v12469_v0 = vcombine.low %v562_v50, %v578_v51  ;;  %v12471_v1 = vcombine.low %v563_v52, %v579_v54  ;;  %v308_v52 = vld [vmem:[#allocation2 + $0x630] sm:$0xff]  ;;  %v309_v54 = vld [vmem:[#allocation2 + $0x638] sm:$0xff] }
 0x10a   :  { %3546 = vmatprep.subr.bf16.mxu0 %v12246_v2  ;;  %3589 = vmatprep.subr.bf16.mxu1 %v12248_v6  ;;  %v12502_v2 = vcombine.high %v594_v59, %v610_v60  ;;  %v12504_v6 = vcombine.high %v595_v61, %v611_v63 }
 0x10d   :  { %3547 = vmatpush1.bf16.msra.mxu0 %v12245_v8  ;;  %3590 = vmatpush1.bf16.msra.mxu1 %v12247_v9  ;;  %v12501_v8 = vcombine.low %v594_v59, %v610_v60  ;;  %v12503_v9 = vcombine.low %v595_v61, %v611_v63  ;;  %v340_v61 = vld [vmem:[#allocation2 + $0x730] sm:$0xff]  ;;  %v341_v63 = vld [vmem:[#allocation2 + $0x738] sm:$0xff] }
 0x10e   :  { %3548 = vmatprep.subr.bf16.mxu0 %v12278_v11  ;;  %3591 = vmatprep.subr.bf16.mxu1 %v12280_v15  ;;  %v12026_v11 = vcombine.high %v116_v3, %v132_v4  ;;  %v12028_v15 = vcombine.high %v117_v5, %v133_v7 }
 0x111   :  { %3549 = vmatpush1.bf16.msra.mxu0 %v12277_v17  ;;  %3592 = vmatpush1.bf16.msra.mxu1 %v12279_v18  ;;  %v12025_v17 = vcombine.low %v116_v3, %v132_v4  ;;  %v12027_v18 = vcombine.low %v117_v5, %v133_v7  ;;  %v372_v5 = vld [vmem:[#allocation2 + $0x830] sm:$0xff]  ;;  %v373_v7 = vld [vmem:[#allocation2 + $0x838] sm:$0xff] }
 0x112   :  { %3550 = vmatprep.subr.bf16.mxu0 %v12310_v19  ;;  %3593 = vmatprep.subr.bf16.mxu1 %v12312_v23  ;;  %v12058_v19 = vcombine.high %v148_v12, %v164_v13  ;;  %v12060_v23 = vcombine.high %v149_v14, %v165_v16 }
 0x115   :  { %3551 = vmatpush1.bf16.msra.mxu0 %v12309_v25  ;;  %3594 = vmatpush1.bf16.msra.mxu1 %v12311_v26  ;;  %v15645_v25 = vld [vmem:[%s15998_s0] ss:$8 sps:$4 sm:$0xff]   ;;  %v12057_v26 = vcombine.low %v148_v12, %v164_v13 }
 0x116   :  { %3552 = vmatprep.subr.bf16.mxu0 %v12342_v27  ;;  %3595 = vmatprep.subr.bf16.mxu1 %v12344_v31  ;;  %v12059_v27 = vcombine.low %v149_v14, %v165_v16  ;;  %v213_v31 = vld [vmem:[#allocation2 + $0x338] sm:$0xff]  ;;  %v404_v14 = vld [vmem:[#allocation2 + $0x930] sm:$0xff] }
 0x117   :  { %v405_v16 = vld [vmem:[#allocation2 + $0x938] sm:$0xff] }
 0x119   :  { %3553 = vmatpush1.bf16.msra.mxu0 %v12341_v33  ;;  %3596 = vmatpush1.bf16.msra.mxu1 %v12343_v10  ;;  %v229_v33 = vld [vmem:[#allocation2 + $0x3b8] sm:$0xff]  ;;  %v15652_v10 = vld [vmem:[%s15998_s0 + $0x4] ss:$8 sps:$4 sm:$0xff]  }
 0x11a   :  { %3554 = vmatprep.subr.bf16.mxu0 %v12374_v34  ;;  %3597 = vmatprep.subr.bf16.mxu1 %v12376_v38  ;;  %v12089_v34 = vcombine.low %v180_v20, %v196_v21  ;;  %v260_v38 = vld [vmem:[#allocation2 + $0x4b0] sm:$0xff]  ;;  %v12123_v43 = vcombine.low %v213_v31, %v229_v33 }
 0x11b   :  { %v12154_v56 = vcombine.high %v244_v37, %v260_v38 }
 0x11d   :  { %3555 = vmatpush1.bf16.msra.mxu0 %v12373_v40  ;;  %3598 = vmatpush1.bf16.msra.mxu1 %v12375_v41  ;;  %v12124_v40 = vcombine.high %v213_v31, %v229_v33  ;;  %v261_v41 = vld [vmem:[#allocation2 + $0x4b8] sm:$0xff]  ;;  %v468_v31 = vld [vmem:[#allocation2 + $0xb30] sm:$0xff] }
 0x11e   :  { %3556 = vmatprep.subr.bf16.mxu0 %v12406_v42  ;;  %3599 = vmatprep.subr.bf16.mxu1 %v12408_v45  ;;  %v12121_v42 = vcombine.low %v212_v29, %v228_v30  ;;  %v292_v45 = vld [vmem:[#allocation2 + $0x5b0] sm:$0xff]  ;;  %v12155_v50 = vcombine.low %v245_v39, %v261_v41  ;;  %v469_v33 = vld [vmem:[#allocation2 + $0xb38] sm:$0xff] }
 0x11f   :  { %v12186_v51 = vcombine.high %v276_v44, %v292_v45 }
 0x121   :  { %3557 = vmatpush1.bf16.msra.mxu0 %v12405_v47  ;;  %3600 = vmatpush1.bf16.msra.mxu1 %v12407_v48  ;;  %v12156_v47 = vcombine.high %v245_v39, %v261_v41  ;;  %v293_v48 = vld [vmem:[#allocation2 + $0x5b8] sm:$0xff]  ;;  %v500_v39 = vld [vmem:[#allocation2 + $0xc30] sm:$0xff] }
 0x122   :  { %3558 = vmatprep.subr.bf16.mxu0 %v12438_v49  ;;  %3601 = vmatprep.subr.bf16.mxu1 %v12440_v53  ;;  %v12153_v49 = vcombine.low %v244_v37, %v260_v38  ;;  %v324_v53 = vld [vmem:[#allocation2 + $0x6b0] sm:$0xff]  ;;  %v12187_v59 = vcombine.low %v277_v46, %v293_v48  ;;  %v501_v41 = vld [vmem:[#allocation2 + $0xc38] sm:$0xff] }
 0x123   :  { %v12218_v60 = vcombine.high %v308_v52, %v324_v53 }
 0x125   :  { %3559 = vmatpush1.bf16.msra.mxu0 %v12437_v55  ;;  %3602 = vmatpush1.bf16.msra.mxu1 %v12439_v57  ;;  %v12188_v55 = vcombine.high %v277_v46, %v293_v48  ;;  %v325_v57 = vld [vmem:[#allocation2 + $0x6b8] sm:$0xff]  ;;  %v532_v46 = vld [vmem:[#allocation2 + $0xd30] sm:$0xff] }
 0x126   :  { %3560 = vmatprep.subr.bf16.mxu0 %v12470_v58  ;;  %3603 = vmatprep.subr.bf16.mxu1 %v12472_v62  ;;  %v12185_v58 = vcombine.low %v276_v44, %v292_v45  ;;  %v356_v62 = vld [vmem:[#allocation2 + $0x7b0] sm:$0xff]  ;;  %v12219_v3 = vcombine.low %v309_v54, %v325_v57  ;;  %v533_v48 = vld [vmem:[#allocation2 + $0xd38] sm:$0xff] }
 0x127   :  { %v12250_v4 = vcombine.high %v340_v61, %v356_v62 }
 0x129   :  { %3561 = vmatpush1.bf16.msra.mxu0 %v12469_v0  ;;  %3604 = vmatpush1.bf16.msra.mxu1 %v12471_v1  ;;  %v12220_v0 = vcombine.high %v309_v54, %v325_v57  ;;  %v357_v1 = vld [vmem:[#allocation2 + $0x7b8] sm:$0xff]  ;;  %v564_v54 = vld [vmem:[#allocation2 + $0xe30] sm:$0xff] }
 0x12a   :  { %3562 = vmatprep.subr.bf16.mxu0 %v12502_v2  ;;  %3605 = vmatprep.subr.bf16.mxu1 %v12504_v6  ;;  %v12217_v2 = vcombine.low %v308_v52, %v324_v53  ;;  %v388_v6 = vld [vmem:[#allocation2 + $0x8b0] sm:$0xff]  ;;  %v12251_v12 = vcombine.low %v341_v63, %v357_v1  ;;  %v565_v57 = vld [vmem:[#allocation2 + $0xe38] sm:$0xff] }
 0x12b   :  { %v12282_v13 = vcombine.high %v372_v5, %v388_v6 }
 0x12d   :  { %3563 = vmatpush1.bf16.msra.mxu0 %v12501_v8  ;;  %3606 = vmatpush1.bf16.msra.mxu1 %v12503_v9  ;;  %v12252_v8 = vcombine.high %v341_v63, %v357_v1  ;;  %v389_v9 = vld [vmem:[#allocation2 + $0x8b8] sm:$0xff]  ;;  %v596_v63 = vld [vmem:[#allocation2 + $0xf30] sm:$0xff] }
 0x12e   :  { %3618 = vmatprep.subr.bf16.mxu0 %v12026_v11  ;;  %3661 = vmatprep.subr.bf16.mxu1 %v12028_v15  ;;  %v12249_v11 = vcombine.low %v340_v61, %v356_v62  ;;  %v420_v15 = vld [vmem:[#allocation2 + $0x9b0] sm:$0xff]  ;;  %v12283_v20 = vcombine.low %v373_v7, %v389_v9  ;;  %v597_v1 = vld [vmem:[#allocation2 + $0xf38] sm:$0xff] }
 0x12f   :  { %v12314_v21 = vcombine.high %v404_v14, %v420_v15 }
 0x130   :  { %3565 = vmatmul.mubr.bf16.vlgmr.msra.gmra.mrb[8].mxu0 %v15645_v25  ;;  %3608 = vmatmul.mubr.bf16.vlgmr.msra.gmra.mrb[8].mxu1 %v15645_v25 }
 0x131   :  { %3619 = vmatpush1.bf16.msra.mxu0 %v12025_v17  ;;  %3662 = vmatpush1.bf16.msra.mxu1 %v12027_v18  ;;  %v12284_v17 = vcombine.high %v373_v7, %v389_v9  ;;  %v421_v18 = vld [vmem:[#allocation2 + $0x9b8] sm:$0xff]  ;;  %v118_v7 = vld [vmem:[#allocation2 + $0x40] sm:$0xff]  ;;  %v119_v9 = vld [vmem:[#allocation2 + $0x48] sm:$0xff] }
 0x132   :  { %3620 = vmatprep.subr.bf16.mxu0 %v12058_v19  ;;  %3663 = vmatprep.subr.bf16.mxu1 %v12060_v23  ;;  %v12281_v19 = vcombine.low %v372_v5, %v388_v6  ;;  %v452_v23 = vld [vmem:[#allocation2 + $0xab0] sm:$0xff]  ;;  %v12315_v29 = vcombine.low %v405_v16, %v421_v18 }
 0x133   :  { %3693 = vmatprep.mubr.bf16.mxu1 %v15652_v10  ;;  %3650 = vmatprep.mubr.bf16.mxu0 %v15652_v10  ;;  %v12346_v30 = vcombine.high %v436_v22, %v452_v23 }
 0x135   :  { %3621 = vmatpush1.bf16.msra.mxu0 %v12057_v26  ;;  %3664 = vmatpush1.bf16.msra.mxu1 %v12059_v27  ;;  %v12316_v26 = vcombine.high %v405_v16, %v421_v18  ;;  %v453_v27 = vld [vmem:[#allocation2 + $0xab8] sm:$0xff]  ;;  %v150_v16 = vld [vmem:[#allocation2 + $0x140] sm:$0xff]  ;;  %v151_v18 = vld [vmem:[#allocation2 + $0x148] sm:$0xff] }
 0x136   :  { %3622 = vmatprep.subr.bf16.mxu0 %v12090_v28  ;;  %3665 = vmatprep.subr.bf16.mxu1 %v12092_v32  ;;  %v12313_v28 = vcombine.low %v404_v14, %v420_v15  ;;  %v484_v32 = vld [vmem:[#allocation2 + $0xbb0] sm:$0xff]  ;;  %v12347_v37 = vcombine.low %v437_v24, %v453_v27 }
 0x137   :  { %v12378_v38 = vcombine.high %v468_v31, %v484_v32 }
 0x139   :  { %3623 = vmatpush1.bf16.msra.mxu0 %v12089_v34  ;;  %3666 = vmatpush1.bf16.msra.mxu1 %v12091_v35  ;;  %v12348_v34 = vcombine.high %v437_v24, %v453_v27  ;;  %v485_v35 = vld [vmem:[#allocation2 + $0xbb8] sm:$0xff]  ;;  %v182_v24 = vld [vmem:[#allocation2 + $0x240] sm:$0xff]  ;;  %v183_v27 = vld [vmem:[#allocation2 + $0x248] sm:$0xff] }
 0x13a   :  { %3624 = vmatprep.subr.bf16.mxu0 %v12122_v36  ;;  %3667 = vmatprep.subr.bf16.mxu1 %v12124_v40  ;;  %v12345_v36 = vcombine.low %v436_v22, %v452_v23  ;;  %v516_v40 = vld [vmem:[#allocation2 + $0xcb0] sm:$0xff]  ;;  %v12379_v44 = vcombine.low %v469_v33, %v485_v35 }
 0x13b   :  { %v12410_v45 = vcombine.high %v500_v39, %v516_v40 }
 0x13d   :  { %3625 = vmatpush1.bf16.msra.mxu0 %v12121_v42  ;;  %3668 = vmatpush1.bf16.msra.mxu1 %v12123_v43  ;;  %v12380_v42 = vcombine.high %v469_v33, %v485_v35  ;;  %v517_v43 = vld [vmem:[#allocation2 + $0xcb8] sm:$0xff]  ;;  %v214_v33 = vld [vmem:[#allocation2 + $0x340] sm:$0xff]  ;;  %v215_v35 = vld [vmem:[#allocation2 + $0x348] sm:$0xff] }
 0x13e   :  { %3626 = vmatprep.subr.bf16.mxu0 %v12154_v56  ;;  %3669 = vmatprep.subr.bf16.mxu1 %v12156_v47  ;;  %v12377_v56 = vcombine.low %v468_v31, %v484_v32  ;;  %v548_v47 = vld [vmem:[#allocation2 + $0xdb0] sm:$0xff]  ;;  %v12411_v52 = vcombine.low %v501_v41, %v517_v43 }
 0x13f   :  { %v12442_v53 = vcombine.high %v532_v46, %v548_v47 }
 0x141   :  { %3627 = vmatpush1.bf16.msra.mxu0 %v12153_v49  ;;  %3670 = vmatpush1.bf16.msra.mxu1 %v12155_v50  ;;  %v12412_v49 = vcombine.high %v501_v41, %v517_v43  ;;  %v549_v50 = vld [vmem:[#allocation2 + $0xdb8] sm:$0xff]  ;;  %v246_v41 = vld [vmem:[#allocation2 + $0x440] sm:$0xff]  ;;  %v247_v43 = vld [vmem:[#allocation2 + $0x448] sm:$0xff] }
 0x142   :  { %3628 = vmatprep.subr.bf16.mxu0 %v12186_v51  ;;  %3671 = vmatprep.subr.bf16.mxu1 %v12188_v55  ;;  %v12409_v51 = vcombine.low %v500_v39, %v516_v40  ;;  %v580_v55 = vld [vmem:[#allocation2 + $0xeb0] sm:$0xff]  ;;  %v12443_v61 = vcombine.low %v533_v48, %v549_v50  ;;  %v630_v39 = vlaneseq }
 0x143   :  { %v12474_v62 = vcombine.high %v564_v54, %v580_v55 }
 0x145   :  { %3629 = vmatpush1.bf16.msra.mxu0 %v12185_v58  ;;  %3672 = vmatpush1.bf16.msra.mxu1 %v12187_v59  ;;  %v12444_v58 = vcombine.high %v533_v48, %v549_v50  ;;  %v581_v59 = vld [vmem:[#allocation2 + $0xeb8] sm:$0xff]  ;;  %v278_v48 = vld [vmem:[#allocation2 + $0x540] sm:$0xff]  ;;  %v279_v50 = vld [vmem:[#allocation2 + $0x548] sm:$0xff] }
 0x146   :  { %3630 = vmatprep.subr.bf16.mxu0 %v12218_v60  ;;  %3673 = vmatprep.subr.bf16.mxu1 %v12220_v0  ;;  %v12441_v60 = vcombine.low %v532_v46, %v548_v47  ;;  %v612_v0 = vld [vmem:[#allocation2 + $0xfb0] sm:$0xff]  ;;  %v12475_v5 = vcombine.low %v565_v57, %v581_v59  ;;  %v15660_v46 = vshrl.u32 %v630_v39, 7 }
 0x147   :  { %v12506_v6 = vcombine.high %v596_v63, %v612_v0 }
 0x149   :  { %3631 = vmatpush1.bf16.msra.mxu0 %v12217_v2  ;;  %3674 = vmatpush1.bf16.msra.mxu1 %v12219_v3  ;;  %v12476_v2 = vcombine.high %v565_v57, %v581_v59  ;;  %v613_v3 = vld [vmem:[#allocation2 + $0xfb8] sm:$0xff]  ;;  %v15668_v57 = vsub.s32 2, %v15660_v46 }
 0x14a   :  { %3632 = vmatprep.subr.bf16.mxu0 %v12250_v4  ;;  %3675 = vmatprep.subr.bf16.mxu1 %v12252_v8  ;;  %v12473_v4 = vcombine.low %v564_v54, %v580_v55  ;;  %v134_v8 = vld [vmem:[#allocation2 + $0xc0] sm:$0xff]  ;;  %v12507_v14 = vcombine.low %v597_v1, %v613_v3  ;;  %v15665_v54 = vsub.s32 0, %v15660_v46 }
 0x14b   :  { %v12030_v15 = vcombine.high %v118_v7, %v134_v8 }
 0x14d   :  { %3633 = vmatpush1.bf16.msra.mxu0 %v12249_v11  ;;  %3676 = vmatpush1.bf16.msra.mxu1 %v12251_v12  ;;  %v12508_v11 = vcombine.high %v597_v1, %v613_v3  ;;  %v135_v12 = vld [vmem:[#allocation2 + $0xc8] sm:$0xff] }
 0x14e   :  { %3634 = vmatprep.subr.bf16.mxu0 %v12282_v13  ;;  %3677 = vmatprep.subr.bf16.mxu1 %v12284_v17  ;;  %v12505_v13 = vcombine.low %v596_v63, %v612_v0  ;;  %v166_v17 = vld [vmem:[#allocation2 + $0x1c0] sm:$0xff]  ;;  %v12031_v22 = vcombine.low %v119_v9, %v135_v12  ;;  %v311_v0 = vld [vmem:[#allocation2 + $0x648] sm:$0xff] }
 0x14f   :  { %v12062_v23 = vcombine.high %v150_v16, %v166_v17  ;;  %v326_v63 = vld [vmem:[#allocation2 + $0x6c0] sm:$0xff] }
 0x151   :  { %3635 = vmatpush1.bf16.msra.mxu0 %v12281_v19  ;;  %3678 = vmatpush1.bf16.msra.mxu1 %v12283_v20  ;;  %v12032_v19 = vcombine.high %v119_v9, %v135_v12  ;;  %v167_v20 = vld [vmem:[#allocation2 + $0x1c8] sm:$0xff]  ;;  %v358_v12 = vld [vmem:[#allocation2 + $0x7c0] sm:$0xff] }
 0x152   :  { %3636 = vmatprep.subr.bf16.mxu0 %v12314_v21  ;;  %3679 = vmatprep.subr.bf16.mxu1 %v12316_v26  ;;  %v12029_v21 = vcombine.low %v118_v7, %v134_v8  ;;  %v198_v26 = vld [vmem:[#allocation2 + $0x2c0] sm:$0xff]  ;;  %v12063_v31 = vcombine.low %v151_v18, %v167_v20 }
 0x153   :  { %v12094_v32 = vcombine.high %v182_v24, %v198_v26 }
 0x155   :  { %3637 = vmatpush1.bf16.msra.mxu0 %v12313_v28  ;;  %3680 = vmatpush1.bf16.msra.mxu1 %v12315_v29  ;;  %v12064_v28 = vcombine.high %v151_v18, %v167_v20  ;;  %v199_v29 = vld [vmem:[#allocation2 + $0x2c8] sm:$0xff] }
 0x156   :  { %3638 = vmatprep.subr.bf16.mxu0 %v12346_v30  ;;  %3681 = vmatprep.subr.bf16.mxu1 %v12348_v34  ;;  %v12061_v30 = vcombine.low %v150_v16, %v166_v17  ;;  %v230_v34 = vld [vmem:[#allocation2 + $0x3c0] sm:$0xff] }
 0x157   :  { %v12126_v40 = vcombine.high %v214_v33, %v230_v34 }
 0x159   :  { %3639 = vmatpush1.bf16.msra.mxu0 %v12345_v36  ;;  %3682 = vmatpush1.bf16.msra.mxu1 %v12347_v37  ;;  %v12096_v36 = vcombine.high %v183_v27, %v199_v29  ;;  %v231_v37 = vld [vmem:[#allocation2 + $0x3c8] sm:$0xff] }
 0x15a   :  { %3640 = vmatprep.subr.bf16.mxu0 %v12378_v38  ;;  %3683 = vmatprep.subr.bf16.mxu1 %v12380_v42  ;;  %v12093_v38 = vcombine.low %v182_v24, %v198_v26  ;;  %v262_v42 = vld [vmem:[#allocation2 + $0x4c0] sm:$0xff] }
 0x15b   :  { %v12158_v47 = vcombine.high %v246_v41, %v262_v42  ;;  %v12157_v55 = vcombine.low %v246_v41, %v262_v42 }
 0x15d   :  { %3641 = vmatpush1.bf16.msra.mxu0 %v12377_v56  ;;  %3684 = vmatpush1.bf16.msra.mxu1 %v12379_v44  ;;  %v12128_v56 = vcombine.high %v215_v35, %v231_v37  ;;  %v263_v44 = vld [vmem:[#allocation2 + $0x4c8] sm:$0xff] }
 0x15e   :  { %3642 = vmatprep.subr.bf16.mxu0 %v12410_v45  ;;  %3685 = vmatprep.subr.bf16.mxu1 %v12412_v49  ;;  %v12125_v45 = vcombine.low %v214_v33, %v230_v34  ;;  %v294_v49 = vld [vmem:[#allocation2 + $0x5c0] sm:$0xff]  ;;  %v12159_v59 = vcombine.low %v247_v43, %v263_v44  ;;  %v375_v33 = vld [vmem:[#allocation2 + $0x848] sm:$0xff] }
 0x161   :  { %3643 = vmatpush1.bf16.msra.mxu0 %v12409_v51  ;;  %3686 = vmatpush1.bf16.msra.mxu1 %v12411_v52  ;;  %v12160_v51 = vcombine.high %v247_v43, %v263_v44  ;;  %v295_v52 = vld [vmem:[#allocation2 + $0x5c8] sm:$0xff] }
 0x162   :  { %3644 = vmatprep.subr.bf16.mxu0 %v12442_v53  ;;  %3687 = vmatprep.subr.bf16.mxu1 %v12444_v58  ;;  %v15662_v53 = vld [vmem:[#allocation4] sm:$0xff]  ;;  %v15671_v58 = vsub.s32 1, %v15660_v46  ;;  %v12192_v1 = vcombine.high %v279_v50, %v295_v52  ;;  %v12191_v8 = vcombine.low %v279_v50, %v295_v52 }
 0x163   :  { %v633_v3 = vrot.slane %v15662_v53, %v15665_v54  ;;  %v422_v52 = vld [vmem:[#allocation2 + $0x9c0] sm:$0xff] }
 0x165   :  { %3645 = vmatpush1.bf16.msra.mxu0 %v12441_v60  ;;  %3688 = vmatpush1.bf16.msra.mxu1 %v12443_v61  ;;  %v15674_v60 = vsub.s32 3, %v15660_v46  ;;  %v12190_v61 = vcombine.high %v278_v48, %v294_v49 }
 0x166   :  { %3646 = vmatprep.subr.bf16.mxu0 %v12474_v62  ;;  %3689 = vmatprep.subr.bf16.mxu1 %v12476_v2  ;;  %v310_v62 = vld [vmem:[#allocation2 + $0x640] sm:$0xff]  ;;  %v327_v2 = vld [vmem:[#allocation2 + $0x6c8] sm:$0xff] }
 0x167   :  { %v645_v7 = vrot.slane %v15662_v53, %v15674_v60  ;;  %v12222_v9 = vcombine.high %v310_v62, %v326_v63  ;;  %v12221_v18 = vcombine.low %v310_v62, %v326_v63  ;;  %v423_v62 = vld [vmem:[#allocation2 + $0x9c8] sm:$0xff] }
 0x169   :  { %3647 = vmatpush1.bf16.msra.mxu0 %v12473_v4  ;;  %3690 = vmatpush1.bf16.msra.mxu1 %v12475_v5  ;;  %v641_v4 = vrot.slane %v15662_v53, %v15668_v57  ;;  %v12189_v5 = vcombine.low %v278_v48, %v294_v49 }
 0x16a   :  { %3648 = vmatprep.subr.bf16.mxu0 %v12506_v6  ;;  %3691 = vmatprep.subr.bf16.mxu1 %v12508_v11  ;;  %v637_v6 = vrot.slane %v15662_v53, %v15671_v58  ;;  %v342_v11 = vld [vmem:[#allocation2 + $0x740] sm:$0xff] }
 0x16b   :  { %v12254_v24 = vcombine.high %v342_v11, %v358_v12  ;;  %v12253_v44 = vcombine.low %v342_v11, %v358_v12 }
 0x16d   :  { %3649 = vmatpush1.bf16.msra.mxu0 %v12505_v13  ;;  %3692 = vmatpush1.bf16.msra.mxu1 %v12507_v14  ;;  %v12224_v13 = vcombine.high %v311_v0, %v327_v2  ;;  %v343_v14 = vld [vmem:[#allocation2 + $0x748] sm:$0xff] }
 0x16e   :  { %3704 = vmatprep.subr.bf16.mxu0 %v12030_v15  ;;  %3747 = vmatprep.subr.bf16.mxu1 %v12032_v19  ;;  %v359_v15 = vld [vmem:[#allocation2 + $0x7c8] sm:$0xff] }
 0x170   :  { %3651 = vmatmul.mubr.bf16.vlgmr.msra.gmra.mrb[12].mxu0 %v15645_v25  ;;  %3694 = vmatmul.mubr.bf16.vlgmr.msra.gmra.mrb[12].mxu1 %v15645_v25  ;;  %v12095_v25 = vcombine.low %v183_v27, %v199_v29 }
 0x171   :  { %3705 = vmatpush1.bf16.msra.mxu0 %v12029_v21  ;;  %3748 = vmatpush1.bf16.msra.mxu1 %v12031_v22 }
 0x172   :  { %3706 = vmatprep.subr.bf16.mxu0 %v12062_v23  ;;  %3749 = vmatprep.subr.bf16.mxu1 %v12064_v28  ;;  %v12223_v23 = vcombine.low %v311_v0, %v327_v2 }
 0x173   :  { %3779 = vmatprep.mubr.bf16.mxu1 %v15652_v10  ;;  %3736 = vmatprep.mubr.bf16.mxu0 %v15652_v10  ;;  %v12127_v10 = vcombine.low %v215_v35, %v231_v37 }
 0x175   :  { %3707 = vmatpush1.bf16.msra.mxu0 %v12061_v30  ;;  %3750 = vmatpush1.bf16.msra.mxu1 %v12063_v31  ;;  %v12256_v30 = vcombine.high %v343_v14, %v359_v15  ;;  %v374_v31 = vld [vmem:[#allocation2 + $0x840] sm:$0xff] }
 0x176   :  { %3708 = vmatprep.subr.bf16.mxu0 %v12094_v32  ;;  %3751 = vmatprep.subr.bf16.mxu1 %v12096_v36  ;;  %v390_v32 = vld [vmem:[#allocation2 + $0x8c0] sm:$0xff] }
 0x177   :  { %v12286_v49 = vcombine.high %v374_v31, %v390_v32 }
 0x179   :  { %3709 = vmatpush1.bf16.msra.mxu0 %v12093_v38  ;;  %3752 = vmatpush1.bf16.msra.mxu1 %v12095_v25  ;;  %v391_v25 = vld [vmem:[#allocation2 + $0x8c8] sm:$0xff] }
 0x17a   :  { %3710 = vmatprep.subr.bf16.mxu0 %v12126_v40  ;;  %3753 = vmatprep.subr.bf16.mxu1 %v12128_v56  ;;  %v12287_v2 = vcombine.low %v375_v33, %v391_v25 }
 0x17d   :  { %3711 = vmatpush1.bf16.msra.mxu0 %v12125_v45  ;;  %3754 = vmatpush1.bf16.msra.mxu1 %v12127_v10  ;;  %v12255_v45 = vcombine.low %v343_v14, %v359_v15  ;;  %v486_v14 = vld [vmem:[#allocation2 + $0xbc0] sm:$0xff]  ;;  %v471_v15 = vld [vmem:[#allocation2 + $0xb48] sm:$0xff] }
 0x17e   :  { %3712 = vmatprep.subr.bf16.mxu0 %v12158_v47  ;;  %3755 = vmatprep.subr.bf16.mxu1 %v12160_v51  ;;  %v406_v51 = vld [vmem:[#allocation2 + $0x940] sm:$0xff] }
 0x181   :  { %3713 = vmatpush1.bf16.msra.mxu0 %v12157_v55  ;;  %3756 = vmatpush1.bf16.msra.mxu1 %v12159_v59  ;;  %v407_v55 = vld [vmem:[#allocation2 + $0x948] sm:$0xff] }
 0x182   :  { %3714 = vmatprep.subr.bf16.mxu0 %v12190_v61  ;;  %3757 = vmatprep.subr.bf16.mxu1 %v12192_v1  ;;  %v12288_v61 = vcombine.high %v375_v33, %v391_v25  ;;  %v12285_v1 = vcombine.low %v374_v31, %v390_v32  ;;  %v12319_v11 = vcombine.low %v407_v55, %v423_v62  ;;  %v550_v31 = vld [vmem:[#allocation2 + $0xdc0] sm:$0xff]  ;;  %v535_v32 = vld [vmem:[#allocation2 + $0xd48] sm:$0xff] }
 0x183   :  { %v3394_v16 = vpop.f32.mrb[0].mxu0  ;;  %v3437_v17 = vpop.f32.mrb[0].mxu1  ;;  %v567_v25 = vld [vmem:[#allocation2 + $0xe48] sm:$0xff] }
 0x184   :  { %v3395_v19 = vadd.f32 %v3394_v16, %v633_v3  ;;  %v3396_v20 = vpop.f32.mrb[1].mxu0  ;;  %v3438_v21 = vadd.f32 %v3437_v17, %v641_v4  ;;  %v3439_v22 = vpop.f32.mrb[1].mxu1  ;;  %v487_v17 = vld [vmem:[#allocation2 + $0xbc8] sm:$0xff] }
 0x185   :  { %3715 = vmatpush1.bf16.msra.mxu0 %v12189_v5  ;;  %v3397_v26 = vadd.f32 %v3396_v20, %v637_v6  ;;  %v3398_v27 = vpop.f32.mrb[2].mxu0  ;;  %v3440_v28 = vadd.f32 %v3439_v22, %v645_v7  ;;  %v3441_v29 = vpop.f32.mrb[2].mxu1  ;;  %3758 = vmatpush1.bf16.msra.mxu1 %v12191_v8  ;;  %v454_v5 = vld [vmem:[#allocation2 + $0xac0] sm:$0xff]  ;;  %v455_v8 = vld [vmem:[#allocation2 + $0xac8] sm:$0xff] }
 0x186   :  { %3716 = vmatprep.subr.bf16.mxu0 %v12222_v9  ;;  %v4048_v34 = vmax.f32 %v3395_v19, 0.0  ;;  %v3399_v35 = vadd.f32 %v3398_v27, %v633_v3  ;;  %v3400_v36 = vpop.f32.mrb[3].mxu0  ;;  %v4050_v37 = vmax.f32 %v3438_v21, 0.0  ;;  %v3442_v38 = vadd.f32 %v3441_v29, %v641_v4  ;;  %v3443_v39 = vpop.f32.mrb[3].mxu1  ;;  %3759 = vmatprep.subr.bf16.mxu1 %v12224_v13  ;;  %v438_v4 = vld [vmem:[#allocation2 + $0xa40] sm:$0xff] }
 0x187   :  { %v4049_v40 = vmax.f32 %v3397_v26, 0.0  ;;  %v3401_v41 = vadd.f32 %v3400_v36, %v637_v6  ;;  %v3444_v42 = vadd.f32 %v3443_v39, %v645_v7  ;;  %v4051_v47 = vmax.f32 %v3440_v28, 0.0  ;;  %v439_v6 = vld [vmem:[#allocation2 + $0xa48] sm:$0xff]  ;;  %v470_v13 = vld [vmem:[#allocation2 + $0xb40] sm:$0xff] }
 0x188   :  { %v4080_v43 = vmax.f32 %v3399_v35, 0.0  ;;  %v4082_v56 = vmax.f32 %v3442_v38, 0.0  ;;  %v12318_v3 = vcombine.high %v406_v51, %v422_v52  ;;  %v12320_v7 = vcombine.high %v407_v55, %v423_v62  ;;  %v502_v21 = vld [vmem:[#allocation2 + $0xc40] sm:$0xff]  ;;  %v519_v26 = vld [vmem:[#allocation2 + $0xcc8] sm:$0xff]  ;;  %v120_v55 = vld [vmem:[#allocation2 + $0x50] sm:$0xff] }
 0x189   :  { %3717 = vmatpush1.bf16.msra.mxu0 %v12221_v18  ;;  %v4081_v10 = vmax.f32 %v3401_v41, 0.0  ;;  %v4083_v48 = vmax.f32 %v3444_v42, 0.0  ;;  %3760 = vmatpush1.bf16.msra.mxu1 %v12223_v23  ;;  %v12317_v9 = vcombine.low %v406_v51, %v422_v52  ;;  %v12350_v12 = vcombine.high %v438_v4, %v454_v5  ;;  %v518_v22 = vld [vmem:[#allocation2 + $0xcc0] sm:$0xff]  ;;  %v503_v23 = vld [vmem:[#allocation2 + $0xc48] sm:$0xff]  ;;  %v121_v62 = vld [vmem:[#allocation2 + $0x58] sm:$0xff] }
 0x18a   :  { %3718 = vmatprep.subr.bf16.mxu0 %v12254_v24  ;;  %v15684_v50 = vpack.c.bf16 %v4080_v43, %v4048_v34  ;;  %v15686_v59 = vpack.c.bf16 %v4082_v56, %v4050_v37  ;;  %3761 = vmatprep.subr.bf16.mxu1 %v12256_v30  ;;  %v12352_v16 = vcombine.high %v439_v6, %v455_v8  ;;  %v534_v30 = vld [vmem:[#allocation2 + $0xd40] sm:$0xff]  ;;  %v551_v34 = vld [vmem:[#allocation2 + $0xdc8] sm:$0xff] }
 0x18b   :  { %v15688_v63 = vpack.c.bf16 %v4081_v10, %v4049_v40  ;;  %v15690_v0 = vpack.c.bf16 %v4083_v48, %v4051_v47  ;;  %v12349_v18 = vcombine.low %v438_v4, %v454_v5  ;;  %v12351_v19 = vcombine.low %v439_v6, %v455_v8  ;;  %v566_v38 = vld [vmem:[#allocation2 + $0xe40] sm:$0xff]  ;;  %v583_v41 = vld [vmem:[#allocation2 + $0xec8] sm:$0xff]  ;;  %v152_v6 = vld [vmem:[#allocation2 + $0x150] sm:$0xff] }
 0x18c   :  { %v12382_v20 = vcombine.high %v470_v13, %v486_v14  ;;  %v12384_v24 = vcombine.high %v471_v15, %v487_v17  ;;  %v12381_v27 = vcombine.low %v470_v13, %v486_v14  ;;  %v12383_v28 = vcombine.low %v471_v15, %v487_v17  ;;  %v582_v39 = vld [vmem:[#allocation2 + $0xec0] sm:$0xff]  ;;  %v599_v10 = vld [vmem:[#allocation2 + $0xf48] sm:$0xff]  ;;  %v153_v8 = vld [vmem:[#allocation2 + $0x158] sm:$0xff] }
 0x18d   :  { %3719 = vmatpush1.bf16.msra.mxu0 %v12253_v44  ;;  %3762 = vmatpush1.bf16.msra.mxu1 %v12255_v45  ;;  %v12414_v29 = vcombine.high %v502_v21, %v518_v22  ;;  %v12416_v33 = vcombine.high %v503_v23, %v519_v26  ;;  %v12413_v35 = vcombine.low %v502_v21, %v518_v22  ;;  %v598_v44 = vld [vmem:[#allocation2 + $0xf40] sm:$0xff]  ;;  %v615_v48 = vld [vmem:[#allocation2 + $0xfc8] sm:$0xff]  ;;  %v184_v15 = vld [vmem:[#allocation2 + $0x250] sm:$0xff] }
 0x18e   :  { %3720 = vmatprep.subr.bf16.mxu0 %v12286_v49  ;;  %3763 = vmatprep.subr.bf16.mxu1 %v12288_v61  ;;  %v12415_v36 = vcombine.low %v503_v23, %v519_v26  ;;  %v12446_v37 = vcombine.high %v534_v30, %v550_v31  ;;  %v12448_v40 = vcombine.high %v535_v32, %v551_v34  ;;  %v614_v45 = vld [vmem:[#allocation2 + $0xfc0] sm:$0xff]  ;;  %v136_v61 = vld [vmem:[#allocation2 + $0xd0] sm:$0xff]  ;;  %v185_v17 = vld [vmem:[#allocation2 + $0x258] sm:$0xff] }
 0x18f   :  { %v12445_v42 = vcombine.low %v534_v30, %v550_v31  ;;  %v12447_v43 = vcombine.low %v535_v32, %v551_v34  ;;  %v12478_v56 = vcombine.high %v566_v38, %v582_v39  ;;  %v12480_v47 = vcombine.high %v567_v25, %v583_v41  ;;  %v232_v26 = vld [vmem:[#allocation2 + $0x3d0] sm:$0xff]  ;;  %v15702_v30 = vld [vmem:[%s15998_s0 + $0x4] ss:$8 sps:$4 sm:$0xff]  }
 0x190   :  { %v12477_v49 = vcombine.low %v566_v38, %v582_v39  ;;  %v12479_v51 = vcombine.low %v567_v25, %v583_v41  ;;  %v12510_v52 = vcombine.high %v598_v44, %v614_v45  ;;  %v12511_v4 = vcombine.low %v599_v10, %v615_v48  ;;  %v248_v34 = vld [vmem:[#allocation2 + $0x450] sm:$0xff]  ;;  %v265_v38 = vld [vmem:[#allocation2 + $0x4d8] sm:$0xff] }
 0x191   :  { %3721 = vmatpush1.bf16.msra.mxu0 %v12285_v1  ;;  %3764 = vmatpush1.bf16.msra.mxu1 %v12287_v2  ;;  %v12512_v1 = vcombine.high %v599_v10, %v615_v48  ;;  %v137_v2 = vld [vmem:[#allocation2 + $0xd8] sm:$0xff]  ;;  %v12034_v5 = vcombine.high %v120_v55, %v136_v61  ;;  %v280_v41 = vld [vmem:[#allocation2 + $0x550] sm:$0xff]  ;;  %v15713_v48 = vsub.s32 5, %v15660_v46 }
 0x192   :  { %3722 = vmatprep.subr.bf16.mxu0 %v12318_v3  ;;  %3765 = vmatprep.subr.bf16.mxu1 %v12320_v7  ;;  %v12509_v3 = vcombine.low %v598_v44, %v614_v45  ;;  %v168_v7 = vld [vmem:[#allocation2 + $0x1d0] sm:$0xff]  ;;  %v12035_v13 = vcombine.low %v121_v62, %v137_v2  ;;  %v297_v44 = vld [vmem:[#allocation2 + $0x5d8] sm:$0xff]  ;;  %v15707_v45 = vsub.s32 4, %v15660_v46 }
 0x193   :  { %v12066_v14 = vcombine.high %v152_v6, %v168_v7  ;;  %v12065_v21 = vcombine.low %v152_v6, %v168_v7  ;;  %v653_v6 = vrot.slane %v15662_v53, %v15713_v48 }
 0x195   :  { %3723 = vmatpush1.bf16.msra.mxu0 %v12317_v9  ;;  %3766 = vmatpush1.bf16.msra.mxu1 %v12319_v11  ;;  %v12036_v9 = vcombine.high %v121_v62, %v137_v2  ;;  %v169_v11 = vld [vmem:[#allocation2 + $0x1d8] sm:$0xff] }
 0x196   :  { %3724 = vmatprep.subr.bf16.mxu0 %v12350_v12  ;;  %3767 = vmatprep.subr.bf16.mxu1 %v12352_v16  ;;  %v12033_v12 = vcombine.low %v120_v55, %v136_v61  ;;  %v200_v16 = vld [vmem:[#allocation2 + $0x2d0] sm:$0xff]  ;;  %v12067_v22 = vcombine.low %v153_v8, %v169_v11  ;;  %v313_v62 = vld [vmem:[#allocation2 + $0x658] sm:$0xff] }
 0x197   :  { %v12098_v23 = vcombine.high %v184_v15, %v200_v16  ;;  %v12097_v31 = vcombine.low %v184_v15, %v200_v16  ;;  %v312_v55 = vld [vmem:[#allocation2 + $0x650] sm:$0xff]  ;;  %v329_v2 = vld [vmem:[#allocation2 + $0x6d8] sm:$0xff] }
 0x198   :  { %v328_v61 = vld [vmem:[#allocation2 + $0x6d0] sm:$0xff] }
 0x199   :  { %3725 = vmatpush1.bf16.msra.mxu0 %v12349_v18  ;;  %3768 = vmatpush1.bf16.msra.mxu1 %v12351_v19  ;;  %v12068_v18 = vcombine.high %v153_v8, %v169_v11  ;;  %v201_v19 = vld [vmem:[#allocation2 + $0x2d8] sm:$0xff]  ;;  %v12226_v8 = vcombine.high %v312_v55, %v328_v61  ;;  %v360_v11 = vld [vmem:[#allocation2 + $0x7d0] sm:$0xff] }
 0x19a   :  { %3726 = vmatprep.subr.bf16.mxu0 %v12382_v20  ;;  %3769 = vmatprep.subr.bf16.mxu1 %v12384_v24  ;;  %v15695_v20 = vld [vmem:[%s15998_s0] ss:$8 sps:$4 sm:$0xff]   ;;  %v216_v24 = vld [vmem:[#allocation2 + $0x350] sm:$0xff]  ;;  %v12099_v32 = vcombine.low %v185_v17, %v201_v19 }
 0x19b   :  { %v12129_v39 = vcombine.low %v216_v24, %v232_v26 }
 0x19d   :  { %3727 = vmatpush1.bf16.msra.mxu0 %v12381_v27  ;;  %3770 = vmatpush1.bf16.msra.mxu1 %v12383_v28  ;;  %v217_v27 = vld [vmem:[#allocation2 + $0x358] sm:$0xff]  ;;  %v12100_v28 = vcombine.high %v185_v17, %v201_v19  ;;  %v12225_v17 = vcombine.low %v312_v55, %v328_v61 }
 0x19e   :  { %3728 = vmatprep.subr.bf16.mxu0 %v12414_v29  ;;  %3771 = vmatprep.subr.bf16.mxu1 %v12416_v33  ;;  %v233_v29 = vld [vmem:[#allocation2 + $0x3d8] sm:$0xff]  ;;  %v12130_v33 = vcombine.high %v216_v24, %v232_v26 }
 0x19f   :  { %v12131_v25 = vcombine.low %v217_v27, %v233_v29 }
 0x1a1   :  { %3729 = vmatpush1.bf16.msra.mxu0 %v12413_v35  ;;  %3772 = vmatpush1.bf16.msra.mxu1 %v12415_v36  ;;  %v264_v35 = vld [vmem:[#allocation2 + $0x4d0] sm:$0xff]  ;;  %v249_v36 = vld [vmem:[#allocation2 + $0x458] sm:$0xff] }
 0x1a2   :  { %3730 = vmatprep.subr.bf16.mxu0 %v12446_v37  ;;  %3773 = vmatprep.subr.bf16.mxu1 %v12448_v40  ;;  %v12132_v37 = vcombine.high %v217_v27, %v233_v29  ;;  %v12162_v40 = vcombine.high %v248_v34, %v264_v35  ;;  %v12161_v10 = vcombine.low %v248_v34, %v264_v35 }
 0x1a5   :  { %3731 = vmatpush1.bf16.msra.mxu0 %v12445_v42  ;;  %3774 = vmatpush1.bf16.msra.mxu1 %v12447_v43  ;;  %v296_v42 = vld [vmem:[#allocation2 + $0x5d0] sm:$0xff]  ;;  %v281_v43 = vld [vmem:[#allocation2 + $0x558] sm:$0xff] }
 0x1a6   :  { %3732 = vmatprep.subr.bf16.mxu0 %v12478_v56  ;;  %3775 = vmatprep.subr.bf16.mxu1 %v12480_v47  ;;  %v12164_v56 = vcombine.high %v249_v36, %v265_v38  ;;  %v15710_v47 = vsub.s32 6, %v15660_v46  ;;  %v12195_v7 = vcombine.low %v281_v43, %v297_v44 }
 0x1a9   :  { %3733 = vmatpush1.bf16.msra.mxu0 %v12477_v49  ;;  %3776 = vmatpush1.bf16.msra.mxu1 %v12479_v51  ;;  %v12163_v49 = vcombine.low %v249_v36, %v265_v38  ;;  %v15716_v51 = vsub.s32 7, %v15660_v46 }
 0x1aa   :  { %3734 = vmatprep.subr.bf16.mxu0 %v12510_v52  ;;  %3777 = vmatprep.subr.bf16.mxu1 %v12512_v1  ;;  %v12194_v52 = vcombine.high %v280_v41, %v296_v42  ;;  %v12196_v1 = vcombine.high %v281_v43, %v297_v44 }
 0x1ab   :  { %v661_v46 = vrot.slane %v15662_v53, %v15716_v51 }
 0x1ad   :  { %3735 = vmatpush1.bf16.msra.mxu0 %v12509_v3  ;;  %3778 = vmatpush1.bf16.msra.mxu1 %v12511_v4  ;;  %v649_v3 = vrot.slane %v15662_v53, %v15707_v45  ;;  %v657_v4 = vrot.slane %v15662_v53, %v15710_v47 }
 0x1ae   :  { %3790 = vmatprep.subr.bf16.mxu0 %v12034_v5  ;;  %3833 = vmatprep.subr.bf16.mxu1 %v12036_v9  ;;  %v12193_v5 = vcombine.low %v280_v41, %v296_v42  ;;  %v344_v9 = vld [vmem:[#allocation2 + $0x750] sm:$0xff] }
 0x1af   :  { %v12258_v24 = vcombine.high %v344_v9, %v360_v11  ;;  %v12257_v44 = vcombine.low %v344_v9, %v360_v11 }
 0x1b0   :  { %3737 = vmatmul.mubr.bf16.vlgmr.msra.gmra.mrb[16].mxu0 %v15695_v20  ;;  %3780 = vmatmul.mubr.bf16.vlgmr.msra.gmra.mrb[16].mxu1 %v15695_v20 }
 0x1b1   :  { %3791 = vmatpush1.bf16.msra.mxu0 %v12033_v12  ;;  %3834 = vmatpush1.bf16.msra.mxu1 %v12035_v13  ;;  %v345_v12 = vld [vmem:[#allocation2 + $0x758] sm:$0xff]  ;;  %v12228_v13 = vcombine.high %v313_v62, %v329_v2 }
 0x1b2   :  { %3792 = vmatprep.subr.bf16.mxu0 %v12066_v14  ;;  %3835 = vmatprep.subr.bf16.mxu1 %v12068_v18  ;;  %v361_v14 = vld [vmem:[#allocation2 + $0x7d8] sm:$0xff] }
 0x1b3   :  { %3865 = vmatprep.mubr.bf16.mxu1 %v15702_v30  ;;  %3822 = vmatprep.mubr.bf16.mxu0 %v15702_v30  ;;  %v12260_v29 = vcombine.high %v345_v12, %v361_v14 }
 0x1b5   :  { %3793 = vmatpush1.bf16.msra.mxu0 %v12065_v21  ;;  %3836 = vmatpush1.bf16.msra.mxu1 %v12067_v22 }
 0x1b6   :  { %3794 = vmatprep.subr.bf16.mxu0 %v12098_v23  ;;  %3837 = vmatprep.subr.bf16.mxu1 %v12100_v28  ;;  %v12227_v23 = vcombine.low %v313_v62, %v329_v2  ;;  %v424_v2 = vld [vmem:[#allocation2 + $0x9d0] sm:$0xff] }
 0x1b9   :  { %3795 = vmatpush1.bf16.msra.mxu0 %v12097_v31  ;;  %3838 = vmatpush1.bf16.msra.mxu1 %v12099_v32  ;;  %v376_v31 = vld [vmem:[#allocation2 + $0x850] sm:$0xff] }
 0x1ba   :  { %3796 = vmatprep.subr.bf16.mxu0 %v12130_v33  ;;  %3839 = vmatprep.subr.bf16.mxu1 %v12132_v37  ;;  %v392_v32 = vld [vmem:[#allocation2 + $0x8d0] sm:$0xff]  ;;  %v377_v33 = vld [vmem:[#allocation2 + $0x858] sm:$0xff] }
 0x1bb   :  { %v12290_v61 = vcombine.high %v376_v31, %v392_v32 }
 0x1bd   :  { %3797 = vmatpush1.bf16.msra.mxu0 %v12129_v39  ;;  %3840 = vmatpush1.bf16.msra.mxu1 %v12131_v25  ;;  %v393_v25 = vld [vmem:[#allocation2 + $0x8d8] sm:$0xff] }
 0x1be   :  { %3798 = vmatprep.subr.bf16.mxu0 %v12162_v40  ;;  %3841 = vmatprep.subr.bf16.mxu1 %v12164_v56  ;;  %v12291_v9 = vcombine.low %v377_v33, %v393_v25 }
 0x1c1   :  { %3799 = vmatpush1.bf16.msra.mxu0 %v12161_v10  ;;  %3842 = vmatpush1.bf16.msra.mxu1 %v12163_v49  ;;  %v12259_v10 = vcombine.low %v345_v12, %v361_v14  ;;  %v440_v12 = vld [vmem:[#allocation2 + $0xa50] sm:$0xff]  ;;  %v441_v14 = vld [vmem:[#allocation2 + $0xa58] sm:$0xff] }
 0x1c2   :  { %3800 = vmatprep.subr.bf16.mxu0 %v12194_v52  ;;  %3843 = vmatprep.subr.bf16.mxu1 %v12196_v1  ;;  %v408_v1 = vld [vmem:[#allocation2 + $0x950] sm:$0xff] }
 0x1c3   :  { %v3480_v15 = vpop.f32.mrb[4].mxu0  ;;  %v3523_v16 = vpop.f32.mrb[4].mxu1  ;;  %v12322_v11 = vcombine.high %v408_v1, %v424_v2 }
 0x1c4   :  { %v3481_v18 = vadd.f32 %v3480_v15, %v649_v3  ;;  %v3482_v19 = vpop.f32.mrb[5].mxu0  ;;  %v3524_v21 = vadd.f32 %v3523_v16, %v657_v4  ;;  %v3525_v22 = vpop.f32.mrb[5].mxu1  ;;  %v457_v16 = vld [vmem:[#allocation2 + $0xad8] sm:$0xff] }
 0x1c5   :  { %3801 = vmatpush1.bf16.msra.mxu0 %v12193_v5  ;;  %v3483_v53 = vadd.f32 %v3482_v19, %v653_v6  ;;  %v3484_v26 = vpop.f32.mrb[6].mxu0  ;;  %v3526_v27 = vadd.f32 %v3525_v22, %v661_v46  ;;  %v3527_v28 = vpop.f32.mrb[6].mxu1  ;;  %3844 = vmatpush1.bf16.msra.mxu1 %v12195_v7  ;;  %v12292_v5 = vcombine.high %v377_v33, %v393_v25  ;;  %v488_v22 = vld [vmem:[#allocation2 + $0xbd0] sm:$0xff]  ;;  %v537_v25 = vld [vmem:[#allocation2 + $0xd58] sm:$0xff] }
 0x1c6   :  { %3802 = vmatprep.subr.bf16.mxu0 %v12226_v8  ;;  %v4052_v34 = vmax.f32 %v3481_v18, 0.0  ;;  %v3485_v35 = vadd.f32 %v3484_v26, %v649_v3  ;;  %v3486_v36 = vpop.f32.mrb[7].mxu0  ;;  %v4054_v37 = vmax.f32 %v3524_v21, 0.0  ;;  %v3528_v38 = vadd.f32 %v3527_v28, %v657_v4  ;;  %v3529_v39 = vpop.f32.mrb[7].mxu1  ;;  %3845 = vmatprep.subr.bf16.mxu1 %v12228_v13  ;;  %v409_v3 = vld [vmem:[#allocation2 + $0x958] sm:$0xff]  ;;  %v456_v13 = vld [vmem:[#allocation2 + $0xad0] sm:$0xff] }
 0x1c7   :  { %v4053_v40 = vmax.f32 %v3483_v53, 0.0  ;;  %v3487_v41 = vadd.f32 %v3486_v36, %v653_v6  ;;  %v3530_v42 = vadd.f32 %v3529_v39, %v661_v46  ;;  %v4055_v52 = vmax.f32 %v3526_v27, 0.0  ;;  %v425_v6 = vld [vmem:[#allocation2 + $0x9d8] sm:$0xff]  ;;  %v472_v21 = vld [vmem:[#allocation2 + $0xb50] sm:$0xff] }
 0x1c8   :  { %v4084_v43 = vmax.f32 %v3485_v35, 0.0  ;;  %v4086_v56 = vmax.f32 %v3528_v38, 0.0  ;;  %v12289_v8 = vcombine.low %v376_v31, %v392_v32  ;;  %v12324_v15 = vcombine.high %v409_v3, %v425_v6  ;;  %v489_v53 = vld [vmem:[#allocation2 + $0xbd8] sm:$0xff]  ;;  %v520_v31 = vld [vmem:[#allocation2 + $0xcd0] sm:$0xff] }
 0x1c9   :  { %3803 = vmatpush1.bf16.msra.mxu0 %v12225_v17  ;;  %v4085_v49 = vmax.f32 %v3487_v41, 0.0  ;;  %v4087_v55 = vmax.f32 %v3530_v42, 0.0  ;;  %3846 = vmatpush1.bf16.msra.mxu1 %v12227_v23  ;;  %v12321_v17 = vcombine.low %v408_v1, %v424_v2  ;;  %v12323_v18 = vcombine.low %v409_v3, %v425_v6  ;;  %v473_v23 = vld [vmem:[#allocation2 + $0xb58] sm:$0xff]  ;;  %v536_v38 = vld [vmem:[#allocation2 + $0xd50] sm:$0xff] }
 0x1ca   :  { %3804 = vmatprep.subr.bf16.mxu0 %v12258_v24  ;;  %v15726_v62 = vpack.c.bf16 %v4084_v43, %v4052_v34  ;;  %v15728_v4 = vpack.c.bf16 %v4086_v56, %v4054_v37  ;;  %3847 = vmatprep.subr.bf16.mxu1 %v12260_v29  ;;  %v12354_v19 = vcombine.high %v440_v12, %v456_v13  ;;  %v504_v29 = vld [vmem:[#allocation2 + $0xc50] sm:$0xff]  ;;  %v505_v32 = vld [vmem:[#allocation2 + $0xc58] sm:$0xff] }
 0x1cb   :  { %v15730_v46 = vpack.c.bf16 %v4085_v49, %v4053_v40  ;;  %v15732_v7 = vpack.c.bf16 %v4087_v55, %v4055_v52  ;;  %v12356_v24 = vcombine.high %v441_v14, %v457_v16  ;;  %v12353_v26 = vcombine.low %v440_v12, %v456_v13  ;;  %v521_v34 = vld [vmem:[#allocation2 + $0xcd8] sm:$0xff]  ;;  %v552_v39 = vld [vmem:[#allocation2 + $0xdd0] sm:$0xff] }
 0x1cc   :  { %v12355_v27 = vcombine.low %v441_v14, %v457_v16  ;;  %v12386_v28 = vcombine.high %v472_v21, %v488_v22  ;;  %v12388_v33 = vcombine.high %v473_v23, %v489_v53  ;;  %v12385_v35 = vcombine.low %v472_v21, %v488_v22  ;;  %v553_v41 = vld [vmem:[#allocation2 + $0xdd8] sm:$0xff]  ;;  %v600_v3 = vld [vmem:[#allocation2 + $0xf50] sm:$0xff]  ;;  %v122_v14 = vld [vmem:[#allocation2 + $0x60] sm:$0xff] }
 0x1cd   :  { %3805 = vmatpush1.bf16.msra.mxu0 %v12257_v44  ;;  %3848 = vmatpush1.bf16.msra.mxu1 %v12259_v10  ;;  %v12387_v36 = vcombine.low %v473_v23, %v489_v53  ;;  %v12418_v37 = vcombine.high %v504_v29, %v520_v31  ;;  %v12420_v40 = vcombine.high %v505_v32, %v521_v34  ;;  %v568_v44 = vld [vmem:[#allocation2 + $0xe50] sm:$0xff]  ;;  %v569_v49 = vld [vmem:[#allocation2 + $0xe58] sm:$0xff]  ;;  %v123_v16 = vld [vmem:[#allocation2 + $0x68] sm:$0xff] }
 0x1ce   :  { %3806 = vmatprep.subr.bf16.mxu0 %v12290_v61  ;;  %3849 = vmatprep.subr.bf16.mxu1 %v12292_v5  ;;  %v12417_v42 = vcombine.low %v504_v29, %v520_v31  ;;  %v12419_v43 = vcombine.low %v505_v32, %v521_v34  ;;  %v12450_v56 = vcombine.high %v536_v38, %v552_v39  ;;  %v584_v10 = vld [vmem:[#allocation2 + $0xed0] sm:$0xff]  ;;  %v585_v55 = vld [vmem:[#allocation2 + $0xed8] sm:$0xff]  ;;  %v154_v23 = vld [vmem:[#allocation2 + $0x160] sm:$0xff] }
 0x1cf   :  { %v12452_v52 = vcombine.high %v537_v25, %v553_v41  ;;  %v12449_v61 = vcombine.low %v536_v38, %v552_v39  ;;  %v12451_v1 = vcombine.low %v537_v25, %v553_v41  ;;  %v12482_v2 = vcombine.high %v568_v44, %v584_v10  ;;  %v616_v5 = vld [vmem:[#allocation2 + $0xfd0] sm:$0xff]  ;;  %v601_v6 = vld [vmem:[#allocation2 + $0xf58] sm:$0xff]  ;;  %v155_v53 = vld [vmem:[#allocation2 + $0x168] sm:$0xff] }
 0x1d0   :  { %v12483_v12 = vcombine.low %v569_v49, %v585_v55  ;;  %v12514_v13 = vcombine.high %v600_v3, %v616_v5  ;;  %v202_v34 = vld [vmem:[#allocation2 + $0x2e0] sm:$0xff] }
 0x1d1   :  { %3807 = vmatpush1.bf16.msra.mxu0 %v12289_v8  ;;  %3850 = vmatpush1.bf16.msra.mxu1 %v12291_v9  ;;  %v12484_v8 = vcombine.high %v569_v49, %v585_v55  ;;  %v617_v9 = vld [vmem:[#allocation2 + $0xfd8] sm:$0xff]  ;;  %v234_v41 = vld [vmem:[#allocation2 + $0x3e0] sm:$0xff] }
 0x1d2   :  { %3808 = vmatprep.subr.bf16.mxu0 %v12322_v11  ;;  %3851 = vmatprep.subr.bf16.mxu1 %v12324_v15  ;;  %v12481_v11 = vcombine.low %v568_v44, %v584_v10  ;;  %v138_v15 = vld [vmem:[#allocation2 + $0xe0] sm:$0xff]  ;;  %v12515_v21 = vcombine.low %v601_v6, %v617_v9 }
 0x1d3   :  { %v12038_v22 = vcombine.high %v122_v14, %v138_v15  ;;  %v250_v10 = vld [vmem:[#allocation2 + $0x460] sm:$0xff] }
 0x1d4   :  { %v266_v49 = vld [vmem:[#allocation2 + $0x4e0] sm:$0xff] }
 0x1d5   :  { %3809 = vmatpush1.bf16.msra.mxu0 %v12321_v17  ;;  %3852 = vmatpush1.bf16.msra.mxu1 %v12323_v18  ;;  %v12516_v17 = vcombine.high %v601_v6, %v617_v9  ;;  %v139_v18 = vld [vmem:[#allocation2 + $0xe8] sm:$0xff] }
 0x1d6   :  { %3810 = vmatprep.subr.bf16.mxu0 %v12354_v19  ;;  %3853 = vmatprep.subr.bf16.mxu1 %v12356_v24  ;;  %v12513_v19 = vcombine.low %v600_v3, %v616_v5  ;;  %v170_v24 = vld [vmem:[#allocation2 + $0x1e0] sm:$0xff]  ;;  %v12039_v29 = vcombine.low %v123_v16, %v139_v18  ;;  %v12166_v3 = vcombine.high %v250_v10, %v266_v49  ;;  %v283_v6 = vld [vmem:[#allocation2 + $0x568] sm:$0xff] }
 0x1d7   :  { %v12070_v31 = vcombine.high %v154_v23, %v170_v24  ;;  %v282_v5 = vld [vmem:[#allocation2 + $0x560] sm:$0xff]  ;;  %v299_v9 = vld [vmem:[#allocation2 + $0x5e8] sm:$0xff] }
 0x1d9   :  { %3811 = vmatpush1.bf16.msra.mxu0 %v12353_v26  ;;  %3854 = vmatpush1.bf16.msra.mxu1 %v12355_v27  ;;  %v12040_v26 = vcombine.high %v123_v16, %v139_v18  ;;  %v171_v27 = vld [vmem:[#allocation2 + $0x1e8] sm:$0xff]  ;;  %v330_v16 = vld [vmem:[#allocation2 + $0x6e0] sm:$0xff]  ;;  %v12200_v18 = vcombine.high %v283_v6, %v299_v9 }
 0x1da   :  { %3812 = vmatprep.subr.bf16.mxu0 %v12386_v28  ;;  %3855 = vmatprep.subr.bf16.mxu1 %v12388_v33  ;;  %v12037_v28 = vcombine.low %v122_v14, %v138_v15  ;;  %v12072_v32 = vcombine.high %v155_v53, %v171_v27  ;;  %v186_v33 = vld [vmem:[#allocation2 + $0x260] sm:$0xff]  ;;  %v12071_v38 = vcombine.low %v155_v53, %v171_v27 }
 0x1db   :  { %v12102_v39 = vcombine.high %v186_v33, %v202_v34  ;;  %v314_v15 = vld [vmem:[#allocation2 + $0x660] sm:$0xff] }
 0x1dd   :  { %3813 = vmatpush1.bf16.msra.mxu0 %v12385_v35  ;;  %3856 = vmatpush1.bf16.msra.mxu1 %v12387_v36  ;;  %v187_v35 = vld [vmem:[#allocation2 + $0x268] sm:$0xff] }
 0x1de   :  { %3814 = vmatprep.subr.bf16.mxu0 %v12418_v37  ;;  %3857 = vmatprep.subr.bf16.mxu1 %v12420_v40  ;;  %v203_v36 = vld [vmem:[#allocation2 + $0x2e8] sm:$0xff]  ;;  %v12069_v37 = vcombine.low %v154_v23, %v170_v24  ;;  %v218_v40 = vld [vmem:[#allocation2 + $0x360] sm:$0xff] }
 0x1df   :  { %v12104_v25 = vcombine.high %v187_v35, %v203_v36  ;;  %v12134_v44 = vcombine.high %v218_v40, %v234_v41 }
 0x1e1   :  { %3815 = vmatpush1.bf16.msra.mxu0 %v12417_v42  ;;  %3858 = vmatpush1.bf16.msra.mxu1 %v12419_v43  ;;  %v219_v42 = vld [vmem:[#allocation2 + $0x368] sm:$0xff] }
 0x1e2   :  { %3816 = vmatprep.subr.bf16.mxu0 %v12450_v56  ;;  %3859 = vmatprep.subr.bf16.mxu1 %v12452_v52  ;;  %v235_v43 = vld [vmem:[#allocation2 + $0x3e8] sm:$0xff]  ;;  %v12101_v56 = vcombine.low %v186_v33, %v202_v34 }
 0x1e3   :  { %v251_v52 = vld [vmem:[#allocation2 + $0x468] sm:$0xff]  ;;  %v12136_v55 = vcombine.high %v219_v42, %v235_v43 }
 0x1e5   :  { %3817 = vmatpush1.bf16.msra.mxu0 %v12449_v61  ;;  %3860 = vmatpush1.bf16.msra.mxu1 %v12451_v1  ;;  %v267_v61 = vld [vmem:[#allocation2 + $0x4e8] sm:$0xff]  ;;  %v12133_v1 = vcombine.low %v218_v40, %v234_v41 }
 0x1e6   :  { %3818 = vmatprep.subr.bf16.mxu0 %v12482_v2  ;;  %3861 = vmatprep.subr.bf16.mxu1 %v12484_v8  ;;  %v12135_v2 = vcombine.low %v219_v42, %v235_v43  ;;  %v12168_v8 = vcombine.high %v251_v52, %v267_v61  ;;  %v378_v42 = vld [vmem:[#allocation2 + $0x860] sm:$0xff] }
 0x1e7   :  { %v394_v43 = vld [vmem:[#allocation2 + $0x8e0] sm:$0xff] }
 0x1e9   :  { %3819 = vmatpush1.bf16.msra.mxu0 %v12481_v11  ;;  %3862 = vmatpush1.bf16.msra.mxu1 %v12483_v12  ;;  %v15738_v11 = vld [vmem:[#allocation4 + $0x8] sm:$0xff]  ;;  %v12165_v12 = vcombine.low %v250_v10, %v266_v49 }
 0x1ea   :  { %3820 = vmatprep.subr.bf16.mxu0 %v12514_v13  ;;  %3863 = vmatprep.subr.bf16.mxu1 %v12516_v17  ;;  %v12167_v13 = vcombine.low %v251_v52, %v267_v61  ;;  %v315_v17 = vld [vmem:[#allocation2 + $0x668] sm:$0xff]  ;;  %v665_v23 = vrot.slane %v15738_v11, %v15665_v54  ;;  %v673_v24 = vrot.slane %v15738_v11, %v15668_v57 }
 0x1eb   :  { %v669_v27 = vrot.slane %v15738_v11, %v15671_v58 }
 0x1ed   :  { %3821 = vmatpush1.bf16.msra.mxu0 %v12513_v19  ;;  %3864 = vmatpush1.bf16.msra.mxu1 %v12515_v21  ;;  %v331_v19 = vld [vmem:[#allocation2 + $0x6e8] sm:$0xff]  ;;  %v15740_v21 = vld [vmem:[#allocation2 + $0x760] sm:$0xff] }
 0x1ee   :  { %3876 = vmatprep.subr.bf16.mxu0 %v12038_v22  ;;  %3919 = vmatprep.subr.bf16.mxu1 %v12040_v26  ;;  %v15742_v22 = vld [vmem:[#allocation2 + $0x7e0] sm:$0xff]  ;;  %v15748_v26 = vld [vmem:[#allocation2 + $0x768] sm:$0xff]  ;;  %v12232_v33 = vcombine.high %v315_v17, %v331_v19  ;;  %v12231_v40 = vcombine.low %v315_v17, %v331_v19 }
 0x1ef   :  { %v12262_v41 = vcombine.high %v15740_v21, %v15742_v22  ;;  %v426_v17 = vld [vmem:[#allocation2 + $0x9e0] sm:$0xff] }
 0x1f0   :  { %3823 = vmatmul.mubr.bf16.vlgmr.msra.gmra.mrb[20].mxu0 %v15695_v20  ;;  %3866 = vmatmul.mubr.bf16.vlgmr.msra.gmra.mrb[20].mxu1 %v15695_v20  ;;  %v12103_v20 = vcombine.low %v187_v35, %v203_v36  ;;  %v12229_v36 = vcombine.low %v314_v15, %v330_v16 }
 0x1f1   :  { %3877 = vmatpush1.bf16.msra.mxu0 %v12037_v28  ;;  %3920 = vmatpush1.bf16.msra.mxu1 %v12039_v29  ;;  %v677_v28 = vrot.slane %v15738_v11, %v15674_v60  ;;  %v12199_v29 = vcombine.low %v283_v6, %v299_v9  ;;  %v395_v9 = vld [vmem:[#allocation2 + $0x8e8] sm:$0xff] }
 0x1f2   :  { %3878 = vmatprep.subr.bf16.mxu0 %v12070_v31  ;;  %3921 = vmatprep.subr.bf16.mxu1 %v12072_v32  ;;  %v12230_v31 = vcombine.high %v314_v15, %v330_v16  ;;  %v363_v32 = vld [vmem:[#allocation2 + $0x7e8] sm:$0xff]  ;;  %v410_v16 = vld [vmem:[#allocation2 + $0x960] sm:$0xff] }
 0x1f3   :  { %3951 = vmatprep.mubr.bf16.mxu1 %v15702_v30  ;;  %3908 = vmatprep.mubr.bf16.mxu0 %v15702_v30  ;;  %v298_v30 = vld [vmem:[#allocation2 + $0x5e0] sm:$0xff]  ;;  %v12264_v49 = vcombine.high %v15748_v26, %v363_v32  ;;  %v12263_v15 = vcombine.low %v15748_v26, %v363_v32  ;;  %v12293_v26 = vcombine.low %v378_v42, %v394_v43 }
 0x1f4   :  { %v12198_v14 = vcombine.high %v282_v5, %v298_v30  ;;  %v12197_v53 = vcombine.low %v282_v5, %v298_v30 }
 0x1f5   :  { %3879 = vmatpush1.bf16.msra.mxu0 %v12069_v37  ;;  %3922 = vmatpush1.bf16.msra.mxu1 %v12071_v38 }
 0x1f6   :  { %3880 = vmatprep.subr.bf16.mxu0 %v12102_v39  ;;  %3923 = vmatprep.subr.bf16.mxu1 %v12104_v25 }
 0x1f9   :  { %3881 = vmatpush1.bf16.msra.mxu0 %v12101_v56  ;;  %3924 = vmatpush1.bf16.msra.mxu1 %v12103_v20 }
 0x1fa   :  { %3882 = vmatprep.subr.bf16.mxu0 %v12134_v44  ;;  %3925 = vmatprep.subr.bf16.mxu1 %v12136_v55 }
 0x1fd   :  { %3883 = vmatpush1.bf16.msra.mxu0 %v12133_v1  ;;  %3926 = vmatpush1.bf16.msra.mxu1 %v12135_v2 }
 0x1fe   :  { %3884 = vmatprep.subr.bf16.mxu0 %v12166_v3  ;;  %3927 = vmatprep.subr.bf16.mxu1 %v12168_v8  ;;  %v379_v8 = vld [vmem:[#allocation2 + $0x868] sm:$0xff] }
 0x1ff   :  { %v12295_v32 = vcombine.low %v379_v8, %v395_v9 }
 0x201   :  { %3885 = vmatpush1.bf16.msra.mxu0 %v12165_v12  ;;  %3928 = vmatpush1.bf16.msra.mxu1 %v12167_v13 }
 0x202   :  { %3886 = vmatprep.subr.bf16.mxu0 %v12198_v14  ;;  %3929 = vmatprep.subr.bf16.mxu1 %v12200_v18  ;;  %v12261_v14 = vcombine.low %v15740_v21, %v15742_v22  ;;  %v411_v21 = vld [vmem:[#allocation2 + $0x968] sm:$0xff] }
 0x203   :  { %v3566_v34 = vpop.f32.mrb[8].mxu0  ;;  %v3609_v35 = vpop.f32.mrb[8].mxu1  ;;  %v427_v22 = vld [vmem:[#allocation2 + $0x9e8] sm:$0xff] }
 0x204   :  { %v3567_v37 = vadd.f32 %v3566_v34, %v665_v23  ;;  %v3568_v38 = vpop.f32.mrb[9].mxu0  ;;  %v3610_v39 = vadd.f32 %v3609_v35, %v673_v24  ;;  %v3611_v25 = vpop.f32.mrb[9].mxu1  ;;  %v442_v34 = vld [vmem:[#allocation2 + $0xa60] sm:$0xff] }
 0x205   :  { %3887 = vmatpush1.bf16.msra.mxu0 %v12197_v53  ;;  %v3569_v56 = vadd.f32 %v3568_v38, %v669_v27  ;;  %v3570_v20 = vpop.f32.mrb[10].mxu0  ;;  %v3612_v44 = vadd.f32 %v3611_v25, %v677_v28  ;;  %v3613_v10 = vpop.f32.mrb[10].mxu1  ;;  %3930 = vmatpush1.bf16.msra.mxu1 %v12199_v29  ;;  %v458_v35 = vld [vmem:[#allocation2 + $0xae0] sm:$0xff]  ;;  %v459_v38 = vld [vmem:[#allocation2 + $0xae8] sm:$0xff]  ;;  %v12327_v25 = vcombine.low %v411_v21, %v427_v22 }
 0x206   :  { %3888 = vmatprep.subr.bf16.mxu0 %v12230_v31  ;;  %v4056_v52 = vmax.f32 %v3567_v37, 0.0  ;;  %v3571_v55 = vadd.f32 %v3570_v20, %v665_v23  ;;  %v3572_v61 = vpop.f32.mrb[11].mxu0  ;;  %v4058_v1 = vmax.f32 %v3610_v39, 0.0  ;;  %v3614_v2 = vadd.f32 %v3613_v10, %v673_v24  ;;  %v3615_v3 = vpop.f32.mrb[11].mxu1  ;;  %3931 = vmatprep.subr.bf16.mxu1 %v12232_v33  ;;  %v475_v20 = vld [vmem:[#allocation2 + $0xb68] sm:$0xff] }
 0x207   :  { %v4057_v5 = vmax.f32 %v3569_v56, 0.0  ;;  %v3573_v30 = vadd.f32 %v3572_v61, %v669_v27  ;;  %v3616_v6 = vadd.f32 %v3615_v3, %v677_v28  ;;  %v4059_v19 = vmax.f32 %v3612_v44, 0.0  ;;  %v490_v56 = vld [vmem:[#allocation2 + $0xbe0] sm:$0xff]  ;;  %v507_v61 = vld [vmem:[#allocation2 + $0xc68] sm:$0xff] }
 0x208   :  { %v4088_v12 = vmax.f32 %v3571_v55, 0.0  ;;  %v4090_v13 = vmax.f32 %v3614_v2, 0.0  ;;  %v12294_v24 = vcombine.high %v378_v42, %v394_v43  ;;  %v12296_v28 = vcombine.high %v379_v8, %v395_v9  ;;  %v491_v43 = vld [vmem:[#allocation2 + $0xbe8] sm:$0xff]  ;;  %v522_v55 = vld [vmem:[#allocation2 + $0xce0] sm:$0xff] }
 0x209   :  { %3889 = vmatpush1.bf16.msra.mxu0 %v12229_v36  ;;  %v4089_v18 = vmax.f32 %v3573_v30, 0.0  ;;  %v4091_v23 = vmax.f32 %v3616_v6, 0.0  ;;  %3932 = vmatpush1.bf16.msra.mxu1 %v12231_v40  ;;  %v12326_v33 = vcombine.high %v410_v16, %v426_v17  ;;  %v443_v36 = vld [vmem:[#allocation2 + $0xa68] sm:$0xff]  ;;  %v12328_v37 = vcombine.high %v411_v21, %v427_v22  ;;  %v538_v6 = vld [vmem:[#allocation2 + $0xd60] sm:$0xff] }
 0x20a   :  { %3890 = vmatprep.subr.bf16.mxu0 %v12262_v41  ;;  %v15760_v53 = vpack.c.bf16 %v4088_v12, %v4056_v52  ;;  %v15762_v27 = vpack.c.bf16 %v4090_v13, %v4058_v1  ;;  %3933 = vmatprep.subr.bf16.mxu1 %v12264_v49  ;;  %v12325_v39 = vcombine.low %v410_v16, %v426_v17  ;;  %v474_v41 = vld [vmem:[#allocation2 + $0xb60] sm:$0xff]  ;;  %v523_v2 = vld [vmem:[#allocation2 + $0xce8] sm:$0xff] }
 0x20b   :  { %v15764_v29 = vpack.c.bf16 %v4089_v18, %v4057_v5  ;;  %v15766_v31 = vpack.c.bf16 %v4091_v23, %v4059_v19  ;;  %v12358_v40 = vcombine.high %v442_v34, %v458_v35  ;;  %v12360_v42 = vcombine.high %v443_v36, %v459_v38  ;;  %v506_v52 = vld [vmem:[#allocation2 + $0xc60] sm:$0xff]  ;;  %v539_v9 = vld [vmem:[#allocation2 + $0xd68] sm:$0xff] }
 0x20c   :  { %v12357_v44 = vcombine.low %v442_v34, %v458_v35  ;;  %v12359_v10 = vcombine.low %v443_v36, %v459_v38  ;;  %v12390_v49 = vcombine.high %v474_v41, %v490_v56  ;;  %v12392_v1 = vcombine.high %v475_v20, %v491_v43  ;;  %v554_v8 = vld [vmem:[#allocation2 + $0xde0] sm:$0xff]  ;;  %v555_v13 = vld [vmem:[#allocation2 + $0xde8] sm:$0xff] }
 0x20d   :  { %3891 = vmatpush1.bf16.msra.mxu0 %v12261_v14  ;;  %3934 = vmatpush1.bf16.msra.mxu1 %v12263_v15  ;;  %v12389_v3 = vcombine.low %v474_v41, %v490_v56  ;;  %v12391_v5 = vcombine.low %v475_v20, %v491_v43  ;;  %v12422_v30 = vcombine.high %v506_v52, %v522_v55  ;;  %v570_v17 = vld [vmem:[#allocation2 + $0xe60] sm:$0xff]  ;;  %v571_v19 = vld [vmem:[#allocation2 + $0xe68] sm:$0xff]  ;;  %v141_v56 = vld [vmem:[#allocation2 + $0xf8] sm:$0xff] }
 0x20e   :  { %3892 = vmatprep.subr.bf16.mxu0 %v12294_v24  ;;  %3935 = vmatprep.subr.bf16.mxu1 %v12296_v28  ;;  %v12424_v12 = vcombine.high %v507_v61, %v523_v2  ;;  %v12421_v14 = vcombine.low %v506_v52, %v522_v55  ;;  %v12423_v15 = vcombine.low %v507_v61, %v523_v2  ;;  %v586_v18 = vld [vmem:[#allocation2 + $0xee0] sm:$0xff]  ;;  %v587_v24 = vld [vmem:[#allocation2 + $0xee8] sm:$0xff]  ;;  %v173_v55 = vld [vmem:[#allocation2 + $0x1f8] sm:$0xff] }
 0x20f   :  { %v12454_v16 = vcombine.high %v538_v6, %v554_v8  ;;  %v12456_v23 = vcombine.high %v539_v9, %v555_v13  ;;  %v12453_v28 = vcombine.low %v538_v6, %v554_v8  ;;  %v12455_v21 = vcombine.low %v539_v9, %v555_v13  ;;  %v619_v35 = vld [vmem:[#allocation2 + $0xfe8] sm:$0xff]  ;;  %v204_v2 = vld [vmem:[#allocation2 + $0x2f0] sm:$0xff]  ;;  %v189_v8 = vld [vmem:[#allocation2 + $0x278] sm:$0xff] }
 0x210   :  { %v12486_v22 = vcombine.high %v570_v17, %v586_v18  ;;  %v12488_v34 = vcombine.high %v571_v19, %v587_v24  ;;  %v12485_v36 = vcombine.low %v570_v17, %v586_v18  ;;  %v15771_v6 = vld [vmem:[%s15998_s0] ss:$8 sps:$4 sm:$0xff]   ;;  %v205_v9 = vld [vmem:[#allocation2 + $0x2f8] sm:$0xff]  ;;  %v236_v17 = vld [vmem:[#allocation2 + $0x3f0] sm:$0xff] }
 0x211   :  { %3893 = vmatpush1.bf16.msra.mxu0 %v12293_v26  ;;  %3936 = vmatpush1.bf16.msra.mxu1 %v12295_v32  ;;  %v602_v26 = vld [vmem:[#allocation2 + $0xf60] sm:$0xff]  ;;  %v221_v18 = vld [vmem:[#allocation2 + $0x378] sm:$0xff] }
 0x212   :  { %3894 = vmatprep.subr.bf16.mxu0 %v12326_v33  ;;  %3937 = vmatprep.subr.bf16.mxu1 %v12328_v37  ;;  %v618_v32 = vld [vmem:[#allocation2 + $0xfe0] sm:$0xff]  ;;  %v603_v33 = vld [vmem:[#allocation2 + $0xf68] sm:$0xff]  ;;  %v12487_v37 = vcombine.low %v571_v19, %v587_v24 }
 0x213   :  { %v12518_v38 = vcombine.high %v602_v26, %v618_v32  ;;  %v12520_v41 = vcombine.high %v603_v33, %v619_v35  ;;  %v12517_v20 = vcombine.low %v602_v26, %v618_v32  ;;  %v15340_v19 = vld [vmem:[%s15998_s0 + $0x4] ss:$8 sps:$4 sm:$0xff]   ;;  %v268_v26 = vld [vmem:[#allocation2 + $0x4f0] sm:$0xff]  ;;  %v253_v32 = vld [vmem:[#allocation2 + $0x478] sm:$0xff] }
 0x215   :  { %3895 = vmatpush1.bf16.msra.mxu0 %v12325_v39  ;;  %3938 = vmatpush1.bf16.msra.mxu1 %v12327_v25  ;;  %v124_v39 = vld [vmem:[#allocation2 + $0x70] sm:$0xff] }
 0x216   :  { %3896 = vmatprep.subr.bf16.mxu0 %v12358_v40  ;;  %3939 = vmatprep.subr.bf16.mxu1 %v12360_v42  ;;  %v140_v25 = vld [vmem:[#allocation2 + $0xf0] sm:$0xff]  ;;  %v125_v40 = vld [vmem:[#allocation2 + $0x78] sm:$0xff]  ;;  %v12519_v42 = vcombine.low %v603_v33, %v619_v35 }
 0x217   :  { %v12042_v43 = vcombine.high %v124_v39, %v140_v25  ;;  %v12044_v52 = vcombine.high %v125_v40, %v141_v56  ;;  %v12041_v61 = vcombine.low %v124_v39, %v140_v25  ;;  %v300_v39 = vld [vmem:[#allocation2 + $0x5f0] sm:$0xff]  ;;  %v285_v25 = vld [vmem:[#allocation2 + $0x578] sm:$0xff] }
 0x219   :  { %3897 = vmatpush1.bf16.msra.mxu0 %v12357_v44  ;;  %3940 = vmatpush1.bf16.msra.mxu1 %v12359_v10  ;;  %v156_v44 = vld [vmem:[#allocation2 + $0x170] sm:$0xff] }
 0x21a   :  { %3898 = vmatprep.subr.bf16.mxu0 %v12390_v49  ;;  %3941 = vmatprep.subr.bf16.mxu1 %v12392_v1  ;;  %v172_v10 = vld [vmem:[#allocation2 + $0x1f0] sm:$0xff]  ;;  %v157_v49 = vld [vmem:[#allocation2 + $0x178] sm:$0xff] }
 0x21b   :  { %v188_v1 = vld [vmem:[#allocation2 + $0x270] sm:$0xff]  ;;  %v12075_v13 = vcombine.low %v157_v49, %v173_v55 }
 0x21c   :  { %v12105_v24 = vcombine.low %v188_v1, %v204_v2 }
 0x21d   :  { %3899 = vmatpush1.bf16.msra.mxu0 %v12389_v3  ;;  %3942 = vmatpush1.bf16.msra.mxu1 %v12391_v5  ;;  %v12043_v3 = vcombine.low %v125_v40, %v141_v56  ;;  %v12074_v5 = vcombine.high %v156_v44, %v172_v10 }
 0x21e   :  { %3900 = vmatprep.subr.bf16.mxu0 %v12422_v30  ;;  %3943 = vmatprep.subr.bf16.mxu1 %v12424_v12  ;;  %v12076_v30 = vcombine.high %v157_v49, %v173_v55  ;;  %v12073_v12 = vcombine.low %v156_v44, %v172_v10  ;;  %v332_v44 = vld [vmem:[#allocation2 + $0x6f0] sm:$0xff]  ;;  %v317_v10 = vld [vmem:[#allocation2 + $0x678] sm:$0xff] }
 0x21f   :  { %v15778_v55 = vld [vmem:[#allocation2 + $0x770] sm:$0xff] }
 0x221   :  { %3901 = vmatpush1.bf16.msra.mxu0 %v12421_v14  ;;  %3944 = vmatpush1.bf16.msra.mxu1 %v12423_v15  ;;  %v12106_v14 = vcombine.high %v188_v1, %v204_v2  ;;  %v12108_v15 = vcombine.high %v189_v8, %v205_v9  ;;  %v681_v1 = vrot.slane %v15738_v11, %v15707_v45 }
 0x222   :  { %3902 = vmatprep.subr.bf16.mxu0 %v12454_v16  ;;  %3945 = vmatprep.subr.bf16.mxu1 %v12456_v23  ;;  %v220_v16 = vld [vmem:[#allocation2 + $0x370] sm:$0xff]  ;;  %v237_v23 = vld [vmem:[#allocation2 + $0x3f8] sm:$0xff]  ;;  %v689_v2 = vrot.slane %v15738_v11, %v15710_v47 }
 0x223   :  { %v12140_v33 = vcombine.high %v221_v18, %v237_v23  ;;  %v12137_v35 = vcombine.low %v220_v16, %v236_v17 }
 0x225   :  { %3903 = vmatpush1.bf16.msra.mxu0 %v12453_v28  ;;  %3946 = vmatpush1.bf16.msra.mxu1 %v12455_v21  ;;  %v12107_v28 = vcombine.low %v189_v8, %v205_v9  ;;  %v12138_v21 = vcombine.high %v220_v16, %v236_v17  ;;  %v685_v8 = vrot.slane %v15738_v11, %v15713_v48 }
 0x226   :  { %3904 = vmatprep.subr.bf16.mxu0 %v12486_v22  ;;  %3947 = vmatprep.subr.bf16.mxu1 %v12488_v34  ;;  %v252_v22 = vld [vmem:[#allocation2 + $0x470] sm:$0xff]  ;;  %v269_v34 = vld [vmem:[#allocation2 + $0x4f8] sm:$0xff]  ;;  %v693_v9 = vrot.slane %v15738_v11, %v15716_v51 }
 0x227   :  { %v12172_v40 = vcombine.high %v253_v32, %v269_v34  ;;  %v12169_v56 = vcombine.low %v252_v22, %v268_v26 }
 0x229   :  { %3905 = vmatpush1.bf16.msra.mxu0 %v12485_v36  ;;  %3948 = vmatpush1.bf16.msra.mxu1 %v12487_v37  ;;  %v12139_v36 = vcombine.low %v221_v18, %v237_v23  ;;  %v12170_v37 = vcombine.high %v252_v22, %v268_v26  ;;  %v380_v22 = vld [vmem:[#allocation2 + $0x870] sm:$0xff] }
 0x22a   :  { %3906 = vmatprep.subr.bf16.mxu0 %v12518_v38  ;;  %3949 = vmatprep.subr.bf16.mxu1 %v12520_v41  ;;  %v284_v38 = vld [vmem:[#allocation2 + $0x570] sm:$0xff]  ;;  %v301_v41 = vld [vmem:[#allocation2 + $0x5f8] sm:$0xff] }
 0x22b   :  { %v12204_v49 = vcombine.high %v285_v25, %v301_v41  ;;  %v396_v26 = vld [vmem:[#allocation2 + $0x8f0] sm:$0xff] }
 0x22d   :  { %3907 = vmatpush1.bf16.msra.mxu0 %v12517_v20  ;;  %3950 = vmatpush1.bf16.msra.mxu1 %v12519_v42  ;;  %v12171_v20 = vcombine.low %v253_v32, %v269_v34  ;;  %v12202_v42 = vcombine.high %v284_v38, %v300_v39 }
 0x22e   :  { %3962 = vmatprep.subr.bf16.mxu0 %v12042_v43  ;;  %4005 = vmatprep.subr.bf16.mxu1 %v12044_v52  ;;  %v316_v43 = vld [vmem:[#allocation2 + $0x670] sm:$0xff]  ;;  %v333_v52 = vld [vmem:[#allocation2 + $0x6f8] sm:$0xff] }
 0x22f   :  { %v12233_v17 = vcombine.low %v316_v43, %v332_v44 }
 0x230   :  { %3909 = vmatmul.mubr.bf16.vlgmr.msra.gmra.mrb[24].mxu0 %v15771_v6  ;;  %3952 = vmatmul.mubr.bf16.vlgmr.msra.gmra.mrb[24].mxu1 %v15771_v6 }
 0x231   :  { %3963 = vmatpush1.bf16.msra.mxu0 %v12041_v61  ;;  %4006 = vmatpush1.bf16.msra.mxu1 %v12043_v3  ;;  %v15780_v61 = vld [vmem:[#allocation2 + $0x7f0] sm:$0xff]  ;;  %v12201_v3 = vcombine.low %v284_v38, %v300_v39 }
 0x232   :  { %3964 = vmatprep.subr.bf16.mxu0 %v12074_v5  ;;  %4007 = vmatprep.subr.bf16.mxu1 %v12076_v30  ;;  %v15786_v5 = vld [vmem:[#allocation2 + $0x778] sm:$0xff] }
 0x233   :  { %3994 = vmatprep.mubr.bf16.mxu0 %v15340_v19  ;;  %4037 = vmatprep.mubr.bf16.mxu1 %v15340_v19  ;;  %v15788_v30 = vld [vmem:[#allocation2 + $0x7f8] sm:$0xff] }
 0x235   :  { %3965 = vmatpush1.bf16.msra.mxu0 %v12073_v12  ;;  %4008 = vmatpush1.bf16.msra.mxu1 %v12075_v13  ;;  %v12203_v12 = vcombine.low %v285_v25, %v301_v41  ;;  %v12234_v13 = vcombine.high %v316_v43, %v332_v44  ;;  %v397_v43 = vld [vmem:[#allocation2 + $0x8f8] sm:$0xff] }
 0x236   :  { %3966 = vmatprep.subr.bf16.mxu0 %v12106_v14  ;;  %4009 = vmatprep.subr.bf16.mxu1 %v12108_v15  ;;  %v12236_v14 = vcombine.high %v317_v10, %v333_v52 }
 0x239   :  { %3967 = vmatpush1.bf16.msra.mxu0 %v12105_v24  ;;  %4010 = vmatpush1.bf16.msra.mxu1 %v12107_v28  ;;  %v12235_v28 = vcombine.low %v317_v10, %v333_v52  ;;  %v12267_v52 = vcombine.low %v15786_v5, %v15788_v30 }
 0x23a   :  { %3968 = vmatprep.subr.bf16.mxu0 %v12138_v21  ;;  %4011 = vmatprep.subr.bf16.mxu1 %v12140_v33  ;;  %v12266_v21 = vcombine.high %v15778_v55, %v15780_v61 }
 0x23d   :  { %3969 = vmatpush1.bf16.msra.mxu0 %v12137_v35  ;;  %4012 = vmatpush1.bf16.msra.mxu1 %v12139_v36  ;;  %v12268_v35 = vcombine.high %v15786_v5, %v15788_v30  ;;  %v429_v5 = vld [vmem:[#allocation2 + $0x9f8] sm:$0xff]  ;;  %v12297_v30 = vcombine.low %v380_v22, %v396_v26 }
 0x23e   :  { %3970 = vmatprep.subr.bf16.mxu0 %v12170_v37  ;;  %4013 = vmatprep.subr.bf16.mxu1 %v12172_v40 }
 0x241   :  { %3971 = vmatpush1.bf16.msra.mxu0 %v12169_v56  ;;  %4014 = vmatpush1.bf16.msra.mxu1 %v12171_v20 }
 0x242   :  { %3972 = vmatprep.subr.bf16.mxu0 %v12202_v42  ;;  %4015 = vmatprep.subr.bf16.mxu1 %v12204_v49  ;;  %v381_v42 = vld [vmem:[#allocation2 + $0x878] sm:$0xff]  ;;  %v12265_v49 = vcombine.low %v15778_v55, %v15780_v61 }
 0x243   :  { %v3652_v15 = vpop.f32.mrb[12].mxu0  ;;  %v3695_v16 = vpop.f32.mrb[12].mxu1  ;;  %v413_v61 = vld [vmem:[#allocation2 + $0x978] sm:$0xff] }
 0x244   :  { %v3653_v18 = vadd.f32 %v3652_v15, %v681_v1  ;;  %v3654_v19 = vpop.f32.mrb[13].mxu0  ;;  %v3696_v23 = vadd.f32 %v3695_v16, %v689_v2  ;;  %v3697_v24 = vpop.f32.mrb[13].mxu1  ;;  %v12300_v15 = vcombine.high %v381_v42, %v397_v43 }
 0x245   :  { %3973 = vmatpush1.bf16.msra.mxu0 %v12201_v3  ;;  %v3655_v11 = vadd.f32 %v3654_v19, %v685_v8  ;;  %v3656_v32 = vpop.f32.mrb[14].mxu0  ;;  %v3698_v33 = vadd.f32 %v3697_v24, %v693_v9  ;;  %v3699_v34 = vpop.f32.mrb[14].mxu1  ;;  %4016 = vmatpush1.bf16.msra.mxu1 %v12203_v12  ;;  %v428_v3 = vld [vmem:[#allocation2 + $0x9f0] sm:$0xff]  ;;  %v445_v24 = vld [vmem:[#allocation2 + $0xa78] sm:$0xff] }
 0x246   :  { %3974 = vmatprep.subr.bf16.mxu0 %v12234_v13  ;;  %v4060_v36 = vmax.f32 %v3653_v18, 0.0  ;;  %v3657_v37 = vadd.f32 %v3656_v32, %v681_v1  ;;  %v3658_v38 = vpop.f32.mrb[15].mxu0  ;;  %v4062_v39 = vmax.f32 %v3696_v23, 0.0  ;;  %v3700_v25 = vadd.f32 %v3699_v34, %v689_v2  ;;  %v3701_v40 = vpop.f32.mrb[15].mxu1  ;;  %4017 = vmatprep.subr.bf16.mxu1 %v12236_v14  ;;  %v412_v1 = vld [vmem:[#allocation2 + $0x970] sm:$0xff] }
 0x247   :  { %v4061_v41 = vmax.f32 %v3655_v11, 0.0  ;;  %v3659_v56 = vadd.f32 %v3658_v38, %v685_v8  ;;  %v3702_v20 = vadd.f32 %v3701_v40, %v693_v9  ;;  %v4063_v2 = vmax.f32 %v3698_v33, 0.0  ;;  %v444_v19 = vld [vmem:[#allocation2 + $0xa70] sm:$0xff] }
 0x248   :  { %v4092_v44 = vmax.f32 %v3657_v37, 0.0  ;;  %v4094_v10 = vmax.f32 %v3700_v25, 0.0  ;;  %v12298_v8 = vcombine.high %v380_v22, %v396_v26  ;;  %v12330_v18 = vcombine.high %v412_v1, %v428_v3  ;;  %v460_v23 = vld [vmem:[#allocation2 + $0xaf0] sm:$0xff]  ;;  %v493_v26 = vld [vmem:[#allocation2 + $0xbf8] sm:$0xff] }
 0x249   :  { %3975 = vmatpush1.bf16.msra.mxu0 %v12233_v17  ;;  %v4093_v12 = vmax.f32 %v3659_v56, 0.0  ;;  %v4095_v13 = vmax.f32 %v3702_v20, 0.0  ;;  %4018 = vmatpush1.bf16.msra.mxu1 %v12235_v28  ;;  %v12299_v17 = vcombine.low %v381_v42, %v397_v43  ;;  %v12332_v28 = vcombine.high %v413_v61, %v429_v5  ;;  %v476_v34 = vld [vmem:[#allocation2 + $0xb70] sm:$0xff]  ;;  %v525_v20 = vld [vmem:[#allocation2 + $0xcf8] sm:$0xff] }
 0x24a   :  { %3976 = vmatprep.subr.bf16.mxu0 %v12266_v21  ;;  %v15802_v9 = vpack.c.bf16 %v4092_v44, %v4060_v36  ;;  %v15804_v14 = vpack.c.bf16 %v4094_v10, %v4062_v39  ;;  %4019 = vmatprep.subr.bf16.mxu1 %v12268_v35  ;;  %v461_v21 = vld [vmem:[#allocation2 + $0xaf8] sm:$0xff]  ;;  %v12329_v11 = vcombine.low %v412_v1, %v428_v3  ;;  %v492_v35 = vld [vmem:[#allocation2 + $0xbf0] sm:$0xff] }
 0x24b   :  { %v15806_v16 = vpack.c.bf16 %v4093_v12, %v4061_v41  ;;  %v15808_v55 = vpack.c.bf16 %v4095_v13, %v4063_v2  ;;  %v12331_v32 = vcombine.low %v413_v61, %v429_v5  ;;  %v12362_v33 = vcombine.high %v444_v19, %v460_v23  ;;  %v477_v36 = vld [vmem:[#allocation2 + $0xb78] sm:$0xff]  ;;  %v508_v25 = vld [vmem:[#allocation2 + $0xc70] sm:$0xff] }
 0x24c   :  { %v12364_v22 = vcombine.high %v445_v24, %v461_v21  ;;  %v12361_v37 = vcombine.low %v444_v19, %v460_v23  ;;  %v12363_v38 = vcombine.low %v445_v24, %v461_v21  ;;  %v12394_v39 = vcombine.high %v476_v34, %v492_v35  ;;  %v524_v40 = vld [vmem:[#allocation2 + $0xcf0] sm:$0xff]  ;;  %v509_v41 = vld [vmem:[#allocation2 + $0xc78] sm:$0xff] }
 0x24d   :  { %3977 = vmatpush1.bf16.msra.mxu0 %v12265_v49  ;;  %4020 = vmatpush1.bf16.msra.mxu1 %v12267_v52  ;;  %v12396_v56 = vcombine.high %v477_v36, %v493_v26  ;;  %v12393_v42 = vcombine.low %v476_v34, %v492_v35  ;;  %v12395_v43 = vcombine.low %v477_v36, %v493_v26  ;;  %v540_v10 = vld [vmem:[#allocation2 + $0xd70] sm:$0xff]  ;;  %v541_v52 = vld [vmem:[#allocation2 + $0xd78] sm:$0xff] }
 0x24e   :  { %3978 = vmatprep.subr.bf16.mxu0 %v12298_v8  ;;  %4021 = vmatprep.subr.bf16.mxu1 %v12300_v15  ;;  %v12426_v44 = vcombine.high %v508_v25, %v524_v40  ;;  %v556_v49 = vld [vmem:[#allocation2 + $0xdf0] sm:$0xff]  ;;  %v12428_v1 = vcombine.high %v509_v41, %v525_v20  ;;  %v557_v3 = vld [vmem:[#allocation2 + $0xdf8] sm:$0xff]  ;;  %v12425_v12 = vcombine.low %v508_v25, %v524_v40 }
 0x24f   :  { %v12427_v2 = vcombine.low %v509_v41, %v525_v20  ;;  %v12458_v13 = vcombine.high %v540_v10, %v556_v49  ;;  %v572_v8 = vld [vmem:[#allocation2 + $0xe70] sm:$0xff]  ;;  %v573_v61 = vld [vmem:[#allocation2 + $0xe78] sm:$0xff]  ;;  %v12460_v5 = vcombine.high %v541_v52, %v557_v3 }
 0x250   :  { %v588_v15 = vld [vmem:[#allocation2 + $0xef0] sm:$0xff]  ;;  %v13736_v41 = vld [vmem:[#allocation6 + $0x28] ss:$16 sps:$4 sm:$0xff]  }
 0x251   :  { %3979 = vmatpush1.bf16.msra.mxu0 %v12297_v30  ;;  %4022 = vmatpush1.bf16.msra.mxu1 %v12299_v17  ;;  %v589_v30 = vld [vmem:[#allocation2 + $0xef8] sm:$0xff]  ;;  %v12457_v17 = vcombine.low %v540_v10, %v556_v49  ;;  %v12490_v19 = vcombine.high %v572_v8, %v588_v15  ;;  %v604_v23 = vld [vmem:[#allocation2 + $0xf70] sm:$0xff] }
 0x252   :  { %3980 = vmatprep.subr.bf16.mxu0 %v12330_v18  ;;  %4023 = vmatprep.subr.bf16.mxu1 %v12332_v28  ;;  %v12459_v18 = vcombine.low %v541_v52, %v557_v3  ;;  %v620_v24 = vld [vmem:[#allocation2 + $0xff0] sm:$0xff]  ;;  %v605_v28 = vld [vmem:[#allocation2 + $0xf78] sm:$0xff]  ;;  %v12492_v21 = vcombine.high %v573_v61, %v589_v30 }
 0x253   :  { %v12522_v34 = vcombine.high %v604_v23, %v620_v24  ;;  %v12521_v36 = vcombine.low %v604_v23, %v620_v24  ;;  %v13729_v26 = vld [vmem:[#allocation6 + $0x4] ss:$16 sps:$4 sm:$0xff]   ;;  %v13733_v40 = vld [vmem:[#allocation6 + $0x20] ss:$16 sps:$4 sm:$0xff]   ;;  %v13750_v52 = vld [vmem:[#allocation6 + $0x6c] ss:$16 sps:$4 sm:$0xff]  }
 0x254   :  { %v13735_v25 = vld [vmem:[#allocation6 + $0x24] ss:$16 sps:$4 sm:$0xff]   ;;  %v13745_v49 = vld [vmem:[#allocation6 + $0x60] ss:$16 sps:$4 sm:$0xff]   ;;  %v13768_v23 = vld [vmem:[#allocation6 + $0xcc] ss:$16 sps:$4 sm:$0xff]  }
 0x255   :  { %3981 = vmatpush1.bf16.msra.mxu0 %v12329_v11  ;;  %4024 = vmatpush1.bf16.msra.mxu1 %v12331_v32  ;;  %v621_v11 = vld [vmem:[#allocation2 + $0xff8] sm:$0xff]  ;;  %v12489_v32 = vcombine.low %v572_v8, %v588_v15  ;;  %v13741_v20 = vld [vmem:[#allocation6 + $0x44] ss:$16 sps:$4 sm:$0xff]   ;;  %v13751_v3 = vld [vmem:[#allocation6 + $0x80] ss:$16 sps:$4 sm:$0xff]  }
 0x256   :  { %3982 = vmatprep.subr.bf16.mxu0 %v12362_v33  ;;  %4025 = vmatprep.subr.bf16.mxu1 %v12364_v22  ;;  %v12491_v33 = vcombine.low %v573_v61, %v589_v30  ;;  %v12524_v35 = vcombine.high %v605_v28, %v621_v11  ;;  %v12523_v22 = vcombine.low %v605_v28, %v621_v11  ;;  %v13747_v10 = vld [vmem:[#allocation6 + $0x64] ss:$16 sps:$4 sm:$0xff]   ;;  %v13762_v8 = vld [vmem:[#allocation6 + $0xac] ss:$16 sps:$4 sm:$0xff]   ;;  %v13757_v15 = vld [vmem:[#allocation6 + $0xa0] ss:$16 sps:$4 sm:$0xff]  }
 0x257   :  { %v13760_v61 = vld [vmem:[#allocation6 + $0xa8] ss:$16 sps:$4 sm:$0xff]  }
 0x258   :  { %v13766_v11 = vld [vmem:[#allocation6 + $0xc8] ss:$16 sps:$4 sm:$0xff]  }
 0x259   :  { %3983 = vmatpush1.bf16.msra.mxu0 %v12361_v37  ;;  %4026 = vmatpush1.bf16.msra.mxu1 %v12363_v38  ;;  %v13732_v37 = vld [vmem:[#allocation6 + $0xc] ss:$16 sps:$4 sm:$0xff]   ;;  %v13727_v38 = vld [vmem:[#allocation6] ss:$16 sps:$4 sm:$0xff]  }
 0x25a   :  { %3984 = vmatprep.subr.bf16.mxu0 %v12394_v39  ;;  %4027 = vmatprep.subr.bf16.mxu1 %v12396_v56  ;;  %v13730_v39 = vld [vmem:[#allocation6 + $0x8] ss:$16 sps:$4 sm:$0xff]   ;;  %v13738_v56 = vld [vmem:[#allocation6 + $0x2c] ss:$16 sps:$4 sm:$0xff]  }
 0x25d   :  { %3985 = vmatpush1.bf16.msra.mxu0 %v12393_v42  ;;  %4028 = vmatpush1.bf16.msra.mxu1 %v12395_v43  ;;  %v13744_v42 = vld [vmem:[#allocation6 + $0x4c] ss:$16 sps:$4 sm:$0xff]   ;;  %v13739_v43 = vld [vmem:[#allocation6 + $0x40] ss:$16 sps:$4 sm:$0xff]  }
 0x25e   :  { %3986 = vmatprep.subr.bf16.mxu0 %v12426_v44  ;;  %4029 = vmatprep.subr.bf16.mxu1 %v12428_v1  ;;  %v13742_v44 = vld [vmem:[#allocation6 + $0x48] ss:$16 sps:$4 sm:$0xff]   ;;  %v13753_v1 = vld [vmem:[#allocation6 + $0x84] ss:$16 sps:$4 sm:$0xff]  }
 0x261   :  { %3987 = vmatpush1.bf16.msra.mxu0 %v12425_v12  ;;  %4030 = vmatpush1.bf16.msra.mxu1 %v12427_v2  ;;  %v13754_v12 = vld [vmem:[#allocation6 + $0x88] ss:$16 sps:$4 sm:$0xff]   ;;  %v15814_v2 = vld [vmem:[#allocation4 + $0x10] sm:$0xff] }
 0x262   :  { %3988 = vmatprep.subr.bf16.mxu0 %v12458_v13  ;;  %4031 = vmatprep.subr.bf16.mxu1 %v12460_v5  ;;  %v13759_v13 = vld [vmem:[#allocation6 + $0xa4] ss:$16 sps:$4 sm:$0xff]   ;;  %v697_v30 = vrot.slane %v15814_v2, %v15665_v54 }
 0x263   :  { %v13765_v5 = vld [vmem:[#allocation6 + $0xc4] ss:$16 sps:$4 sm:$0xff]  }
 0x265   :  { %3989 = vmatpush1.bf16.msra.mxu0 %v12457_v17  ;;  %4032 = vmatpush1.bf16.msra.mxu1 %v12459_v18  ;;  %v705_v17 = vrot.slane %v15814_v2, %v15668_v57  ;;  %v701_v18 = vrot.slane %v15814_v2, %v15671_v58 }
 0x266   :  { %3990 = vmatprep.subr.bf16.mxu0 %v12490_v19  ;;  %4033 = vmatprep.subr.bf16.mxu1 %v12492_v21  ;;  %v709_v19 = vrot.slane %v15814_v2, %v15674_v60  ;;  %v13763_v21 = vld [vmem:[#allocation6 + $0xc0] ss:$16 sps:$4 sm:$0xff]  }
 0x269   :  { %3991 = vmatpush1.bf16.msra.mxu0 %v12489_v32  ;;  %4034 = vmatpush1.bf16.msra.mxu1 %v12491_v33 }
 0x26a   :  { %3992 = vmatprep.subr.bf16.mxu0 %v12522_v34  ;;  %4035 = vmatprep.subr.bf16.mxu1 %v12524_v35 }
 0x26d   :  { %3993 = vmatpush1.bf16.msra.mxu0 %v12521_v36  ;;  %4036 = vmatpush1.bf16.msra.mxu1 %v12523_v22  ;;  %v13771_v36 = vld [vmem:[#allocation6 + $0xe4] ss:$16 sps:$4 sm:$0xff]   ;;  %v13774_v22 = vld [vmem:[#allocation6 + $0xec] ss:$16 sps:$4 sm:$0xff]  }
 0x26e   :  { %10310 = vmatprep.subr.bf16.mxu0 %v13729_v26  ;;  %10998 = vmatprep.subr.bf16.mxu1 %v13732_v37 }
 0x270   :  { %3995 = vmatmul.mubr.bf16.vlgmr.msra.gmra.mrb[28].mxu0 %v15771_v6  ;;  %4038 = vmatmul.mubr.bf16.vlgmr.msra.gmra.mrb[28].mxu1 %v15771_v6  ;;  %v13748_v6 = vld [vmem:[#allocation6 + $0x68] ss:$16 sps:$4 sm:$0xff]  }
 0x271   :  { %10311 = vmatpush1.bf16.msra.mxu0 %v13727_v38  ;;  %10342 = vmatprep.mubr.bf16.mxu0 %v15688_v63 }
 0x272   :  { %10999 = vmatpush1.bf16.msra.mxu1 %v13730_v39  ;;  %11030 = vmatprep.mubr.bf16.mxu1 %v15688_v63  ;;  %v13756_v63 = vld [vmem:[#allocation6 + $0x8c] ss:$16 sps:$4 sm:$0xff]  }
 0x273   :  { %10312 = vmatprep.subr.bf16.mxu0 %v13735_v25  ;;  %11000 = vmatprep.subr.bf16.mxu1 %v13738_v56 }
 0x275   :  { %10313 = vmatpush1.bf16.msra.mxu0 %v13733_v40 }
 0x276   :  { %11001 = vmatpush1.bf16.msra.mxu1 %v13736_v41  ;;  %10314 = vmatprep.subr.bf16.mxu0 %v13741_v20 }
 0x277   :  { %11002 = vmatprep.subr.bf16.mxu1 %v13744_v42 }
 0x279   :  { %10315 = vmatpush1.bf16.msra.mxu0 %v13739_v43 }
 0x27a   :  { %11003 = vmatpush1.bf16.msra.mxu1 %v13742_v44  ;;  %10316 = vmatprep.subr.bf16.mxu0 %v13747_v10 }
 0x27b   :  { %11004 = vmatprep.subr.bf16.mxu1 %v13750_v52  ;;  %v13772_v52 = vld [vmem:[#allocation6 + $0xe8] ss:$16 sps:$4 sm:$0xff]  }
 0x27d   :  { %10317 = vmatpush1.bf16.msra.mxu0 %v13745_v49  ;;  %v13769_v49 = vld [vmem:[#allocation6 + $0xe0] ss:$16 sps:$4 sm:$0xff]  }
 0x27e   :  { %11005 = vmatpush1.bf16.msra.mxu1 %v13748_v6  ;;  %10318 = vmatprep.subr.bf16.mxu0 %v13753_v1 }
 0x27f   :  { %11006 = vmatprep.subr.bf16.mxu1 %v13756_v63  ;;  %v13780_v63 = vld [vmem:[#allocation6 + $0x10c] ss:$16 sps:$4 sm:$0xff]  }
 0x281   :  { %10319 = vmatpush1.bf16.msra.mxu0 %v13751_v3  ;;  %v13777_v3 = vld [vmem:[#allocation6 + $0x104] ss:$16 sps:$4 sm:$0xff]  }
 0x282   :  { %11007 = vmatpush1.bf16.msra.mxu1 %v13754_v12  ;;  %10320 = vmatprep.subr.bf16.mxu0 %v13759_v13 }
 0x283   :  { %11008 = vmatprep.subr.bf16.mxu1 %v13762_v8  ;;  %v3738_v24 = vpop.f32.mrb[16].mxu0  ;;  %v3781_v28 = vpop.f32.mrb[16].mxu1 }
 0x284   :  { %v3739_v32 = vadd.f32 %v3738_v24, %v697_v30  ;;  %v3740_v33 = vpop.f32.mrb[17].mxu0  ;;  %v3782_v34 = vadd.f32 %v3781_v28, %v705_v17  ;;  %v3783_v35 = vpop.f32.mrb[17].mxu1  ;;  %v13786_v24 = vld [vmem:[#allocation6 + $0x12c] ss:$16 sps:$4 sm:$0xff]   ;;  %v13784_v28 = vld [vmem:[#allocation6 + $0x128] ss:$16 sps:$4 sm:$0xff]  }
 0x285   :  { %10321 = vmatpush1.bf16.msra.mxu0 %v13757_v15  ;;  %v3741_v26 = vadd.f32 %v3740_v33, %v701_v18  ;;  %v3742_v37 = vpop.f32.mrb[18].mxu0  ;;  %v3784_v38 = vadd.f32 %v3783_v35, %v709_v19  ;;  %v3785_v39 = vpop.f32.mrb[18].mxu1  ;;  %v13790_v33 = vld [vmem:[#allocation6 + $0x148] ss:$16 sps:$4 sm:$0xff]   ;;  %v13793_v35 = vld [vmem:[#allocation6 + $0x160] ss:$16 sps:$4 sm:$0xff]  }
 0x286   :  { %11009 = vmatpush1.bf16.msra.mxu1 %v13760_v61  ;;  %10322 = vmatprep.subr.bf16.mxu0 %v13765_v5  ;;  %v4064_v25 = vmax.f32 %v3739_v32, 0.0  ;;  %v3743_v40 = vadd.f32 %v3742_v37, %v697_v30  ;;  %v3744_v41 = vpop.f32.mrb[19].mxu0  ;;  %v4066_v56 = vmax.f32 %v3782_v34, 0.0  ;;  %v3786_v20 = vadd.f32 %v3785_v39, %v705_v17  ;;  %v3787_v42 = vpop.f32.mrb[19].mxu1  ;;  %v13775_v17 = vld [vmem:[#allocation6 + $0x100] ss:$16 sps:$4 sm:$0xff]  }
 0x287   :  { %11010 = vmatprep.subr.bf16.mxu1 %v13768_v23  ;;  %v4065_v43 = vmax.f32 %v3741_v26, 0.0  ;;  %v3745_v44 = vadd.f32 %v3744_v41, %v701_v18  ;;  %v3788_v10 = vadd.f32 %v3787_v42, %v709_v19  ;;  %v4067_v13 = vmax.f32 %v3784_v38, 0.0  ;;  %v13778_v18 = vld [vmem:[#allocation6 + $0x108] ss:$16 sps:$4 sm:$0xff]   ;;  %v13783_v19 = vld [vmem:[#allocation6 + $0x124] ss:$16 sps:$4 sm:$0xff]  }
 0x288   :  { %v4096_v6 = vmax.f32 %v3743_v40, 0.0  ;;  %v4098_v1 = vmax.f32 %v3786_v20, 0.0  ;;  %v13781_v23 = vld [vmem:[#allocation6 + $0x120] ss:$16 sps:$4 sm:$0xff]   ;;  %v13792_v32 = vld [vmem:[#allocation6 + $0x14c] ss:$16 sps:$4 sm:$0xff]  }
 0x289   :  { %10323 = vmatpush1.bf16.msra.mxu0 %v13763_v21  ;;  %v4097_v12 = vmax.f32 %v3745_v44, 0.0  ;;  %v4099_v8 = vmax.f32 %v3788_v10, 0.0  ;;  %v13789_v21 = vld [vmem:[#allocation6 + $0x144] ss:$16 sps:$4 sm:$0xff]   ;;  %v13799_v37 = vld [vmem:[#allocation6 + $0x180] ss:$16 sps:$4 sm:$0xff]  }
 0x28a   :  { %11011 = vmatpush1.bf16.msra.mxu1 %v13766_v11  ;;  %10324 = vmatprep.subr.bf16.mxu0 %v13771_v36  ;;  %v15824_v15 = vpack.c.bf16 %v4096_v6, %v4064_v25  ;;  %v15826_v61 = vpack.c.bf16 %v4098_v1, %v4066_v56  ;;  %v13787_v11 = vld [vmem:[#allocation6 + $0x140] ss:$16 sps:$4 sm:$0xff]   ;;  %v13795_v34 = vld [vmem:[#allocation6 + $0x164] ss:$16 sps:$4 sm:$0xff]   ;;  %v13798_v36 = vld [vmem:[#allocation6 + $0x16c] ss:$16 sps:$4 sm:$0xff]  }
 0x28b   :  { %11012 = vmatprep.subr.bf16.mxu1 %v13774_v22  ;;  %v15828_v5 = vpack.c.bf16 %v4097_v12, %v4065_v43  ;;  %v15830_v30 = vpack.c.bf16 %v4099_v8, %v4067_v13  ;;  %v13796_v22 = vld [vmem:[#allocation6 + $0x168] ss:$16 sps:$4 sm:$0xff]   ;;  %v13801_v26 = vld [vmem:[#allocation6 + $0x184] ss:$16 sps:$4 sm:$0xff]   ;;  %v13804_v38 = vld [vmem:[#allocation6 + $0x18c] ss:$16 sps:$4 sm:$0xff]  }
 0x28c   :  { %v13802_v39 = vld [vmem:[#allocation6 + $0x188] ss:$16 sps:$4 sm:$0xff]   ;;  %v13807_v25 = vld [vmem:[#allocation6 + $0x1a4] ss:$16 sps:$4 sm:$0xff]   ;;  %v13805_v40 = vld [vmem:[#allocation6 + $0x1a0] ss:$16 sps:$4 sm:$0xff]  }
 0x28d   :  { %10325 = vmatpush1.bf16.msra.mxu0 %v13769_v49  ;;  %v13810_v41 = vld [vmem:[#allocation6 + $0x1ac] ss:$16 sps:$4 sm:$0xff]   ;;  %v13808_v56 = vld [vmem:[#allocation6 + $0x1a8] ss:$16 sps:$4 sm:$0xff]   ;;  %v13813_v20 = vld [vmem:[#allocation6 + $0x1c4] ss:$16 sps:$4 sm:$0xff]  }
 0x28e   :  { %11013 = vmatpush1.bf16.msra.mxu1 %v13772_v52  ;;  %10326 = vmatprep.subr.bf16.mxu0 %v13777_v3  ;;  %v13811_v42 = vld [vmem:[#allocation6 + $0x1c0] ss:$16 sps:$4 sm:$0xff]   ;;  %v13816_v43 = vld [vmem:[#allocation6 + $0x1cc] ss:$16 sps:$4 sm:$0xff]   ;;  %v13814_v44 = vld [vmem:[#allocation6 + $0x1c8] ss:$16 sps:$4 sm:$0xff]  }
 0x28f   :  { %11014 = vmatprep.subr.bf16.mxu1 %v13780_v63  ;;  %v13819_v10 = vld [vmem:[#allocation6 + $0x1e4] ss:$16 sps:$4 sm:$0xff]   ;;  %v13817_v49 = vld [vmem:[#allocation6 + $0x1e0] ss:$16 sps:$4 sm:$0xff]   ;;  %v13822_v52 = vld [vmem:[#allocation6 + $0x1ec] ss:$16 sps:$4 sm:$0xff]  }
 0x290   :  { %v13820_v6 = vld [vmem:[#allocation6 + $0x1e8] ss:$16 sps:$4 sm:$0xff]   ;;  %v13825_v1 = vld [vmem:[#allocation6 + $0x204] ss:$16 sps:$4 sm:$0xff]   ;;  %v13823_v3 = vld [vmem:[#allocation6 + $0x200] ss:$16 sps:$4 sm:$0xff]  }
 0x291   :  { %10327 = vmatpush1.bf16.msra.mxu0 %v13775_v17  ;;  %v13828_v63 = vld [vmem:[#allocation6 + $0x20c] ss:$16 sps:$4 sm:$0xff]   ;;  %v13826_v12 = vld [vmem:[#allocation6 + $0x208] ss:$16 sps:$4 sm:$0xff]   ;;  %v13831_v13 = vld [vmem:[#allocation6 + $0x224] ss:$16 sps:$4 sm:$0xff]  }
 0x292   :  { %11015 = vmatpush1.bf16.msra.mxu1 %v13778_v18  ;;  %10328 = vmatprep.subr.bf16.mxu0 %v13783_v19  ;;  %v13829_v8 = vld [vmem:[#allocation6 + $0x220] ss:$16 sps:$4 sm:$0xff]   ;;  %v13832_v17 = vld [vmem:[#allocation6 + $0x228] ss:$16 sps:$4 sm:$0xff]   ;;  %v13834_v18 = vld [vmem:[#allocation6 + $0x22c] ss:$16 sps:$4 sm:$0xff]  }
 0x293   :  { %11016 = vmatprep.subr.bf16.mxu1 %v13786_v24  ;;  %v13837_v19 = vld [vmem:[#allocation6 + $0x244] ss:$16 sps:$4 sm:$0xff]   ;;  %v13835_v24 = vld [vmem:[#allocation6 + $0x240] ss:$16 sps:$4 sm:$0xff]  }
 0x295   :  { %10329 = vmatpush1.bf16.msra.mxu0 %v13781_v23  ;;  %v13840_v23 = vld [vmem:[#allocation6 + $0x24c] ss:$16 sps:$4 sm:$0xff]  }
 0x296   :  { %11017 = vmatpush1.bf16.msra.mxu1 %v13784_v28  ;;  %10330 = vmatprep.subr.bf16.mxu0 %v13789_v21  ;;  %v13838_v28 = vld [vmem:[#allocation6 + $0x248] ss:$16 sps:$4 sm:$0xff]   ;;  %v13843_v21 = vld [vmem:[#allocation6 + $0x264] ss:$16 sps:$4 sm:$0xff]  }
 0x297   :  { %11018 = vmatprep.subr.bf16.mxu1 %v13792_v32  ;;  %v13846_v32 = vld [vmem:[#allocation6 + $0x26c] ss:$16 sps:$4 sm:$0xff]  }
 0x299   :  { %10331 = vmatpush1.bf16.msra.mxu0 %v13787_v11  ;;  %v13841_v11 = vld [vmem:[#allocation6 + $0x260] ss:$16 sps:$4 sm:$0xff]  }
 0x29a   :  { %11019 = vmatpush1.bf16.msra.mxu1 %v13790_v33  ;;  %10332 = vmatprep.subr.bf16.mxu0 %v13795_v34  ;;  %v13849_v33 = vld [vmem:[#allocation6 + $0x284] ss:$16 sps:$4 sm:$0xff]   ;;  %v13847_v34 = vld [vmem:[#allocation6 + $0x280] ss:$16 sps:$4 sm:$0xff]  }
 0x29b   :  { %11020 = vmatprep.subr.bf16.mxu1 %v13798_v36  ;;  %v13855_v36 = vld [vmem:[#allocation6 + $0x2a4] ss:$16 sps:$4 sm:$0xff]  }
 0x29d   :  { %10333 = vmatpush1.bf16.msra.mxu0 %v13793_v35  ;;  %v13850_v35 = vld [vmem:[#allocation6 + $0x288] ss:$16 sps:$4 sm:$0xff]  }
 0x29e   :  { %11021 = vmatpush1.bf16.msra.mxu1 %v13796_v22  ;;  %10334 = vmatprep.subr.bf16.mxu0 %v13801_v26  ;;  %v13858_v22 = vld [vmem:[#allocation6 + $0x2ac] ss:$16 sps:$4 sm:$0xff]   ;;  %v13853_v26 = vld [vmem:[#allocation6 + $0x2a0] ss:$16 sps:$4 sm:$0xff]  }
 0x29f   :  { %11022 = vmatprep.subr.bf16.mxu1 %v13804_v38  ;;  %v13861_v38 = vld [vmem:[#allocation6 + $0x2c4] ss:$16 sps:$4 sm:$0xff]  }
 0x2a1   :  { %10335 = vmatpush1.bf16.msra.mxu0 %v13799_v37  ;;  %v13856_v37 = vld [vmem:[#allocation6 + $0x2a8] ss:$16 sps:$4 sm:$0xff]  }
 0x2a2   :  { %11023 = vmatpush1.bf16.msra.mxu1 %v13802_v39  ;;  %10336 = vmatprep.subr.bf16.mxu0 %v13807_v25  ;;  %v713_v39 = vrot.slane %v15814_v2, %v15707_v45  ;;  %v721_v25 = vrot.slane %v15814_v2, %v15710_v47 }
 0x2a3   :  { %11024 = vmatprep.subr.bf16.mxu1 %v13810_v41  ;;  %v717_v41 = vrot.slane %v15814_v2, %v15713_v48 }
 0x2a5   :  { %10337 = vmatpush1.bf16.msra.mxu0 %v13805_v40  ;;  %v13864_v40 = vld [vmem:[#allocation6 + $0x2cc] ss:$16 sps:$4 sm:$0xff]  }
 0x2a6   :  { %11025 = vmatpush1.bf16.msra.mxu1 %v13808_v56  ;;  %10338 = vmatprep.subr.bf16.mxu0 %v13813_v20  ;;  %v725_v56 = vrot.slane %v15814_v2, %v15716_v51 }
 0x2a7   :  { %11026 = vmatprep.subr.bf16.mxu1 %v13816_v43  ;;  %v13859_v43 = vld [vmem:[#allocation6 + $0x2c0] ss:$16 sps:$4 sm:$0xff]  }
 0x2a9   :  { %10339 = vmatpush1.bf16.msra.mxu0 %v13811_v42 }
 0x2aa   :  { %11027 = vmatpush1.bf16.msra.mxu1 %v13814_v44  ;;  %10340 = vmatprep.subr.bf16.mxu0 %v13819_v10 }
 0x2ab   :  { %11028 = vmatprep.subr.bf16.mxu1 %v13822_v52 }
 0x2ad   :  { %10341 = vmatpush1.bf16.msra.mxu0 %v13817_v49 }
 0x2ae   :  { %11029 = vmatpush1.bf16.msra.mxu1 %v13820_v6  ;;  %10353 = vmatprep.subr.bf16.mxu0 %v13825_v1  ;;  %v13862_v6 = vld [vmem:[#allocation6 + $0x2c8] ss:$16 sps:$4 sm:$0xff]   ;;  %v13867_v1 = vld [vmem:[#allocation6 + $0x2e4] ss:$16 sps:$4 sm:$0xff]  }
 0x2af   :  { %11041 = vmatprep.subr.bf16.mxu1 %v13828_v63 }
 0x2b0   :  { %10343 = vmatmul.mubr.bf16.vlgmr.msra.gmra.mrb[32].mxu0 %v15684_v50 }
 0x2b1   :  { %11031 = vmatmul.mubr.bf16.vlgmr.msra.gmra.mrb[32].mxu1 %v15684_v50  ;;  %10354 = vmatpush1.bf16.msra.mxu0 %v13823_v3  ;;  %v13844_v50 = vld [vmem:[#allocation6 + $0x268] ss:$16 sps:$4 sm:$0xff]  }
 0x2b2   :  { %10385 = vmatprep.mubr.bf16.mxu0 %v15690_v0  ;;  %11042 = vmatpush1.bf16.msra.mxu1 %v13826_v12 }
 0x2b3   :  { %11073 = vmatprep.mubr.bf16.mxu1 %v15690_v0  ;;  %10355 = vmatprep.subr.bf16.mxu0 %v13831_v13  ;;  %v13852_v0 = vld [vmem:[#allocation6 + $0x28c] ss:$16 sps:$4 sm:$0xff]  }
 0x2b4   :  { %11043 = vmatprep.subr.bf16.mxu1 %v13834_v18 }
 0x2b5   :  { %10356 = vmatpush1.bf16.msra.mxu0 %v13829_v8 }
 0x2b6   :  { %11044 = vmatpush1.bf16.msra.mxu1 %v13832_v17  ;;  %10357 = vmatprep.subr.bf16.mxu0 %v13837_v19 }
 0x2b7   :  { %11045 = vmatprep.subr.bf16.mxu1 %v13840_v23 }
 0x2b9   :  { %10358 = vmatpush1.bf16.msra.mxu0 %v13835_v24  ;;  %v13870_v24 = vld [vmem:[#allocation6 + $0x2ec] ss:$16 sps:$4 sm:$0xff]  }
 0x2ba   :  { %11046 = vmatpush1.bf16.msra.mxu1 %v13838_v28  ;;  %10359 = vmatprep.subr.bf16.mxu0 %v13843_v21 }
 0x2bb   :  { %11047 = vmatprep.subr.bf16.mxu1 %v13846_v32 }
 0x2bd   :  { %10360 = vmatpush1.bf16.msra.mxu0 %v13841_v11 }
 0x2be   :  { %11048 = vmatpush1.bf16.msra.mxu1 %v13844_v50  ;;  %10361 = vmatprep.subr.bf16.mxu0 %v13849_v33  ;;  %v13865_v33 = vld [vmem:[#allocation6 + $0x2e0] ss:$16 sps:$4 sm:$0xff]  }
 0x2bf   :  { %11049 = vmatprep.subr.bf16.mxu1 %v13852_v0 }
 0x2c1   :  { %10362 = vmatpush1.bf16.msra.mxu0 %v13847_v34 }
 0x2c2   :  { %11050 = vmatpush1.bf16.msra.mxu1 %v13850_v35  ;;  %10363 = vmatprep.subr.bf16.mxu0 %v13855_v36  ;;  %v13868_v36 = vld [vmem:[#allocation6 + $0x2e8] ss:$16 sps:$4 sm:$0xff]  }
 0x2c3   :  { %11051 = vmatprep.subr.bf16.mxu1 %v13858_v22  ;;  %v3824_v20 = vpop.f32.mrb[20].mxu0  ;;  %v3867_v42 = vpop.f32.mrb[20].mxu1  ;;  %v13873_v22 = vld [vmem:[#allocation6 + $0x304] ss:$16 sps:$4 sm:$0xff]  }
 0x2c4   :  { %v3825_v44 = vadd.f32 %v3824_v20, %v713_v39  ;;  %v3826_v10 = vpop.f32.mrb[21].mxu0  ;;  %v3868_v49 = vadd.f32 %v3867_v42, %v721_v25  ;;  %v3869_v52 = vpop.f32.mrb[21].mxu1  ;;  %v13882_v20 = vld [vmem:[#allocation6 + $0x32c] ss:$16 sps:$4 sm:$0xff]   ;;  %v13877_v42 = vld [vmem:[#allocation6 + $0x320] ss:$16 sps:$4 sm:$0xff]  }
 0x2c5   :  { %10364 = vmatpush1.bf16.msra.mxu0 %v13853_v26  ;;  %v3827_v3 = vadd.f32 %v3826_v10, %v717_v41  ;;  %v3828_v63 = vpop.f32.mrb[22].mxu0  ;;  %v3870_v12 = vadd.f32 %v3869_v52, %v725_v56  ;;  %v3871_v13 = vpop.f32.mrb[22].mxu1  ;;  %v13888_v10 = vld [vmem:[#allocation6 + $0x34c] ss:$16 sps:$4 sm:$0xff]   ;;  %v13886_v52 = vld [vmem:[#allocation6 + $0x348] ss:$16 sps:$4 sm:$0xff]  }
 0x2c6   :  { %11052 = vmatpush1.bf16.msra.mxu1 %v13856_v37  ;;  %10365 = vmatprep.subr.bf16.mxu0 %v13861_v38  ;;  %v4068_v8 = vmax.f32 %v3825_v44, 0.0  ;;  %v3829_v2 = vadd.f32 %v3828_v63, %v713_v39  ;;  %v3830_v17 = vpop.f32.mrb[23].mxu0  ;;  %v4070_v18 = vmax.f32 %v3868_v49, 0.0  ;;  %v3872_v19 = vadd.f32 %v3871_v13, %v721_v25  ;;  %v3873_v23 = vpop.f32.mrb[23].mxu1  ;;  %v13876_v38 = vld [vmem:[#allocation6 + $0x30c] ss:$16 sps:$4 sm:$0xff]  }
 0x2c7   :  { %11053 = vmatprep.subr.bf16.mxu1 %v13864_v40  ;;  %v4069_v28 = vmax.f32 %v3827_v3, 0.0  ;;  %v3831_v21 = vadd.f32 %v3830_v17, %v717_v41  ;;  %v3874_v11 = vadd.f32 %v3873_v23, %v725_v56  ;;  %v4071_v0 = vmax.f32 %v3870_v12, 0.0  ;;  %v13871_v40 = vld [vmem:[#allocation6 + $0x300] ss:$16 sps:$4 sm:$0xff]   ;;  %v13874_v41 = vld [vmem:[#allocation6 + $0x308] ss:$16 sps:$4 sm:$0xff]  }
 0x2c8   :  { %v4100_v32 = vmax.f32 %v3829_v2, 0.0  ;;  %v4102_v50 = vmax.f32 %v3872_v19, 0.0  ;;  %v13879_v56 = vld [vmem:[#allocation6 + $0x324] ss:$16 sps:$4 sm:$0xff]   ;;  %v13883_v49 = vld [vmem:[#allocation6 + $0x340] ss:$16 sps:$4 sm:$0xff]  }
 0x2c9   :  { %10366 = vmatpush1.bf16.msra.mxu0 %v13859_v43  ;;  %v4101_v34 = vmax.f32 %v3831_v21, 0.0  ;;  %v4103_v35 = vmax.f32 %v3874_v11, 0.0  ;;  %v13880_v43 = vld [vmem:[#allocation6 + $0x328] ss:$16 sps:$4 sm:$0xff]   ;;  %v13885_v44 = vld [vmem:[#allocation6 + $0x344] ss:$16 sps:$4 sm:$0xff]  }
 0x2ca   :  { %11054 = vmatpush1.bf16.msra.mxu1 %v13862_v6  ;;  %10367 = vmatprep.subr.bf16.mxu0 %v13867_v1  ;;  %v15844_v26 = vpack.c.bf16 %v4100_v32, %v4068_v8  ;;  %v15846_v37 = vpack.c.bf16 %v4102_v50, %v4070_v18  ;;  %v13891_v6 = vld [vmem:[#allocation6 + $0x364] ss:$16 sps:$4 sm:$0xff]   ;;  %v13894_v1 = vld [vmem:[#allocation6 + $0x36c] ss:$16 sps:$4 sm:$0xff]   ;;  %v13889_v3 = vld [vmem:[#allocation6 + $0x360] ss:$16 sps:$4 sm:$0xff]  }
 0x2cb   :  { %11055 = vmatprep.subr.bf16.mxu1 %v13870_v24  ;;  %v15848_v39 = vpack.c.bf16 %v4101_v34, %v4069_v28  ;;  %v15850_v25 = vpack.c.bf16 %v4103_v35, %v4071_v0  ;;  %v13892_v63 = vld [vmem:[#allocation6 + $0x368] ss:$16 sps:$4 sm:$0xff]   ;;  %v13897_v12 = vld [vmem:[#allocation6 + $0x384] ss:$16 sps:$4 sm:$0xff]   ;;  %v13900_v13 = vld [vmem:[#allocation6 + $0x38c] ss:$16 sps:$4 sm:$0xff]  }
 0x2cc   :  { %v13895_v8 = vld [vmem:[#allocation6 + $0x380] ss:$16 sps:$4 sm:$0xff]   ;;  %v13898_v2 = vld [vmem:[#allocation6 + $0x388] ss:$16 sps:$4 sm:$0xff]   ;;  %v13903_v17 = vld [vmem:[#allocation6 + $0x3a4] ss:$16 sps:$4 sm:$0xff]  }
 0x2cd   :  { %10368 = vmatpush1.bf16.msra.mxu0 %v13865_v33  ;;  %v13906_v18 = vld [vmem:[#allocation6 + $0x3ac] ss:$16 sps:$4 sm:$0xff]   ;;  %v13901_v19 = vld [vmem:[#allocation6 + $0x3a0] ss:$16 sps:$4 sm:$0xff]   ;;  %v13904_v23 = vld [vmem:[#allocation6 + $0x3a8] ss:$16 sps:$4 sm:$0xff]  }
 0x2ce   :  { %11056 = vmatpush1.bf16.msra.mxu1 %v13868_v36  ;;  %10369 = vmatprep.subr.bf16.mxu0 %v13873_v22  ;;  %v13909_v24 = vld [vmem:[#allocation6 + $0x3c4] ss:$16 sps:$4 sm:$0xff]   ;;  %v13912_v28 = vld [vmem:[#allocation6 + $0x3cc] ss:$16 sps:$4 sm:$0xff]   ;;  %v13907_v21 = vld [vmem:[#allocation6 + $0x3c0] ss:$16 sps:$4 sm:$0xff]  }
 0x2cf   :  { %11057 = vmatprep.subr.bf16.mxu1 %v13876_v38  ;;  %v13910_v11 = vld [vmem:[#allocation6 + $0x3c8] ss:$16 sps:$4 sm:$0xff]   ;;  %v13915_v32 = vld [vmem:[#allocation6 + $0x3e4] ss:$16 sps:$4 sm:$0xff]   ;;  %v13918_v50 = vld [vmem:[#allocation6 + $0x3ec] ss:$16 sps:$4 sm:$0xff]  }
 0x2d0   :  { %v13913_v33 = vld [vmem:[#allocation6 + $0x3e0] ss:$16 sps:$4 sm:$0xff]   ;;  %v13916_v34 = vld [vmem:[#allocation6 + $0x3e8] ss:$16 sps:$4 sm:$0xff]   ;;  %v13921_v0 = vld [vmem:[#allocation6 + $0x404] ss:$16 sps:$4 sm:$0xff]  }
 0x2d1   :  { %10370 = vmatpush1.bf16.msra.mxu0 %v13871_v40  ;;  %v13924_v35 = vld [vmem:[#allocation6 + $0x40c] ss:$16 sps:$4 sm:$0xff]   ;;  %v13919_v36 = vld [vmem:[#allocation6 + $0x400] ss:$16 sps:$4 sm:$0xff]   ;;  %v13922_v22 = vld [vmem:[#allocation6 + $0x408] ss:$16 sps:$4 sm:$0xff]  }
 0x2d2   :  { %11058 = vmatpush1.bf16.msra.mxu1 %v13874_v41  ;;  %10371 = vmatprep.subr.bf16.mxu0 %v13879_v56  ;;  %v13927_v38 = vld [vmem:[#allocation6 + $0x424] ss:$16 sps:$4 sm:$0xff]   ;;  %v13930_v40 = vld [vmem:[#allocation6 + $0x42c] ss:$16 sps:$4 sm:$0xff]   ;;  %v13925_v41 = vld [vmem:[#allocation6 + $0x420] ss:$16 sps:$4 sm:$0xff]  }
 0x2d3   :  { %11059 = vmatprep.subr.bf16.mxu1 %v13882_v20  ;;  %v13928_v56 = vld [vmem:[#allocation6 + $0x428] ss:$16 sps:$4 sm:$0xff]   ;;  %v13933_v20 = vld [vmem:[#allocation6 + $0x444] ss:$16 sps:$4 sm:$0xff]  }
 0x2d5   :  { %10372 = vmatpush1.bf16.msra.mxu0 %v13877_v42  ;;  %v13936_v42 = vld [vmem:[#allocation6 + $0x44c] ss:$16 sps:$4 sm:$0xff]  }
 0x2d6   :  { %11060 = vmatpush1.bf16.msra.mxu1 %v13880_v43  ;;  %10373 = vmatprep.subr.bf16.mxu0 %v13885_v44  ;;  %v13931_v43 = vld [vmem:[#allocation6 + $0x440] ss:$16 sps:$4 sm:$0xff]   ;;  %v13934_v44 = vld [vmem:[#allocation6 + $0x448] ss:$16 sps:$4 sm:$0xff]  }
 0x2d7   :  { %11061 = vmatprep.subr.bf16.mxu1 %v13888_v10  ;;  %v13939_v10 = vld [vmem:[#allocation6 + $0x464] ss:$16 sps:$4 sm:$0xff]  }
 0x2d9   :  { %10374 = vmatpush1.bf16.msra.mxu0 %v13883_v49  ;;  %v13937_v49 = vld [vmem:[#allocation6 + $0x460] ss:$16 sps:$4 sm:$0xff]  }
 0x2da   :  { %11062 = vmatpush1.bf16.msra.mxu1 %v13886_v52  ;;  %10375 = vmatprep.subr.bf16.mxu0 %v13891_v6  ;;  %v13940_v52 = vld [vmem:[#allocation6 + $0x468] ss:$16 sps:$4 sm:$0xff]   ;;  %v13945_v6 = vld [vmem:[#allocation6 + $0x484] ss:$16 sps:$4 sm:$0xff]  }
 0x2db   :  { %11063 = vmatprep.subr.bf16.mxu1 %v13894_v1  ;;  %v13948_v1 = vld [vmem:[#allocation6 + $0x48c] ss:$16 sps:$4 sm:$0xff]  }
 0x2dd   :  { %10376 = vmatpush1.bf16.msra.mxu0 %v13889_v3  ;;  %v13946_v3 = vld [vmem:[#allocation6 + $0x488] ss:$16 sps:$4 sm:$0xff]  }
 0x2de   :  { %11064 = vmatpush1.bf16.msra.mxu1 %v13892_v63  ;;  %10377 = vmatprep.subr.bf16.mxu0 %v13897_v12  ;;  %v15856_v63 = vld [vmem:[#allocation4 + $0x18] sm:$0xff]  ;;  %v13951_v12 = vld [vmem:[#allocation6 + $0x4a4] ss:$16 sps:$4 sm:$0xff]  }
 0x2df   :  { %11065 = vmatprep.subr.bf16.mxu1 %v13900_v13  ;;  %v13954_v13 = vld [vmem:[#allocation6 + $0x4ac] ss:$16 sps:$4 sm:$0xff]  }
 0x2e1   :  { %10378 = vmatpush1.bf16.msra.mxu0 %v13895_v8  ;;  %v729_v8 = vrot.slane %v15856_v63, %v15665_v54 }
 0x2e2   :  { %11066 = vmatpush1.bf16.msra.mxu1 %v13898_v2  ;;  %10379 = vmatprep.subr.bf16.mxu0 %v13903_v17  ;;  %v737_v2 = vrot.slane %v15856_v63, %v15668_v57  ;;  %v13949_v17 = vld [vmem:[#allocation6 + $0x4a0] ss:$16 sps:$4 sm:$0xff]  }
 0x2e3   :  { %11067 = vmatprep.subr.bf16.mxu1 %v13906_v18  ;;  %v733_v18 = vrot.slane %v15856_v63, %v15671_v58 }
 0x2e5   :  { %10380 = vmatpush1.bf16.msra.mxu0 %v13901_v19  ;;  %v741_v19 = vrot.slane %v15856_v63, %v15674_v60 }
 0x2e6   :  { %11068 = vmatpush1.bf16.msra.mxu1 %v13904_v23  ;;  %10381 = vmatprep.subr.bf16.mxu0 %v13909_v24  ;;  %v13952_v23 = vld [vmem:[#allocation6 + $0x4a8] ss:$16 sps:$4 sm:$0xff]   ;;  %v13957_v24 = vld [vmem:[#allocation6 + $0x4c4] ss:$16 sps:$4 sm:$0xff]  }
 0x2e7   :  { %11069 = vmatprep.subr.bf16.mxu1 %v13912_v28  ;;  %v13960_v28 = vld [vmem:[#allocation6 + $0x4cc] ss:$16 sps:$4 sm:$0xff]  }
 0x2e9   :  { %10382 = vmatpush1.bf16.msra.mxu0 %v13907_v21 }
 0x2ea   :  { %11070 = vmatpush1.bf16.msra.mxu1 %v13910_v11  ;;  %10383 = vmatprep.subr.bf16.mxu0 %v13915_v32 }
 0x2eb   :  { %11071 = vmatprep.subr.bf16.mxu1 %v13918_v50 }
 0x2ed   :  { %10384 = vmatpush1.bf16.msra.mxu0 %v13913_v33 }
 0x2ee   :  { %11072 = vmatpush1.bf16.msra.mxu1 %v13916_v34  ;;  %10396 = vmatprep.subr.bf16.mxu0 %v13921_v0  ;;  %v13955_v0 = vld [vmem:[#allocation6 + $0x4c0] ss:$16 sps:$4 sm:$0xff]  }
 0x2ef   :  { %11084 = vmatprep.subr.bf16.mxu1 %v13924_v35  ;;  %v13958_v35 = vld [vmem:[#allocation6 + $0x4c8] ss:$16 sps:$4 sm:$0xff]  }
 0x2f0   :  { %10386 = vmatmul.mubr.bf16.vlgmr.msra.gmra.mrb[32].mxu0 %v15686_v59 }
 0x2f1   :  { %11074 = vmatmul.mubr.bf16.vlgmr.msra.gmra.mrb[32].mxu1 %v15686_v59  ;;  %10397 = vmatpush1.bf16.msra.mxu0 %v13919_v36  ;;  %v13942_v59 = vld [vmem:[#allocation6 + $0x46c] ss:$16 sps:$4 sm:$0xff]  }
 0x2f2   :  { %10428 = vmatprep.mubr.bf16.mxu0 %v15730_v46  ;;  %11085 = vmatpush1.bf16.msra.mxu1 %v13922_v22 }
 0x2f3   :  { %11116 = vmatprep.mubr.bf16.mxu1 %v15730_v46  ;;  %10398 = vmatprep.subr.bf16.mxu0 %v13927_v38  ;;  %v13943_v46 = vld [vmem:[#allocation6 + $0x480] ss:$16 sps:$4 sm:$0xff]  }
 0x2f4   :  { %11086 = vmatprep.subr.bf16.mxu1 %v13930_v40 }
 0x2f5   :  { %10399 = vmatpush1.bf16.msra.mxu0 %v13925_v41  ;;  %v13963_v41 = vld [vmem:[#allocation6 + $0x4e4] ss:$16 sps:$4 sm:$0xff]  }
 0x2f6   :  { %11087 = vmatpush1.bf16.msra.mxu1 %v13928_v56  ;;  %10400 = vmatprep.subr.bf16.mxu0 %v13933_v20 }
 0x2f7   :  { %11088 = vmatprep.subr.bf16.mxu1 %v13936_v42 }
 0x2f9   :  { %10401 = vmatpush1.bf16.msra.mxu0 %v13931_v43 }
 0x2fa   :  { %11089 = vmatpush1.bf16.msra.mxu1 %v13934_v44  ;;  %10402 = vmatprep.subr.bf16.mxu0 %v13939_v10 }
 0x2fb   :  { %11090 = vmatprep.subr.bf16.mxu1 %v13942_v59  ;;  %v13966_v59 = vld [vmem:[#allocation6 + $0x4ec] ss:$16 sps:$4 sm:$0xff]  }
 0x2fd   :  { %10403 = vmatpush1.bf16.msra.mxu0 %v13937_v49 }
 0x2fe   :  { %11091 = vmatpush1.bf16.msra.mxu1 %v13940_v52  ;;  %10404 = vmatprep.subr.bf16.mxu0 %v13945_v6 }
 0x2ff   :  { %11092 = vmatprep.subr.bf16.mxu1 %v13948_v1 }
 0x301   :  { %10405 = vmatpush1.bf16.msra.mxu0 %v13943_v46 }
 0x302   :  { %11093 = vmatpush1.bf16.msra.mxu1 %v13946_v3  ;;  %10406 = vmatprep.subr.bf16.mxu0 %v13951_v12  ;;  %v13961_v3 = vld [vmem:[#allocation6 + $0x4e0] ss:$16 sps:$4 sm:$0xff]  }
 0x303   :  { %11094 = vmatprep.subr.bf16.mxu1 %v13954_v13  ;;  %v3910_v21 = vpop.f32.mrb[24].mxu0  ;;  %v3953_v11 = vpop.f32.mrb[24].mxu1 }
 0x304   :  { %v3911_v32 = vadd.f32 %v3910_v21, %v729_v8  ;;  %v3912_v50 = vpop.f32.mrb[25].mxu0  ;;  %v3954_v33 = vadd.f32 %v3953_v11, %v737_v2  ;;  %v3955_v34 = vpop.f32.mrb[25].mxu1  ;;  %v13970_v11 = vld [vmem:[#allocation6 + $0x508] ss:$16 sps:$4 sm:$0xff]  }
 0x305   :  { %10407 = vmatpush1.bf16.msra.mxu0 %v13949_v17  ;;  %v3913_v36 = vadd.f32 %v3912_v50, %v733_v18  ;;  %v3914_v22 = vpop.f32.mrb[26].mxu0  ;;  %v3956_v38 = vadd.f32 %v3955_v34, %v741_v19  ;;  %v3957_v40 = vpop.f32.mrb[26].mxu1  ;;  %v13978_v50 = vld [vmem:[#allocation6 + $0x52c] ss:$16 sps:$4 sm:$0xff]   ;;  %v13976_v34 = vld [vmem:[#allocation6 + $0x528] ss:$16 sps:$4 sm:$0xff]  }
 0x306   :  { %11095 = vmatpush1.bf16.msra.mxu1 %v13952_v23  ;;  %10408 = vmatprep.subr.bf16.mxu0 %v13957_v24  ;;  %v4072_v56 = vmax.f32 %v3911_v32, 0.0  ;;  %v3915_v20 = vadd.f32 %v3914_v22, %v729_v8  ;;  %v3916_v42 = vpop.f32.mrb[27].mxu0  ;;  %v4074_v43 = vmax.f32 %v3954_v33, 0.0  ;;  %v3958_v44 = vadd.f32 %v3957_v40, %v737_v2  ;;  %v3959_v10 = vpop.f32.mrb[27].mxu1  ;;  %v13964_v23 = vld [vmem:[#allocation6 + $0x4e8] ss:$16 sps:$4 sm:$0xff]  }
 0x307   :  { %11096 = vmatprep.subr.bf16.mxu1 %v13960_v28  ;;  %v4073_v49 = vmax.f32 %v3913_v36, 0.0  ;;  %v3917_v52 = vadd.f32 %v3916_v42, %v733_v18  ;;  %v3960_v6 = vadd.f32 %v3959_v10, %v741_v19  ;;  %v4075_v13 = vmax.f32 %v3956_v38, 0.0  ;;  %v13969_v8 = vld [vmem:[#allocation6 + $0x504] ss:$16 sps:$4 sm:$0xff]   ;;  %v13972_v28 = vld [vmem:[#allocation6 + $0x50c] ss:$16 sps:$4 sm:$0xff]  }
 0x308   :  { %v4104_v1 = vmax.f32 %v3915_v20, 0.0  ;;  %v4106_v46 = vmax.f32 %v3958_v44, 0.0  ;;  %v13967_v19 = vld [vmem:[#allocation6 + $0x500] ss:$16 sps:$4 sm:$0xff]   ;;  %v13975_v32 = vld [vmem:[#allocation6 + $0x524] ss:$16 sps:$4 sm:$0xff]  }
 0x309   :  { %10409 = vmatpush1.bf16.msra.mxu0 %v13955_v0  ;;  %v4105_v12 = vmax.f32 %v3917_v52, 0.0  ;;  %v4107_v17 = vmax.f32 %v3960_v6, 0.0  ;;  %v13973_v33 = vld [vmem:[#allocation6 + $0x520] ss:$16 sps:$4 sm:$0xff]   ;;  %v13981_v0 = vld [vmem:[#allocation6 + $0x544] ss:$16 sps:$4 sm:$0xff]  }
 0x30a   :  { %11097 = vmatpush1.bf16.msra.mxu1 %v13958_v35  ;;  %10410 = vmatprep.subr.bf16.mxu0 %v13963_v41  ;;  %v15866_v24 = vpack.c.bf16 %v4104_v1, %v4072_v56  ;;  %v15868_v2 = vpack.c.bf16 %v4106_v46, %v4074_v43  ;;  %v13984_v35 = vld [vmem:[#allocation6 + $0x54c] ss:$16 sps:$4 sm:$0xff]   ;;  %v13979_v36 = vld [vmem:[#allocation6 + $0x540] ss:$16 sps:$4 sm:$0xff]   ;;  %v13982_v22 = vld [vmem:[#allocation6 + $0x548] ss:$16 sps:$4 sm:$0xff]  }
 0x30b   :  { %11098 = vmatprep.subr.bf16.mxu1 %v13966_v59  ;;  %v15870_v21 = vpack.c.bf16 %v4105_v12, %v4073_v49  ;;  %v15872_v18 = vpack.c.bf16 %v4107_v17, %v4075_v13  ;;  %v13987_v38 = vld [vmem:[#allocation6 + $0x564] ss:$16 sps:$4 sm:$0xff]   ;;  %v13990_v40 = vld [vmem:[#allocation6 + $0x56c] ss:$16 sps:$4 sm:$0xff]   ;;  %v13985_v41 = vld [vmem:[#allocation6 + $0x560] ss:$16 sps:$4 sm:$0xff]  }
 0x30c   :  { %v13988_v56 = vld [vmem:[#allocation6 + $0x568] ss:$16 sps:$4 sm:$0xff]   ;;  %v13993_v20 = vld [vmem:[#allocation6 + $0x584] ss:$16 sps:$4 sm:$0xff]   ;;  %v13996_v42 = vld [vmem:[#allocation6 + $0x58c] ss:$16 sps:$4 sm:$0xff]  }
 0x30d   :  { %10411 = vmatpush1.bf16.msra.mxu0 %v13961_v3  ;;  %v13991_v43 = vld [vmem:[#allocation6 + $0x580] ss:$16 sps:$4 sm:$0xff]   ;;  %v13994_v44 = vld [vmem:[#allocation6 + $0x588] ss:$16 sps:$4 sm:$0xff]   ;;  %v13999_v10 = vld [vmem:[#allocation6 + $0x5a4] ss:$16 sps:$4 sm:$0xff]  }
 0x30e   :  { %11099 = vmatpush1.bf16.msra.mxu1 %v13964_v23  ;;  %10412 = vmatprep.subr.bf16.mxu0 %v13969_v8  ;;  %v14002_v59 = vld [vmem:[#allocation6 + $0x5ac] ss:$16 sps:$4 sm:$0xff]   ;;  %v13997_v49 = vld [vmem:[#allocation6 + $0x5a0] ss:$16 sps:$4 sm:$0xff]   ;;  %v14000_v52 = vld [vmem:[#allocation6 + $0x5a8] ss:$16 sps:$4 sm:$0xff]  }
 0x30f   :  { %11100 = vmatprep.subr.bf16.mxu1 %v13972_v28  ;;  %v14005_v6 = vld [vmem:[#allocation6 + $0x5c4] ss:$16 sps:$4 sm:$0xff]   ;;  %v14008_v1 = vld [vmem:[#allocation6 + $0x5cc] ss:$16 sps:$4 sm:$0xff]   ;;  %v14003_v46 = vld [vmem:[#allocation6 + $0x5c0] ss:$16 sps:$4 sm:$0xff]  }
 0x310   :  { %v14006_v3 = vld [vmem:[#allocation6 + $0x5c8] ss:$16 sps:$4 sm:$0xff]   ;;  %v14011_v12 = vld [vmem:[#allocation6 + $0x5e4] ss:$16 sps:$4 sm:$0xff]   ;;  %v14014_v13 = vld [vmem:[#allocation6 + $0x5ec] ss:$16 sps:$4 sm:$0xff]  }
 0x311   :  { %10413 = vmatpush1.bf16.msra.mxu0 %v13967_v19  ;;  %v14009_v17 = vld [vmem:[#allocation6 + $0x5e0] ss:$16 sps:$4 sm:$0xff]   ;;  %v14012_v23 = vld [vmem:[#allocation6 + $0x5e8] ss:$16 sps:$4 sm:$0xff]   ;;  %v14017_v8 = vld [vmem:[#allocation6 + $0x604] ss:$16 sps:$4 sm:$0xff]  }
 0x312   :  { %11101 = vmatpush1.bf16.msra.mxu1 %v13970_v11  ;;  %10414 = vmatprep.subr.bf16.mxu0 %v13975_v32  ;;  %v14020_v28 = vld [vmem:[#allocation6 + $0x60c] ss:$16 sps:$4 sm:$0xff]   ;;  %v14015_v19 = vld [vmem:[#allocation6 + $0x600] ss:$16 sps:$4 sm:$0xff]   ;;  %v14018_v11 = vld [vmem:[#allocation6 + $0x608] ss:$16 sps:$4 sm:$0xff]  }
 0x313   :  { %11102 = vmatprep.subr.bf16.mxu1 %v13978_v50  ;;  %v14023_v32 = vld [vmem:[#allocation6 + $0x624] ss:$16 sps:$4 sm:$0xff]   ;;  %v14026_v50 = vld [vmem:[#allocation6 + $0x62c] ss:$16 sps:$4 sm:$0xff]  }
 0x315   :  { %10415 = vmatpush1.bf16.msra.mxu0 %v13973_v33  ;;  %v14021_v33 = vld [vmem:[#allocation6 + $0x620] ss:$16 sps:$4 sm:$0xff]  }
 0x316   :  { %11103 = vmatpush1.bf16.msra.mxu1 %v13976_v34  ;;  %10416 = vmatprep.subr.bf16.mxu0 %v13981_v0  ;;  %v14024_v34 = vld [vmem:[#allocation6 + $0x628] ss:$16 sps:$4 sm:$0xff]   ;;  %v14029_v0 = vld [vmem:[#allocation6 + $0x644] ss:$16 sps:$4 sm:$0xff]  }
 0x317   :  { %11104 = vmatprep.subr.bf16.mxu1 %v13984_v35  ;;  %v14032_v35 = vld [vmem:[#allocation6 + $0x64c] ss:$16 sps:$4 sm:$0xff]  }
 0x319   :  { %10417 = vmatpush1.bf16.msra.mxu0 %v13979_v36  ;;  %v14027_v36 = vld [vmem:[#allocation6 + $0x640] ss:$16 sps:$4 sm:$0xff]  }
 0x31a   :  { %11105 = vmatpush1.bf16.msra.mxu1 %v13982_v22  ;;  %10418 = vmatprep.subr.bf16.mxu0 %v13987_v38  ;;  %v14030_v22 = vld [vmem:[#allocation6 + $0x648] ss:$16 sps:$4 sm:$0xff]   ;;  %v14035_v38 = vld [vmem:[#allocation6 + $0x664] ss:$16 sps:$4 sm:$0xff]  }
 0x31b   :  { %11106 = vmatprep.subr.bf16.mxu1 %v13990_v40  ;;  %v14033_v40 = vld [vmem:[#allocation6 + $0x660] ss:$16 sps:$4 sm:$0xff]  }
 0x31d   :  { %10419 = vmatpush1.bf16.msra.mxu0 %v13985_v41  ;;  %v14036_v41 = vld [vmem:[#allocation6 + $0x668] ss:$16 sps:$4 sm:$0xff]  }
 0x31e   :  { %11107 = vmatpush1.bf16.msra.mxu1 %v13988_v56  ;;  %10420 = vmatprep.subr.bf16.mxu0 %v13993_v20  ;;  %v14041_v56 = vld [vmem:[#allocation6 + $0x684] ss:$16 sps:$4 sm:$0xff]   ;;  %v14044_v20 = vld [vmem:[#allocation6 + $0x68c] ss:$16 sps:$4 sm:$0xff]  }
 0x31f   :  { %11108 = vmatprep.subr.bf16.mxu1 %v13996_v42  ;;  %v14042_v42 = vld [vmem:[#allocation6 + $0x688] ss:$16 sps:$4 sm:$0xff]  }
 0x321   :  { %10421 = vmatpush1.bf16.msra.mxu0 %v13991_v43  ;;  %v14047_v43 = vld [vmem:[#allocation6 + $0x6a4] ss:$16 sps:$4 sm:$0xff]  }
 0x322   :  { %11109 = vmatpush1.bf16.msra.mxu1 %v13994_v44  ;;  %10422 = vmatprep.subr.bf16.mxu0 %v13999_v10  ;;  %v14050_v44 = vld [vmem:[#allocation6 + $0x6ac] ss:$16 sps:$4 sm:$0xff]   ;;  %v745_v10 = vrot.slane %v15856_v63, %v15707_v45 }
 0x323   :  { %11110 = vmatprep.subr.bf16.mxu1 %v14002_v59  ;;  %v753_v59 = vrot.slane %v15856_v63, %v15710_v47  ;;  %v14051_v47 = vld [vmem:[#allocation6 + $0x6c0] ss:$16 sps:$4 sm:$0xff]  }
 0x325   :  { %10423 = vmatpush1.bf16.msra.mxu0 %v13997_v49  ;;  %v14045_v49 = vld [vmem:[#allocation6 + $0x6a0] ss:$16 sps:$4 sm:$0xff]  }
 0x326   :  { %11111 = vmatpush1.bf16.msra.mxu1 %v14000_v52  ;;  %10424 = vmatprep.subr.bf16.mxu0 %v14005_v6  ;;  %v749_v52 = vrot.slane %v15856_v63, %v15713_v48  ;;  %v757_v6 = vrot.slane %v15856_v63, %v15716_v51  ;;  %v14059_v51 = vld [vmem:[#allocation6 + $0x6e4] ss:$16 sps:$4 sm:$0xff]  }
 0x327   :  { %11112 = vmatprep.subr.bf16.mxu1 %v14008_v1  ;;  %v14048_v1 = vld [vmem:[#allocation6 + $0x6a8] ss:$16 sps:$4 sm:$0xff]  }
 0x329   :  { %10425 = vmatpush1.bf16.msra.mxu0 %v14003_v46  ;;  %v14053_v46 = vld [vmem:[#allocation6 + $0x6c4] ss:$16 sps:$4 sm:$0xff]  }
 0x32a   :  { %11113 = vmatpush1.bf16.msra.mxu1 %v14006_v3  ;;  %10426 = vmatprep.subr.bf16.mxu0 %v14011_v12  ;;  %v14056_v3 = vld [vmem:[#allocation6 + $0x6cc] ss:$16 sps:$4 sm:$0xff]  }
 0x32b   :  { %11114 = vmatprep.subr.bf16.mxu1 %v14014_v13 }
 0x32d   :  { %10427 = vmatpush1.bf16.msra.mxu0 %v14009_v17 }
 0x32e   :  { %11115 = vmatpush1.bf16.msra.mxu1 %v14012_v23  ;;  %10439 = vmatprep.subr.bf16.mxu0 %v14017_v8 }
 0x32f   :  { %11127 = vmatprep.subr.bf16.mxu1 %v14020_v28  ;;  %v14054_v28 = vld [vmem:[#allocation6 + $0x6c8] ss:$16 sps:$4 sm:$0xff]  }
 0x330   :  { %10429 = vmatmul.mubr.bf16.vlgmr.msra.gmra.mrb[32].mxu0 %v15726_v62 }
 0x331   :  { %11117 = vmatmul.mubr.bf16.vlgmr.msra.gmra.mrb[32].mxu1 %v15726_v62  ;;  %10440 = vmatpush1.bf16.msra.mxu0 %v14015_v19  ;;  %v14038_v62 = vld [vmem:[#allocation6 + $0x66c] ss:$16 sps:$4 sm:$0xff]  }
 0x332   :  { %10471 = vmatprep.mubr.bf16.mxu0 %v15732_v7  ;;  %11128 = vmatpush1.bf16.msra.mxu1 %v14018_v11 }
 0x333   :  { %11159 = vmatprep.mubr.bf16.mxu1 %v15732_v7  ;;  %10441 = vmatprep.subr.bf16.mxu0 %v14023_v32  ;;  %v14039_v7 = vld [vmem:[#allocation6 + $0x680] ss:$16 sps:$4 sm:$0xff]  }
 0x334   :  { %11129 = vmatprep.subr.bf16.mxu1 %v14026_v50 }
 0x335   :  { %10442 = vmatpush1.bf16.msra.mxu0 %v14021_v33 }
 0x336   :  { %11130 = vmatpush1.bf16.msra.mxu1 %v14024_v34  ;;  %10443 = vmatprep.subr.bf16.mxu0 %v14029_v0 }
 0x337   :  { %11131 = vmatprep.subr.bf16.mxu1 %v14032_v35 }
 0x339   :  { %10444 = vmatpush1.bf16.msra.mxu0 %v14027_v36  ;;  %v14062_v36 = vld [vmem:[#allocation6 + $0x6ec] ss:$16 sps:$4 sm:$0xff]  }
 0x33a   :  { %11132 = vmatpush1.bf16.msra.mxu1 %v14030_v22  ;;  %10445 = vmatprep.subr.bf16.mxu0 %v14035_v38 }
 0x33b   :  { %11133 = vmatprep.subr.bf16.mxu1 %v14038_v62 }
 0x33d   :  { %10446 = vmatpush1.bf16.msra.mxu0 %v14033_v40 }
 0x33e   :  { %11134 = vmatpush1.bf16.msra.mxu1 %v14036_v41  ;;  %10447 = vmatprep.subr.bf16.mxu0 %v14041_v56  ;;  %v14057_v56 = vld [vmem:[#allocation6 + $0x6e0] ss:$16 sps:$4 sm:$0xff]  }
 0x33f   :  { %11135 = vmatprep.subr.bf16.mxu1 %v14044_v20 }
 0x341   :  { %10448 = vmatpush1.bf16.msra.mxu0 %v14039_v7 }
 0x342   :  { %11136 = vmatpush1.bf16.msra.mxu1 %v14042_v42  ;;  %10449 = vmatprep.subr.bf16.mxu0 %v14047_v43  ;;  %v14060_v43 = vld [vmem:[#allocation6 + $0x6e8] ss:$16 sps:$4 sm:$0xff]  }
 0x343   :  { %11137 = vmatprep.subr.bf16.mxu1 %v14050_v44  ;;  %v3996_v12 = vpop.f32.mrb[28].mxu0  ;;  %v4039_v13 = vpop.f32.mrb[28].mxu1  ;;  %v14065_v44 = vld [vmem:[#allocation6 + $0x704] ss:$16 sps:$4 sm:$0xff]  }
 0x344   :  { %v3997_v45 = vadd.f32 %v3996_v12, %v745_v10  ;;  %v3998_v17 = vpop.f32.mrb[29].mxu0  ;;  %v4040_v23 = vadd.f32 %v4039_v13, %v753_v59  ;;  %v4041_v8 = vpop.f32.mrb[29].mxu1  ;;  %v14074_v12 = vld [vmem:[#allocation6 + $0x72c] ss:$16 sps:$4 sm:$0xff]   ;;  %v14069_v13 = vld [vmem:[#allocation6 + $0x720] ss:$16 sps:$4 sm:$0xff]  }
 0x345   :  { %10450 = vmatpush1.bf16.msra.mxu0 %v14045_v49  ;;  %v3999_v19 = vadd.f32 %v3998_v17, %v749_v52  ;;  %v4000_v48 = vpop.f32.mrb[30].mxu0  ;;  %v4042_v11 = vadd.f32 %v4041_v8, %v757_v6  ;;  %v4043_v32 = vpop.f32.mrb[30].mxu1  ;;  %v14068_v49 = vld [vmem:[#allocation6 + $0x70c] ss:$16 sps:$4 sm:$0xff]   ;;  %v14077_v17 = vld [vmem:[#allocation6 + $0x744] ss:$16 sps:$4 sm:$0xff]  }
 0x346   :  { %11138 = vmatpush1.bf16.msra.mxu1 %v14048_v1  ;;  %10451 = vmatprep.subr.bf16.mxu0 %v14053_v46  ;;  %v4076_v63 = vmax.f32 %v3997_v45, 0.0  ;;  %v4001_v50 = vadd.f32 %v4000_v48, %v745_v10  ;;  %v4002_v33 = vpop.f32.mrb[31].mxu0  ;;  %v4078_v34 = vmax.f32 %v4040_v23, 0.0  ;;  %v4044_v0 = vadd.f32 %v4043_v32, %v753_v59  ;;  %v4045_v35 = vpop.f32.mrb[31].mxu1  ;;  %v14066_v46 = vld [vmem:[#allocation6 + $0x708] ss:$16 sps:$4 sm:$0xff]  }
 0x347   :  { %11139 = vmatprep.subr.bf16.mxu1 %v14056_v3  ;;  %v4077_v22 = vmax.f32 %v3999_v19, 0.0  ;;  %v4003_v38 = vadd.f32 %v4002_v33, %v749_v52  ;;  %v4046_v62 = vadd.f32 %v4045_v35, %v757_v6  ;;  %v4079_v7 = vmax.f32 %v4042_v11, 0.0  ;;  %v14063_v6 = vld [vmem:[#allocation6 + $0x700] ss:$16 sps:$4 sm:$0xff]   ;;  %v14071_v3 = vld [vmem:[#allocation6 + $0x724] ss:$16 sps:$4 sm:$0xff]  }
 0x348   :  { %v4108_v40 = vmax.f32 %v4001_v50, 0.0  ;;  %v4110_v41 = vmax.f32 %v4044_v0, 0.0  ;;  %v14072_v45 = vld [vmem:[#allocation6 + $0x728] ss:$16 sps:$4 sm:$0xff]   ;;  %v14080_v23 = vld [vmem:[#allocation6 + $0x74c] ss:$16 sps:$4 sm:$0xff]  }
 0x349   :  { %10452 = vmatpush1.bf16.msra.mxu0 %v14051_v47  ;;  %v4109_v20 = vmax.f32 %v4003_v38, 0.0  ;;  %v4111_v42 = vmax.f32 %v4046_v62, 0.0  ;;  %v14075_v8 = vld [vmem:[#allocation6 + $0x740] ss:$16 sps:$4 sm:$0xff]   ;;  %v14078_v47 = vld [vmem:[#allocation6 + $0x748] ss:$16 sps:$4 sm:$0xff]  }
 0x34a   :  { %11140 = vmatpush1.bf16.msra.mxu1 %v14054_v28  ;;  %10453 = vmatprep.subr.bf16.mxu0 %v14059_v51  ;;  %v15886_v10 = vpack.c.bf16 %v4108_v40, %v4076_v63  ;;  %v15888_v59 = vpack.c.bf16 %v4110_v41, %v4078_v34  ;;  %v14083_v28 = vld [vmem:[#allocation6 + $0x764] ss:$16 sps:$4 sm:$0xff]   ;;  %v14086_v19 = vld [vmem:[#allocation6 + $0x76c] ss:$16 sps:$4 sm:$0xff]   ;;  %v14081_v48 = vld [vmem:[#allocation6 + $0x760] ss:$16 sps:$4 sm:$0xff]  }
 0x34b   :  { %11141 = vmatprep.subr.bf16.mxu1 %v14062_v36  ;;  %v15890_v1 = vpack.c.bf16 %v4109_v20, %v4077_v22  ;;  %v15892_v52 = vpack.c.bf16 %v4111_v42, %v4079_v7  ;;  %v14084_v11 = vld [vmem:[#allocation6 + $0x768] ss:$16 sps:$4 sm:$0xff]   ;;  %v14089_v32 = vld [vmem:[#allocation6 + $0x784] ss:$16 sps:$4 sm:$0xff]   ;;  %v14092_v51 = vld [vmem:[#allocation6 + $0x78c] ss:$16 sps:$4 sm:$0xff]  }
 0x34c   :  { %v14087_v63 = vld [vmem:[#allocation6 + $0x780] ss:$16 sps:$4 sm:$0xff]   ;;  %v14090_v50 = vld [vmem:[#allocation6 + $0x788] ss:$16 sps:$4 sm:$0xff]   ;;  %v14095_v33 = vld [vmem:[#allocation6 + $0x7a4] ss:$16 sps:$4 sm:$0xff]  }
 0x34d   :  { %10454 = vmatpush1.bf16.msra.mxu0 %v14057_v56  ;;  %v14098_v34 = vld [vmem:[#allocation6 + $0x7ac] ss:$16 sps:$4 sm:$0xff]   ;;  %v14093_v0 = vld [vmem:[#allocation6 + $0x7a0] ss:$16 sps:$4 sm:$0xff]   ;;  %v14096_v35 = vld [vmem:[#allocation6 + $0x7a8] ss:$16 sps:$4 sm:$0xff]  }
 0x34e   :  { %11142 = vmatpush1.bf16.msra.mxu1 %v14060_v43  ;;  %10455 = vmatprep.subr.bf16.mxu0 %v14065_v44  ;;  %v14101_v36 = vld [vmem:[#allocation6 + $0x7c4] ss:$16 sps:$4 sm:$0xff]   ;;  %v14104_v22 = vld [vmem:[#allocation6 + $0x7cc] ss:$16 sps:$4 sm:$0xff]   ;;  %v14099_v38 = vld [vmem:[#allocation6 + $0x7c0] ss:$16 sps:$4 sm:$0xff]  }
 0x34f   :  { %11143 = vmatprep.subr.bf16.mxu1 %v14068_v49  ;;  %v14102_v62 = vld [vmem:[#allocation6 + $0x7c8] ss:$16 sps:$4 sm:$0xff]   ;;  %v14107_v40 = vld [vmem:[#allocation6 + $0x7e4] ss:$16 sps:$4 sm:$0xff]   ;;  %v14110_v41 = vld [vmem:[#allocation6 + $0x7ec] ss:$16 sps:$4 sm:$0xff]  }
 0x350   :  { %v14105_v56 = vld [vmem:[#allocation6 + $0x7e0] ss:$16 sps:$4 sm:$0xff]   ;;  %v14108_v20 = vld [vmem:[#allocation6 + $0x7e8] ss:$16 sps:$4 sm:$0xff]   ;;  %v14113_v7 = vld [vmem:[#allocation6 + $0x804] ss:$16 sps:$4 sm:$0xff]  }
 0x351   :  { %10456 = vmatpush1.bf16.msra.mxu0 %v14063_v6  ;;  %v14116_v42 = vld [vmem:[#allocation6 + $0x80c] ss:$16 sps:$4 sm:$0xff]   ;;  %v14111_v43 = vld [vmem:[#allocation6 + $0x800] ss:$16 sps:$4 sm:$0xff]   ;;  %v14114_v44 = vld [vmem:[#allocation6 + $0x808] ss:$16 sps:$4 sm:$0xff]  }
 0x352   :  { %11144 = vmatpush1.bf16.msra.mxu1 %v14066_v46  ;;  %10457 = vmatprep.subr.bf16.mxu0 %v14071_v3  ;;  %v14119_v49 = vld [vmem:[#allocation6 + $0x824] ss:$16 sps:$4 sm:$0xff]   ;;  %v14122_v6 = vld [vmem:[#allocation6 + $0x82c] ss:$16 sps:$4 sm:$0xff]   ;;  %v14117_v46 = vld [vmem:[#allocation6 + $0x820] ss:$16 sps:$4 sm:$0xff]  }
 0x353   :  { %11145 = vmatprep.subr.bf16.mxu1 %v14074_v12  ;;  %v14120_v3 = vld [vmem:[#allocation6 + $0x828] ss:$16 sps:$4 sm:$0xff]   ;;  %v14125_v12 = vld [vmem:[#allocation6 + $0x844] ss:$16 sps:$4 sm:$0xff]  }
 0x355   :  { %10458 = vmatpush1.bf16.msra.mxu0 %v14069_v13  ;;  %v14128_v13 = vld [vmem:[#allocation6 + $0x84c] ss:$16 sps:$4 sm:$0xff]  }
 0x356   :  { %11146 = vmatpush1.bf16.msra.mxu1 %v14072_v45  ;;  %10459 = vmatprep.subr.bf16.mxu0 %v14077_v17  ;;  %v14123_v45 = vld [vmem:[#allocation6 + $0x840] ss:$16 sps:$4 sm:$0xff]   ;;  %v14126_v17 = vld [vmem:[#allocation6 + $0x848] ss:$16 sps:$4 sm:$0xff]  }
 0x357   :  { %11147 = vmatprep.subr.bf16.mxu1 %v14080_v23  ;;  %v14131_v23 = vld [vmem:[#allocation6 + $0x864] ss:$16 sps:$4 sm:$0xff]  }
 0x359   :  { %10460 = vmatpush1.bf16.msra.mxu0 %v14075_v8  ;;  %v14129_v8 = vld [vmem:[#allocation6 + $0x860] ss:$16 sps:$4 sm:$0xff]  }
 0x35a   :  { %11148 = vmatpush1.bf16.msra.mxu1 %v14078_v47  ;;  %10461 = vmatprep.subr.bf16.mxu0 %v14083_v28  ;;  %v14132_v47 = vld [vmem:[#allocation6 + $0x868] ss:$16 sps:$4 sm:$0xff]   ;;  %v14137_v28 = vld [vmem:[#allocation6 + $0x884] ss:$16 sps:$4 sm:$0xff]  }
 0x35b   :  { %11149 = vmatprep.subr.bf16.mxu1 %v14086_v19  ;;  %v14140_v19 = vld [vmem:[#allocation6 + $0x88c] ss:$16 sps:$4 sm:$0xff]  }
 0x35d   :  { %10462 = vmatpush1.bf16.msra.mxu0 %v14081_v48  ;;  %v14138_v48 = vld [vmem:[#allocation6 + $0x888] ss:$16 sps:$4 sm:$0xff]  }
 0x35e   :  { %11150 = vmatpush1.bf16.msra.mxu1 %v14084_v11  ;;  %10463 = vmatprep.subr.bf16.mxu0 %v14089_v32  ;;  %v14143_v11 = vld [vmem:[#allocation6 + $0x8a4] ss:$16 sps:$4 sm:$0xff]   ;;  %v14146_v32 = vld [vmem:[#allocation6 + $0x8ac] ss:$16 sps:$4 sm:$0xff]  }
 0x35f   :  { %11151 = vmatprep.subr.bf16.mxu1 %v14092_v51  ;;  %v14141_v51 = vld [vmem:[#allocation6 + $0x8a0] ss:$16 sps:$4 sm:$0xff]  }
 0x361   :  { %10464 = vmatpush1.bf16.msra.mxu0 %v14087_v63  ;;  %v14144_v63 = vld [vmem:[#allocation6 + $0x8a8] ss:$16 sps:$4 sm:$0xff]  }
 0x362   :  { %11152 = vmatpush1.bf16.msra.mxu1 %v14090_v50  ;;  %10465 = vmatprep.subr.bf16.mxu0 %v14095_v33  ;;  %v14149_v50 = vld [vmem:[#allocation6 + $0x8c4] ss:$16 sps:$4 sm:$0xff]   ;;  %v14152_v33 = vld [vmem:[#allocation6 + $0x8cc] ss:$16 sps:$4 sm:$0xff]  }
 0x363   :  { %11153 = vmatprep.subr.bf16.mxu1 %v14098_v34  ;;  %v14147_v34 = vld [vmem:[#allocation6 + $0x8c0] ss:$16 sps:$4 sm:$0xff]  }
 0x365   :  { %10466 = vmatpush1.bf16.msra.mxu0 %v14093_v0  ;;  %v14150_v0 = vld [vmem:[#allocation6 + $0x8c8] ss:$16 sps:$4 sm:$0xff]  }
 0x366   :  { %11154 = vmatpush1.bf16.msra.mxu1 %v14096_v35  ;;  %10467 = vmatprep.subr.bf16.mxu0 %v14101_v36  ;;  %v14155_v35 = vld [vmem:[#allocation6 + $0x8e4] ss:$16 sps:$4 sm:$0xff]   ;;  %v14158_v36 = vld [vmem:[#allocation6 + $0x8ec] ss:$16 sps:$4 sm:$0xff]  }
 0x367   :  { %11155 = vmatprep.subr.bf16.mxu1 %v14104_v22  ;;  %v14153_v22 = vld [vmem:[#allocation6 + $0x8e0] ss:$16 sps:$4 sm:$0xff]  }
 0x369   :  { %10468 = vmatpush1.bf16.msra.mxu0 %v14099_v38  ;;  %v14156_v38 = vld [vmem:[#allocation6 + $0x8e8] ss:$16 sps:$4 sm:$0xff]  }
 0x36a   :  { %11156 = vmatpush1.bf16.msra.mxu1 %v14102_v62  ;;  %10469 = vmatprep.subr.bf16.mxu0 %v14107_v40  ;;  %v14161_v62 = vld [vmem:[#allocation6 + $0x904] ss:$16 sps:$4 sm:$0xff]   ;;  %v14164_v40 = vld [vmem:[#allocation6 + $0x90c] ss:$16 sps:$4 sm:$0xff]  }
 0x36b   :  { %11157 = vmatprep.subr.bf16.mxu1 %v14110_v41  ;;  %v14159_v41 = vld [vmem:[#allocation6 + $0x900] ss:$16 sps:$4 sm:$0xff]  }
 0x36d   :  { %10470 = vmatpush1.bf16.msra.mxu0 %v14105_v56  ;;  %v14162_v56 = vld [vmem:[#allocation6 + $0x908] ss:$16 sps:$4 sm:$0xff]  }
 0x36e   :  { %11158 = vmatpush1.bf16.msra.mxu1 %v14108_v20  ;;  %10482 = vmatprep.subr.bf16.mxu0 %v14113_v7  ;;  %v14167_v20 = vld [vmem:[#allocation6 + $0x924] ss:$16 sps:$4 sm:$0xff]   ;;  %v14170_v7 = vld [vmem:[#allocation6 + $0x92c] ss:$16 sps:$4 sm:$0xff]  }
 0x36f   :  { %11170 = vmatprep.subr.bf16.mxu1 %v14116_v42  ;;  %v14165_v42 = vld [vmem:[#allocation6 + $0x920] ss:$16 sps:$4 sm:$0xff]  }
 0x370   :  { %10472 = vmatmul.mubr.bf16.vlgmr.msra.gmra.mrb[32].mxu0 %v15728_v4 }
 0x371   :  { %11160 = vmatmul.mubr.bf16.vlgmr.msra.gmra.mrb[32].mxu1 %v15728_v4  ;;  %10483 = vmatpush1.bf16.msra.mxu0 %v14111_v43  ;;  %v14134_v4 = vld [vmem:[#allocation6 + $0x86c] ss:$16 sps:$4 sm:$0xff]   ;;  %v14168_v43 = vld [vmem:[#allocation6 + $0x928] ss:$16 sps:$4 sm:$0xff]  }
 0x372   :  { %10514 = vmatprep.mubr.bf16.mxu0 %v15764_v29  ;;  %11171 = vmatpush1.bf16.msra.mxu1 %v14114_v44  ;;  %v14173_v44 = vld [vmem:[#allocation6 + $0x944] ss:$16 sps:$4 sm:$0xff]  }
 0x373   :  { %11202 = vmatprep.mubr.bf16.mxu1 %v15764_v29  ;;  %10484 = vmatprep.subr.bf16.mxu0 %v14119_v49  ;;  %v14135_v29 = vld [vmem:[#allocation6 + $0x880] ss:$16 sps:$4 sm:$0xff]   ;;  %v14176_v49 = vld [vmem:[#allocation6 + $0x94c] ss:$16 sps:$4 sm:$0xff]  }
 0x374   :  { %11172 = vmatprep.subr.bf16.mxu1 %v14122_v6  ;;  %v14171_v6 = vld [vmem:[#allocation6 + $0x940] ss:$16 sps:$4 sm:$0xff]  }
 0x375   :  { %10485 = vmatpush1.bf16.msra.mxu0 %v14117_v46  ;;  %v14174_v46 = vld [vmem:[#allocation6 + $0x948] ss:$16 sps:$4 sm:$0xff]  }
 0x376   :  { %11173 = vmatpush1.bf16.msra.mxu1 %v14120_v3  ;;  %10486 = vmatprep.subr.bf16.mxu0 %v14125_v12  ;;  %v14179_v3 = vld [vmem:[#allocation6 + $0x964] ss:$16 sps:$4 sm:$0xff]   ;;  %v14182_v12 = vld [vmem:[#allocation6 + $0x96c] ss:$16 sps:$4 sm:$0xff]  }
 0x377   :  { %11174 = vmatprep.subr.bf16.mxu1 %v14128_v13  ;;  %v14177_v13 = vld [vmem:[#allocation6 + $0x960] ss:$16 sps:$4 sm:$0xff]  }
 0x379   :  { %10487 = vmatpush1.bf16.msra.mxu0 %v14123_v45  ;;  %v14180_v45 = vld [vmem:[#allocation6 + $0x968] ss:$16 sps:$4 sm:$0xff]  }
 0x37a   :  { %11175 = vmatpush1.bf16.msra.mxu1 %v14126_v17  ;;  %10488 = vmatprep.subr.bf16.mxu0 %v14131_v23  ;;  %v14185_v17 = vld [vmem:[#allocation6 + $0x984] ss:$16 sps:$4 sm:$0xff]   ;;  %v14188_v23 = vld [vmem:[#allocation6 + $0x98c] ss:$16 sps:$4 sm:$0xff]  }
 0x37b   :  { %11176 = vmatprep.subr.bf16.mxu1 %v14134_v4  ;;  %v14183_v4 = vld [vmem:[#allocation6 + $0x980] ss:$16 sps:$4 sm:$0xff]  }
 0x37d   :  { %10489 = vmatpush1.bf16.msra.mxu0 %v14129_v8  ;;  %v14186_v8 = vld [vmem:[#allocation6 + $0x988] ss:$16 sps:$4 sm:$0xff]  }
 0x37e   :  { %11177 = vmatpush1.bf16.msra.mxu1 %v14132_v47  ;;  %10490 = vmatprep.subr.bf16.mxu0 %v14137_v28  ;;  %v14191_v47 = vld [vmem:[#allocation6 + $0x9a4] ss:$16 sps:$4 sm:$0xff]   ;;  %v14194_v28 = vld [vmem:[#allocation6 + $0x9ac] ss:$16 sps:$4 sm:$0xff]  }
 0x37f   :  { %11178 = vmatprep.subr.bf16.mxu1 %v14140_v19  ;;  %v14189_v19 = vld [vmem:[#allocation6 + $0x9a0] ss:$16 sps:$4 sm:$0xff]  }
 0x381   :  { %10491 = vmatpush1.bf16.msra.mxu0 %v14135_v29  ;;  %v14192_v29 = vld [vmem:[#allocation6 + $0x9a8] ss:$16 sps:$4 sm:$0xff]  }
 0x382   :  { %11179 = vmatpush1.bf16.msra.mxu1 %v14138_v48  ;;  %10492 = vmatprep.subr.bf16.mxu0 %v14143_v11  ;;  %v14197_v48 = vld [vmem:[#allocation6 + $0x9c4] ss:$16 sps:$4 sm:$0xff]   ;;  %v14200_v11 = vld [vmem:[#allocation6 + $0x9cc] ss:$16 sps:$4 sm:$0xff]  }
 0x383   :  { %11180 = vmatprep.subr.bf16.mxu1 %v14146_v32  ;;  %v14195_v32 = vld [vmem:[#allocation6 + $0x9c0] ss:$16 sps:$4 sm:$0xff]  }
 0x385   :  { %10493 = vmatpush1.bf16.msra.mxu0 %v14141_v51  ;;  %v14198_v51 = vld [vmem:[#allocation6 + $0x9c8] ss:$16 sps:$4 sm:$0xff]  }
 0x386   :  { %11181 = vmatpush1.bf16.msra.mxu1 %v14144_v63  ;;  %10494 = vmatprep.subr.bf16.mxu0 %v14149_v50  ;;  %v14203_v63 = vld [vmem:[#allocation6 + $0x9e4] ss:$16 sps:$4 sm:$0xff]   ;;  %v14206_v50 = vld [vmem:[#allocation6 + $0x9ec] ss:$16 sps:$4 sm:$0xff]  }
 0x387   :  { %11182 = vmatprep.subr.bf16.mxu1 %v14152_v33  ;;  %v14201_v33 = vld [vmem:[#allocation6 + $0x9e0] ss:$16 sps:$4 sm:$0xff]  }
 0x389   :  { %10495 = vmatpush1.bf16.msra.mxu0 %v14147_v34  ;;  %v14204_v34 = vld [vmem:[#allocation6 + $0x9e8] ss:$16 sps:$4 sm:$0xff]  }
 0x38a   :  { %11183 = vmatpush1.bf16.msra.mxu1 %v14150_v0  ;;  %10496 = vmatprep.subr.bf16.mxu0 %v14155_v35  ;;  %v14209_v0 = vld [vmem:[#allocation6 + $0xa04] ss:$16 sps:$4 sm:$0xff]   ;;  %v14212_v35 = vld [vmem:[#allocation6 + $0xa0c] ss:$16 sps:$4 sm:$0xff]  }
 0x38b   :  { %11184 = vmatprep.subr.bf16.mxu1 %v14158_v36  ;;  %v14207_v36 = vld [vmem:[#allocation6 + $0xa00] ss:$16 sps:$4 sm:$0xff]  }
 0x38d   :  { %10497 = vmatpush1.bf16.msra.mxu0 %v14153_v22  ;;  %v14210_v22 = vld [vmem:[#allocation6 + $0xa08] ss:$16 sps:$4 sm:$0xff]  }
 0x38e   :  { %11185 = vmatpush1.bf16.msra.mxu1 %v14156_v38  ;;  %10498 = vmatprep.subr.bf16.mxu0 %v14161_v62  ;;  %v14215_v38 = vld [vmem:[#allocation6 + $0xa24] ss:$16 sps:$4 sm:$0xff]   ;;  %v14218_v62 = vld [vmem:[#allocation6 + $0xa2c] ss:$16 sps:$4 sm:$0xff]  }
 0x38f   :  { %11186 = vmatprep.subr.bf16.mxu1 %v14164_v40  ;;  %v14213_v40 = vld [vmem:[#allocation6 + $0xa20] ss:$16 sps:$4 sm:$0xff]  }
 0x391   :  { %10499 = vmatpush1.bf16.msra.mxu0 %v14159_v41  ;;  %v14216_v41 = vld [vmem:[#allocation6 + $0xa28] ss:$16 sps:$4 sm:$0xff]  }
 0x392   :  { %11187 = vmatpush1.bf16.msra.mxu1 %v14162_v56  ;;  %10500 = vmatprep.subr.bf16.mxu0 %v14167_v20  ;;  %v14221_v56 = vld [vmem:[#allocation6 + $0xa44] ss:$16 sps:$4 sm:$0xff]   ;;  %v14224_v20 = vld [vmem:[#allocation6 + $0xa4c] ss:$16 sps:$4 sm:$0xff]  }
 0x393   :  { %11188 = vmatprep.subr.bf16.mxu1 %v14170_v7  ;;  %v14219_v7 = vld [vmem:[#allocation6 + $0xa40] ss:$16 sps:$4 sm:$0xff]  }
 0x395   :  { %10501 = vmatpush1.bf16.msra.mxu0 %v14165_v42  ;;  %v14222_v42 = vld [vmem:[#allocation6 + $0xa48] ss:$16 sps:$4 sm:$0xff]  }
 0x396   :  { %11189 = vmatpush1.bf16.msra.mxu1 %v14168_v43  ;;  %10502 = vmatprep.subr.bf16.mxu0 %v14173_v44  ;;  %v14227_v43 = vld [vmem:[#allocation6 + $0xa64] ss:$16 sps:$4 sm:$0xff]   ;;  %v14225_v44 = vld [vmem:[#allocation6 + $0xa60] ss:$16 sps:$4 sm:$0xff]  }
 0x397   :  { %11190 = vmatprep.subr.bf16.mxu1 %v14176_v49  ;;  %v14228_v49 = vld [vmem:[#allocation6 + $0xa68] ss:$16 sps:$4 sm:$0xff]  }
 0x399   :  { %10503 = vmatpush1.bf16.msra.mxu0 %v14171_v6  ;;  %v14233_v6 = vld [vmem:[#allocation6 + $0xa84] ss:$16 sps:$4 sm:$0xff]  }
 0x39a   :  { %11191 = vmatpush1.bf16.msra.mxu1 %v14174_v46  ;;  %10504 = vmatprep.subr.bf16.mxu0 %v14179_v3  ;;  %v14236_v46 = vld [vmem:[#allocation6 + $0xa8c] ss:$16 sps:$4 sm:$0xff]   ;;  %v14234_v3 = vld [vmem:[#allocation6 + $0xa88] ss:$16 sps:$4 sm:$0xff]  }
 0x39b   :  { %11192 = vmatprep.subr.bf16.mxu1 %v14182_v12  ;;  %v14239_v12 = vld [vmem:[#allocation6 + $0xaa4] ss:$16 sps:$4 sm:$0xff]  }
 0x39d   :  { %10505 = vmatpush1.bf16.msra.mxu0 %v14177_v13  ;;  %v14242_v13 = vld [vmem:[#allocation6 + $0xaac] ss:$16 sps:$4 sm:$0xff]  }
 0x39e   :  { %11193 = vmatpush1.bf16.msra.mxu1 %v14180_v45  ;;  %10506 = vmatprep.subr.bf16.mxu0 %v14185_v17  ;;  %v14237_v45 = vld [vmem:[#allocation6 + $0xaa0] ss:$16 sps:$4 sm:$0xff]   ;;  %v14240_v17 = vld [vmem:[#allocation6 + $0xaa8] ss:$16 sps:$4 sm:$0xff]  }
 0x39f   :  { %11194 = vmatprep.subr.bf16.mxu1 %v14188_v23  ;;  %v14245_v23 = vld [vmem:[#allocation6 + $0xac4] ss:$16 sps:$4 sm:$0xff]  }
 0x3a1   :  { %10507 = vmatpush1.bf16.msra.mxu0 %v14183_v4  ;;  %v14248_v4 = vld [vmem:[#allocation6 + $0xacc] ss:$16 sps:$4 sm:$0xff]  }
 0x3a2   :  { %11195 = vmatpush1.bf16.msra.mxu1 %v14186_v8  ;;  %10508 = vmatprep.subr.bf16.mxu0 %v14191_v47  ;;  %v14243_v8 = vld [vmem:[#allocation6 + $0xac0] ss:$16 sps:$4 sm:$0xff]   ;;  %v14246_v47 = vld [vmem:[#allocation6 + $0xac8] ss:$16 sps:$4 sm:$0xff]  }
 0x3a3   :  { %11196 = vmatprep.subr.bf16.mxu1 %v14194_v28  ;;  %v14251_v28 = vld [vmem:[#allocation6 + $0xae4] ss:$16 sps:$4 sm:$0xff]  }
 0x3a5   :  { %10509 = vmatpush1.bf16.msra.mxu0 %v14189_v19  ;;  %v14254_v19 = vld [vmem:[#allocation6 + $0xaec] ss:$16 sps:$4 sm:$0xff]  }
 0x3a6   :  { %11197 = vmatpush1.bf16.msra.mxu1 %v14192_v29  ;;  %10510 = vmatprep.subr.bf16.mxu0 %v14197_v48  ;;  %v14249_v29 = vld [vmem:[#allocation6 + $0xae0] ss:$16 sps:$4 sm:$0xff]   ;;  %v14252_v48 = vld [vmem:[#allocation6 + $0xae8] ss:$16 sps:$4 sm:$0xff]  }
 0x3a7   :  { %11198 = vmatprep.subr.bf16.mxu1 %v14200_v11  ;;  %v14257_v11 = vld [vmem:[#allocation6 + $0xb04] ss:$16 sps:$4 sm:$0xff]  }
 0x3a9   :  { %10511 = vmatpush1.bf16.msra.mxu0 %v14195_v32  ;;  %v14260_v32 = vld [vmem:[#allocation6 + $0xb0c] ss:$16 sps:$4 sm:$0xff]  }
 0x3aa   :  { %11199 = vmatpush1.bf16.msra.mxu1 %v14198_v51  ;;  %10512 = vmatprep.subr.bf16.mxu0 %v14203_v63  ;;  %v14255_v51 = vld [vmem:[#allocation6 + $0xb00] ss:$16 sps:$4 sm:$0xff]   ;;  %v14258_v63 = vld [vmem:[#allocation6 + $0xb08] ss:$16 sps:$4 sm:$0xff]  }
 0x3ab   :  { %11200 = vmatprep.subr.bf16.mxu1 %v14206_v50  ;;  %v14263_v50 = vld [vmem:[#allocation6 + $0xb24] ss:$16 sps:$4 sm:$0xff]  }
 0x3ad   :  { %10513 = vmatpush1.bf16.msra.mxu0 %v14201_v33  ;;  %v14266_v33 = vld [vmem:[#allocation6 + $0xb2c] ss:$16 sps:$4 sm:$0xff]  }
 0x3ae   :  { %11201 = vmatpush1.bf16.msra.mxu1 %v14204_v34  ;;  %10525 = vmatprep.subr.bf16.mxu0 %v14209_v0  ;;  %v14261_v34 = vld [vmem:[#allocation6 + $0xb20] ss:$16 sps:$4 sm:$0xff]   ;;  %v14264_v0 = vld [vmem:[#allocation6 + $0xb28] ss:$16 sps:$4 sm:$0xff]  }
 0x3af   :  { %11213 = vmatprep.subr.bf16.mxu1 %v14212_v35  ;;  %v14269_v35 = vld [vmem:[#allocation6 + $0xb44] ss:$16 sps:$4 sm:$0xff]  }
 0x3b0   :  { %10515 = vmatmul.mubr.bf16.vlgmr.msra.gmra.mrb[32].mxu0 %v15760_v53 }
 0x3b1   :  { %11203 = vmatmul.mubr.bf16.vlgmr.msra.gmra.mrb[32].mxu1 %v15760_v53  ;;  %10526 = vmatpush1.bf16.msra.mxu0 %v14207_v36  ;;  %v14230_v53 = vld [vmem:[#allocation6 + $0xa6c] ss:$16 sps:$4 sm:$0xff]  }
 0x3b2   :  { %10557 = vmatprep.mubr.bf16.mxu0 %v15766_v31  ;;  %11214 = vmatpush1.bf16.msra.mxu1 %v14210_v22  ;;  %v14272_v36 = vld [vmem:[#allocation6 + $0xb4c] ss:$16 sps:$4 sm:$0xff]   ;;  %v14267_v22 = vld [vmem:[#allocation6 + $0xb40] ss:$16 sps:$4 sm:$0xff]  }
 0x3b3   :  { %11245 = vmatprep.mubr.bf16.mxu1 %v15766_v31  ;;  %10527 = vmatprep.subr.bf16.mxu0 %v14215_v38  ;;  %v14231_v31 = vld [vmem:[#allocation6 + $0xa80] ss:$16 sps:$4 sm:$0xff]   ;;  %v14270_v38 = vld [vmem:[#allocation6 + $0xb48] ss:$16 sps:$4 sm:$0xff]  }
 0x3b4   :  { %11215 = vmatprep.subr.bf16.mxu1 %v14218_v62  ;;  %v14275_v62 = vld [vmem:[#allocation6 + $0xb64] ss:$16 sps:$4 sm:$0xff]  }
 0x3b5   :  { %10528 = vmatpush1.bf16.msra.mxu0 %v14213_v40  ;;  %v14278_v40 = vld [vmem:[#allocation6 + $0xb6c] ss:$16 sps:$4 sm:$0xff]  }
 0x3b6   :  { %11216 = vmatpush1.bf16.msra.mxu1 %v14216_v41  ;;  %10529 = vmatprep.subr.bf16.mxu0 %v14221_v56  ;;  %v14273_v41 = vld [vmem:[#allocation6 + $0xb60] ss:$16 sps:$4 sm:$0xff]   ;;  %v14276_v56 = vld [vmem:[#allocation6 + $0xb68] ss:$16 sps:$4 sm:$0xff]  }
 0x3b7   :  { %11217 = vmatprep.subr.bf16.mxu1 %v14224_v20  ;;  %v14281_v20 = vld [vmem:[#allocation6 + $0xb84] ss:$16 sps:$4 sm:$0xff]  }
 0x3b9   :  { %10530 = vmatpush1.bf16.msra.mxu0 %v14219_v7  ;;  %v14284_v7 = vld [vmem:[#allocation6 + $0xb8c] ss:$16 sps:$4 sm:$0xff]  }
 0x3ba   :  { %11218 = vmatpush1.bf16.msra.mxu1 %v14222_v42  ;;  %10531 = vmatprep.subr.bf16.mxu0 %v14227_v43  ;;  %v14279_v42 = vld [vmem:[#allocation6 + $0xb80] ss:$16 sps:$4 sm:$0xff]   ;;  %v14282_v43 = vld [vmem:[#allocation6 + $0xb88] ss:$16 sps:$4 sm:$0xff]  }
 0x3bb   :  { %11219 = vmatprep.subr.bf16.mxu1 %v14230_v53  ;;  %v14287_v53 = vld [vmem:[#allocation6 + $0xba4] ss:$16 sps:$4 sm:$0xff]  }
 0x3bd   :  { %10532 = vmatpush1.bf16.msra.mxu0 %v14225_v44  ;;  %v14290_v44 = vld [vmem:[#allocation6 + $0xbac] ss:$16 sps:$4 sm:$0xff]  }
 0x3be   :  { %11220 = vmatpush1.bf16.msra.mxu1 %v14228_v49  ;;  %10533 = vmatprep.subr.bf16.mxu0 %v14233_v6  ;;  %v14285_v49 = vld [vmem:[#allocation6 + $0xba0] ss:$16 sps:$4 sm:$0xff]   ;;  %v14288_v6 = vld [vmem:[#allocation6 + $0xba8] ss:$16 sps:$4 sm:$0xff]  }
 0x3bf   :  { %11221 = vmatprep.subr.bf16.mxu1 %v14236_v46  ;;  %v14293_v46 = vld [vmem:[#allocation6 + $0xbc4] ss:$16 sps:$4 sm:$0xff]  }
 0x3c1   :  { %10534 = vmatpush1.bf16.msra.mxu0 %v14231_v31  ;;  %v14296_v31 = vld [vmem:[#allocation6 + $0xbcc] ss:$16 sps:$4 sm:$0xff]  }
 0x3c2   :  { %11222 = vmatpush1.bf16.msra.mxu1 %v14234_v3  ;;  %10535 = vmatprep.subr.bf16.mxu0 %v14239_v12  ;;  %v14291_v3 = vld [vmem:[#allocation6 + $0xbc0] ss:$16 sps:$4 sm:$0xff]   ;;  %v14294_v12 = vld [vmem:[#allocation6 + $0xbc8] ss:$16 sps:$4 sm:$0xff]  }
 0x3c3   :  { %11223 = vmatprep.subr.bf16.mxu1 %v14242_v13  ;;  %v14299_v13 = vld [vmem:[#allocation6 + $0xbe4] ss:$16 sps:$4 sm:$0xff]  }
 0x3c5   :  { %10536 = vmatpush1.bf16.msra.mxu0 %v14237_v45  ;;  %v14302_v45 = vld [vmem:[#allocation6 + $0xbec] ss:$16 sps:$4 sm:$0xff]  }
 0x3c6   :  { %11224 = vmatpush1.bf16.msra.mxu1 %v14240_v17  ;;  %10537 = vmatprep.subr.bf16.mxu0 %v14245_v23  ;;  %v14297_v17 = vld [vmem:[#allocation6 + $0xbe0] ss:$16 sps:$4 sm:$0xff]   ;;  %v14300_v23 = vld [vmem:[#allocation6 + $0xbe8] ss:$16 sps:$4 sm:$0xff]  }
 0x3c7   :  { %11225 = vmatprep.subr.bf16.mxu1 %v14248_v4  ;;  %v14305_v4 = vld [vmem:[#allocation6 + $0xc04] ss:$16 sps:$4 sm:$0xff]  }
 0x3c9   :  { %10538 = vmatpush1.bf16.msra.mxu0 %v14243_v8  ;;  %v14308_v8 = vld [vmem:[#allocation6 + $0xc0c] ss:$16 sps:$4 sm:$0xff]  }
 0x3ca   :  { %11226 = vmatpush1.bf16.msra.mxu1 %v14246_v47  ;;  %10539 = vmatprep.subr.bf16.mxu0 %v14251_v28  ;;  %v14303_v47 = vld [vmem:[#allocation6 + $0xc00] ss:$16 sps:$4 sm:$0xff]   ;;  %v14306_v28 = vld [vmem:[#allocation6 + $0xc08] ss:$16 sps:$4 sm:$0xff]  }
 0x3cb   :  { %11227 = vmatprep.subr.bf16.mxu1 %v14254_v19  ;;  %v14311_v19 = vld [vmem:[#allocation6 + $0xc24] ss:$16 sps:$4 sm:$0xff]  }
 0x3cd   :  { %10540 = vmatpush1.bf16.msra.mxu0 %v14249_v29  ;;  %v14314_v29 = vld [vmem:[#allocation6 + $0xc2c] ss:$16 sps:$4 sm:$0xff]  }
 0x3ce   :  { %11228 = vmatpush1.bf16.msra.mxu1 %v14252_v48  ;;  %10541 = vmatprep.subr.bf16.mxu0 %v14257_v11  ;;  %v14309_v48 = vld [vmem:[#allocation6 + $0xc20] ss:$16 sps:$4 sm:$0xff]   ;;  %v14312_v11 = vld [vmem:[#allocation6 + $0xc28] ss:$16 sps:$4 sm:$0xff]  }
 0x3cf   :  { %11229 = vmatprep.subr.bf16.mxu1 %v14260_v32  ;;  %v14317_v32 = vld [vmem:[#allocation6 + $0xc44] ss:$16 sps:$4 sm:$0xff]  }
 0x3d1   :  { %10542 = vmatpush1.bf16.msra.mxu0 %v14255_v51  ;;  %v14320_v51 = vld [vmem:[#allocation6 + $0xc4c] ss:$16 sps:$4 sm:$0xff]  }
 0x3d2   :  { %11230 = vmatpush1.bf16.msra.mxu1 %v14258_v63  ;;  %10543 = vmatprep.subr.bf16.mxu0 %v14263_v50  ;;  %v14315_v63 = vld [vmem:[#allocation6 + $0xc40] ss:$16 sps:$4 sm:$0xff]   ;;  %v14318_v50 = vld [vmem:[#allocation6 + $0xc48] ss:$16 sps:$4 sm:$0xff]  }
 0x3d3   :  { %11231 = vmatprep.subr.bf16.mxu1 %v14266_v33  ;;  %v14323_v33 = vld [vmem:[#allocation6 + $0xc64] ss:$16 sps:$4 sm:$0xff]  }
 0x3d5   :  { %10544 = vmatpush1.bf16.msra.mxu0 %v14261_v34  ;;  %v14321_v34 = vld [vmem:[#allocation6 + $0xc60] ss:$16 sps:$4 sm:$0xff]  }
 0x3d6   :  { %11232 = vmatpush1.bf16.msra.mxu1 %v14264_v0  ;;  %10545 = vmatprep.subr.bf16.mxu0 %v14269_v35  ;;  %v14324_v0 = vld [vmem:[#allocation6 + $0xc68] ss:$16 sps:$4 sm:$0xff]   ;;  %v14329_v35 = vld [vmem:[#allocation6 + $0xc84] ss:$16 sps:$4 sm:$0xff]  }
 0x3d7   :  { %11233 = vmatprep.subr.bf16.mxu1 %v14272_v36  ;;  %v14332_v36 = vld [vmem:[#allocation6 + $0xc8c] ss:$16 sps:$4 sm:$0xff]  }
 0x3d9   :  { %10546 = vmatpush1.bf16.msra.mxu0 %v14267_v22  ;;  %v14330_v22 = vld [vmem:[#allocation6 + $0xc88] ss:$16 sps:$4 sm:$0xff]  }
 0x3da   :  { %11234 = vmatpush1.bf16.msra.mxu1 %v14270_v38  ;;  %10547 = vmatprep.subr.bf16.mxu0 %v14275_v62  ;;  %v14335_v38 = vld [vmem:[#allocation6 + $0xca4] ss:$16 sps:$4 sm:$0xff]   ;;  %v14338_v62 = vld [vmem:[#allocation6 + $0xcac] ss:$16 sps:$4 sm:$0xff]  }
 0x3db   :  { %11235 = vmatprep.subr.bf16.mxu1 %v14278_v40  ;;  %v14333_v40 = vld [vmem:[#allocation6 + $0xca0] ss:$16 sps:$4 sm:$0xff]  }
 0x3dd   :  { %10548 = vmatpush1.bf16.msra.mxu0 %v14273_v41  ;;  %v14336_v41 = vld [vmem:[#allocation6 + $0xca8] ss:$16 sps:$4 sm:$0xff]  }
 0x3de   :  { %11236 = vmatpush1.bf16.msra.mxu1 %v14276_v56  ;;  %10549 = vmatprep.subr.bf16.mxu0 %v14281_v20  ;;  %v14341_v56 = vld [vmem:[#allocation6 + $0xcc4] ss:$16 sps:$4 sm:$0xff]   ;;  %v14344_v20 = vld [vmem:[#allocation6 + $0xccc] ss:$16 sps:$4 sm:$0xff]  }
 0x3df   :  { %11237 = vmatprep.subr.bf16.mxu1 %v14284_v7  ;;  %v14339_v7 = vld [vmem:[#allocation6 + $0xcc0] ss:$16 sps:$4 sm:$0xff]  }
 0x3e1   :  { %10550 = vmatpush1.bf16.msra.mxu0 %v14279_v42  ;;  %v14342_v42 = vld [vmem:[#allocation6 + $0xcc8] ss:$16 sps:$4 sm:$0xff]  }
 0x3e2   :  { %11238 = vmatpush1.bf16.msra.mxu1 %v14282_v43  ;;  %10551 = vmatprep.subr.bf16.mxu0 %v14287_v53  ;;  %v14347_v43 = vld [vmem:[#allocation6 + $0xce4] ss:$16 sps:$4 sm:$0xff]   ;;  %v14350_v53 = vld [vmem:[#allocation6 + $0xcec] ss:$16 sps:$4 sm:$0xff]  }
 0x3e3   :  { %11239 = vmatprep.subr.bf16.mxu1 %v14290_v44  ;;  %v14345_v44 = vld [vmem:[#allocation6 + $0xce0] ss:$16 sps:$4 sm:$0xff]  }
 0x3e5   :  { %10552 = vmatpush1.bf16.msra.mxu0 %v14285_v49  ;;  %v14348_v49 = vld [vmem:[#allocation6 + $0xce8] ss:$16 sps:$4 sm:$0xff]  }
 0x3e6   :  { %11240 = vmatpush1.bf16.msra.mxu1 %v14288_v6  ;;  %10553 = vmatprep.subr.bf16.mxu0 %v14293_v46  ;;  %v14353_v6 = vld [vmem:[#allocation6 + $0xd04] ss:$16 sps:$4 sm:$0xff]   ;;  %v14356_v46 = vld [vmem:[#allocation6 + $0xd0c] ss:$16 sps:$4 sm:$0xff]  }
 0x3e7   :  { %11241 = vmatprep.subr.bf16.mxu1 %v14296_v31  ;;  %v14351_v31 = vld [vmem:[#allocation6 + $0xd00] ss:$16 sps:$4 sm:$0xff]  }
 0x3e9   :  { %10554 = vmatpush1.bf16.msra.mxu0 %v14291_v3  ;;  %v14354_v3 = vld [vmem:[#allocation6 + $0xd08] ss:$16 sps:$4 sm:$0xff]  }
 0x3ea   :  { %11242 = vmatpush1.bf16.msra.mxu1 %v14294_v12  ;;  %10555 = vmatprep.subr.bf16.mxu0 %v14299_v13  ;;  %v14359_v12 = vld [vmem:[#allocation6 + $0xd24] ss:$16 sps:$4 sm:$0xff]   ;;  %v14362_v13 = vld [vmem:[#allocation6 + $0xd2c] ss:$16 sps:$4 sm:$0xff]  }
 0x3eb   :  { %11243 = vmatprep.subr.bf16.mxu1 %v14302_v45  ;;  %v14357_v45 = vld [vmem:[#allocation6 + $0xd20] ss:$16 sps:$4 sm:$0xff]  }
 0x3ed   :  { %10556 = vmatpush1.bf16.msra.mxu0 %v14297_v17  ;;  %v14360_v17 = vld [vmem:[#allocation6 + $0xd28] ss:$16 sps:$4 sm:$0xff]  }
 0x3ee   :  { %11244 = vmatpush1.bf16.msra.mxu1 %v14300_v23  ;;  %10568 = vmatprep.subr.bf16.mxu0 %v14305_v4  ;;  %v14365_v23 = vld [vmem:[#allocation6 + $0xd44] ss:$16 sps:$4 sm:$0xff]   ;;  %v14368_v4 = vld [vmem:[#allocation6 + $0xd4c] ss:$16 sps:$4 sm:$0xff]  }
 0x3ef   :  { %11256 = vmatprep.subr.bf16.mxu1 %v14308_v8  ;;  %v14363_v8 = vld [vmem:[#allocation6 + $0xd40] ss:$16 sps:$4 sm:$0xff]  }
 0x3f0   :  { %10558 = vmatmul.mubr.bf16.vlgmr.msra.gmra.mrb[32].mxu0 %v15762_v27 }
 0x3f1   :  { %11246 = vmatmul.mubr.bf16.vlgmr.msra.gmra.mrb[32].mxu1 %v15762_v27  ;;  %10569 = vmatpush1.bf16.msra.mxu0 %v14303_v47  ;;  %v14326_v27 = vld [vmem:[#allocation6 + $0xc6c] ss:$16 sps:$4 sm:$0xff]   ;;  %v14366_v47 = vld [vmem:[#allocation6 + $0xd48] ss:$16 sps:$4 sm:$0xff]  }
 0x3f2   :  { %10600 = vmatprep.mubr.bf16.mxu0 %v15806_v16  ;;  %11257 = vmatpush1.bf16.msra.mxu1 %v14306_v28  ;;  %v14371_v28 = vld [vmem:[#allocation6 + $0xd64] ss:$16 sps:$4 sm:$0xff]  }
 0x3f3   :  { %11288 = vmatprep.mubr.bf16.mxu1 %v15806_v16  ;;  %10570 = vmatprep.subr.bf16.mxu0 %v14311_v19  ;;  %v14327_v16 = vld [vmem:[#allocation6 + $0xc80] ss:$16 sps:$4 sm:$0xff]   ;;  %v14374_v19 = vld [vmem:[#allocation6 + $0xd6c] ss:$16 sps:$4 sm:$0xff]  }
 0x3f4   :  { %11258 = vmatprep.subr.bf16.mxu1 %v14314_v29  ;;  %v14369_v29 = vld [vmem:[#allocation6 + $0xd60] ss:$16 sps:$4 sm:$0xff]  }
 0x3f5   :  { %10571 = vmatpush1.bf16.msra.mxu0 %v14309_v48  ;;  %v14372_v48 = vld [vmem:[#allocation6 + $0xd68] ss:$16 sps:$4 sm:$0xff]  }
 0x3f6   :  { %11259 = vmatpush1.bf16.msra.mxu1 %v14312_v11  ;;  %10572 = vmatprep.subr.bf16.mxu0 %v14317_v32  ;;  %v14377_v11 = vld [vmem:[#allocation6 + $0xd84] ss:$16 sps:$4 sm:$0xff]   ;;  %v14380_v32 = vld [vmem:[#allocation6 + $0xd8c] ss:$16 sps:$4 sm:$0xff]  }
 0x3f7   :  { %11260 = vmatprep.subr.bf16.mxu1 %v14320_v51  ;;  %v14375_v51 = vld [vmem:[#allocation6 + $0xd80] ss:$16 sps:$4 sm:$0xff]  }
 0x3f9   :  { %10573 = vmatpush1.bf16.msra.mxu0 %v14315_v63  ;;  %v14378_v63 = vld [vmem:[#allocation6 + $0xd88] ss:$16 sps:$4 sm:$0xff]  }
 0x3fa   :  { %11261 = vmatpush1.bf16.msra.mxu1 %v14318_v50  ;;  %10574 = vmatprep.subr.bf16.mxu0 %v14323_v33  ;;  %v14383_v50 = vld [vmem:[#allocation6 + $0xda4] ss:$16 sps:$4 sm:$0xff]   ;;  %v14386_v33 = vld [vmem:[#allocation6 + $0xdac] ss:$16 sps:$4 sm:$0xff]  }
 0x3fb   :  { %11262 = vmatprep.subr.bf16.mxu1 %v14326_v27  ;;  %v14381_v27 = vld [vmem:[#allocation6 + $0xda0] ss:$16 sps:$4 sm:$0xff]  }
 0x3fd   :  { %10575 = vmatpush1.bf16.msra.mxu0 %v14321_v34  ;;  %v14384_v34 = vld [vmem:[#allocation6 + $0xda8] ss:$16 sps:$4 sm:$0xff]  }
 0x3fe   :  { %11263 = vmatpush1.bf16.msra.mxu1 %v14324_v0  ;;  %10576 = vmatprep.subr.bf16.mxu0 %v14329_v35  ;;  %v14389_v0 = vld [vmem:[#allocation6 + $0xdc4] ss:$16 sps:$4 sm:$0xff]   ;;  %v14392_v35 = vld [vmem:[#allocation6 + $0xdcc] ss:$16 sps:$4 sm:$0xff]  }
 0x3ff   :  { %11264 = vmatprep.subr.bf16.mxu1 %v14332_v36  ;;  %v14387_v36 = vld [vmem:[#allocation6 + $0xdc0] ss:$16 sps:$4 sm:$0xff]  }
 0x401   :  { %10577 = vmatpush1.bf16.msra.mxu0 %v14327_v16  ;;  %v14390_v16 = vld [vmem:[#allocation6 + $0xdc8] ss:$16 sps:$4 sm:$0xff]  }
 0x402   :  { %11265 = vmatpush1.bf16.msra.mxu1 %v14330_v22  ;;  %10578 = vmatprep.subr.bf16.mxu0 %v14335_v38  ;;  %v14395_v22 = vld [vmem:[#allocation6 + $0xde4] ss:$16 sps:$4 sm:$0xff]   ;;  %v14398_v38 = vld [vmem:[#allocation6 + $0xdec] ss:$16 sps:$4 sm:$0xff]  }
 0x403   :  { %11266 = vmatprep.subr.bf16.mxu1 %v14338_v62  ;;  %v14393_v62 = vld [vmem:[#allocation6 + $0xde0] ss:$16 sps:$4 sm:$0xff]  }
 0x405   :  { %10579 = vmatpush1.bf16.msra.mxu0 %v14333_v40  ;;  %v14396_v40 = vld [vmem:[#allocation6 + $0xde8] ss:$16 sps:$4 sm:$0xff]  }
 0x406   :  { %11267 = vmatpush1.bf16.msra.mxu1 %v14336_v41  ;;  %10580 = vmatprep.subr.bf16.mxu0 %v14341_v56  ;;  %v14401_v41 = vld [vmem:[#allocation6 + $0xe04] ss:$16 sps:$4 sm:$0xff]   ;;  %v14404_v56 = vld [vmem:[#allocation6 + $0xe0c] ss:$16 sps:$4 sm:$0xff]  }
 0x407   :  { %11268 = vmatprep.subr.bf16.mxu1 %v14344_v20  ;;  %v14399_v20 = vld [vmem:[#allocation6 + $0xe00] ss:$16 sps:$4 sm:$0xff]  }
 0x409   :  { %10581 = vmatpush1.bf16.msra.mxu0 %v14339_v7  ;;  %v14402_v7 = vld [vmem:[#allocation6 + $0xe08] ss:$16 sps:$4 sm:$0xff]  }
 0x40a   :  { %11269 = vmatpush1.bf16.msra.mxu1 %v14342_v42  ;;  %10582 = vmatprep.subr.bf16.mxu0 %v14347_v43  ;;  %v14407_v42 = vld [vmem:[#allocation6 + $0xe24] ss:$16 sps:$4 sm:$0xff]   ;;  %v14410_v43 = vld [vmem:[#allocation6 + $0xe2c] ss:$16 sps:$4 sm:$0xff]  }
 0x40b   :  { %11270 = vmatprep.subr.bf16.mxu1 %v14350_v53  ;;  %v14405_v53 = vld [vmem:[#allocation6 + $0xe20] ss:$16 sps:$4 sm:$0xff]  }
 0x40d   :  { %10583 = vmatpush1.bf16.msra.mxu0 %v14345_v44  ;;  %v14408_v44 = vld [vmem:[#allocation6 + $0xe28] ss:$16 sps:$4 sm:$0xff]  }
 0x40e   :  { %11271 = vmatpush1.bf16.msra.mxu1 %v14348_v49  ;;  %10584 = vmatprep.subr.bf16.mxu0 %v14353_v6  ;;  %v14413_v49 = vld [vmem:[#allocation6 + $0xe44] ss:$16 sps:$4 sm:$0xff]   ;;  %v14416_v6 = vld [vmem:[#allocation6 + $0xe4c] ss:$16 sps:$4 sm:$0xff]  }
 0x40f   :  { %11272 = vmatprep.subr.bf16.mxu1 %v14356_v46  ;;  %v14411_v46 = vld [vmem:[#allocation6 + $0xe40] ss:$16 sps:$4 sm:$0xff]  }
 0x411   :  { %10585 = vmatpush1.bf16.msra.mxu0 %v14351_v31  ;;  %v14414_v31 = vld [vmem:[#allocation6 + $0xe48] ss:$16 sps:$4 sm:$0xff]  }
 0x412   :  { %11273 = vmatpush1.bf16.msra.mxu1 %v14354_v3  ;;  %10586 = vmatprep.subr.bf16.mxu0 %v14359_v12  ;;  %v14419_v3 = vld [vmem:[#allocation6 + $0xe64] ss:$16 sps:$4 sm:$0xff]   ;;  %v14417_v12 = vld [vmem:[#allocation6 + $0xe60] ss:$16 sps:$4 sm:$0xff]  }
 0x413   :  { %11274 = vmatprep.subr.bf16.mxu1 %v14362_v13  ;;  %v14420_v13 = vld [vmem:[#allocation6 + $0xe68] ss:$16 sps:$4 sm:$0xff]  }
 0x415   :  { %10587 = vmatpush1.bf16.msra.mxu0 %v14357_v45  ;;  %v14425_v45 = vld [vmem:[#allocation6 + $0xe84] ss:$16 sps:$4 sm:$0xff]  }
 0x416   :  { %11275 = vmatpush1.bf16.msra.mxu1 %v14360_v17  ;;  %10588 = vmatprep.subr.bf16.mxu0 %v14365_v23  ;;  %v14428_v17 = vld [vmem:[#allocation6 + $0xe8c] ss:$16 sps:$4 sm:$0xff]   ;;  %v14426_v23 = vld [vmem:[#allocation6 + $0xe88] ss:$16 sps:$4 sm:$0xff]  }
 0x417   :  { %11276 = vmatprep.subr.bf16.mxu1 %v14368_v4  ;;  %v14431_v4 = vld [vmem:[#allocation6 + $0xea4] ss:$16 sps:$4 sm:$0xff]  }
 0x419   :  { %10589 = vmatpush1.bf16.msra.mxu0 %v14363_v8  ;;  %v14434_v8 = vld [vmem:[#allocation6 + $0xeac] ss:$16 sps:$4 sm:$0xff]  }
 0x41a   :  { %11277 = vmatpush1.bf16.msra.mxu1 %v14366_v47  ;;  %10590 = vmatprep.subr.bf16.mxu0 %v14371_v28  ;;  %v14429_v47 = vld [vmem:[#allocation6 + $0xea0] ss:$16 sps:$4 sm:$0xff]   ;;  %v14432_v28 = vld [vmem:[#allocation6 + $0xea8] ss:$16 sps:$4 sm:$0xff]  }
 0x41b   :  { %11278 = vmatprep.subr.bf16.mxu1 %v14374_v19  ;;  %v14437_v19 = vld [vmem:[#allocation6 + $0xec4] ss:$16 sps:$4 sm:$0xff]  }
 0x41d   :  { %10591 = vmatpush1.bf16.msra.mxu0 %v14369_v29  ;;  %v14440_v29 = vld [vmem:[#allocation6 + $0xecc] ss:$16 sps:$4 sm:$0xff]  }
 0x41e   :  { %11279 = vmatpush1.bf16.msra.mxu1 %v14372_v48  ;;  %10592 = vmatprep.subr.bf16.mxu0 %v14377_v11  ;;  %v14435_v48 = vld [vmem:[#allocation6 + $0xec0] ss:$16 sps:$4 sm:$0xff]   ;;  %v14438_v11 = vld [vmem:[#allocation6 + $0xec8] ss:$16 sps:$4 sm:$0xff]  }
 0x41f   :  { %11280 = vmatprep.subr.bf16.mxu1 %v14380_v32  ;;  %v14443_v32 = vld [vmem:[#allocation6 + $0xee4] ss:$16 sps:$4 sm:$0xff]  }
 0x421   :  { %10593 = vmatpush1.bf16.msra.mxu0 %v14375_v51  ;;  %v14446_v51 = vld [vmem:[#allocation6 + $0xeec] ss:$16 sps:$4 sm:$0xff]  }
 0x422   :  { %11281 = vmatpush1.bf16.msra.mxu1 %v14378_v63  ;;  %10594 = vmatprep.subr.bf16.mxu0 %v14383_v50  ;;  %v14441_v63 = vld [vmem:[#allocation6 + $0xee0] ss:$16 sps:$4 sm:$0xff]   ;;  %v14444_v50 = vld [vmem:[#allocation6 + $0xee8] ss:$16 sps:$4 sm:$0xff]  }
 0x423   :  { %11282 = vmatprep.subr.bf16.mxu1 %v14386_v33  ;;  %v14449_v33 = vld [vmem:[#allocation6 + $0xf04] ss:$16 sps:$4 sm:$0xff]  }
 0x425   :  { %10595 = vmatpush1.bf16.msra.mxu0 %v14381_v27  ;;  %v14452_v27 = vld [vmem:[#allocation6 + $0xf0c] ss:$16 sps:$4 sm:$0xff]  }
 0x426   :  { %11283 = vmatpush1.bf16.msra.mxu1 %v14384_v34  ;;  %10596 = vmatprep.subr.bf16.mxu0 %v14389_v0  ;;  %v14447_v34 = vld [vmem:[#allocation6 + $0xf00] ss:$16 sps:$4 sm:$0xff]   ;;  %v14450_v0 = vld [vmem:[#allocation6 + $0xf08] ss:$16 sps:$4 sm:$0xff]  }
 0x427   :  { %11284 = vmatprep.subr.bf16.mxu1 %v14392_v35  ;;  %v14455_v35 = vld [vmem:[#allocation6 + $0xf24] ss:$16 sps:$4 sm:$0xff]  }
 0x429   :  { %10597 = vmatpush1.bf16.msra.mxu0 %v14387_v36  ;;  %v14458_v36 = vld [vmem:[#allocation6 + $0xf2c] ss:$16 sps:$4 sm:$0xff]  }
 0x42a   :  { %11285 = vmatpush1.bf16.msra.mxu1 %v14390_v16  ;;  %10598 = vmatprep.subr.bf16.mxu0 %v14395_v22  ;;  %v14453_v16 = vld [vmem:[#allocation6 + $0xf20] ss:$16 sps:$4 sm:$0xff]   ;;  %v14456_v22 = vld [vmem:[#allocation6 + $0xf28] ss:$16 sps:$4 sm:$0xff]  }
 0x42b   :  { %11286 = vmatprep.subr.bf16.mxu1 %v14398_v38  ;;  %v14461_v38 = vld [vmem:[#allocation6 + $0xf44] ss:$16 sps:$4 sm:$0xff]  }
 0x42d   :  { %10599 = vmatpush1.bf16.msra.mxu0 %v14393_v62  ;;  %v14464_v62 = vld [vmem:[#allocation6 + $0xf4c] ss:$16 sps:$4 sm:$0xff]  }
 0x42e   :  { %11287 = vmatpush1.bf16.msra.mxu1 %v14396_v40  ;;  %10611 = vmatprep.subr.bf16.mxu0 %v14401_v41  ;;  %v14459_v40 = vld [vmem:[#allocation6 + $0xf40] ss:$16 sps:$4 sm:$0xff]   ;;  %v14462_v41 = vld [vmem:[#allocation6 + $0xf48] ss:$16 sps:$4 sm:$0xff]  }
 0x42f   :  { %11299 = vmatprep.subr.bf16.mxu1 %v14404_v56  ;;  %v14467_v56 = vld [vmem:[#allocation6 + $0xf64] ss:$16 sps:$4 sm:$0xff]  }
 0x430   :  { %10601 = vmatmul.mubr.bf16.vlgmr.msra.gmra.mrb[32].mxu0 %v15802_v9 }
 0x431   :  { %11289 = vmatmul.mubr.bf16.vlgmr.msra.gmra.mrb[32].mxu1 %v15802_v9  ;;  %10612 = vmatpush1.bf16.msra.mxu0 %v14399_v20  ;;  %v14422_v9 = vld [vmem:[#allocation6 + $0xe6c] ss:$16 sps:$4 sm:$0xff]  }
 0x432   :  { %10643 = vmatprep.mubr.bf16.mxu0 %v15808_v55  ;;  %11300 = vmatpush1.bf16.msra.mxu1 %v14402_v7  ;;  %v14470_v20 = vld [vmem:[#allocation6 + $0xf6c] ss:$16 sps:$4 sm:$0xff]   ;;  %v14465_v7 = vld [vmem:[#allocation6 + $0xf60] ss:$16 sps:$4 sm:$0xff]  }
 0x433   :  { %11331 = vmatprep.mubr.bf16.mxu1 %v15808_v55  ;;  %10613 = vmatprep.subr.bf16.mxu0 %v14407_v42  ;;  %v14423_v55 = vld [vmem:[#allocation6 + $0xe80] ss:$16 sps:$4 sm:$0xff]   ;;  %v14468_v42 = vld [vmem:[#allocation6 + $0xf68] ss:$16 sps:$4 sm:$0xff]  }
 0x434   :  { %11301 = vmatprep.subr.bf16.mxu1 %v14410_v43  ;;  %v14473_v43 = vld [vmem:[#allocation6 + $0xf84] ss:$16 sps:$4 sm:$0xff]  }
 0x435   :  { %10614 = vmatpush1.bf16.msra.mxu0 %v14405_v53  ;;  %v14476_v53 = vld [vmem:[#allocation6 + $0xf8c] ss:$16 sps:$4 sm:$0xff]  }
 0x436   :  { %11302 = vmatpush1.bf16.msra.mxu1 %v14408_v44  ;;  %10615 = vmatprep.subr.bf16.mxu0 %v14413_v49  ;;  %v14471_v44 = vld [vmem:[#allocation6 + $0xf80] ss:$16 sps:$4 sm:$0xff]   ;;  %v14474_v49 = vld [vmem:[#allocation6 + $0xf88] ss:$16 sps:$4 sm:$0xff]  }
 0x437   :  { %11303 = vmatprep.subr.bf16.mxu1 %v14416_v6  ;;  %v14479_v6 = vld [vmem:[#allocation6 + $0xfa4] ss:$16 sps:$4 sm:$0xff]  }
 0x439   :  { %10616 = vmatpush1.bf16.msra.mxu0 %v14411_v46  ;;  %v14482_v46 = vld [vmem:[#allocation6 + $0xfac] ss:$16 sps:$4 sm:$0xff]  }
 0x43a   :  { %11304 = vmatpush1.bf16.msra.mxu1 %v14414_v31  ;;  %10617 = vmatprep.subr.bf16.mxu0 %v14419_v3  ;;  %v14477_v31 = vld [vmem:[#allocation6 + $0xfa0] ss:$16 sps:$4 sm:$0xff]   ;;  %v14480_v3 = vld [vmem:[#allocation6 + $0xfa8] ss:$16 sps:$4 sm:$0xff]  }
 0x43b   :  { %11305 = vmatprep.subr.bf16.mxu1 %v14422_v9  ;;  %v14485_v9 = vld [vmem:[#allocation6 + $0xfc4] ss:$16 sps:$4 sm:$0xff]  }
 0x43d   :  { %10618 = vmatpush1.bf16.msra.mxu0 %v14417_v12  ;;  %v14488_v12 = vld [vmem:[#allocation6 + $0xfcc] ss:$16 sps:$4 sm:$0xff]  }
 0x43e   :  { %11306 = vmatpush1.bf16.msra.mxu1 %v14420_v13  ;;  %10619 = vmatprep.subr.bf16.mxu0 %v14425_v45  ;;  %v14483_v13 = vld [vmem:[#allocation6 + $0xfc0] ss:$16 sps:$4 sm:$0xff]   ;;  %v14486_v45 = vld [vmem:[#allocation6 + $0xfc8] ss:$16 sps:$4 sm:$0xff]  }
 0x43f   :  { %11307 = vmatprep.subr.bf16.mxu1 %v14428_v17  ;;  %v14491_v17 = vld [vmem:[#allocation6 + $0xfe4] ss:$16 sps:$4 sm:$0xff]  }
 0x441   :  { %10620 = vmatpush1.bf16.msra.mxu0 %v14423_v55  ;;  %v14494_v55 = vld [vmem:[#allocation6 + $0xfec] ss:$16 sps:$4 sm:$0xff]  }
 0x442   :  { %11308 = vmatpush1.bf16.msra.mxu1 %v14426_v23  ;;  %10621 = vmatprep.subr.bf16.mxu0 %v14431_v4  ;;  %v14489_v23 = vld [vmem:[#allocation6 + $0xfe0] ss:$16 sps:$4 sm:$0xff]   ;;  %v14492_v4 = vld [vmem:[#allocation6 + $0xfe8] ss:$16 sps:$4 sm:$0xff]  }
 0x443   :  { %11309 = vmatprep.subr.bf16.mxu1 %v14434_v8  ;;  %v14497_v8 = vld [vmem:[#allocation6 + $0x1004] ss:$16 sps:$4 sm:$0xff]  }
 0x445   :  { %10622 = vmatpush1.bf16.msra.mxu0 %v14429_v47  ;;  %v14500_v47 = vld [vmem:[#allocation6 + $0x100c] ss:$16 sps:$4 sm:$0xff]  }
 0x446   :  { %11310 = vmatpush1.bf16.msra.mxu1 %v14432_v28  ;;  %10623 = vmatprep.subr.bf16.mxu0 %v14437_v19  ;;  %v14495_v28 = vld [vmem:[#allocation6 + $0x1000] ss:$16 sps:$4 sm:$0xff]   ;;  %v14498_v19 = vld [vmem:[#allocation6 + $0x1008] ss:$16 sps:$4 sm:$0xff]  }
 0x447   :  { %11311 = vmatprep.subr.bf16.mxu1 %v14440_v29  ;;  %v14503_v29 = vld [vmem:[#allocation6 + $0x1024] ss:$16 sps:$4 sm:$0xff]  }
 0x449   :  { %10624 = vmatpush1.bf16.msra.mxu0 %v14435_v48  ;;  %v14506_v48 = vld [vmem:[#allocation6 + $0x102c] ss:$16 sps:$4 sm:$0xff]  }
 0x44a   :  { %11312 = vmatpush1.bf16.msra.mxu1 %v14438_v11  ;;  %10625 = vmatprep.subr.bf16.mxu0 %v14443_v32  ;;  %v14501_v11 = vld [vmem:[#allocation6 + $0x1020] ss:$16 sps:$4 sm:$0xff]   ;;  %v14504_v32 = vld [vmem:[#allocation6 + $0x1028] ss:$16 sps:$4 sm:$0xff]  }
 0x44b   :  { %11313 = vmatprep.subr.bf16.mxu1 %v14446_v51  ;;  %v14509_v51 = vld [vmem:[#allocation6 + $0x1044] ss:$16 sps:$4 sm:$0xff]  }
 0x44d   :  { %10626 = vmatpush1.bf16.msra.mxu0 %v14441_v63  ;;  %v14512_v63 = vld [vmem:[#allocation6 + $0x104c] ss:$16 sps:$4 sm:$0xff]  }
 0x44e   :  { %11314 = vmatpush1.bf16.msra.mxu1 %v14444_v50  ;;  %10627 = vmatprep.subr.bf16.mxu0 %v14449_v33  ;;  %v14507_v50 = vld [vmem:[#allocation6 + $0x1040] ss:$16 sps:$4 sm:$0xff]   ;;  %v14510_v33 = vld [vmem:[#allocation6 + $0x1048] ss:$16 sps:$4 sm:$0xff]  }
 0x44f   :  { %11315 = vmatprep.subr.bf16.mxu1 %v14452_v27  ;;  %v14515_v27 = vld [vmem:[#allocation6 + $0x1064] ss:$16 sps:$4 sm:$0xff]  }
 0x451   :  { %10628 = vmatpush1.bf16.msra.mxu0 %v14447_v34  ;;  %v14513_v34 = vld [vmem:[#allocation6 + $0x1060] ss:$16 sps:$4 sm:$0xff]  }
 0x452   :  { %11316 = vmatpush1.bf16.msra.mxu1 %v14450_v0  ;;  %10629 = vmatprep.subr.bf16.mxu0 %v14455_v35  ;;  %v14516_v0 = vld [vmem:[#allocation6 + $0x1068] ss:$16 sps:$4 sm:$0xff]   ;;  %v14521_v35 = vld [vmem:[#allocation6 + $0x1084] ss:$16 sps:$4 sm:$0xff]  }
 0x453   :  { %11317 = vmatprep.subr.bf16.mxu1 %v14458_v36  ;;  %v14524_v36 = vld [vmem:[#allocation6 + $0x108c] ss:$16 sps:$4 sm:$0xff]  }
 0x455   :  { %10630 = vmatpush1.bf16.msra.mxu0 %v14453_v16  ;;  %v14522_v16 = vld [vmem:[#allocation6 + $0x1088] ss:$16 sps:$4 sm:$0xff]  }
 0x456   :  { %11318 = vmatpush1.bf16.msra.mxu1 %v14456_v22  ;;  %10631 = vmatprep.subr.bf16.mxu0 %v14461_v38  ;;  %v14527_v22 = vld [vmem:[#allocation6 + $0x10a4] ss:$16 sps:$4 sm:$0xff]   ;;  %v14530_v38 = vld [vmem:[#allocation6 + $0x10ac] ss:$16 sps:$4 sm:$0xff]  }
 0x457   :  { %11319 = vmatprep.subr.bf16.mxu1 %v14464_v62  ;;  %v14525_v62 = vld [vmem:[#allocation6 + $0x10a0] ss:$16 sps:$4 sm:$0xff]  }
 0x459   :  { %10632 = vmatpush1.bf16.msra.mxu0 %v14459_v40  ;;  %v14528_v40 = vld [vmem:[#allocation6 + $0x10a8] ss:$16 sps:$4 sm:$0xff]  }
 0x45a   :  { %11320 = vmatpush1.bf16.msra.mxu1 %v14462_v41  ;;  %10633 = vmatprep.subr.bf16.mxu0 %v14467_v56  ;;  %v14533_v41 = vld [vmem:[#allocation6 + $0x10c4] ss:$16 sps:$4 sm:$0xff]   ;;  %v14536_v56 = vld [vmem:[#allocation6 + $0x10cc] ss:$16 sps:$4 sm:$0xff]  }
 0x45b   :  { %11321 = vmatprep.subr.bf16.mxu1 %v14470_v20  ;;  %v14531_v20 = vld [vmem:[#allocation6 + $0x10c0] ss:$16 sps:$4 sm:$0xff]  }
 0x45d   :  { %10634 = vmatpush1.bf16.msra.mxu0 %v14465_v7  ;;  %v14534_v7 = vld [vmem:[#allocation6 + $0x10c8] ss:$16 sps:$4 sm:$0xff]  }
 0x45e   :  { %11322 = vmatpush1.bf16.msra.mxu1 %v14468_v42  ;;  %10635 = vmatprep.subr.bf16.mxu0 %v14473_v43  ;;  %v14539_v42 = vld [vmem:[#allocation6 + $0x10e4] ss:$16 sps:$4 sm:$0xff]   ;;  %v14542_v43 = vld [vmem:[#allocation6 + $0x10ec] ss:$16 sps:$4 sm:$0xff]  }
 0x45f   :  { %11323 = vmatprep.subr.bf16.mxu1 %v14476_v53  ;;  %v14537_v53 = vld [vmem:[#allocation6 + $0x10e0] ss:$16 sps:$4 sm:$0xff]  }
 0x461   :  { %10636 = vmatpush1.bf16.msra.mxu0 %v14471_v44  ;;  %v14540_v44 = vld [vmem:[#allocation6 + $0x10e8] ss:$16 sps:$4 sm:$0xff]  }
 0x462   :  { %11324 = vmatpush1.bf16.msra.mxu1 %v14474_v49  ;;  %10637 = vmatprep.subr.bf16.mxu0 %v14479_v6  ;;  %v14545_v49 = vld [vmem:[#allocation6 + $0x1104] ss:$16 sps:$4 sm:$0xff]   ;;  %v14548_v6 = vld [vmem:[#allocation6 + $0x110c] ss:$16 sps:$4 sm:$0xff]  }
 0x463   :  { %11325 = vmatprep.subr.bf16.mxu1 %v14482_v46  ;;  %v14543_v46 = vld [vmem:[#allocation6 + $0x1100] ss:$16 sps:$4 sm:$0xff]  }
 0x465   :  { %10638 = vmatpush1.bf16.msra.mxu0 %v14477_v31  ;;  %v14546_v31 = vld [vmem:[#allocation6 + $0x1108] ss:$16 sps:$4 sm:$0xff]  }
 0x466   :  { %11326 = vmatpush1.bf16.msra.mxu1 %v14480_v3  ;;  %10639 = vmatprep.subr.bf16.mxu0 %v14485_v9  ;;  %v14551_v3 = vld [vmem:[#allocation6 + $0x1124] ss:$16 sps:$4 sm:$0xff]   ;;  %v14554_v9 = vld [vmem:[#allocation6 + $0x112c] ss:$16 sps:$4 sm:$0xff]  }
 0x467   :  { %11327 = vmatprep.subr.bf16.mxu1 %v14488_v12  ;;  %v14549_v12 = vld [vmem:[#allocation6 + $0x1120] ss:$16 sps:$4 sm:$0xff]  }
 0x469   :  { %10640 = vmatpush1.bf16.msra.mxu0 %v14483_v13  ;;  %v14552_v13 = vld [vmem:[#allocation6 + $0x1128] ss:$16 sps:$4 sm:$0xff]  }
 0x46a   :  { %11328 = vmatpush1.bf16.msra.mxu1 %v14486_v45  ;;  %10641 = vmatprep.subr.bf16.mxu0 %v14491_v17  ;;  %v14557_v45 = vld [vmem:[#allocation6 + $0x1144] ss:$16 sps:$4 sm:$0xff]   ;;  %v14560_v17 = vld [vmem:[#allocation6 + $0x114c] ss:$16 sps:$4 sm:$0xff]  }
 0x46b   :  { %11329 = vmatprep.subr.bf16.mxu1 %v14494_v55  ;;  %v14555_v55 = vld [vmem:[#allocation6 + $0x1140] ss:$16 sps:$4 sm:$0xff]  }
 0x46d   :  { %10642 = vmatpush1.bf16.msra.mxu0 %v14489_v23  ;;  %v14558_v23 = vld [vmem:[#allocation6 + $0x1148] ss:$16 sps:$4 sm:$0xff]  }
 0x46e   :  { %11330 = vmatpush1.bf16.msra.mxu1 %v14492_v4  ;;  %10654 = vmatprep.subr.bf16.mxu0 %v14497_v8  ;;  %v14563_v4 = vld [vmem:[#allocation6 + $0x1164] ss:$16 sps:$4 sm:$0xff]   ;;  %v14566_v8 = vld [vmem:[#allocation6 + $0x116c] ss:$16 sps:$4 sm:$0xff]  }
 0x46f   :  { %11342 = vmatprep.subr.bf16.mxu1 %v14500_v47  ;;  %v14561_v47 = vld [vmem:[#allocation6 + $0x1160] ss:$16 sps:$4 sm:$0xff]  }
 0x470   :  { %10644 = vmatmul.mubr.bf16.vlgmr.msra.gmra.mrb[32].mxu0 %v15804_v14 }
 0x471   :  { %11332 = vmatmul.mubr.bf16.vlgmr.msra.gmra.mrb[32].mxu1 %v15804_v14  ;;  %10655 = vmatpush1.bf16.msra.mxu0 %v14495_v28  ;;  %v14518_v14 = vld [vmem:[#allocation6 + $0x106c] ss:$16 sps:$4 sm:$0xff]   ;;  %v14564_v28 = vld [vmem:[#allocation6 + $0x1168] ss:$16 sps:$4 sm:$0xff]  }
 0x472   :  { %10686 = vmatprep.mubr.bf16.mxu0 %v15828_v5  ;;  %11343 = vmatpush1.bf16.msra.mxu1 %v14498_v19  ;;  %v14569_v19 = vld [vmem:[#allocation6 + $0x1184] ss:$16 sps:$4 sm:$0xff]  }
 0x473   :  { %11374 = vmatprep.mubr.bf16.mxu1 %v15828_v5  ;;  %10656 = vmatprep.subr.bf16.mxu0 %v14503_v29  ;;  %v14519_v5 = vld [vmem:[#allocation6 + $0x1080] ss:$16 sps:$4 sm:$0xff]   ;;  %v14572_v29 = vld [vmem:[#allocation6 + $0x118c] ss:$16 sps:$4 sm:$0xff]  }
 0x474   :  { %11344 = vmatprep.subr.bf16.mxu1 %v14506_v48  ;;  %v14567_v48 = vld [vmem:[#allocation6 + $0x1180] ss:$16 sps:$4 sm:$0xff]  }
 0x475   :  { %10657 = vmatpush1.bf16.msra.mxu0 %v14501_v11  ;;  %v14570_v11 = vld [vmem:[#allocation6 + $0x1188] ss:$16 sps:$4 sm:$0xff]  }
 0x476   :  { %11345 = vmatpush1.bf16.msra.mxu1 %v14504_v32  ;;  %10658 = vmatprep.subr.bf16.mxu0 %v14509_v51  ;;  %v14575_v32 = vld [vmem:[#allocation6 + $0x11a4] ss:$16 sps:$4 sm:$0xff]   ;;  %v14578_v51 = vld [vmem:[#allocation6 + $0x11ac] ss:$16 sps:$4 sm:$0xff]  }
 0x477   :  { %11346 = vmatprep.subr.bf16.mxu1 %v14512_v63  ;;  %v14573_v63 = vld [vmem:[#allocation6 + $0x11a0] ss:$16 sps:$4 sm:$0xff]  }
 0x479   :  { %10659 = vmatpush1.bf16.msra.mxu0 %v14507_v50  ;;  %v14576_v50 = vld [vmem:[#allocation6 + $0x11a8] ss:$16 sps:$4 sm:$0xff]  }
 0x47a   :  { %11347 = vmatpush1.bf16.msra.mxu1 %v14510_v33  ;;  %10660 = vmatprep.subr.bf16.mxu0 %v14515_v27  ;;  %v14581_v33 = vld [vmem:[#allocation6 + $0x11c4] ss:$16 sps:$4 sm:$0xff]   ;;  %v14584_v27 = vld [vmem:[#allocation6 + $0x11cc] ss:$16 sps:$4 sm:$0xff]  }
 0x47b   :  { %11348 = vmatprep.subr.bf16.mxu1 %v14518_v14  ;;  %v14579_v14 = vld [vmem:[#allocation6 + $0x11c0] ss:$16 sps:$4 sm:$0xff]  }
 0x47d   :  { %10661 = vmatpush1.bf16.msra.mxu0 %v14513_v34  ;;  %v14582_v34 = vld [vmem:[#allocation6 + $0x11c8] ss:$16 sps:$4 sm:$0xff]  }
 0x47e   :  { %11349 = vmatpush1.bf16.msra.mxu1 %v14516_v0  ;;  %10662 = vmatprep.subr.bf16.mxu0 %v14521_v35  ;;  %v14587_v0 = vld [vmem:[#allocation6 + $0x11e4] ss:$16 sps:$4 sm:$0xff]   ;;  %v14590_v35 = vld [vmem:[#allocation6 + $0x11ec] ss:$16 sps:$4 sm:$0xff]  }
 0x47f   :  { %11350 = vmatprep.subr.bf16.mxu1 %v14524_v36  ;;  %v14585_v36 = vld [vmem:[#allocation6 + $0x11e0] ss:$16 sps:$4 sm:$0xff]  }
 0x481   :  { %10663 = vmatpush1.bf16.msra.mxu0 %v14519_v5  ;;  %v14588_v5 = vld [vmem:[#allocation6 + $0x11e8] ss:$16 sps:$4 sm:$0xff]  }
 0x482   :  { %11351 = vmatpush1.bf16.msra.mxu1 %v14522_v16  ;;  %10664 = vmatprep.subr.bf16.mxu0 %v14527_v22  ;;  %v14593_v16 = vld [vmem:[#allocation6 + $0x1204] ss:$16 sps:$4 sm:$0xff]   ;;  %v14596_v22 = vld [vmem:[#allocation6 + $0x120c] ss:$16 sps:$4 sm:$0xff]  }
 0x483   :  { %11352 = vmatprep.subr.bf16.mxu1 %v14530_v38  ;;  %v14591_v38 = vld [vmem:[#allocation6 + $0x1200] ss:$16 sps:$4 sm:$0xff]  }
 0x485   :  { %10665 = vmatpush1.bf16.msra.mxu0 %v14525_v62  ;;  %v14594_v62 = vld [vmem:[#allocation6 + $0x1208] ss:$16 sps:$4 sm:$0xff]  }
 0x486   :  { %11353 = vmatpush1.bf16.msra.mxu1 %v14528_v40  ;;  %10666 = vmatprep.subr.bf16.mxu0 %v14533_v41  ;;  %v14599_v40 = vld [vmem:[#allocation6 + $0x1224] ss:$16 sps:$4 sm:$0xff]   ;;  %v14602_v41 = vld [vmem:[#allocation6 + $0x122c] ss:$16 sps:$4 sm:$0xff]  }
 0x487   :  { %11354 = vmatprep.subr.bf16.mxu1 %v14536_v56  ;;  %v14597_v56 = vld [vmem:[#allocation6 + $0x1220] ss:$16 sps:$4 sm:$0xff]  }
 0x489   :  { %10667 = vmatpush1.bf16.msra.mxu0 %v14531_v20  ;;  %v14600_v20 = vld [vmem:[#allocation6 + $0x1228] ss:$16 sps:$4 sm:$0xff]  }
 0x48a   :  { %11355 = vmatpush1.bf16.msra.mxu1 %v14534_v7  ;;  %10668 = vmatprep.subr.bf16.mxu0 %v14539_v42  ;;  %v14605_v7 = vld [vmem:[#allocation6 + $0x1244] ss:$16 sps:$4 sm:$0xff]   ;;  %v14608_v42 = vld [vmem:[#allocation6 + $0x124c] ss:$16 sps:$4 sm:$0xff]  }
 0x48b   :  { %11356 = vmatprep.subr.bf16.mxu1 %v14542_v43  ;;  %v14603_v43 = vld [vmem:[#allocation6 + $0x1240] ss:$16 sps:$4 sm:$0xff]  }
 0x48d   :  { %10669 = vmatpush1.bf16.msra.mxu0 %v14537_v53  ;;  %v14606_v53 = vld [vmem:[#allocation6 + $0x1248] ss:$16 sps:$4 sm:$0xff]  }
 0x48e   :  { %11357 = vmatpush1.bf16.msra.mxu1 %v14540_v44  ;;  %10670 = vmatprep.subr.bf16.mxu0 %v14545_v49  ;;  %v14611_v44 = vld [vmem:[#allocation6 + $0x1264] ss:$16 sps:$4 sm:$0xff]   ;;  %v14609_v49 = vld [vmem:[#allocation6 + $0x1260] ss:$16 sps:$4 sm:$0xff]  }
 0x48f   :  { %11358 = vmatprep.subr.bf16.mxu1 %v14548_v6  ;;  %v14612_v6 = vld [vmem:[#allocation6 + $0x1268] ss:$16 sps:$4 sm:$0xff]  }
 0x491   :  { %10671 = vmatpush1.bf16.msra.mxu0 %v14543_v46  ;;  %v14617_v46 = vld [vmem:[#allocation6 + $0x1284] ss:$16 sps:$4 sm:$0xff]  }
 0x492   :  { %11359 = vmatpush1.bf16.msra.mxu1 %v14546_v31  ;;  %10672 = vmatprep.subr.bf16.mxu0 %v14551_v3  ;;  %v14620_v31 = vld [vmem:[#allocation6 + $0x128c] ss:$16 sps:$4 sm:$0xff]   ;;  %v14618_v3 = vld [vmem:[#allocation6 + $0x1288] ss:$16 sps:$4 sm:$0xff]  }
 0x493   :  { %11360 = vmatprep.subr.bf16.mxu1 %v14554_v9  ;;  %v14623_v9 = vld [vmem:[#allocation6 + $0x12a4] ss:$16 sps:$4 sm:$0xff]  }
 0x495   :  { %10673 = vmatpush1.bf16.msra.mxu0 %v14549_v12  ;;  %v14626_v12 = vld [vmem:[#allocation6 + $0x12ac] ss:$16 sps:$4 sm:$0xff]  }
 0x496   :  { %11361 = vmatpush1.bf16.msra.mxu1 %v14552_v13  ;;  %10674 = vmatprep.subr.bf16.mxu0 %v14557_v45  ;;  %v14621_v13 = vld [vmem:[#allocation6 + $0x12a0] ss:$16 sps:$4 sm:$0xff]   ;;  %v14624_v45 = vld [vmem:[#allocation6 + $0x12a8] ss:$16 sps:$4 sm:$0xff]  }
 0x497   :  { %11362 = vmatprep.subr.bf16.mxu1 %v14560_v17  ;;  %v14629_v17 = vld [vmem:[#allocation6 + $0x12c4] ss:$16 sps:$4 sm:$0xff]  }
 0x499   :  { %10675 = vmatpush1.bf16.msra.mxu0 %v14555_v55  ;;  %v14632_v55 = vld [vmem:[#allocation6 + $0x12cc] ss:$16 sps:$4 sm:$0xff]  }
 0x49a   :  { %11363 = vmatpush1.bf16.msra.mxu1 %v14558_v23  ;;  %10676 = vmatprep.subr.bf16.mxu0 %v14563_v4  ;;  %v14627_v23 = vld [vmem:[#allocation6 + $0x12c0] ss:$16 sps:$4 sm:$0xff]   ;;  %v14630_v4 = vld [vmem:[#allocation6 + $0x12c8] ss:$16 sps:$4 sm:$0xff]  }
 0x49b   :  { %11364 = vmatprep.subr.bf16.mxu1 %v14566_v8  ;;  %v14635_v8 = vld [vmem:[#allocation6 + $0x12e4] ss:$16 sps:$4 sm:$0xff]  }
 0x49d   :  { %10677 = vmatpush1.bf16.msra.mxu0 %v14561_v47  ;;  %v14638_v47 = vld [vmem:[#allocation6 + $0x12ec] ss:$16 sps:$4 sm:$0xff]  }
 0x49e   :  { %11365 = vmatpush1.bf16.msra.mxu1 %v14564_v28  ;;  %10678 = vmatprep.subr.bf16.mxu0 %v14569_v19  ;;  %v14633_v28 = vld [vmem:[#allocation6 + $0x12e0] ss:$16 sps:$4 sm:$0xff]   ;;  %v14636_v19 = vld [vmem:[#allocation6 + $0x12e8] ss:$16 sps:$4 sm:$0xff]  }
 0x49f   :  { %11366 = vmatprep.subr.bf16.mxu1 %v14572_v29  ;;  %v14641_v29 = vld [vmem:[#allocation6 + $0x1304] ss:$16 sps:$4 sm:$0xff]  }
 0x4a1   :  { %10679 = vmatpush1.bf16.msra.mxu0 %v14567_v48  ;;  %v14644_v48 = vld [vmem:[#allocation6 + $0x130c] ss:$16 sps:$4 sm:$0xff]  }
 0x4a2   :  { %11367 = vmatpush1.bf16.msra.mxu1 %v14570_v11  ;;  %10680 = vmatprep.subr.bf16.mxu0 %v14575_v32  ;;  %v14639_v11 = vld [vmem:[#allocation6 + $0x1300] ss:$16 sps:$4 sm:$0xff]   ;;  %v14642_v32 = vld [vmem:[#allocation6 + $0x1308] ss:$16 sps:$4 sm:$0xff]  }
 0x4a3   :  { %11368 = vmatprep.subr.bf16.mxu1 %v14578_v51  ;;  %v14647_v51 = vld [vmem:[#allocation6 + $0x1324] ss:$16 sps:$4 sm:$0xff]  }
 0x4a5   :  { %10681 = vmatpush1.bf16.msra.mxu0 %v14573_v63  ;;  %v14650_v63 = vld [vmem:[#allocation6 + $0x132c] ss:$16 sps:$4 sm:$0xff]  }
 0x4a6   :  { %11369 = vmatpush1.bf16.msra.mxu1 %v14576_v50  ;;  %10682 = vmatprep.subr.bf16.mxu0 %v14581_v33  ;;  %v14645_v50 = vld [vmem:[#allocation6 + $0x1320] ss:$16 sps:$4 sm:$0xff]   ;;  %v14648_v33 = vld [vmem:[#allocation6 + $0x1328] ss:$16 sps:$4 sm:$0xff]  }
 0x4a7   :  { %11370 = vmatprep.subr.bf16.mxu1 %v14584_v27  ;;  %v14653_v27 = vld [vmem:[#allocation6 + $0x1344] ss:$16 sps:$4 sm:$0xff]  }
 0x4a9   :  { %10683 = vmatpush1.bf16.msra.mxu0 %v14579_v14  ;;  %v14656_v14 = vld [vmem:[#allocation6 + $0x134c] ss:$16 sps:$4 sm:$0xff]  }
 0x4aa   :  { %11371 = vmatpush1.bf16.msra.mxu1 %v14582_v34  ;;  %10684 = vmatprep.subr.bf16.mxu0 %v14587_v0  ;;  %v14651_v34 = vld [vmem:[#allocation6 + $0x1340] ss:$16 sps:$4 sm:$0xff]   ;;  %v14654_v0 = vld [vmem:[#allocation6 + $0x1348] ss:$16 sps:$4 sm:$0xff]  }
 0x4ab   :  { %11372 = vmatprep.subr.bf16.mxu1 %v14590_v35  ;;  %v14659_v35 = vld [vmem:[#allocation6 + $0x1364] ss:$16 sps:$4 sm:$0xff]  }
 0x4ad   :  { %10685 = vmatpush1.bf16.msra.mxu0 %v14585_v36  ;;  %v14662_v36 = vld [vmem:[#allocation6 + $0x136c] ss:$16 sps:$4 sm:$0xff]  }
 0x4ae   :  { %11373 = vmatpush1.bf16.msra.mxu1 %v14588_v5  ;;  %10697 = vmatprep.subr.bf16.mxu0 %v14593_v16  ;;  %v14657_v5 = vld [vmem:[#allocation6 + $0x1360] ss:$16 sps:$4 sm:$0xff]   ;;  %v14660_v16 = vld [vmem:[#allocation6 + $0x1368] ss:$16 sps:$4 sm:$0xff]  }
 0x4af   :  { %11385 = vmatprep.subr.bf16.mxu1 %v14596_v22  ;;  %v14665_v22 = vld [vmem:[#allocation6 + $0x1384] ss:$16 sps:$4 sm:$0xff]  }
 0x4b0   :  { %10687 = vmatmul.mubr.bf16.vlgmr.msra.gmra.mrb[32].mxu0 %v15824_v15 }
 0x4b1   :  { %11375 = vmatmul.mubr.bf16.vlgmr.msra.gmra.mrb[32].mxu1 %v15824_v15  ;;  %10698 = vmatpush1.bf16.msra.mxu0 %v14591_v38  ;;  %v14614_v15 = vld [vmem:[#allocation6 + $0x126c] ss:$16 sps:$4 sm:$0xff]  }
 0x4b2   :  { %10729 = vmatprep.mubr.bf16.mxu0 %v15830_v30  ;;  %11386 = vmatpush1.bf16.msra.mxu1 %v14594_v62  ;;  %v14668_v38 = vld [vmem:[#allocation6 + $0x138c] ss:$16 sps:$4 sm:$0xff]   ;;  %v14663_v62 = vld [vmem:[#allocation6 + $0x1380] ss:$16 sps:$4 sm:$0xff]  }
 0x4b3   :  { %11417 = vmatprep.mubr.bf16.mxu1 %v15830_v30  ;;  %10699 = vmatprep.subr.bf16.mxu0 %v14599_v40  ;;  %v14615_v30 = vld [vmem:[#allocation6 + $0x1280] ss:$16 sps:$4 sm:$0xff]   ;;  %v14666_v40 = vld [vmem:[#allocation6 + $0x1388] ss:$16 sps:$4 sm:$0xff]  }
 0x4b4   :  { %11387 = vmatprep.subr.bf16.mxu1 %v14602_v41  ;;  %v14671_v41 = vld [vmem:[#allocation6 + $0x13a4] ss:$16 sps:$4 sm:$0xff]  }
 0x4b5   :  { %10700 = vmatpush1.bf16.msra.mxu0 %v14597_v56  ;;  %v14674_v56 = vld [vmem:[#allocation6 + $0x13ac] ss:$16 sps:$4 sm:$0xff]  }
 0x4b6   :  { %11388 = vmatpush1.bf16.msra.mxu1 %v14600_v20  ;;  %10701 = vmatprep.subr.bf16.mxu0 %v14605_v7  ;;  %v14669_v20 = vld [vmem:[#allocation6 + $0x13a0] ss:$16 sps:$4 sm:$0xff]   ;;  %v14672_v7 = vld [vmem:[#allocation6 + $0x13a8] ss:$16 sps:$4 sm:$0xff]  }
 0x4b7   :  { %11389 = vmatprep.subr.bf16.mxu1 %v14608_v42  ;;  %v14677_v42 = vld [vmem:[#allocation6 + $0x13c4] ss:$16 sps:$4 sm:$0xff]  }
 0x4b9   :  { %10702 = vmatpush1.bf16.msra.mxu0 %v14603_v43  ;;  %v14680_v43 = vld [vmem:[#allocation6 + $0x13cc] ss:$16 sps:$4 sm:$0xff]  }
 0x4ba   :  { %11390 = vmatpush1.bf16.msra.mxu1 %v14606_v53  ;;  %10703 = vmatprep.subr.bf16.mxu0 %v14611_v44  ;;  %v14675_v53 = vld [vmem:[#allocation6 + $0x13c0] ss:$16 sps:$4 sm:$0xff]   ;;  %v14678_v44 = vld [vmem:[#allocation6 + $0x13c8] ss:$16 sps:$4 sm:$0xff]  }
 0x4bb   :  { %11391 = vmatprep.subr.bf16.mxu1 %v14614_v15  ;;  %v14683_v15 = vld [vmem:[#allocation6 + $0x13e4] ss:$16 sps:$4 sm:$0xff]  }
 0x4bd   :  { %10704 = vmatpush1.bf16.msra.mxu0 %v14609_v49  ;;  %v14686_v49 = vld [vmem:[#allocation6 + $0x13ec] ss:$16 sps:$4 sm:$0xff]  }
 0x4be   :  { %11392 = vmatpush1.bf16.msra.mxu1 %v14612_v6  ;;  %10705 = vmatprep.subr.bf16.mxu0 %v14617_v46  ;;  %v14681_v6 = vld [vmem:[#allocation6 + $0x13e0] ss:$16 sps:$4 sm:$0xff]   ;;  %v14684_v46 = vld [vmem:[#allocation6 + $0x13e8] ss:$16 sps:$4 sm:$0xff]  }
 0x4bf   :  { %11393 = vmatprep.subr.bf16.mxu1 %v14620_v31  ;;  %v14689_v31 = vld [vmem:[#allocation6 + $0x1404] ss:$16 sps:$4 sm:$0xff]  }
 0x4c1   :  { %10706 = vmatpush1.bf16.msra.mxu0 %v14615_v30  ;;  %v14692_v30 = vld [vmem:[#allocation6 + $0x140c] ss:$16 sps:$4 sm:$0xff]  }
 0x4c2   :  { %11394 = vmatpush1.bf16.msra.mxu1 %v14618_v3  ;;  %10707 = vmatprep.subr.bf16.mxu0 %v14623_v9  ;;  %v14687_v3 = vld [vmem:[#allocation6 + $0x1400] ss:$16 sps:$4 sm:$0xff]   ;;  %v14690_v9 = vld [vmem:[#allocation6 + $0x1408] ss:$16 sps:$4 sm:$0xff]  }
 0x4c3   :  { %11395 = vmatprep.subr.bf16.mxu1 %v14626_v12  ;;  %v14695_v12 = vld [vmem:[#allocation6 + $0x1424] ss:$16 sps:$4 sm:$0xff]  }
 0x4c5   :  { %10708 = vmatpush1.bf16.msra.mxu0 %v14621_v13  ;;  %v14698_v13 = vld [vmem:[#allocation6 + $0x142c] ss:$16 sps:$4 sm:$0xff]  }
 0x4c6   :  { %11396 = vmatpush1.bf16.msra.mxu1 %v14624_v45  ;;  %10709 = vmatprep.subr.bf16.mxu0 %v14629_v17  ;;  %v14693_v45 = vld [vmem:[#allocation6 + $0x1420] ss:$16 sps:$4 sm:$0xff]   ;;  %v14696_v17 = vld [vmem:[#allocation6 + $0x1428] ss:$16 sps:$4 sm:$0xff]  }
 0x4c7   :  { %11397 = vmatprep.subr.bf16.mxu1 %v14632_v55  ;;  %v14701_v55 = vld [vmem:[#allocation6 + $0x1444] ss:$16 sps:$4 sm:$0xff]  }
 0x4c9   :  { %10710 = vmatpush1.bf16.msra.mxu0 %v14627_v23  ;;  %v14704_v23 = vld [vmem:[#allocation6 + $0x144c] ss:$16 sps:$4 sm:$0xff]  }
 0x4ca   :  { %11398 = vmatpush1.bf16.msra.mxu1 %v14630_v4  ;;  %10711 = vmatprep.subr.bf16.mxu0 %v14635_v8  ;;  %v14699_v4 = vld [vmem:[#allocation6 + $0x1440] ss:$16 sps:$4 sm:$0xff]   ;;  %v14702_v8 = vld [vmem:[#allocation6 + $0x1448] ss:$16 sps:$4 sm:$0xff]  }
 0x4cb   :  { %11399 = vmatprep.subr.bf16.mxu1 %v14638_v47  ;;  %v14707_v47 = vld [vmem:[#allocation6 + $0x1464] ss:$16 sps:$4 sm:$0xff]  }
 0x4cd   :  { %10712 = vmatpush1.bf16.msra.mxu0 %v14633_v28  ;;  %v14705_v28 = vld [vmem:[#allocation6 + $0x1460] ss:$16 sps:$4 sm:$0xff]  }
 0x4ce   :  { %11400 = vmatpush1.bf16.msra.mxu1 %v14636_v19  ;;  %10713 = vmatprep.subr.bf16.mxu0 %v14641_v29  ;;  %v14708_v19 = vld [vmem:[#allocation6 + $0x1468] ss:$16 sps:$4 sm:$0xff]   ;;  %v14713_v29 = vld [vmem:[#allocation6 + $0x1484] ss:$16 sps:$4 sm:$0xff]  }
 0x4cf   :  { %11401 = vmatprep.subr.bf16.mxu1 %v14644_v48  ;;  %v14716_v48 = vld [vmem:[#allocation6 + $0x148c] ss:$16 sps:$4 sm:$0xff]  }
 0x4d1   :  { %10714 = vmatpush1.bf16.msra.mxu0 %v14639_v11  ;;  %v14714_v11 = vld [vmem:[#allocation6 + $0x1488] ss:$16 sps:$4 sm:$0xff]  }
 0x4d2   :  { %11402 = vmatpush1.bf16.msra.mxu1 %v14642_v32  ;;  %10715 = vmatprep.subr.bf16.mxu0 %v14647_v51  ;;  %v14719_v32 = vld [vmem:[#allocation6 + $0x14a4] ss:$16 sps:$4 sm:$0xff]   ;;  %v14722_v51 = vld [vmem:[#allocation6 + $0x14ac] ss:$16 sps:$4 sm:$0xff]  }
 0x4d3   :  { %11403 = vmatprep.subr.bf16.mxu1 %v14650_v63  ;;  %v14717_v63 = vld [vmem:[#allocation6 + $0x14a0] ss:$16 sps:$4 sm:$0xff]  }
 0x4d5   :  { %10716 = vmatpush1.bf16.msra.mxu0 %v14645_v50  ;;  %v14720_v50 = vld [vmem:[#allocation6 + $0x14a8] ss:$16 sps:$4 sm:$0xff]  }
 0x4d6   :  { %11404 = vmatpush1.bf16.msra.mxu1 %v14648_v33  ;;  %10717 = vmatprep.subr.bf16.mxu0 %v14653_v27  ;;  %v14725_v33 = vld [vmem:[#allocation6 + $0x14c4] ss:$16 sps:$4 sm:$0xff]   ;;  %v14728_v27 = vld [vmem:[#allocation6 + $0x14cc] ss:$16 sps:$4 sm:$0xff]  }
 0x4d7   :  { %11405 = vmatprep.subr.bf16.mxu1 %v14656_v14  ;;  %v14723_v14 = vld [vmem:[#allocation6 + $0x14c0] ss:$16 sps:$4 sm:$0xff]  }
 0x4d9   :  { %10718 = vmatpush1.bf16.msra.mxu0 %v14651_v34  ;;  %v14726_v34 = vld [vmem:[#allocation6 + $0x14c8] ss:$16 sps:$4 sm:$0xff]  }
 0x4da   :  { %11406 = vmatpush1.bf16.msra.mxu1 %v14654_v0  ;;  %10719 = vmatprep.subr.bf16.mxu0 %v14659_v35  ;;  %v14731_v0 = vld [vmem:[#allocation6 + $0x14e4] ss:$16 sps:$4 sm:$0xff]   ;;  %v14734_v35 = vld [vmem:[#allocation6 + $0x14ec] ss:$16 sps:$4 sm:$0xff]  }
 0x4db   :  { %11407 = vmatprep.subr.bf16.mxu1 %v14662_v36  ;;  %v14729_v36 = vld [vmem:[#allocation6 + $0x14e0] ss:$16 sps:$4 sm:$0xff]  }
 0x4dd   :  { %10720 = vmatpush1.bf16.msra.mxu0 %v14657_v5  ;;  %v14732_v5 = vld [vmem:[#allocation6 + $0x14e8] ss:$16 sps:$4 sm:$0xff]  }
 0x4de   :  { %11408 = vmatpush1.bf16.msra.mxu1 %v14660_v16  ;;  %10721 = vmatprep.subr.bf16.mxu0 %v14665_v22  ;;  %v14737_v16 = vld [vmem:[#allocation6 + $0x1504] ss:$16 sps:$4 sm:$0xff]   ;;  %v14740_v22 = vld [vmem:[#allocation6 + $0x150c] ss:$16 sps:$4 sm:$0xff]  }
 0x4df   :  { %11409 = vmatprep.subr.bf16.mxu1 %v14668_v38  ;;  %v14735_v38 = vld [vmem:[#allocation6 + $0x1500] ss:$16 sps:$4 sm:$0xff]  }
 0x4e1   :  { %10722 = vmatpush1.bf16.msra.mxu0 %v14663_v62  ;;  %v14738_v62 = vld [vmem:[#allocation6 + $0x1508] ss:$16 sps:$4 sm:$0xff]  }
 0x4e2   :  { %11410 = vmatpush1.bf16.msra.mxu1 %v14666_v40  ;;  %10723 = vmatprep.subr.bf16.mxu0 %v14671_v41  ;;  %v14743_v40 = vld [vmem:[#allocation6 + $0x1524] ss:$16 sps:$4 sm:$0xff]   ;;  %v14746_v41 = vld [vmem:[#allocation6 + $0x152c] ss:$16 sps:$4 sm:$0xff]  }
 0x4e3   :  { %11411 = vmatprep.subr.bf16.mxu1 %v14674_v56  ;;  %v14741_v56 = vld [vmem:[#allocation6 + $0x1520] ss:$16 sps:$4 sm:$0xff]  }
 0x4e5   :  { %10724 = vmatpush1.bf16.msra.mxu0 %v14669_v20  ;;  %v14744_v20 = vld [vmem:[#allocation6 + $0x1528] ss:$16 sps:$4 sm:$0xff]  }
 0x4e6   :  { %11412 = vmatpush1.bf16.msra.mxu1 %v14672_v7  ;;  %10725 = vmatprep.subr.bf16.mxu0 %v14677_v42  ;;  %v14749_v7 = vld [vmem:[#allocation6 + $0x1544] ss:$16 sps:$4 sm:$0xff]   ;;  %v14752_v42 = vld [vmem:[#allocation6 + $0x154c] ss:$16 sps:$4 sm:$0xff]  }
 0x4e7   :  { %11413 = vmatprep.subr.bf16.mxu1 %v14680_v43  ;;  %v14747_v43 = vld [vmem:[#allocation6 + $0x1540] ss:$16 sps:$4 sm:$0xff]  }
 0x4e9   :  { %10726 = vmatpush1.bf16.msra.mxu0 %v14675_v53  ;;  %v14750_v53 = vld [vmem:[#allocation6 + $0x1548] ss:$16 sps:$4 sm:$0xff]  }
 0x4ea   :  { %11414 = vmatpush1.bf16.msra.mxu1 %v14678_v44  ;;  %10727 = vmatprep.subr.bf16.mxu0 %v14683_v15  ;;  %v14755_v44 = vld [vmem:[#allocation6 + $0x1564] ss:$16 sps:$4 sm:$0xff]   ;;  %v14758_v15 = vld [vmem:[#allocation6 + $0x156c] ss:$16 sps:$4 sm:$0xff]  }
 0x4eb   :  { %11415 = vmatprep.subr.bf16.mxu1 %v14686_v49  ;;  %v14753_v49 = vld [vmem:[#allocation6 + $0x1560] ss:$16 sps:$4 sm:$0xff]  }
 0x4ed   :  { %10728 = vmatpush1.bf16.msra.mxu0 %v14681_v6  ;;  %v14756_v6 = vld [vmem:[#allocation6 + $0x1568] ss:$16 sps:$4 sm:$0xff]  }
 0x4ee   :  { %11416 = vmatpush1.bf16.msra.mxu1 %v14684_v46  ;;  %10740 = vmatprep.subr.bf16.mxu0 %v14689_v31  ;;  %v14761_v46 = vld [vmem:[#allocation6 + $0x1584] ss:$16 sps:$4 sm:$0xff]   ;;  %v14764_v31 = vld [vmem:[#allocation6 + $0x158c] ss:$16 sps:$4 sm:$0xff]  }
 0x4ef   :  { %11428 = vmatprep.subr.bf16.mxu1 %v14692_v30  ;;  %v14759_v30 = vld [vmem:[#allocation6 + $0x1580] ss:$16 sps:$4 sm:$0xff]  }
 0x4f0   :  { %10730 = vmatmul.mubr.bf16.vlgmr.msra.gmra.mrb[32].mxu0 %v15826_v61 }
 0x4f1   :  { %11418 = vmatmul.mubr.bf16.vlgmr.msra.gmra.mrb[32].mxu1 %v15826_v61  ;;  %10741 = vmatpush1.bf16.msra.mxu0 %v14687_v3  ;;  %v14710_v61 = vld [vmem:[#allocation6 + $0x146c] ss:$16 sps:$4 sm:$0xff]   ;;  %v14762_v3 = vld [vmem:[#allocation6 + $0x1588] ss:$16 sps:$4 sm:$0xff]  }
 0x4f2   :  { %10772 = vmatprep.mubr.bf16.mxu0 %v15848_v39  ;;  %11429 = vmatpush1.bf16.msra.mxu1 %v14690_v9  ;;  %v14767_v9 = vld [vmem:[#allocation6 + $0x15a4] ss:$16 sps:$4 sm:$0xff]  }
 0x4f3   :  { %11460 = vmatprep.mubr.bf16.mxu1 %v15848_v39  ;;  %10742 = vmatprep.subr.bf16.mxu0 %v14695_v12  ;;  %v14711_v39 = vld [vmem:[#allocation6 + $0x1480] ss:$16 sps:$4 sm:$0xff]   ;;  %v14770_v12 = vld [vmem:[#allocation6 + $0x15ac] ss:$16 sps:$4 sm:$0xff]  }
 0x4f4   :  { %11430 = vmatprep.subr.bf16.mxu1 %v14698_v13  ;;  %v14765_v13 = vld [vmem:[#allocation6 + $0x15a0] ss:$16 sps:$4 sm:$0xff]  }
 0x4f5   :  { %10743 = vmatpush1.bf16.msra.mxu0 %v14693_v45  ;;  %v14768_v45 = vld [vmem:[#allocation6 + $0x15a8] ss:$16 sps:$4 sm:$0xff]  }
 0x4f6   :  { %11431 = vmatpush1.bf16.msra.mxu1 %v14696_v17  ;;  %10744 = vmatprep.subr.bf16.mxu0 %v14701_v55  ;;  %v14773_v17 = vld [vmem:[#allocation6 + $0x15c4] ss:$16 sps:$4 sm:$0xff]   ;;  %v14776_v55 = vld [vmem:[#allocation6 + $0x15cc] ss:$16 sps:$4 sm:$0xff]  }
 0x4f7   :  { %11432 = vmatprep.subr.bf16.mxu1 %v14704_v23  ;;  %v14771_v23 = vld [vmem:[#allocation6 + $0x15c0] ss:$16 sps:$4 sm:$0xff]  }
 0x4f9   :  { %10745 = vmatpush1.bf16.msra.mxu0 %v14699_v4  ;;  %v14774_v4 = vld [vmem:[#allocation6 + $0x15c8] ss:$16 sps:$4 sm:$0xff]  }
 0x4fa   :  { %11433 = vmatpush1.bf16.msra.mxu1 %v14702_v8  ;;  %10746 = vmatprep.subr.bf16.mxu0 %v14707_v47  ;;  %v14779_v8 = vld [vmem:[#allocation6 + $0x15e4] ss:$16 sps:$4 sm:$0xff]   ;;  %v14782_v47 = vld [vmem:[#allocation6 + $0x15ec] ss:$16 sps:$4 sm:$0xff]  }
 0x4fb   :  { %11434 = vmatprep.subr.bf16.mxu1 %v14710_v61  ;;  %v14777_v61 = vld [vmem:[#allocation6 + $0x15e0] ss:$16 sps:$4 sm:$0xff]  }
 0x4fd   :  { %10747 = vmatpush1.bf16.msra.mxu0 %v14705_v28  ;;  %v14780_v28 = vld [vmem:[#allocation6 + $0x15e8] ss:$16 sps:$4 sm:$0xff]  }
 0x4fe   :  { %11435 = vmatpush1.bf16.msra.mxu1 %v14708_v19  ;;  %10748 = vmatprep.subr.bf16.mxu0 %v14713_v29  ;;  %v14785_v19 = vld [vmem:[#allocation6 + $0x1604] ss:$16 sps:$4 sm:$0xff]   ;;  %v14788_v29 = vld [vmem:[#allocation6 + $0x160c] ss:$16 sps:$4 sm:$0xff]  }
 0x4ff   :  { %11436 = vmatprep.subr.bf16.mxu1 %v14716_v48  ;;  %v14783_v48 = vld [vmem:[#allocation6 + $0x1600] ss:$16 sps:$4 sm:$0xff]  }
 0x501   :  { %10749 = vmatpush1.bf16.msra.mxu0 %v14711_v39  ;;  %v14786_v39 = vld [vmem:[#allocation6 + $0x1608] ss:$16 sps:$4 sm:$0xff]  }
 0x502   :  { %11437 = vmatpush1.bf16.msra.mxu1 %v14714_v11  ;;  %10750 = vmatprep.subr.bf16.mxu0 %v14719_v32  ;;  %v14791_v11 = vld [vmem:[#allocation6 + $0x1624] ss:$16 sps:$4 sm:$0xff]   ;;  %v14794_v32 = vld [vmem:[#allocation6 + $0x162c] ss:$16 sps:$4 sm:$0xff]  }
 0x503   :  { %11438 = vmatprep.subr.bf16.mxu1 %v14722_v51  ;;  %v14789_v51 = vld [vmem:[#allocation6 + $0x1620] ss:$16 sps:$4 sm:$0xff]  }
 0x505   :  { %10751 = vmatpush1.bf16.msra.mxu0 %v14717_v63  ;;  %v14792_v63 = vld [vmem:[#allocation6 + $0x1628] ss:$16 sps:$4 sm:$0xff]  }
 0x506   :  { %11439 = vmatpush1.bf16.msra.mxu1 %v14720_v50  ;;  %10752 = vmatprep.subr.bf16.mxu0 %v14725_v33  ;;  %v14797_v50 = vld [vmem:[#allocation6 + $0x1644] ss:$16 sps:$4 sm:$0xff]   ;;  %v14800_v33 = vld [vmem:[#allocation6 + $0x164c] ss:$16 sps:$4 sm:$0xff]  }
 0x507   :  { %11440 = vmatprep.subr.bf16.mxu1 %v14728_v27  ;;  %v14795_v27 = vld [vmem:[#allocation6 + $0x1640] ss:$16 sps:$4 sm:$0xff]  }
 0x509   :  { %10753 = vmatpush1.bf16.msra.mxu0 %v14723_v14  ;;  %v14798_v14 = vld [vmem:[#allocation6 + $0x1648] ss:$16 sps:$4 sm:$0xff]  }
 0x50a   :  { %11441 = vmatpush1.bf16.msra.mxu1 %v14726_v34  ;;  %10754 = vmatprep.subr.bf16.mxu0 %v14731_v0  ;;  %v14803_v34 = vld [vmem:[#allocation6 + $0x1664] ss:$16 sps:$4 sm:$0xff]   ;;  %v14801_v0 = vld [vmem:[#allocation6 + $0x1660] ss:$16 sps:$4 sm:$0xff]  }
 0x50b   :  { %11442 = vmatprep.subr.bf16.mxu1 %v14734_v35  ;;  %v14804_v35 = vld [vmem:[#allocation6 + $0x1668] ss:$16 sps:$4 sm:$0xff]  }
 0x50d   :  { %10755 = vmatpush1.bf16.msra.mxu0 %v14729_v36  ;;  %v14809_v36 = vld [vmem:[#allocation6 + $0x1684] ss:$16 sps:$4 sm:$0xff]  }
 0x50e   :  { %11443 = vmatpush1.bf16.msra.mxu1 %v14732_v5  ;;  %10756 = vmatprep.subr.bf16.mxu0 %v14737_v16  ;;  %v14812_v5 = vld [vmem:[#allocation6 + $0x168c] ss:$16 sps:$4 sm:$0xff]   ;;  %v14810_v16 = vld [vmem:[#allocation6 + $0x1688] ss:$16 sps:$4 sm:$0xff]  }
 0x50f   :  { %11444 = vmatprep.subr.bf16.mxu1 %v14740_v22  ;;  %v14815_v22 = vld [vmem:[#allocation6 + $0x16a4] ss:$16 sps:$4 sm:$0xff]  }
 0x511   :  { %10757 = vmatpush1.bf16.msra.mxu0 %v14735_v38  ;;  %v14818_v38 = vld [vmem:[#allocation6 + $0x16ac] ss:$16 sps:$4 sm:$0xff]  }
 0x512   :  { %11445 = vmatpush1.bf16.msra.mxu1 %v14738_v62  ;;  %10758 = vmatprep.subr.bf16.mxu0 %v14743_v40  ;;  %v14813_v62 = vld [vmem:[#allocation6 + $0x16a0] ss:$16 sps:$4 sm:$0xff]   ;;  %v14816_v40 = vld [vmem:[#allocation6 + $0x16a8] ss:$16 sps:$4 sm:$0xff]  }
 0x513   :  { %11446 = vmatprep.subr.bf16.mxu1 %v14746_v41  ;;  %v14821_v41 = vld [vmem:[#allocation6 + $0x16c4] ss:$16 sps:$4 sm:$0xff]  }
 0x515   :  { %10759 = vmatpush1.bf16.msra.mxu0 %v14741_v56  ;;  %v14824_v56 = vld [vmem:[#allocation6 + $0x16cc] ss:$16 sps:$4 sm:$0xff]  }
 0x516   :  { %11447 = vmatpush1.bf16.msra.mxu1 %v14744_v20  ;;  %10760 = vmatprep.subr.bf16.mxu0 %v14749_v7  ;;  %v14819_v20 = vld [vmem:[#allocation6 + $0x16c0] ss:$16 sps:$4 sm:$0xff]   ;;  %v14822_v7 = vld [vmem:[#allocation6 + $0x16c8] ss:$16 sps:$4 sm:$0xff]  }
 0x517   :  { %11448 = vmatprep.subr.bf16.mxu1 %v14752_v42  ;;  %v14827_v42 = vld [vmem:[#allocation6 + $0x16e4] ss:$16 sps:$4 sm:$0xff]  }
 0x519   :  { %10761 = vmatpush1.bf16.msra.mxu0 %v14747_v43  ;;  %v14830_v43 = vld [vmem:[#allocation6 + $0x16ec] ss:$16 sps:$4 sm:$0xff]  }
 0x51a   :  { %11449 = vmatpush1.bf16.msra.mxu1 %v14750_v53  ;;  %10762 = vmatprep.subr.bf16.mxu0 %v14755_v44  ;;  %v14825_v53 = vld [vmem:[#allocation6 + $0x16e0] ss:$16 sps:$4 sm:$0xff]   ;;  %v14828_v44 = vld [vmem:[#allocation6 + $0x16e8] ss:$16 sps:$4 sm:$0xff]  }
 0x51b   :  { %11450 = vmatprep.subr.bf16.mxu1 %v14758_v15  ;;  %v14833_v15 = vld [vmem:[#allocation6 + $0x1704] ss:$16 sps:$4 sm:$0xff]  }
 0x51d   :  { %10763 = vmatpush1.bf16.msra.mxu0 %v14753_v49  ;;  %v14836_v49 = vld [vmem:[#allocation6 + $0x170c] ss:$16 sps:$4 sm:$0xff]  }
 0x51e   :  { %11451 = vmatpush1.bf16.msra.mxu1 %v14756_v6  ;;  %10764 = vmatprep.subr.bf16.mxu0 %v14761_v46  ;;  %v14831_v6 = vld [vmem:[#allocation6 + $0x1700] ss:$16 sps:$4 sm:$0xff]   ;;  %v14834_v46 = vld [vmem:[#allocation6 + $0x1708] ss:$16 sps:$4 sm:$0xff]  }
 0x51f   :  { %11452 = vmatprep.subr.bf16.mxu1 %v14764_v31  ;;  %v14839_v31 = vld [vmem:[#allocation6 + $0x1724] ss:$16 sps:$4 sm:$0xff]  }
 0x521   :  { %10765 = vmatpush1.bf16.msra.mxu0 %v14759_v30  ;;  %v14842_v30 = vld [vmem:[#allocation6 + $0x172c] ss:$16 sps:$4 sm:$0xff]  }
 0x522   :  { %11453 = vmatpush1.bf16.msra.mxu1 %v14762_v3  ;;  %10766 = vmatprep.subr.bf16.mxu0 %v14767_v9  ;;  %v14837_v3 = vld [vmem:[#allocation6 + $0x1720] ss:$16 sps:$4 sm:$0xff]   ;;  %v14840_v9 = vld [vmem:[#allocation6 + $0x1728] ss:$16 sps:$4 sm:$0xff]  }
 0x523   :  { %11454 = vmatprep.subr.bf16.mxu1 %v14770_v12  ;;  %v14845_v12 = vld [vmem:[#allocation6 + $0x1744] ss:$16 sps:$4 sm:$0xff]  }
 0x525   :  { %10767 = vmatpush1.bf16.msra.mxu0 %v14765_v13  ;;  %v14848_v13 = vld [vmem:[#allocation6 + $0x174c] ss:$16 sps:$4 sm:$0xff]  }
 0x526   :  { %11455 = vmatpush1.bf16.msra.mxu1 %v14768_v45  ;;  %10768 = vmatprep.subr.bf16.mxu0 %v14773_v17  ;;  %v14843_v45 = vld [vmem:[#allocation6 + $0x1740] ss:$16 sps:$4 sm:$0xff]   ;;  %v14846_v17 = vld [vmem:[#allocation6 + $0x1748] ss:$16 sps:$4 sm:$0xff]  }
 0x527   :  { %11456 = vmatprep.subr.bf16.mxu1 %v14776_v55  ;;  %v14851_v55 = vld [vmem:[#allocation6 + $0x1764] ss:$16 sps:$4 sm:$0xff]  }
 0x529   :  { %10769 = vmatpush1.bf16.msra.mxu0 %v14771_v23  ;;  %v14854_v23 = vld [vmem:[#allocation6 + $0x176c] ss:$16 sps:$4 sm:$0xff]  }
 0x52a   :  { %11457 = vmatpush1.bf16.msra.mxu1 %v14774_v4  ;;  %10770 = vmatprep.subr.bf16.mxu0 %v14779_v8  ;;  %v14849_v4 = vld [vmem:[#allocation6 + $0x1760] ss:$16 sps:$4 sm:$0xff]   ;;  %v14852_v8 = vld [vmem:[#allocation6 + $0x1768] ss:$16 sps:$4 sm:$0xff]  }
 0x52b   :  { %11458 = vmatprep.subr.bf16.mxu1 %v14782_v47  ;;  %v14857_v47 = vld [vmem:[#allocation6 + $0x1784] ss:$16 sps:$4 sm:$0xff]  }
 0x52d   :  { %10771 = vmatpush1.bf16.msra.mxu0 %v14777_v61  ;;  %v14860_v61 = vld [vmem:[#allocation6 + $0x178c] ss:$16 sps:$4 sm:$0xff]  }
 0x52e   :  { %11459 = vmatpush1.bf16.msra.mxu1 %v14780_v28  ;;  %10783 = vmatprep.subr.bf16.mxu0 %v14785_v19  ;;  %v14855_v28 = vld [vmem:[#allocation6 + $0x1780] ss:$16 sps:$4 sm:$0xff]   ;;  %v14858_v19 = vld [vmem:[#allocation6 + $0x1788] ss:$16 sps:$4 sm:$0xff]  }
 0x52f   :  { %11471 = vmatprep.subr.bf16.mxu1 %v14788_v29  ;;  %v14863_v29 = vld [vmem:[#allocation6 + $0x17a4] ss:$16 sps:$4 sm:$0xff]  }
 0x530   :  { %10773 = vmatmul.mubr.bf16.vlgmr.msra.gmra.mrb[32].mxu0 %v15844_v26 }
 0x531   :  { %11461 = vmatmul.mubr.bf16.vlgmr.msra.gmra.mrb[32].mxu1 %v15844_v26  ;;  %10784 = vmatpush1.bf16.msra.mxu0 %v14783_v48  ;;  %v14806_v26 = vld [vmem:[#allocation6 + $0x166c] ss:$16 sps:$4 sm:$0xff]  }
 0x532   :  { %10815 = vmatprep.mubr.bf16.mxu0 %v15850_v25  ;;  %11472 = vmatpush1.bf16.msra.mxu1 %v14786_v39  ;;  %v14866_v48 = vld [vmem:[#allocation6 + $0x17ac] ss:$16 sps:$4 sm:$0xff]   ;;  %v14861_v39 = vld [vmem:[#allocation6 + $0x17a0] ss:$16 sps:$4 sm:$0xff]  }
 0x533   :  { %11503 = vmatprep.mubr.bf16.mxu1 %v15850_v25  ;;  %10785 = vmatprep.subr.bf16.mxu0 %v14791_v11  ;;  %v14807_v25 = vld [vmem:[#allocation6 + $0x1680] ss:$16 sps:$4 sm:$0xff]   ;;  %v14864_v11 = vld [vmem:[#allocation6 + $0x17a8] ss:$16 sps:$4 sm:$0xff]  }
 0x534   :  { %11473 = vmatprep.subr.bf16.mxu1 %v14794_v32  ;;  %v14869_v32 = vld [vmem:[#allocation6 + $0x17c4] ss:$16 sps:$4 sm:$0xff]  }
 0x535   :  { %10786 = vmatpush1.bf16.msra.mxu0 %v14789_v51  ;;  %v14872_v51 = vld [vmem:[#allocation6 + $0x17cc] ss:$16 sps:$4 sm:$0xff]  }
 0x536   :  { %11474 = vmatpush1.bf16.msra.mxu1 %v14792_v63  ;;  %10787 = vmatprep.subr.bf16.mxu0 %v14797_v50  ;;  %v14867_v63 = vld [vmem:[#allocation6 + $0x17c0] ss:$16 sps:$4 sm:$0xff]   ;;  %v14870_v50 = vld [vmem:[#allocation6 + $0x17c8] ss:$16 sps:$4 sm:$0xff]  }
 0x537   :  { %11475 = vmatprep.subr.bf16.mxu1 %v14800_v33  ;;  %v14875_v33 = vld [vmem:[#allocation6 + $0x17e4] ss:$16 sps:$4 sm:$0xff]  }
 0x539   :  { %10788 = vmatpush1.bf16.msra.mxu0 %v14795_v27  ;;  %v14878_v27 = vld [vmem:[#allocation6 + $0x17ec] ss:$16 sps:$4 sm:$0xff]  }
 0x53a   :  { %11476 = vmatpush1.bf16.msra.mxu1 %v14798_v14  ;;  %10789 = vmatprep.subr.bf16.mxu0 %v14803_v34  ;;  %v14873_v14 = vld [vmem:[#allocation6 + $0x17e0] ss:$16 sps:$4 sm:$0xff]   ;;  %v14876_v34 = vld [vmem:[#allocation6 + $0x17e8] ss:$16 sps:$4 sm:$0xff]  }
 0x53b   :  { %11477 = vmatprep.subr.bf16.mxu1 %v14806_v26  ;;  %v14881_v26 = vld [vmem:[#allocation6 + $0x1804] ss:$16 sps:$4 sm:$0xff]  }
 0x53d   :  { %10790 = vmatpush1.bf16.msra.mxu0 %v14801_v0  ;;  %v14884_v0 = vld [vmem:[#allocation6 + $0x180c] ss:$16 sps:$4 sm:$0xff]  }
 0x53e   :  { %11478 = vmatpush1.bf16.msra.mxu1 %v14804_v35  ;;  %10791 = vmatprep.subr.bf16.mxu0 %v14809_v36  ;;  %v14879_v35 = vld [vmem:[#allocation6 + $0x1800] ss:$16 sps:$4 sm:$0xff]   ;;  %v14882_v36 = vld [vmem:[#allocation6 + $0x1808] ss:$16 sps:$4 sm:$0xff]  }
 0x53f   :  { %11479 = vmatprep.subr.bf16.mxu1 %v14812_v5  ;;  %v14887_v5 = vld [vmem:[#allocation6 + $0x1824] ss:$16 sps:$4 sm:$0xff]  }
 0x541   :  { %10792 = vmatpush1.bf16.msra.mxu0 %v14807_v25  ;;  %v14890_v25 = vld [vmem:[#allocation6 + $0x182c] ss:$16 sps:$4 sm:$0xff]  }
 0x542   :  { %11480 = vmatpush1.bf16.msra.mxu1 %v14810_v16  ;;  %10793 = vmatprep.subr.bf16.mxu0 %v14815_v22  ;;  %v14885_v16 = vld [vmem:[#allocation6 + $0x1820] ss:$16 sps:$4 sm:$0xff]   ;;  %v14888_v22 = vld [vmem:[#allocation6 + $0x1828] ss:$16 sps:$4 sm:$0xff]  }
 0x543   :  { %11481 = vmatprep.subr.bf16.mxu1 %v14818_v38  ;;  %v14893_v38 = vld [vmem:[#allocation6 + $0x1844] ss:$16 sps:$4 sm:$0xff]  }
 0x545   :  { %10794 = vmatpush1.bf16.msra.mxu0 %v14813_v62  ;;  %v14896_v62 = vld [vmem:[#allocation6 + $0x184c] ss:$16 sps:$4 sm:$0xff]  }
 0x546   :  { %11482 = vmatpush1.bf16.msra.mxu1 %v14816_v40  ;;  %10795 = vmatprep.subr.bf16.mxu0 %v14821_v41  ;;  %v14891_v40 = vld [vmem:[#allocation6 + $0x1840] ss:$16 sps:$4 sm:$0xff]   ;;  %v14894_v41 = vld [vmem:[#allocation6 + $0x1848] ss:$16 sps:$4 sm:$0xff]  }
 0x547   :  { %11483 = vmatprep.subr.bf16.mxu1 %v14824_v56  ;;  %v14899_v56 = vld [vmem:[#allocation6 + $0x1864] ss:$16 sps:$4 sm:$0xff]  }
 0x549   :  { %10796 = vmatpush1.bf16.msra.mxu0 %v14819_v20  ;;  %v14897_v20 = vld [vmem:[#allocation6 + $0x1860] ss:$16 sps:$4 sm:$0xff]  }
 0x54a   :  { %11484 = vmatpush1.bf16.msra.mxu1 %v14822_v7  ;;  %10797 = vmatprep.subr.bf16.mxu0 %v14827_v42  ;;  %v14900_v7 = vld [vmem:[#allocation6 + $0x1868] ss:$16 sps:$4 sm:$0xff]   ;;  %v14905_v42 = vld [vmem:[#allocation6 + $0x1884] ss:$16 sps:$4 sm:$0xff]  }
 0x54b   :  { %11485 = vmatprep.subr.bf16.mxu1 %v14830_v43  ;;  %v14908_v43 = vld [vmem:[#allocation6 + $0x188c] ss:$16 sps:$4 sm:$0xff]  }
 0x54d   :  { %10798 = vmatpush1.bf16.msra.mxu0 %v14825_v53  ;;  %v14906_v53 = vld [vmem:[#allocation6 + $0x1888] ss:$16 sps:$4 sm:$0xff]  }
 0x54e   :  { %11486 = vmatpush1.bf16.msra.mxu1 %v14828_v44  ;;  %10799 = vmatprep.subr.bf16.mxu0 %v14833_v15  ;;  %v14911_v44 = vld [vmem:[#allocation6 + $0x18a4] ss:$16 sps:$4 sm:$0xff]   ;;  %v14914_v15 = vld [vmem:[#allocation6 + $0x18ac] ss:$16 sps:$4 sm:$0xff]  }
 0x54f   :  { %11487 = vmatprep.subr.bf16.mxu1 %v14836_v49  ;;  %v14909_v49 = vld [vmem:[#allocation6 + $0x18a0] ss:$16 sps:$4 sm:$0xff]  }
 0x551   :  { %10800 = vmatpush1.bf16.msra.mxu0 %v14831_v6  ;;  %v14912_v6 = vld [vmem:[#allocation6 + $0x18a8] ss:$16 sps:$4 sm:$0xff]  }
 0x552   :  { %11488 = vmatpush1.bf16.msra.mxu1 %v14834_v46  ;;  %10801 = vmatprep.subr.bf16.mxu0 %v14839_v31  ;;  %v14917_v46 = vld [vmem:[#allocation6 + $0x18c4] ss:$16 sps:$4 sm:$0xff]   ;;  %v14920_v31 = vld [vmem:[#allocation6 + $0x18cc] ss:$16 sps:$4 sm:$0xff]  }
 0x553   :  { %11489 = vmatprep.subr.bf16.mxu1 %v14842_v30  ;;  %v14915_v30 = vld [vmem:[#allocation6 + $0x18c0] ss:$16 sps:$4 sm:$0xff]  }
 0x555   :  { %10802 = vmatpush1.bf16.msra.mxu0 %v14837_v3  ;;  %v14918_v3 = vld [vmem:[#allocation6 + $0x18c8] ss:$16 sps:$4 sm:$0xff]  }
 0x556   :  { %11490 = vmatpush1.bf16.msra.mxu1 %v14840_v9  ;;  %10803 = vmatprep.subr.bf16.mxu0 %v14845_v12  ;;  %v14923_v9 = vld [vmem:[#allocation6 + $0x18e4] ss:$16 sps:$4 sm:$0xff]   ;;  %v14926_v12 = vld [vmem:[#allocation6 + $0x18ec] ss:$16 sps:$4 sm:$0xff]  }
 0x557   :  { %11491 = vmatprep.subr.bf16.mxu1 %v14848_v13  ;;  %v14921_v13 = vld [vmem:[#allocation6 + $0x18e0] ss:$16 sps:$4 sm:$0xff]  }
 0x559   :  { %10804 = vmatpush1.bf16.msra.mxu0 %v14843_v45  ;;  %v14924_v45 = vld [vmem:[#allocation6 + $0x18e8] ss:$16 sps:$4 sm:$0xff]  }
 0x55a   :  { %11492 = vmatpush1.bf16.msra.mxu1 %v14846_v17  ;;  %10805 = vmatprep.subr.bf16.mxu0 %v14851_v55  ;;  %v14929_v17 = vld [vmem:[#allocation6 + $0x1904] ss:$16 sps:$4 sm:$0xff]   ;;  %v14932_v55 = vld [vmem:[#allocation6 + $0x190c] ss:$16 sps:$4 sm:$0xff]  }
 0x55b   :  { %11493 = vmatprep.subr.bf16.mxu1 %v14854_v23  ;;  %v14927_v23 = vld [vmem:[#allocation6 + $0x1900] ss:$16 sps:$4 sm:$0xff]  }
 0x55d   :  { %10806 = vmatpush1.bf16.msra.mxu0 %v14849_v4  ;;  %v14930_v4 = vld [vmem:[#allocation6 + $0x1908] ss:$16 sps:$4 sm:$0xff]  }
 0x55e   :  { %11494 = vmatpush1.bf16.msra.mxu1 %v14852_v8  ;;  %10807 = vmatprep.subr.bf16.mxu0 %v14857_v47  ;;  %v14935_v8 = vld [vmem:[#allocation6 + $0x1924] ss:$16 sps:$4 sm:$0xff]   ;;  %v14938_v47 = vld [vmem:[#allocation6 + $0x192c] ss:$16 sps:$4 sm:$0xff]  }
 0x55f   :  { %11495 = vmatprep.subr.bf16.mxu1 %v14860_v61  ;;  %v14933_v61 = vld [vmem:[#allocation6 + $0x1920] ss:$16 sps:$4 sm:$0xff]  }
 0x561   :  { %10808 = vmatpush1.bf16.msra.mxu0 %v14855_v28  ;;  %v14936_v28 = vld [vmem:[#allocation6 + $0x1928] ss:$16 sps:$4 sm:$0xff]  }
 0x562   :  { %11496 = vmatpush1.bf16.msra.mxu1 %v14858_v19  ;;  %10809 = vmatprep.subr.bf16.mxu0 %v14863_v29  ;;  %v14941_v19 = vld [vmem:[#allocation6 + $0x1944] ss:$16 sps:$4 sm:$0xff]   ;;  %v14944_v29 = vld [vmem:[#allocation6 + $0x194c] ss:$16 sps:$4 sm:$0xff]  }
 0x563   :  { %11497 = vmatprep.subr.bf16.mxu1 %v14866_v48  ;;  %v14939_v48 = vld [vmem:[#allocation6 + $0x1940] ss:$16 sps:$4 sm:$0xff]  }
 0x565   :  { %10810 = vmatpush1.bf16.msra.mxu0 %v14861_v39  ;;  %v14942_v39 = vld [vmem:[#allocation6 + $0x1948] ss:$16 sps:$4 sm:$0xff]  }
 0x566   :  { %11498 = vmatpush1.bf16.msra.mxu1 %v14864_v11  ;;  %10811 = vmatprep.subr.bf16.mxu0 %v14869_v32  ;;  %v14947_v11 = vld [vmem:[#allocation6 + $0x1964] ss:$16 sps:$4 sm:$0xff]   ;;  %v14950_v32 = vld [vmem:[#allocation6 + $0x196c] ss:$16 sps:$4 sm:$0xff]  }
 0x567   :  { %11499 = vmatprep.subr.bf16.mxu1 %v14872_v51  ;;  %v14945_v51 = vld [vmem:[#allocation6 + $0x1960] ss:$16 sps:$4 sm:$0xff]  }
 0x569   :  { %10812 = vmatpush1.bf16.msra.mxu0 %v14867_v63  ;;  %v14948_v63 = vld [vmem:[#allocation6 + $0x1968] ss:$16 sps:$4 sm:$0xff]  }
 0x56a   :  { %11500 = vmatpush1.bf16.msra.mxu1 %v14870_v50  ;;  %10813 = vmatprep.subr.bf16.mxu0 %v14875_v33  ;;  %v14953_v50 = vld [vmem:[#allocation6 + $0x1984] ss:$16 sps:$4 sm:$0xff]   ;;  %v14956_v33 = vld [vmem:[#allocation6 + $0x198c] ss:$16 sps:$4 sm:$0xff]  }
 0x56b   :  { %11501 = vmatprep.subr.bf16.mxu1 %v14878_v27  ;;  %v14951_v27 = vld [vmem:[#allocation6 + $0x1980] ss:$16 sps:$4 sm:$0xff]  }
 0x56d   :  { %10814 = vmatpush1.bf16.msra.mxu0 %v14873_v14  ;;  %v14954_v14 = vld [vmem:[#allocation6 + $0x1988] ss:$16 sps:$4 sm:$0xff]  }
 0x56e   :  { %11502 = vmatpush1.bf16.msra.mxu1 %v14876_v34  ;;  %10826 = vmatprep.subr.bf16.mxu0 %v14881_v26  ;;  %v14959_v34 = vld [vmem:[#allocation6 + $0x19a4] ss:$16 sps:$4 sm:$0xff]   ;;  %v14962_v26 = vld [vmem:[#allocation6 + $0x19ac] ss:$16 sps:$4 sm:$0xff]  }
 0x56f   :  { %11514 = vmatprep.subr.bf16.mxu1 %v14884_v0  ;;  %v14957_v0 = vld [vmem:[#allocation6 + $0x19a0] ss:$16 sps:$4 sm:$0xff]  }
 0x570   :  { %10816 = vmatmul.mubr.bf16.vlgmr.msra.gmra.mrb[32].mxu0 %v15846_v37 }
 0x571   :  { %11504 = vmatmul.mubr.bf16.vlgmr.msra.gmra.mrb[32].mxu1 %v15846_v37  ;;  %10827 = vmatpush1.bf16.msra.mxu0 %v14879_v35  ;;  %v14902_v37 = vld [vmem:[#allocation6 + $0x186c] ss:$16 sps:$4 sm:$0xff]   ;;  %v14960_v35 = vld [vmem:[#allocation6 + $0x19a8] ss:$16 sps:$4 sm:$0xff]  }
 0x572   :  { %10858 = vmatprep.mubr.bf16.mxu0 %v15870_v21  ;;  %11515 = vmatpush1.bf16.msra.mxu1 %v14882_v36  ;;  %v14965_v36 = vld [vmem:[#allocation6 + $0x19c4] ss:$16 sps:$4 sm:$0xff]  }
 0x573   :  { %11546 = vmatprep.mubr.bf16.mxu1 %v15870_v21  ;;  %10828 = vmatprep.subr.bf16.mxu0 %v14887_v5  ;;  %v14903_v21 = vld [vmem:[#allocation6 + $0x1880] ss:$16 sps:$4 sm:$0xff]   ;;  %v14968_v5 = vld [vmem:[#allocation6 + $0x19cc] ss:$16 sps:$4 sm:$0xff]  }
 0x574   :  { %11516 = vmatprep.subr.bf16.mxu1 %v14890_v25  ;;  %v14963_v25 = vld [vmem:[#allocation6 + $0x19c0] ss:$16 sps:$4 sm:$0xff]  }
 0x575   :  { %10829 = vmatpush1.bf16.msra.mxu0 %v14885_v16  ;;  %v14966_v16 = vld [vmem:[#allocation6 + $0x19c8] ss:$16 sps:$4 sm:$0xff]  }
 0x576   :  { %11517 = vmatpush1.bf16.msra.mxu1 %v14888_v22  ;;  %10830 = vmatprep.subr.bf16.mxu0 %v14893_v38  ;;  %v14971_v22 = vld [vmem:[#allocation6 + $0x19e4] ss:$16 sps:$4 sm:$0xff]   ;;  %v14974_v38 = vld [vmem:[#allocation6 + $0x19ec] ss:$16 sps:$4 sm:$0xff]  }
 0x577   :  { %11518 = vmatprep.subr.bf16.mxu1 %v14896_v62  ;;  %v14969_v62 = vld [vmem:[#allocation6 + $0x19e0] ss:$16 sps:$4 sm:$0xff]  }
 0x579   :  { %10831 = vmatpush1.bf16.msra.mxu0 %v14891_v40  ;;  %v14972_v40 = vld [vmem:[#allocation6 + $0x19e8] ss:$16 sps:$4 sm:$0xff]  }
 0x57a   :  { %11519 = vmatpush1.bf16.msra.mxu1 %v14894_v41  ;;  %10832 = vmatprep.subr.bf16.mxu0 %v14899_v56  ;;  %v14977_v41 = vld [vmem:[#allocation6 + $0x1a04] ss:$16 sps:$4 sm:$0xff]   ;;  %v14980_v56 = vld [vmem:[#allocation6 + $0x1a0c] ss:$16 sps:$4 sm:$0xff]  }
 0x57b   :  { %11520 = vmatprep.subr.bf16.mxu1 %v14902_v37  ;;  %v14975_v37 = vld [vmem:[#allocation6 + $0x1a00] ss:$16 sps:$4 sm:$0xff]  }
 0x57d   :  { %10833 = vmatpush1.bf16.msra.mxu0 %v14897_v20  ;;  %v14978_v20 = vld [vmem:[#allocation6 + $0x1a08] ss:$16 sps:$4 sm:$0xff]  }
 0x57e   :  { %11521 = vmatpush1.bf16.msra.mxu1 %v14900_v7  ;;  %10834 = vmatprep.subr.bf16.mxu0 %v14905_v42  ;;  %v14983_v7 = vld [vmem:[#allocation6 + $0x1a24] ss:$16 sps:$4 sm:$0xff]   ;;  %v14986_v42 = vld [vmem:[#allocation6 + $0x1a2c] ss:$16 sps:$4 sm:$0xff]  }
 0x57f   :  { %11522 = vmatprep.subr.bf16.mxu1 %v14908_v43  ;;  %v14981_v43 = vld [vmem:[#allocation6 + $0x1a20] ss:$16 sps:$4 sm:$0xff]  }
 0x581   :  { %10835 = vmatpush1.bf16.msra.mxu0 %v14903_v21  ;;  %v14984_v21 = vld [vmem:[#allocation6 + $0x1a28] ss:$16 sps:$4 sm:$0xff]  }
 0x582   :  { %11523 = vmatpush1.bf16.msra.mxu1 %v14906_v53  ;;  %10836 = vmatprep.subr.bf16.mxu0 %v14911_v44  ;;  %v14989_v53 = vld [vmem:[#allocation6 + $0x1a44] ss:$16 sps:$4 sm:$0xff]   ;;  %v14992_v44 = vld [vmem:[#allocation6 + $0x1a4c] ss:$16 sps:$4 sm:$0xff]  }
 0x583   :  { %11524 = vmatprep.subr.bf16.mxu1 %v14914_v15  ;;  %v14987_v15 = vld [vmem:[#allocation6 + $0x1a40] ss:$16 sps:$4 sm:$0xff]  }
 0x585   :  { %10837 = vmatpush1.bf16.msra.mxu0 %v14909_v49  ;;  %v14990_v49 = vld [vmem:[#allocation6 + $0x1a48] ss:$16 sps:$4 sm:$0xff]  }
 0x586   :  { %11525 = vmatpush1.bf16.msra.mxu1 %v14912_v6  ;;  %10838 = vmatprep.subr.bf16.mxu0 %v14917_v46  ;;  %v14995_v6 = vld [vmem:[#allocation6 + $0x1a64] ss:$16 sps:$4 sm:$0xff]   ;;  %v14993_v46 = vld [vmem:[#allocation6 + $0x1a60] ss:$16 sps:$4 sm:$0xff]  }
 0x587   :  { %11526 = vmatprep.subr.bf16.mxu1 %v14920_v31  ;;  %v14996_v31 = vld [vmem:[#allocation6 + $0x1a68] ss:$16 sps:$4 sm:$0xff]  }
 0x589   :  { %10839 = vmatpush1.bf16.msra.mxu0 %v14915_v30  ;;  %v15001_v30 = vld [vmem:[#allocation6 + $0x1a84] ss:$16 sps:$4 sm:$0xff]  }
 0x58a   :  { %11527 = vmatpush1.bf16.msra.mxu1 %v14918_v3  ;;  %10840 = vmatprep.subr.bf16.mxu0 %v14923_v9  ;;  %v15004_v3 = vld [vmem:[#allocation6 + $0x1a8c] ss:$16 sps:$4 sm:$0xff]   ;;  %v15002_v9 = vld [vmem:[#allocation6 + $0x1a88] ss:$16 sps:$4 sm:$0xff]  }
 0x58b   :  { %11528 = vmatprep.subr.bf16.mxu1 %v14926_v12  ;;  %v15007_v12 = vld [vmem:[#allocation6 + $0x1aa4] ss:$16 sps:$4 sm:$0xff]  }
 0x58d   :  { %10841 = vmatpush1.bf16.msra.mxu0 %v14921_v13  ;;  %v15010_v13 = vld [vmem:[#allocation6 + $0x1aac] ss:$16 sps:$4 sm:$0xff]  }
 0x58e   :  { %11529 = vmatpush1.bf16.msra.mxu1 %v14924_v45  ;;  %10842 = vmatprep.subr.bf16.mxu0 %v14929_v17  ;;  %v15005_v45 = vld [vmem:[#allocation6 + $0x1aa0] ss:$16 sps:$4 sm:$0xff]   ;;  %v15008_v17 = vld [vmem:[#allocation6 + $0x1aa8] ss:$16 sps:$4 sm:$0xff]  }
 0x58f   :  { %11530 = vmatprep.subr.bf16.mxu1 %v14932_v55  ;;  %v15013_v55 = vld [vmem:[#allocation6 + $0x1ac4] ss:$16 sps:$4 sm:$0xff]  }
 0x591   :  { %10843 = vmatpush1.bf16.msra.mxu0 %v14927_v23  ;;  %v15016_v23 = vld [vmem:[#allocation6 + $0x1acc] ss:$16 sps:$4 sm:$0xff]  }
 0x592   :  { %11531 = vmatpush1.bf16.msra.mxu1 %v14930_v4  ;;  %10844 = vmatprep.subr.bf16.mxu0 %v14935_v8  ;;  %v15011_v4 = vld [vmem:[#allocation6 + $0x1ac0] ss:$16 sps:$4 sm:$0xff]   ;;  %v15014_v8 = vld [vmem:[#allocation6 + $0x1ac8] ss:$16 sps:$4 sm:$0xff]  }
 0x593   :  { %11532 = vmatprep.subr.bf16.mxu1 %v14938_v47  ;;  %v15019_v47 = vld [vmem:[#allocation6 + $0x1ae4] ss:$16 sps:$4 sm:$0xff]  }
 0x595   :  { %10845 = vmatpush1.bf16.msra.mxu0 %v14933_v61  ;;  %v15022_v61 = vld [vmem:[#allocation6 + $0x1aec] ss:$16 sps:$4 sm:$0xff]  }
 0x596   :  { %11533 = vmatpush1.bf16.msra.mxu1 %v14936_v28  ;;  %10846 = vmatprep.subr.bf16.mxu0 %v14941_v19  ;;  %v15017_v28 = vld [vmem:[#allocation6 + $0x1ae0] ss:$16 sps:$4 sm:$0xff]   ;;  %v15020_v19 = vld [vmem:[#allocation6 + $0x1ae8] ss:$16 sps:$4 sm:$0xff]  }
 0x597   :  { %11534 = vmatprep.subr.bf16.mxu1 %v14944_v29  ;;  %v15025_v29 = vld [vmem:[#allocation6 + $0x1b04] ss:$16 sps:$4 sm:$0xff]  }
 0x599   :  { %10847 = vmatpush1.bf16.msra.mxu0 %v14939_v48  ;;  %v15028_v48 = vld [vmem:[#allocation6 + $0x1b0c] ss:$16 sps:$4 sm:$0xff]  }
 0x59a   :  { %11535 = vmatpush1.bf16.msra.mxu1 %v14942_v39  ;;  %10848 = vmatprep.subr.bf16.mxu0 %v14947_v11  ;;  %v15023_v39 = vld [vmem:[#allocation6 + $0x1b00] ss:$16 sps:$4 sm:$0xff]   ;;  %v15026_v11 = vld [vmem:[#allocation6 + $0x1b08] ss:$16 sps:$4 sm:$0xff]  }
 0x59b   :  { %11536 = vmatprep.subr.bf16.mxu1 %v14950_v32  ;;  %v15031_v32 = vld [vmem:[#allocation6 + $0x1b24] ss:$16 sps:$4 sm:$0xff]  }
 0x59d   :  { %10849 = vmatpush1.bf16.msra.mxu0 %v14945_v51  ;;  %v15034_v51 = vld [vmem:[#allocation6 + $0x1b2c] ss:$16 sps:$4 sm:$0xff]  }
 0x59e   :  { %11537 = vmatpush1.bf16.msra.mxu1 %v14948_v63  ;;  %10850 = vmatprep.subr.bf16.mxu0 %v14953_v50  ;;  %v15029_v63 = vld [vmem:[#allocation6 + $0x1b20] ss:$16 sps:$4 sm:$0xff]   ;;  %v15032_v50 = vld [vmem:[#allocation6 + $0x1b28] ss:$16 sps:$4 sm:$0xff]  }
 0x59f   :  { %11538 = vmatprep.subr.bf16.mxu1 %v14956_v33  ;;  %v15037_v33 = vld [vmem:[#allocation6 + $0x1b44] ss:$16 sps:$4 sm:$0xff]  }
 0x5a1   :  { %10851 = vmatpush1.bf16.msra.mxu0 %v14951_v27  ;;  %v15040_v27 = vld [vmem:[#allocation6 + $0x1b4c] ss:$16 sps:$4 sm:$0xff]  }
 0x5a2   :  { %11539 = vmatpush1.bf16.msra.mxu1 %v14954_v14  ;;  %10852 = vmatprep.subr.bf16.mxu0 %v14959_v34  ;;  %v15035_v14 = vld [vmem:[#allocation6 + $0x1b40] ss:$16 sps:$4 sm:$0xff]   ;;  %v15038_v34 = vld [vmem:[#allocation6 + $0x1b48] ss:$16 sps:$4 sm:$0xff]  }
 0x5a3   :  { %11540 = vmatprep.subr.bf16.mxu1 %v14962_v26  ;;  %v15043_v26 = vld [vmem:[#allocation6 + $0x1b64] ss:$16 sps:$4 sm:$0xff]  }
 0x5a5   :  { %10853 = vmatpush1.bf16.msra.mxu0 %v14957_v0  ;;  %v15046_v0 = vld [vmem:[#allocation6 + $0x1b6c] ss:$16 sps:$4 sm:$0xff]  }
 0x5a6   :  { %11541 = vmatpush1.bf16.msra.mxu1 %v14960_v35  ;;  %10854 = vmatprep.subr.bf16.mxu0 %v14965_v36  ;;  %v15041_v35 = vld [vmem:[#allocation6 + $0x1b60] ss:$16 sps:$4 sm:$0xff]   ;;  %v15044_v36 = vld [vmem:[#allocation6 + $0x1b68] ss:$16 sps:$4 sm:$0xff]  }
 0x5a7   :  { %11542 = vmatprep.subr.bf16.mxu1 %v14968_v5  ;;  %v15049_v5 = vld [vmem:[#allocation6 + $0x1b84] ss:$16 sps:$4 sm:$0xff]  }
 0x5a9   :  { %10855 = vmatpush1.bf16.msra.mxu0 %v14963_v25  ;;  %v15052_v25 = vld [vmem:[#allocation6 + $0x1b8c] ss:$16 sps:$4 sm:$0xff]  }
 0x5aa   :  { %11543 = vmatpush1.bf16.msra.mxu1 %v14966_v16  ;;  %10856 = vmatprep.subr.bf16.mxu0 %v14971_v22  ;;  %v15047_v16 = vld [vmem:[#allocation6 + $0x1b80] ss:$16 sps:$4 sm:$0xff]   ;;  %v15050_v22 = vld [vmem:[#allocation6 + $0x1b88] ss:$16 sps:$4 sm:$0xff]  }
 0x5ab   :  { %11544 = vmatprep.subr.bf16.mxu1 %v14974_v38  ;;  %v15055_v38 = vld [vmem:[#allocation6 + $0x1ba4] ss:$16 sps:$4 sm:$0xff]  }
 0x5ad   :  { %10857 = vmatpush1.bf16.msra.mxu0 %v14969_v62  ;;  %v15058_v62 = vld [vmem:[#allocation6 + $0x1bac] ss:$16 sps:$4 sm:$0xff]  }
 0x5ae   :  { %11545 = vmatpush1.bf16.msra.mxu1 %v14972_v40  ;;  %10869 = vmatprep.subr.bf16.mxu0 %v14977_v41  ;;  %v15053_v40 = vld [vmem:[#allocation6 + $0x1ba0] ss:$16 sps:$4 sm:$0xff]   ;;  %v15056_v41 = vld [vmem:[#allocation6 + $0x1ba8] ss:$16 sps:$4 sm:$0xff]  }
 0x5af   :  { %11557 = vmatprep.subr.bf16.mxu1 %v14980_v56  ;;  %v15061_v56 = vld [vmem:[#allocation6 + $0x1bc4] ss:$16 sps:$4 sm:$0xff]  }
 0x5b0   :  { %10859 = vmatmul.mubr.bf16.vlgmr.msra.gmra.mrb[32].mxu0 %v15866_v24 }
 0x5b1   :  { %11547 = vmatmul.mubr.bf16.vlgmr.msra.gmra.mrb[32].mxu1 %v15866_v24  ;;  %10870 = vmatpush1.bf16.msra.mxu0 %v14975_v37  ;;  %v14998_v24 = vld [vmem:[#allocation6 + $0x1a6c] ss:$16 sps:$4 sm:$0xff]  }
 0x5b2   :  { %10901 = vmatprep.mubr.bf16.mxu0 %v15872_v18  ;;  %11558 = vmatpush1.bf16.msra.mxu1 %v14978_v20  ;;  %v15064_v37 = vld [vmem:[#allocation6 + $0x1bcc] ss:$16 sps:$4 sm:$0xff]   ;;  %v15059_v20 = vld [vmem:[#allocation6 + $0x1bc0] ss:$16 sps:$4 sm:$0xff]  }
 0x5b3   :  { %11589 = vmatprep.mubr.bf16.mxu1 %v15872_v18  ;;  %10871 = vmatprep.subr.bf16.mxu0 %v14983_v7  ;;  %v14999_v18 = vld [vmem:[#allocation6 + $0x1a80] ss:$16 sps:$4 sm:$0xff]   ;;  %v15062_v7 = vld [vmem:[#allocation6 + $0x1bc8] ss:$16 sps:$4 sm:$0xff]  }
 0x5b4   :  { %11559 = vmatprep.subr.bf16.mxu1 %v14986_v42  ;;  %v15067_v42 = vld [vmem:[#allocation6 + $0x1be4] ss:$16 sps:$4 sm:$0xff]  }
 0x5b5   :  { %10872 = vmatpush1.bf16.msra.mxu0 %v14981_v43  ;;  %v15070_v43 = vld [vmem:[#allocation6 + $0x1bec] ss:$16 sps:$4 sm:$0xff]  }
 0x5b6   :  { %11560 = vmatpush1.bf16.msra.mxu1 %v14984_v21  ;;  %10873 = vmatprep.subr.bf16.mxu0 %v14989_v53  ;;  %v15065_v21 = vld [vmem:[#allocation6 + $0x1be0] ss:$16 sps:$4 sm:$0xff]   ;;  %v15068_v53 = vld [vmem:[#allocation6 + $0x1be8] ss:$16 sps:$4 sm:$0xff]  }
 0x5b7   :  { %11561 = vmatprep.subr.bf16.mxu1 %v14992_v44  ;;  %v15073_v44 = vld [vmem:[#allocation6 + $0x1c04] ss:$16 sps:$4 sm:$0xff]  }
 0x5b9   :  { %10874 = vmatpush1.bf16.msra.mxu0 %v14987_v15  ;;  %v15076_v15 = vld [vmem:[#allocation6 + $0x1c0c] ss:$16 sps:$4 sm:$0xff]  }
 0x5ba   :  { %11562 = vmatpush1.bf16.msra.mxu1 %v14990_v49  ;;  %10875 = vmatprep.subr.bf16.mxu0 %v14995_v6  ;;  %v15071_v49 = vld [vmem:[#allocation6 + $0x1c00] ss:$16 sps:$4 sm:$0xff]   ;;  %v15074_v6 = vld [vmem:[#allocation6 + $0x1c08] ss:$16 sps:$4 sm:$0xff]  }
 0x5bb   :  { %11563 = vmatprep.subr.bf16.mxu1 %v14998_v24  ;;  %v15079_v24 = vld [vmem:[#allocation6 + $0x1c24] ss:$16 sps:$4 sm:$0xff]  }
 0x5bd   :  { %10876 = vmatpush1.bf16.msra.mxu0 %v14993_v46  ;;  %v15082_v46 = vld [vmem:[#allocation6 + $0x1c2c] ss:$16 sps:$4 sm:$0xff]  }
 0x5be   :  { %11564 = vmatpush1.bf16.msra.mxu1 %v14996_v31  ;;  %10877 = vmatprep.subr.bf16.mxu0 %v15001_v30  ;;  %v15077_v31 = vld [vmem:[#allocation6 + $0x1c20] ss:$16 sps:$4 sm:$0xff]   ;;  %v15080_v30 = vld [vmem:[#allocation6 + $0x1c28] ss:$16 sps:$4 sm:$0xff]  }
 0x5bf   :  { %11565 = vmatprep.subr.bf16.mxu1 %v15004_v3  ;;  %v15085_v3 = vld [vmem:[#allocation6 + $0x1c44] ss:$16 sps:$4 sm:$0xff]  }
 0x5c1   :  { %10878 = vmatpush1.bf16.msra.mxu0 %v14999_v18  ;;  %v15088_v18 = vld [vmem:[#allocation6 + $0x1c4c] ss:$16 sps:$4 sm:$0xff]  }
 0x5c2   :  { %11566 = vmatpush1.bf16.msra.mxu1 %v15002_v9  ;;  %10879 = vmatprep.subr.bf16.mxu0 %v15007_v12  ;;  %v15083_v9 = vld [vmem:[#allocation6 + $0x1c40] ss:$16 sps:$4 sm:$0xff]   ;;  %v15086_v12 = vld [vmem:[#allocation6 + $0x1c48] ss:$16 sps:$4 sm:$0xff]  }
 0x5c3   :  { %11567 = vmatprep.subr.bf16.mxu1 %v15010_v13  ;;  %v15091_v13 = vld [vmem:[#allocation6 + $0x1c64] ss:$16 sps:$4 sm:$0xff]  }
 0x5c5   :  { %10880 = vmatpush1.bf16.msra.mxu0 %v15005_v45  ;;  %v15089_v45 = vld [vmem:[#allocation6 + $0x1c60] ss:$16 sps:$4 sm:$0xff]  }
 0x5c6   :  { %11568 = vmatpush1.bf16.msra.mxu1 %v15008_v17  ;;  %10881 = vmatprep.subr.bf16.mxu0 %v15013_v55  ;;  %v15092_v17 = vld [vmem:[#allocation6 + $0x1c68] ss:$16 sps:$4 sm:$0xff]   ;;  %v15097_v55 = vld [vmem:[#allocation6 + $0x1c84] ss:$16 sps:$4 sm:$0xff]  }
 0x5c7   :  { %11569 = vmatprep.subr.bf16.mxu1 %v15016_v23  ;;  %v15100_v23 = vld [vmem:[#allocation6 + $0x1c8c] ss:$16 sps:$4 sm:$0xff]  }
 0x5c9   :  { %10882 = vmatpush1.bf16.msra.mxu0 %v15011_v4  ;;  %v15098_v4 = vld [vmem:[#allocation6 + $0x1c88] ss:$16 sps:$4 sm:$0xff]  }
 0x5ca   :  { %11570 = vmatpush1.bf16.msra.mxu1 %v15014_v8  ;;  %10883 = vmatprep.subr.bf16.mxu0 %v15019_v47  ;;  %v15103_v8 = vld [vmem:[#allocation6 + $0x1ca4] ss:$16 sps:$4 sm:$0xff]   ;;  %v15106_v47 = vld [vmem:[#allocation6 + $0x1cac] ss:$16 sps:$4 sm:$0xff]  }
 0x5cb   :  { %11571 = vmatprep.subr.bf16.mxu1 %v15022_v61  ;;  %v15101_v61 = vld [vmem:[#allocation6 + $0x1ca0] ss:$16 sps:$4 sm:$0xff]  }
 0x5cd   :  { %10884 = vmatpush1.bf16.msra.mxu0 %v15017_v28  ;;  %v15104_v28 = vld [vmem:[#allocation6 + $0x1ca8] ss:$16 sps:$4 sm:$0xff]  }
 0x5ce   :  { %11572 = vmatpush1.bf16.msra.mxu1 %v15020_v19  ;;  %10885 = vmatprep.subr.bf16.mxu0 %v15025_v29  ;;  %v15109_v19 = vld [vmem:[#allocation6 + $0x1cc4] ss:$16 sps:$4 sm:$0xff]   ;;  %v15112_v29 = vld [vmem:[#allocation6 + $0x1ccc] ss:$16 sps:$4 sm:$0xff]  }
 0x5cf   :  { %11573 = vmatprep.subr.bf16.mxu1 %v15028_v48  ;;  %v15107_v48 = vld [vmem:[#allocation6 + $0x1cc0] ss:$16 sps:$4 sm:$0xff]  }
 0x5d1   :  { %10886 = vmatpush1.bf16.msra.mxu0 %v15023_v39  ;;  %v15110_v39 = vld [vmem:[#allocation6 + $0x1cc8] ss:$16 sps:$4 sm:$0xff]  }
 0x5d2   :  { %11574 = vmatpush1.bf16.msra.mxu1 %v15026_v11  ;;  %10887 = vmatprep.subr.bf16.mxu0 %v15031_v32  ;;  %v15115_v11 = vld [vmem:[#allocation6 + $0x1ce4] ss:$16 sps:$4 sm:$0xff]   ;;  %v15118_v32 = vld [vmem:[#allocation6 + $0x1cec] ss:$16 sps:$4 sm:$0xff]  }
 0x5d3   :  { %11575 = vmatprep.subr.bf16.mxu1 %v15034_v51  ;;  %v15113_v51 = vld [vmem:[#allocation6 + $0x1ce0] ss:$16 sps:$4 sm:$0xff]  }
 0x5d5   :  { %10888 = vmatpush1.bf16.msra.mxu0 %v15029_v63  ;;  %v15116_v63 = vld [vmem:[#allocation6 + $0x1ce8] ss:$16 sps:$4 sm:$0xff]  }
 0x5d6   :  { %11576 = vmatpush1.bf16.msra.mxu1 %v15032_v50  ;;  %10889 = vmatprep.subr.bf16.mxu0 %v15037_v33  ;;  %v15121_v50 = vld [vmem:[#allocation6 + $0x1d04] ss:$16 sps:$4 sm:$0xff]   ;;  %v15124_v33 = vld [vmem:[#allocation6 + $0x1d0c] ss:$16 sps:$4 sm:$0xff]  }
 0x5d7   :  { %11577 = vmatprep.subr.bf16.mxu1 %v15040_v27  ;;  %v15119_v27 = vld [vmem:[#allocation6 + $0x1d00] ss:$16 sps:$4 sm:$0xff]  }
 0x5d9   :  { %10890 = vmatpush1.bf16.msra.mxu0 %v15035_v14  ;;  %v15122_v14 = vld [vmem:[#allocation6 + $0x1d08] ss:$16 sps:$4 sm:$0xff]  }
 0x5da   :  { %11578 = vmatpush1.bf16.msra.mxu1 %v15038_v34  ;;  %10891 = vmatprep.subr.bf16.mxu0 %v15043_v26  ;;  %v15127_v34 = vld [vmem:[#allocation6 + $0x1d24] ss:$16 sps:$4 sm:$0xff]   ;;  %v15130_v26 = vld [vmem:[#allocation6 + $0x1d2c] ss:$16 sps:$4 sm:$0xff]  }
 0x5db   :  { %11579 = vmatprep.subr.bf16.mxu1 %v15046_v0  ;;  %v15125_v0 = vld [vmem:[#allocation6 + $0x1d20] ss:$16 sps:$4 sm:$0xff]  }
 0x5dd   :  { %10892 = vmatpush1.bf16.msra.mxu0 %v15041_v35  ;;  %v15128_v35 = vld [vmem:[#allocation6 + $0x1d28] ss:$16 sps:$4 sm:$0xff]  }
 0x5de   :  { %11580 = vmatpush1.bf16.msra.mxu1 %v15044_v36  ;;  %10893 = vmatprep.subr.bf16.mxu0 %v15049_v5  ;;  %v15133_v36 = vld [vmem:[#allocation6 + $0x1d44] ss:$16 sps:$4 sm:$0xff]   ;;  %v15136_v5 = vld [vmem:[#allocation6 + $0x1d4c] ss:$16 sps:$4 sm:$0xff]  }
 0x5df   :  { %11581 = vmatprep.subr.bf16.mxu1 %v15052_v25  ;;  %v15131_v25 = vld [vmem:[#allocation6 + $0x1d40] ss:$16 sps:$4 sm:$0xff]  }
 0x5e1   :  { %10894 = vmatpush1.bf16.msra.mxu0 %v15047_v16  ;;  %v15134_v16 = vld [vmem:[#allocation6 + $0x1d48] ss:$16 sps:$4 sm:$0xff]  }
 0x5e2   :  { %11582 = vmatpush1.bf16.msra.mxu1 %v15050_v22  ;;  %10895 = vmatprep.subr.bf16.mxu0 %v15055_v38  ;;  %v15139_v22 = vld [vmem:[#allocation6 + $0x1d64] ss:$16 sps:$4 sm:$0xff]   ;;  %v15142_v38 = vld [vmem:[#allocation6 + $0x1d6c] ss:$16 sps:$4 sm:$0xff]  }
 0x5e3   :  { %11583 = vmatprep.subr.bf16.mxu1 %v15058_v62  ;;  %v15137_v62 = vld [vmem:[#allocation6 + $0x1d60] ss:$16 sps:$4 sm:$0xff]  }
 0x5e5   :  { %10896 = vmatpush1.bf16.msra.mxu0 %v15053_v40  ;;  %v15140_v40 = vld [vmem:[#allocation6 + $0x1d68] ss:$16 sps:$4 sm:$0xff]  }
 0x5e6   :  { %11584 = vmatpush1.bf16.msra.mxu1 %v15056_v41  ;;  %10897 = vmatprep.subr.bf16.mxu0 %v15061_v56  ;;  %v15145_v41 = vld [vmem:[#allocation6 + $0x1d84] ss:$16 sps:$4 sm:$0xff]   ;;  %v15148_v56 = vld [vmem:[#allocation6 + $0x1d8c] ss:$16 sps:$4 sm:$0xff]  }
 0x5e7   :  { %11585 = vmatprep.subr.bf16.mxu1 %v15064_v37  ;;  %v15143_v37 = vld [vmem:[#allocation6 + $0x1d80] ss:$16 sps:$4 sm:$0xff]  }
 0x5e9   :  { %10898 = vmatpush1.bf16.msra.mxu0 %v15059_v20  ;;  %v15146_v20 = vld [vmem:[#allocation6 + $0x1d88] ss:$16 sps:$4 sm:$0xff]  }
 0x5ea   :  { %11586 = vmatpush1.bf16.msra.mxu1 %v15062_v7  ;;  %10899 = vmatprep.subr.bf16.mxu0 %v15067_v42  ;;  %v15151_v7 = vld [vmem:[#allocation6 + $0x1da4] ss:$16 sps:$4 sm:$0xff]   ;;  %v15154_v42 = vld [vmem:[#allocation6 + $0x1dac] ss:$16 sps:$4 sm:$0xff]  }
 0x5eb   :  { %11587 = vmatprep.subr.bf16.mxu1 %v15070_v43  ;;  %v15149_v43 = vld [vmem:[#allocation6 + $0x1da0] ss:$16 sps:$4 sm:$0xff]  }
 0x5ed   :  { %10900 = vmatpush1.bf16.msra.mxu0 %v15065_v21  ;;  %v15152_v21 = vld [vmem:[#allocation6 + $0x1da8] ss:$16 sps:$4 sm:$0xff]  }
 0x5ee   :  { %11588 = vmatpush1.bf16.msra.mxu1 %v15068_v53  ;;  %10912 = vmatprep.subr.bf16.mxu0 %v15073_v44  ;;  %v15157_v53 = vld [vmem:[#allocation6 + $0x1dc4] ss:$16 sps:$4 sm:$0xff]   ;;  %v15160_v44 = vld [vmem:[#allocation6 + $0x1dcc] ss:$16 sps:$4 sm:$0xff]  }
 0x5ef   :  { %11600 = vmatprep.subr.bf16.mxu1 %v15076_v15  ;;  %v15155_v15 = vld [vmem:[#allocation6 + $0x1dc0] ss:$16 sps:$4 sm:$0xff]  }
 0x5f0   :  { %10902 = vmatmul.mubr.bf16.vlgmr.msra.gmra.mrb[32].mxu0 %v15868_v2 }
 0x5f1   :  { %11590 = vmatmul.mubr.bf16.vlgmr.msra.gmra.mrb[32].mxu1 %v15868_v2  ;;  %10913 = vmatpush1.bf16.msra.mxu0 %v15071_v49  ;;  %v15094_v2 = vld [vmem:[#allocation6 + $0x1c6c] ss:$16 sps:$4 sm:$0xff]   ;;  %v15158_v49 = vld [vmem:[#allocation6 + $0x1dc8] ss:$16 sps:$4 sm:$0xff]  }
 0x5f2   :  { %10944 = vmatprep.mubr.bf16.mxu0 %v15890_v1  ;;  %11601 = vmatpush1.bf16.msra.mxu1 %v15074_v6  ;;  %v15163_v6 = vld [vmem:[#allocation6 + $0x1de4] ss:$16 sps:$4 sm:$0xff]  }
 0x5f3   :  { %11632 = vmatprep.mubr.bf16.mxu1 %v15890_v1  ;;  %10914 = vmatprep.subr.bf16.mxu0 %v15079_v24  ;;  %v15095_v1 = vld [vmem:[#allocation6 + $0x1c80] ss:$16 sps:$4 sm:$0xff]   ;;  %v15166_v24 = vld [vmem:[#allocation6 + $0x1dec] ss:$16 sps:$4 sm:$0xff]  }
 0x5f4   :  { %11602 = vmatprep.subr.bf16.mxu1 %v15082_v46  ;;  %v15161_v46 = vld [vmem:[#allocation6 + $0x1de0] ss:$16 sps:$4 sm:$0xff]  }
 0x5f5   :  { %10915 = vmatpush1.bf16.msra.mxu0 %v15077_v31  ;;  %v15164_v31 = vld [vmem:[#allocation6 + $0x1de8] ss:$16 sps:$4 sm:$0xff]  }
 0x5f6   :  { %11603 = vmatpush1.bf16.msra.mxu1 %v15080_v30  ;;  %10916 = vmatprep.subr.bf16.mxu0 %v15085_v3  ;;  %v15169_v30 = vld [vmem:[#allocation6 + $0x1e04] ss:$16 sps:$4 sm:$0xff]   ;;  %v15172_v3 = vld [vmem:[#allocation6 + $0x1e0c] ss:$16 sps:$4 sm:$0xff]  }
 0x5f7   :  { %11604 = vmatprep.subr.bf16.mxu1 %v15088_v18  ;;  %v15167_v18 = vld [vmem:[#allocation6 + $0x1e00] ss:$16 sps:$4 sm:$0xff]  }
 0x5f9   :  { %10917 = vmatpush1.bf16.msra.mxu0 %v15083_v9  ;;  %v15170_v9 = vld [vmem:[#allocation6 + $0x1e08] ss:$16 sps:$4 sm:$0xff]  }
 0x5fa   :  { %11605 = vmatpush1.bf16.msra.mxu1 %v15086_v12  ;;  %10918 = vmatprep.subr.bf16.mxu0 %v15091_v13  ;;  %v15175_v12 = vld [vmem:[#allocation6 + $0x1e24] ss:$16 sps:$4 sm:$0xff]   ;;  %v15178_v13 = vld [vmem:[#allocation6 + $0x1e2c] ss:$16 sps:$4 sm:$0xff]  }
 0x5fb   :  { %11606 = vmatprep.subr.bf16.mxu1 %v15094_v2  ;;  %v15173_v2 = vld [vmem:[#allocation6 + $0x1e20] ss:$16 sps:$4 sm:$0xff]  }
 0x5fd   :  { %10919 = vmatpush1.bf16.msra.mxu0 %v15089_v45  ;;  %v15176_v45 = vld [vmem:[#allocation6 + $0x1e28] ss:$16 sps:$4 sm:$0xff]  }
 0x5fe   :  { %11607 = vmatpush1.bf16.msra.mxu1 %v15092_v17  ;;  %10920 = vmatprep.subr.bf16.mxu0 %v15097_v55  ;;  %v15181_v17 = vld [vmem:[#allocation6 + $0x1e44] ss:$16 sps:$4 sm:$0xff]   ;;  %v15184_v55 = vld [vmem:[#allocation6 + $0x1e4c] ss:$16 sps:$4 sm:$0xff]  }
 0x5ff   :  { %11608 = vmatprep.subr.bf16.mxu1 %v15100_v23  ;;  %v15179_v23 = vld [vmem:[#allocation6 + $0x1e40] ss:$16 sps:$4 sm:$0xff]  }
 0x601   :  { %10921 = vmatpush1.bf16.msra.mxu0 %v15095_v1  ;;  %v15182_v1 = vld [vmem:[#allocation6 + $0x1e48] ss:$16 sps:$4 sm:$0xff]  }
 0x602   :  { %11609 = vmatpush1.bf16.msra.mxu1 %v15098_v4  ;;  %10922 = vmatprep.subr.bf16.mxu0 %v15103_v8  ;;  %v15187_v4 = vld [vmem:[#allocation6 + $0x1e64] ss:$16 sps:$4 sm:$0xff]   ;;  %v15185_v8 = vld [vmem:[#allocation6 + $0x1e60] ss:$16 sps:$4 sm:$0xff]  }
 0x603   :  { %11610 = vmatprep.subr.bf16.mxu1 %v15106_v47  ;;  %v15188_v47 = vld [vmem:[#allocation6 + $0x1e68] ss:$16 sps:$4 sm:$0xff]  }
 0x605   :  { %10923 = vmatpush1.bf16.msra.mxu0 %v15101_v61  ;;  %v15193_v61 = vld [vmem:[#allocation6 + $0x1e84] ss:$16 sps:$4 sm:$0xff]  }
 0x606   :  { %11611 = vmatpush1.bf16.msra.mxu1 %v15104_v28  ;;  %10924 = vmatprep.subr.bf16.mxu0 %v15109_v19  ;;  %v15196_v28 = vld [vmem:[#allocation6 + $0x1e8c] ss:$16 sps:$4 sm:$0xff]   ;;  %v15194_v19 = vld [vmem:[#allocation6 + $0x1e88] ss:$16 sps:$4 sm:$0xff]  }
 0x607   :  { %11612 = vmatprep.subr.bf16.mxu1 %v15112_v29  ;;  %v15199_v29 = vld [vmem:[#allocation6 + $0x1ea4] ss:$16 sps:$4 sm:$0xff]  }
 0x609   :  { %10925 = vmatpush1.bf16.msra.mxu0 %v15107_v48  ;;  %v15202_v48 = vld [vmem:[#allocation6 + $0x1eac] ss:$16 sps:$4 sm:$0xff]  }
 0x60a   :  { %11613 = vmatpush1.bf16.msra.mxu1 %v15110_v39  ;;  %10926 = vmatprep.subr.bf16.mxu0 %v15115_v11  ;;  %v15197_v39 = vld [vmem:[#allocation6 + $0x1ea0] ss:$16 sps:$4 sm:$0xff]   ;;  %v15200_v11 = vld [vmem:[#allocation6 + $0x1ea8] ss:$16 sps:$4 sm:$0xff]  }
 0x60b   :  { %11614 = vmatprep.subr.bf16.mxu1 %v15118_v32  ;;  %v15205_v32 = vld [vmem:[#allocation6 + $0x1ec4] ss:$16 sps:$4 sm:$0xff]  }
 0x60d   :  { %10927 = vmatpush1.bf16.msra.mxu0 %v15113_v51  ;;  %v15208_v51 = vld [vmem:[#allocation6 + $0x1ecc] ss:$16 sps:$4 sm:$0xff]  }
 0x60e   :  { %11615 = vmatpush1.bf16.msra.mxu1 %v15116_v63  ;;  %10928 = vmatprep.subr.bf16.mxu0 %v15121_v50  ;;  %v15203_v63 = vld [vmem:[#allocation6 + $0x1ec0] ss:$16 sps:$4 sm:$0xff]   ;;  %v15206_v50 = vld [vmem:[#allocation6 + $0x1ec8] ss:$16 sps:$4 sm:$0xff]  }
 0x60f   :  { %11616 = vmatprep.subr.bf16.mxu1 %v15124_v33  ;;  %v15211_v33 = vld [vmem:[#allocation6 + $0x1ee4] ss:$16 sps:$4 sm:$0xff]  }
 0x611   :  { %10929 = vmatpush1.bf16.msra.mxu0 %v15119_v27  ;;  %v15214_v27 = vld [vmem:[#allocation6 + $0x1eec] ss:$16 sps:$4 sm:$0xff]  }
 0x612   :  { %11617 = vmatpush1.bf16.msra.mxu1 %v15122_v14  ;;  %10930 = vmatprep.subr.bf16.mxu0 %v15127_v34  ;;  %v15209_v14 = vld [vmem:[#allocation6 + $0x1ee0] ss:$16 sps:$4 sm:$0xff]   ;;  %v15212_v34 = vld [vmem:[#allocation6 + $0x1ee8] ss:$16 sps:$4 sm:$0xff]  }
 0x613   :  { %11618 = vmatprep.subr.bf16.mxu1 %v15130_v26  ;;  %v15217_v26 = vld [vmem:[#allocation6 + $0x1f04] ss:$16 sps:$4 sm:$0xff]  }
 0x615   :  { %10931 = vmatpush1.bf16.msra.mxu0 %v15125_v0  ;;  %v15220_v0 = vld [vmem:[#allocation6 + $0x1f0c] ss:$16 sps:$4 sm:$0xff]  }
 0x616   :  { %11619 = vmatpush1.bf16.msra.mxu1 %v15128_v35  ;;  %10932 = vmatprep.subr.bf16.mxu0 %v15133_v36  ;;  %v15215_v35 = vld [vmem:[#allocation6 + $0x1f00] ss:$16 sps:$4 sm:$0xff]   ;;  %v15218_v36 = vld [vmem:[#allocation6 + $0x1f08] ss:$16 sps:$4 sm:$0xff]  }
 0x617   :  { %11620 = vmatprep.subr.bf16.mxu1 %v15136_v5  ;;  %v15223_v5 = vld [vmem:[#allocation6 + $0x1f24] ss:$16 sps:$4 sm:$0xff]  }
 0x619   :  { %10933 = vmatpush1.bf16.msra.mxu0 %v15131_v25  ;;  %v15226_v25 = vld [vmem:[#allocation6 + $0x1f2c] ss:$16 sps:$4 sm:$0xff]  }
 0x61a   :  { %11621 = vmatpush1.bf16.msra.mxu1 %v15134_v16  ;;  %10934 = vmatprep.subr.bf16.mxu0 %v15139_v22  ;;  %v15221_v16 = vld [vmem:[#allocation6 + $0x1f20] ss:$16 sps:$4 sm:$0xff]   ;;  %v15224_v22 = vld [vmem:[#allocation6 + $0x1f28] ss:$16 sps:$4 sm:$0xff]  }
 0x61b   :  { %11622 = vmatprep.subr.bf16.mxu1 %v15142_v38  ;;  %v15229_v38 = vld [vmem:[#allocation6 + $0x1f44] ss:$16 sps:$4 sm:$0xff]  }
 0x61d   :  { %10935 = vmatpush1.bf16.msra.mxu0 %v15137_v62  ;;  %v15232_v62 = vld [vmem:[#allocation6 + $0x1f4c] ss:$16 sps:$4 sm:$0xff]  }
 0x61e   :  { %11623 = vmatpush1.bf16.msra.mxu1 %v15140_v40  ;;  %10936 = vmatprep.subr.bf16.mxu0 %v15145_v41  ;;  %v15227_v40 = vld [vmem:[#allocation6 + $0x1f40] ss:$16 sps:$4 sm:$0xff]   ;;  %v15230_v41 = vld [vmem:[#allocation6 + $0x1f48] ss:$16 sps:$4 sm:$0xff]  }
 0x61f   :  { %11624 = vmatprep.subr.bf16.mxu1 %v15148_v56  ;;  %v15235_v56 = vld [vmem:[#allocation6 + $0x1f64] ss:$16 sps:$4 sm:$0xff]  }
 0x621   :  { %10937 = vmatpush1.bf16.msra.mxu0 %v15143_v37  ;;  %v15238_v37 = vld [vmem:[#allocation6 + $0x1f6c] ss:$16 sps:$4 sm:$0xff]  }
 0x622   :  { %11625 = vmatpush1.bf16.msra.mxu1 %v15146_v20  ;;  %10938 = vmatprep.subr.bf16.mxu0 %v15151_v7  ;;  %v15233_v20 = vld [vmem:[#allocation6 + $0x1f60] ss:$16 sps:$4 sm:$0xff]   ;;  %v15236_v7 = vld [vmem:[#allocation6 + $0x1f68] ss:$16 sps:$4 sm:$0xff]  }
 0x623   :  { %11626 = vmatprep.subr.bf16.mxu1 %v15154_v42  ;;  %v15241_v42 = vld [vmem:[#allocation6 + $0x1f84] ss:$16 sps:$4 sm:$0xff]  }
 0x625   :  { %10939 = vmatpush1.bf16.msra.mxu0 %v15149_v43  ;;  %v15244_v43 = vld [vmem:[#allocation6 + $0x1f8c] ss:$16 sps:$4 sm:$0xff]  }
 0x626   :  { %11627 = vmatpush1.bf16.msra.mxu1 %v15152_v21  ;;  %10940 = vmatprep.subr.bf16.mxu0 %v15157_v53  ;;  %v15239_v21 = vld [vmem:[#allocation6 + $0x1f80] ss:$16 sps:$4 sm:$0xff]   ;;  %v15242_v53 = vld [vmem:[#allocation6 + $0x1f88] ss:$16 sps:$4 sm:$0xff]  }
 0x627   :  { %11628 = vmatprep.subr.bf16.mxu1 %v15160_v44  ;;  %v15247_v44 = vld [vmem:[#allocation6 + $0x1fa4] ss:$16 sps:$4 sm:$0xff]  }
 0x629   :  { %10941 = vmatpush1.bf16.msra.mxu0 %v15155_v15  ;;  %v15250_v15 = vld [vmem:[#allocation6 + $0x1fac] ss:$16 sps:$4 sm:$0xff]  }
 0x62a   :  { %11629 = vmatpush1.bf16.msra.mxu1 %v15158_v49  ;;  %10942 = vmatprep.subr.bf16.mxu0 %v15163_v6  ;;  %v15245_v49 = vld [vmem:[#allocation6 + $0x1fa0] ss:$16 sps:$4 sm:$0xff]   ;;  %v15248_v6 = vld [vmem:[#allocation6 + $0x1fa8] ss:$16 sps:$4 sm:$0xff]  }
 0x62b   :  { %11630 = vmatprep.subr.bf16.mxu1 %v15166_v24  ;;  %v15253_v24 = vld [vmem:[#allocation6 + $0x1fc4] ss:$16 sps:$4 sm:$0xff]  }
 0x62d   :  { %10943 = vmatpush1.bf16.msra.mxu0 %v15161_v46  ;;  %v15256_v46 = vld [vmem:[#allocation6 + $0x1fcc] ss:$16 sps:$4 sm:$0xff]  }
 0x62e   :  { %11631 = vmatpush1.bf16.msra.mxu1 %v15164_v31  ;;  %10955 = vmatprep.subr.bf16.mxu0 %v15169_v30  ;;  %v15251_v31 = vld [vmem:[#allocation6 + $0x1fc0] ss:$16 sps:$4 sm:$0xff]   ;;  %v15254_v30 = vld [vmem:[#allocation6 + $0x1fc8] ss:$16 sps:$4 sm:$0xff]  }
 0x62f   :  { %11643 = vmatprep.subr.bf16.mxu1 %v15172_v3  ;;  %v15259_v3 = vld [vmem:[#allocation6 + $0x1fe4] ss:$16 sps:$4 sm:$0xff]  }
 0x630   :  { %10945 = vmatmul.mubr.bf16.vlgmr.msra.gmra.mrb[32].mxu0 %v15886_v10 }
 0x631   :  { %11633 = vmatmul.mubr.bf16.vlgmr.msra.gmra.mrb[32].mxu1 %v15886_v10  ;;  %10956 = vmatpush1.bf16.msra.mxu0 %v15167_v18  ;;  %v15190_v10 = vld [vmem:[#allocation6 + $0x1e6c] ss:$16 sps:$4 sm:$0xff]  }
 0x632   :  { %10987 = vmatprep.mubr.bf16.mxu0 %v15892_v52  ;;  %11644 = vmatpush1.bf16.msra.mxu1 %v15170_v9  ;;  %v15262_v18 = vld [vmem:[#allocation6 + $0x1fec] ss:$16 sps:$4 sm:$0xff]   ;;  %v15257_v9 = vld [vmem:[#allocation6 + $0x1fe0] ss:$16 sps:$4 sm:$0xff]  }
 0x633   :  { %11675 = vmatprep.mubr.bf16.mxu1 %v15892_v52  ;;  %10957 = vmatprep.subr.bf16.mxu0 %v15175_v12  ;;  %v15191_v52 = vld [vmem:[#allocation6 + $0x1e80] ss:$16 sps:$4 sm:$0xff]   ;;  %v15260_v12 = vld [vmem:[#allocation6 + $0x1fe8] ss:$16 sps:$4 sm:$0xff]  }
 0x634   :  { %11645 = vmatprep.subr.bf16.mxu1 %v15178_v13  ;;  %v15265_v13 = vld [vmem:[#allocation9 + $0x4] ss:$8 sps:$4 sm:$0xff]  }
 0x635   :  { %10958 = vmatpush1.bf16.msra.mxu0 %v15173_v2  ;;  %v15263_v2 = vld [vmem:[#allocation9] ss:$8 sps:$4 sm:$0xff]  }
 0x636   :  { %11646 = vmatpush1.bf16.msra.mxu1 %v15176_v45  ;;  %10959 = vmatprep.subr.bf16.mxu0 %v15181_v17  ;;  %v15268_v45 = vld [vmem:[#allocation9 + $0x14] ss:$8 sps:$4 sm:$0xff]   ;;  %v15266_v17 = vld [vmem:[#allocation9 + $0x10] ss:$8 sps:$4 sm:$0xff]  }
 0x637   :  { %11647 = vmatprep.subr.bf16.mxu1 %v15184_v55  ;;  %v15271_v55 = vld [vmem:[#allocation9 + $0x24] ss:$8 sps:$4 sm:$0xff]  }
 0x639   :  { %10960 = vmatpush1.bf16.msra.mxu0 %v15179_v23  ;;  %v15269_v23 = vld [vmem:[#allocation9 + $0x20] ss:$8 sps:$4 sm:$0xff]  }
 0x63a   :  { %11648 = vmatpush1.bf16.msra.mxu1 %v15182_v1  ;;  %10961 = vmatprep.subr.bf16.mxu0 %v15187_v4  ;;  %v15274_v1 = vld [vmem:[#allocation9 + $0x34] ss:$8 sps:$4 sm:$0xff]   ;;  %v15272_v4 = vld [vmem:[#allocation9 + $0x30] ss:$8 sps:$4 sm:$0xff]  }
 0x63b   :  { %11649 = vmatprep.subr.bf16.mxu1 %v15190_v10  ;;  %v15277_v10 = vld [vmem:[#allocation9 + $0x44] ss:$8 sps:$4 sm:$0xff]  }
 0x63d   :  { %10962 = vmatpush1.bf16.msra.mxu0 %v15185_v8  ;;  %v15275_v8 = vld [vmem:[#allocation9 + $0x40] ss:$8 sps:$4 sm:$0xff]  }
 0x63e   :  { %11650 = vmatpush1.bf16.msra.mxu1 %v15188_v47  ;;  %10963 = vmatprep.subr.bf16.mxu0 %v15193_v61  ;;  %v15280_v47 = vld [vmem:[#allocation9 + $0x54] ss:$8 sps:$4 sm:$0xff]   ;;  %v15278_v61 = vld [vmem:[#allocation9 + $0x50] ss:$8 sps:$4 sm:$0xff]  }
 0x63f   :  { %11651 = vmatprep.subr.bf16.mxu1 %v15196_v28  ;;  %v15281_v28 = vld [vmem:[#allocation9 + $0x60] ss:$8 sps:$4 sm:$0xff]  }
 0x641   :  { %10964 = vmatpush1.bf16.msra.mxu0 %v15191_v52  ;;  %v15286_v52 = vld [vmem:[#allocation9 + $0x74] ss:$8 sps:$4 sm:$0xff]  }
 0x642   :  { %11652 = vmatpush1.bf16.msra.mxu1 %v15194_v19  ;;  %10965 = vmatprep.subr.bf16.mxu0 %v15199_v29  ;;  %v15284_v19 = vld [vmem:[#allocation9 + $0x70] ss:$8 sps:$4 sm:$0xff]   ;;  %v15289_v29 = vld [vmem:[#allocation9 + $0x84] ss:$8 sps:$4 sm:$0xff]  }
 0x643   :  { %11653 = vmatprep.subr.bf16.mxu1 %v15202_v48  ;;  %v15287_v48 = vld [vmem:[#allocation9 + $0x80] ss:$8 sps:$4 sm:$0xff]  }
 0x645   :  { %10966 = vmatpush1.bf16.msra.mxu0 %v15197_v39  ;;  %v15292_v39 = vld [vmem:[#allocation9 + $0x94] ss:$8 sps:$4 sm:$0xff]  }
 0x646   :  { %11654 = vmatpush1.bf16.msra.mxu1 %v15200_v11  ;;  %10967 = vmatprep.subr.bf16.mxu0 %v15205_v32  ;;  %v15290_v11 = vld [vmem:[#allocation9 + $0x90] ss:$8 sps:$4 sm:$0xff]   ;;  %v15295_v32 = vld [vmem:[#allocation9 + $0xa4] ss:$8 sps:$4 sm:$0xff]  }
 0x647   :  { %11655 = vmatprep.subr.bf16.mxu1 %v15208_v51  ;;  %v15293_v51 = vld [vmem:[#allocation9 + $0xa0] ss:$8 sps:$4 sm:$0xff]  }
 0x649   :  { %10968 = vmatpush1.bf16.msra.mxu0 %v15203_v63  ;;  %v15298_v63 = vld [vmem:[#allocation9 + $0xb4] ss:$8 sps:$4 sm:$0xff]  }
 0x64a   :  { %11656 = vmatpush1.bf16.msra.mxu1 %v15206_v50  ;;  %10969 = vmatprep.subr.bf16.mxu0 %v15211_v33  ;;  %v15296_v50 = vld [vmem:[#allocation9 + $0xb0] ss:$8 sps:$4 sm:$0xff]   ;;  %v15299_v33 = vld [vmem:[#allocation9 + $0xc0] ss:$8 sps:$4 sm:$0xff]  }
 0x64b   :  { %11657 = vmatprep.subr.bf16.mxu1 %v15214_v27  ;;  %v15301_v27 = vld [vmem:[#allocation9 + $0xc4] ss:$8 sps:$4 sm:$0xff]  }
 0x64d   :  { %10970 = vmatpush1.bf16.msra.mxu0 %v15209_v14  ;;  %v15304_v14 = vld [vmem:[#allocation9 + $0xd4] ss:$8 sps:$4 sm:$0xff]  }
 0x64e   :  { %11658 = vmatpush1.bf16.msra.mxu1 %v15212_v34  ;;  %10971 = vmatprep.subr.bf16.mxu0 %v15217_v26  ;;  %v15302_v34 = vld [vmem:[#allocation9 + $0xd0] ss:$8 sps:$4 sm:$0xff]   ;;  %v15307_v26 = vld [vmem:[#allocation9 + $0xe4] ss:$8 sps:$4 sm:$0xff]  }
 0x64f   :  { %11659 = vmatprep.subr.bf16.mxu1 %v15220_v0  ;;  %v15305_v0 = vld [vmem:[#allocation9 + $0xe0] ss:$8 sps:$4 sm:$0xff]  }
 0x651   :  { %10972 = vmatpush1.bf16.msra.mxu0 %v15215_v35  ;;  %v15310_v35 = vld [vmem:[#allocation9 + $0xf4] ss:$8 sps:$4 sm:$0xff]  }
 0x652   :  { %11660 = vmatpush1.bf16.msra.mxu1 %v15218_v36  ;;  %10973 = vmatprep.subr.bf16.mxu0 %v15223_v5  ;;  %v15308_v36 = vld [vmem:[#allocation9 + $0xf0] ss:$8 sps:$4 sm:$0xff]   ;;  %v5168_v5 = vld [vmem:[#allocation7] sm:$0xf] }
 0x653   :  { %11661 = vmatprep.subr.bf16.mxu1 %v15226_v25  ;;  %v5173_v25 = vrot.slane %v5168_v5, %v15665_v54 }
 0x655   :  { %10974 = vmatpush1.bf16.msra.mxu0 %v15221_v16  ;;  %v5181_v16 = vrot.slane %v5168_v5, %v15668_v57 }
 0x656   :  { %11662 = vmatpush1.bf16.msra.mxu1 %v15224_v22  ;;  %10975 = vmatprep.subr.bf16.mxu0 %v15229_v38  ;;  %v5177_v22 = vrot.slane %v5168_v5, %v15671_v58  ;;  %v5185_v38 = vrot.slane %v5168_v5, %v15674_v60 }
 0x657   :  { %11663 = vmatprep.subr.bf16.mxu1 %v15232_v62 }
 0x659   :  { %10976 = vmatpush1.bf16.msra.mxu0 %v15227_v40 }
 0x65a   :  { %11664 = vmatpush1.bf16.msra.mxu1 %v15230_v41  ;;  %10977 = vmatprep.subr.bf16.mxu0 %v15235_v56 }
 0x65b   :  { %11665 = vmatprep.subr.bf16.mxu1 %v15238_v37 }
 0x65d   :  { %10978 = vmatpush1.bf16.msra.mxu0 %v15233_v20 }
 0x65e   :  { %11666 = vmatpush1.bf16.msra.mxu1 %v15236_v7  ;;  %10979 = vmatprep.subr.bf16.mxu0 %v15241_v42 }
 0x65f   :  { %11667 = vmatprep.subr.bf16.mxu1 %v15244_v43 }
 0x661   :  { %10980 = vmatpush1.bf16.msra.mxu0 %v15239_v21 }
 0x662   :  { %11668 = vmatpush1.bf16.msra.mxu1 %v15242_v53  ;;  %10981 = vmatprep.subr.bf16.mxu0 %v15247_v44 }
 0x663   :  { %11669 = vmatprep.subr.bf16.mxu1 %v15250_v15 }
 0x665   :  { %10982 = vmatpush1.bf16.msra.mxu0 %v15245_v49 }
 0x666   :  { %11670 = vmatpush1.bf16.msra.mxu1 %v15248_v6  ;;  %10983 = vmatprep.subr.bf16.mxu0 %v15253_v24 }
 0x667   :  { %11671 = vmatprep.subr.bf16.mxu1 %v15256_v46 }
 0x669   :  { %10984 = vmatpush1.bf16.msra.mxu0 %v15251_v31 }
 0x66a   :  { %11672 = vmatpush1.bf16.msra.mxu1 %v15254_v30  ;;  %10985 = vmatprep.subr.bf16.mxu0 %v15259_v3 }
 0x66b   :  { %11673 = vmatprep.subr.bf16.mxu1 %v15262_v18 }
 0x66d   :  { %10986 = vmatpush1.bf16.msra.mxu0 %v15257_v9 }
 0x66e   :  { %11674 = vmatpush1.bf16.msra.mxu1 %v15260_v12  ;;  %11916 = vmatprep.subr.bf16.mxu0 %v15265_v13  ;;  %v11686_v12 = vld [vmem:[%s15999_s1] sm:$0xff]  ;;  %v11687_v13 = vld [vmem:[%s15999_s1 + $0x8] sm:$0xff] }
 0x670   :  { %10988 = vmatmul.mubr.bf16.vlgmr.msra.gmra.mrb[32].mxu0 %v15888_v59 }
 0x671   :  { %11676 = vmatmul.mubr.bf16.vlgmr.msra.gmra.mrb[32].mxu1 %v15888_v59  ;;  %11917 = vmatpush1.bf16.msra.mxu0 %v15263_v2  ;;  %v15283_v59 = vld [vmem:[#allocation9 + $0x64] ss:$8 sps:$4 sm:$0xff]  }
 0x672   :  { %11918 = vmatprep.subr.bf16.mxu0 %v15268_v45  ;;  %v11688_v45 = vld [vmem:[%s15999_s1 + $0x10] sm:$0xff] }
 0x675   :  { %11919 = vmatpush1.bf16.msra.mxu0 %v15266_v17 }
 0x676   :  { %11920 = vmatprep.subr.bf16.mxu0 %v15271_v55  ;;  %v11689_v55 = vld [vmem:[%s15999_s1 + $0x18] sm:$0xff] }
 0x679   :  { %11921 = vmatpush1.bf16.msra.mxu0 %v15269_v23 }
 0x67a   :  { %11922 = vmatprep.subr.bf16.mxu0 %v15274_v1 }
 0x67d   :  { %11923 = vmatpush1.bf16.msra.mxu0 %v15272_v4 }
 0x67e   :  { %11924 = vmatprep.subr.bf16.mxu0 %v15277_v10 }
 0x681   :  { %11925 = vmatpush1.bf16.msra.mxu0 %v15275_v8 }
 0x682   :  { %11926 = vmatprep.subr.bf16.mxu0 %v15280_v47 }
 0x685   :  { %11927 = vmatpush1.bf16.msra.mxu0 %v15278_v61 }
 0x686   :  { %11928 = vmatprep.subr.bf16.mxu0 %v15283_v59 }
 0x689   :  { %11929 = vmatpush1.bf16.msra.mxu0 %v15281_v28 }
 0x68a   :  { %11930 = vmatprep.subr.bf16.mxu0 %v15286_v52 }
 0x68d   :  { %11931 = vmatpush1.bf16.msra.mxu0 %v15284_v19 }
 0x68e   :  { %11932 = vmatprep.subr.bf16.mxu0 %v15289_v29 }
 0x691   :  { %11933 = vmatpush1.bf16.msra.mxu0 %v15287_v48  ;;  %v11744_v48 = vld [vmem:[#allocation10] sm:$0x3] }
 0x692   :  { %11934 = vmatprep.subr.bf16.mxu0 %v15292_v39  ;;  %v11749_v39 = vrot.slane %v11744_v48, %v15665_v54 }
 0x695   :  { %11935 = vmatpush1.bf16.msra.mxu0 %v15290_v11  ;;  %v11753_v11 = vrot.slane %v11744_v48, %v15671_v58 }
 0x696   :  { %11936 = vmatprep.subr.bf16.mxu0 %v15295_v32 }
 0x699   :  { %11937 = vmatpush1.bf16.msra.mxu0 %v15293_v51 }
 0x69a   :  { %11938 = vmatprep.subr.bf16.mxu0 %v15298_v63 }
 0x69d   :  { %11939 = vmatpush1.bf16.msra.mxu0 %v15296_v50 }
 0x69e   :  { %11940 = vmatprep.subr.bf16.mxu0 %v15301_v27 }
 0x6a1   :  { %11941 = vmatpush1.bf16.msra.mxu0 %v15299_v33 }
 0x6a2   :  { %11942 = vmatprep.subr.bf16.mxu0 %v15304_v14 }
 0x6a5   :  { %11943 = vmatpush1.bf16.msra.mxu0 %v15302_v34 }
 0x6a6   :  { %11944 = vmatprep.subr.bf16.mxu0 %v15307_v26 }
 0x6a9   :  { %11945 = vmatpush1.bf16.msra.mxu0 %v15305_v0 }
 0x6aa   :  { %11946 = vmatprep.subr.bf16.mxu0 %v15310_v35 }
 0x6ad   :  { %11947 = vmatpush1.bf16.msra.mxu0 %v15308_v36 }
 0x743   :  { %v10989_v62 = vpop.f32.mrb[32].mxu0 }
 0x744   :  { %v13585_v40 = vadd.f32 %v10989_v62, %v5173_v25  ;;  %v11677_v41 = vpop.f32.mrb[32].mxu1  ;;  %v10991_v56 = vpop.f32.mrb[33].mxu0 }
 0x745   :  { %v13589_v37 = vadd.f32 %v11677_v41, %v5181_v16  ;;  %v13586_v20 = vadd.f32 %v10991_v56, %v5177_v22  ;;  %v11679_v7 = vpop.f32.mrb[33].mxu1  ;;  %v10993_v42 = vpop.f32.mrb[34].mxu0 }
 0x746   :  { %11987 = vst [vmem:[%s16007_s9] sm:$0xff] %v13585_v40  ;;  %v13590_v43 = vadd.f32 %v11679_v7, %v5185_v38  ;;  %v13587_v21 = vadd.f32 %v10993_v42, %v5173_v25  ;;  %v11681_v53 = vpop.f32.mrb[34].mxu1  ;;  %v10995_v57 = vpop.f32.mrb[35].mxu0 }
 0x747   :  { %v11690_v44 = vmul.f32 0.5, %v13589_v37  ;;  %11991 = vst [vmem:[%s16008_s10] sm:$0xff] %v13589_v37  ;;  %11988 = vst [vmem:[%s16007_s9 + $0x8] sm:$0xff] %v13586_v20  ;;  %v13591_v60 = vadd.f32 %v11681_v53, %v5181_v16  ;;  %v13588_v15 = vadd.f32 %v10995_v57, %v5177_v22  ;;  %v11683_v49 = vpop.f32.mrb[35].mxu1 }
 0x748   :  { %v11691_v6 = vmul.f32 0.5, %v13590_v43  ;;  %11992 = vst [vmem:[%s16008_s10 + $0x8] sm:$0xff] %v13590_v43  ;;  %11989 = vst [vmem:[%s16007_s9 + $0x10] sm:$0xff] %v13587_v21  ;;  %v13592_v24 = vadd.f32 %v11683_v49, %v5185_v38 }
 0x749   :  { %v11694_v46 = vmul.f32 1.442695, %v11690_v44  ;;  %v11692_v31 = vmul.f32 0.5, %v13591_v60  ;;  %11993 = vst [vmem:[%s16008_s10 + $0x10] sm:$0xff] %v13591_v60  ;;  %11990 = vst [vmem:[%s16007_s9 + $0x18] sm:$0xff] %v13588_v15 }
 0x74a   :  { %v11696_v30 = vmul.f32 1.442695, %v11691_v6  ;;  %v11693_v3 = vmul.f32 0.5, %v13592_v24  ;;  %11994 = vst [vmem:[%s16008_s10 + $0x18] sm:$0xff] %v13592_v24 }
 0x74b   :  { %15311 = vpow2.f32 %v11694_v46  ;;  %v11698_v18 = vmul.f32 1.442695, %v11692_v31 }
 0x74c   :  { %15313 = vpow2.f32 %v11696_v30  ;;  %v11700_v9 = vmul.f32 1.442695, %v11693_v3 }
 0x74d   :  { %15315 = vpow2.f32 %v11698_v18 }
 0x74e   :  { %15317 = vpow2.f32 %v11700_v9 }
 0x755   :  { %v15312_v2 = vpop.eup %15311 }
 0x756   :  { %v15314_v17 = vpop.eup %15313  ;;  %v11702_v23 = vmul.f32 %v15312_v2, %v11686_v12 }
 0x757   :  { %v15316_v1 = vpop.eup %15315  ;;  %v11703_v4 = vmul.f32 %v15314_v17, %v11687_v13 }
 0x758   :  { %v15318_v10 = vpop.eup %15317  ;;  %v11704_v8 = vmul.f32 %v15316_v1, %v11688_v45  ;;  %v11706_v47 = vadd.f32 %v13585_v40, %v11702_v23 }
 0x759   :  { %v11705_v61 = vmul.f32 %v15318_v10, %v11689_v55  ;;  %v11707_v59 = vadd.f32 %v13586_v20, %v11703_v4 }
 0x75a   :  { %v11708_v28 = vadd.f32 %v13587_v21, %v11704_v8 }
 0x75b   :  { %v11709_v52 = vadd.f32 %v13588_v15, %v11705_v61 }
 0x75c   :  { %v11710_v19 = vpack.c.bf16 %v11708_v28, %v11706_v47 }
 0x75d   :  { %v11711_v29 = vpack.c.bf16 %v11709_v52, %v11707_v59 }
 0x75f   :  { %11948 = vmatprep.mubr.bf16.mxu0 %v11711_v29 }
 0x760   :  { %11949 = vmatmul.mubr.bf16.vlgmr.msra.gmra.mrb[36].mxu0 %v11710_v19 }
 0x833   :  { %v11950_v32 = vpop.f32.mrb[36].mxu0 }
 0x834   :  { %v11951_v51 = vadd.f32 %v11950_v32, %v11749_v39  ;;  %v11952_v63 = vpop.f32.mrb[37].mxu0 }
 0x835   :  { %v11953_v50 = vadd.f32 %v11952_v63, %v11753_v11  ;;  %v11954_v33 = vpop.f32.mrb[38].mxu0 }
 0x836   :  { %v13581_v27 = vmul.f32 -1.442695, %v11951_v51  ;;  %v11955_v14 = vadd.f32 %v11954_v33, %v11749_v39  ;;  %v11956_v34 = vpop.f32.mrb[39].mxu0 }
 0x837   :  { %v13582_v26 = vmul.f32 -1.442695, %v11953_v50  ;;  %v11957_v0 = vadd.f32 %v11956_v34, %v11753_v11 }
 0x838   :  { %15319 = vpow2.f32 %v13581_v27  ;;  %v13583_v35 = vmul.f32 -1.442695, %v11955_v14 }
 0x839   :  { %15321 = vpow2.f32 %v13582_v26  ;;  %v13584_v36 = vmul.f32 -1.442695, %v11957_v0 }
 0x83a   :  { %15323 = vpow2.f32 %v13583_v35 }
 0x83b   :  { %15325 = vpow2.f32 %v13584_v36 }
 0x842   :  { %v15320_v5 = vpop.eup %15319 }
 0x843   :  { %v15322_v54 = vpop.eup %15321  ;;  %v11971_v25 = vadd.f32 1.0, %v15320_v5 }
 0x844   :  { %v15324_v58 = vpop.eup %15323  ;;  %v11972_v16 = vadd.f32 1.0, %v15322_v54 }
 0x845   :  { %v15326_v22 = vpop.eup %15325  ;;  %15327 = vrcp.f32 %v11971_v25  ;;  %v11973_v38 = vadd.f32 1.0, %v15324_v58 }
 0x846   :  { %15329 = vrcp.f32 %v11972_v16  ;;  %v11974_v62 = vadd.f32 1.0, %v15326_v22 }
 0x847   :  { %15331 = vrcp.f32 %v11973_v38 }
 0x848   :  { %15333 = vrcp.f32 %v11974_v62 }
 0x84f   :  { %v15328_v40 = vpop.eup %15327 }
 0x850   :  { %v15330_v41 = vpop.eup %15329  ;;  %11983 = vst [vmem:[%s16006_s8] sm:$0xff] %v15328_v40 }
 0x851   :  { %v15332_v56 = vpop.eup %15331  ;;  %11984 = vst [vmem:[%s16006_s8 + $0x8] sm:$0xff] %v15330_v41 }
 0x852   :  { %v15334_v37 = vpop.eup %15333  ;;  %11985 = vst [vmem:[%s16006_s8 + $0x10] sm:$0xff] %v15332_v56 }
 0x853   :  { %11986 = vst [vmem:[%s16006_s8 + $0x18] sm:$0xff] %v15334_v37 }
 0x854   :  { %12007 = vsyncpa [#allocation3], 1 }
 0x855   :  { %12008 = vsyncpa [#allocation5], 1 }
 0x856   :  { %12009 = vsyncpa [#allocation8], 1 }
 0x857   :  { %12010 = vsyncpa [#allocation11], 1 }

</bundles_post_ra>
